<compile_context>
chip_gen: v7x
topology: tpu7x:2x2x1
jax: 0.10.0
libtpu: 0.0.40
codegen_flags: <defaults>
</compile_context>

<pallas_src>
import jax
import jax.numpy as jnp
from jax.experimental import pallas as pl
from jax.experimental.pallas import tpu as pltpu


def _round_up(x, m):
    return ((x + m - 1) // m) * m


# ----------------------------------------------------------------------------
# Pallas kernels
# ----------------------------------------------------------------------------

def _conv_gemm_kernel(w_ref, x_ref, b_ref, o_ref):
    """o = relu(w @ x + b), lane-dense output.

    w: (Cout, 9*Cin) bf16, x: (9*Cin, TN) bf16 im2col patches (transposed),
    b: (Cout, 1) f32, o: (Cout, TN) bf16.  Grid axis 0 tiles H*W (lane axis).
    """
    acc = jnp.dot(w_ref[...], x_ref[...], preferred_element_type=jnp.float32)
    o_ref[...] = jnp.maximum(acc + b_ref[...], 0.0).astype(o_ref.dtype)


def _maxpool_kernel(x_ref, o_ref):
    """x: (k*k, C, Ho*Wo) -> o: (C, Ho*Wo) via max over the window axis."""
    r = x_ref[0]
    for i in range(1, x_ref.shape[0]):
        r = jnp.maximum(r, x_ref[i])
    o_ref[...] = r


def _head_kernel(x_ref, w1_ref, b1_ref, w2_ref, b2_ref, o_ref, acc_ref):
    """Fused fc1 (K-tiled) + classifier + log_softmax.  Grid axis 0: K tiles."""
    @pl.when(pl.program_id(0) == 0)
    def _():
        acc_ref[...] = jnp.zeros_like(acc_ref)

    acc_ref[...] += jnp.dot(x_ref[...], w1_ref[...],
                            preferred_element_type=jnp.float32)

    @pl.when(pl.program_id(0) == pl.num_programs(0) - 1)
    def _():
        h = acc_ref[...] + b1_ref[...]                             # (1, 128) f32
        logits = jnp.dot(h, w2_ref[...],
                         preferred_element_type=jnp.float32) + b2_ref[...]
        m = jnp.max(logits, axis=-1, keepdims=True)
        lse = jnp.log(jnp.sum(jnp.exp(logits - m), axis=-1, keepdims=True)) + m
        o_ref[...] = logits - lse


# ----------------------------------------------------------------------------
# Wrappers (JAX glue + pallas_call); all traced under jit
# ----------------------------------------------------------------------------

_CONV_TN = 2048    # lane tile of the conv GEMM (multiple of 128)
_FC_TILE_K = 2048  # K tile of the big fc1


def _weight_spec(block_shape, index_map, nbuf):
    """BlockSpec with deeper pipelining when supported (v6e feedback)."""
    if nbuf > 2:
        try:
            return pl.BlockSpec(block_shape, index_map,
                                pipeline_mode=pl.Buffered(nbuf))
        except Exception:
            pass
    return pl.BlockSpec(block_shape, index_map)


def conv3x3_relu(x, H, W, wm, b):
    """x: (Cin, H*W), wm: (Cout, 9*Cin) bf16, b: (Cout,1) f32 -> (Cout, H*W) bf16."""
    Cin = x.shape[0]
    Cout = wm.shape[0]
    HW = H * W
    # Transposed im2col -> patches (9*Cin, H*W) so the GEMM output is lane-dense.
    # TODO(synk): fuse im2col into the kernel (halo DMA) to drop the 9x HBM blowup.
    xp = jnp.pad(x.reshape(Cin, H, W), ((0, 0), (1, 1), (1, 1)))
    taps = [xp[:, dy:dy + H, dx:dx + W].reshape(Cin, HW)
            for dy in range(3) for dx in range(3)]
    patches = jnp.concatenate(taps, axis=0)                    # (9*Cin, HW)
    tn = _CONV_TN if HW > _CONV_TN else _round_up(HW, 128)
    HWp = _round_up(HW, tn)
    if HWp != HW:                                              # zero lanes, sliced off below
        patches = jnp.pad(patches, ((0, 0), (0, HWp - HW)))
    patches = patches.astype(jnp.bfloat16)
    K9 = 9 * Cin
    out = pl.pallas_call(
        _conv_gemm_kernel,
        out_shape=jax.ShapeDtypeStruct((Cout, HWp), jnp.bfloat16),
        grid=(HWp // tn,),
        in_specs=[pl.BlockSpec((Cout, K9), lambda j: (0, 0)),
                  pl.BlockSpec((K9, tn), lambda j: (0, j)),
                  pl.BlockSpec((Cout, 1), lambda j: (0, 0))],
        out_specs=pl.BlockSpec((Cout, tn), lambda j: (0, j)),
        compiler_params=pltpu.CompilerParams(
            dimension_semantics=("parallel",)),
    )(wm, patches, b)
    return out[:, :HW]


def maxpool2d(x, H, W, k):
    """x: (C, H*W) -> (C, (H//k)*(W//k)); lane-dense window max."""
    C = x.shape[0]
    Ho, Wo = H // k, W // k
    xr = (x.reshape(C, Ho, k, Wo, k)
           .transpose(2, 4, 0, 1, 3)
           .reshape(k * k, C, Ho * Wo))
    return pl.pallas_call(
        _maxpool_kernel,
        out_shape=jax.ShapeDtypeStruct((C, Ho * Wo), x.dtype),
        grid=(1,),
        in_specs=[pl.BlockSpec((k * k, C, Ho * Wo), lambda i: (0, 0, 0))],
        out_specs=pl.BlockSpec((C, Ho * Wo), lambda i: (0, 0)),
    )(xr)


def head(flat, w1, b1, w2, b2):
    """Fused fc1 + classifier + log_softmax.  flat: (1, K) -> (1, 2) f32."""
    K = flat.shape[1]
    Kp = w1.shape[0]                 # weight pre-padded at init
    if Kp != K:                      # zero-padded K contributes nothing
        flat = jnp.pad(flat, ((0, 0), (0, Kp - K)))
    flat = flat.astype(jnp.bfloat16)
    tile_k = _FC_TILE_K if (Kp > _FC_TILE_K and Kp % _FC_TILE_K == 0) else Kp
    nk = Kp // tile_k
    N = w1.shape[1]
    return pl.pallas_call(
        _head_kernel,
        out_shape=jax.ShapeDtypeStruct((1, 2), jnp.float32),
        grid=(nk,),
        in_specs=[pl.BlockSpec((1, tile_k), lambda kk: (0, kk)),
                  _weight_spec((tile_k, N), lambda kk: (kk, 0),
                               3 if nk >= 3 else 2),
                  pl.BlockSpec((1, N), lambda kk: (0, 0)),
                  pl.BlockSpec((N, 2), lambda kk: (0, 0)),
                  pl.BlockSpec((1, 2), lambda kk: (0, 0))],
        out_specs=pl.BlockSpec((1, 2), lambda kk: (0, 0)),
        scratch_shapes=[pltpu.VMEM((1, N), jnp.float32)],
        compiler_params=pltpu.CompilerParams(
            dimension_semantics=("arbitrary",)),
    )(flat, w1, b1, w2, b2)


# ----------------------------------------------------------------------------
# Model forwards (jitted; only the label branch is eager)
# ----------------------------------------------------------------------------

def _normal_vs_infected(x_flat, p):
    x = conv3x3_relu(x_flat, 150, 150, p["c1_w"], p["c1_b"])   # (8, 22500)
    x = conv3x3_relu(x, 150, 150, p["c2_w"], p["c2_b"])        # (8, 22500)
    x = maxpool2d(x, 150, 150, 2)                              # (8, 5625)
    x = conv3x3_relu(x, 75, 75, p["c3_w"], p["c3_b"])          # (16, 5625)
    x = conv3x3_relu(x, 75, 75, p["c4_w"], p["c4_b"])          # (16, 5625)
    x = maxpool2d(x, 75, 75, 3)                                # (16, 625)
    x = conv3x3_relu(x, 25, 25, p["c5_w"], p["c5_b"])          # (32, 625)
    x = conv3x3_relu(x, 25, 25, p["c6_w"], p["c6_b"])          # (32, 625)
    x = maxpool2d(x, 25, 25, 5)                                # (32, 25)
    flat = x.reshape(1, -1)                                    # CHW flatten -> (1, 800)
    return head(flat, p["fc1_w"], p["fc1_b"], p["cls_w"], p["cls_b"])


def _noncovid_vs_covid(x_flat, p):
    x = conv3x3_relu(x_flat, 150, 150, p["c1_w"], p["c1_b"])   # (8, 22500)
    x = conv3x3_relu(x, 150, 150, p["c2_w"], p["c2_b"])        # (8, 22500)
    x = maxpool2d(x, 150, 150, 2)                              # (8, 5625)
    flat = x.reshape(1, -1)                                    # CHW flatten -> (1, 45000)
    return head(flat, p["fc1_w"], p["fc1_b"], p["cls_w"], p["cls_b"])


normal_vs_infected_forward = jax.jit(_normal_vs_infected)
noncovid_vs_covid_forward = jax.jit(_noncovid_vs_covid)


def two_binary_classifiers_forward(x_nchw, params):
    # x_nchw: (1, 1, 150, 150) f32 NCHW, like PyTorch.
    x_flat = x_nchw.reshape(1, -1)                             # (Cin=1, H*W)
    lp1 = normal_vs_infected_forward(x_flat, params["bc1"])
    label = int(jnp.argmax(lp1, axis=1)[0])                    # eager host control flow
    if label == 1:
        lp2 = noncovid_vs_covid_forward(x_flat, params["bc2"])
        label = int(jnp.argmax(lp2, axis=1)[0]) + 1
    return jnp.zeros((1, 3), jnp.float32).at[0, label].set(1.0)


# ----------------------------------------------------------------------------
# Deterministic synthetic parameters (PyTorch shapes, transformed once at init)
# ----------------------------------------------------------------------------

def _conv_w(key, cout, cin):
    std = (2.0 / (cin * 9)) ** 0.5            # kaiming-normal-like
    return std * jax.random.normal(key, (cout, cin, 3, 3), jnp.float32)


def _conv_b(key, cout, cin):
    bound = (1.0 / (cin * 9)) ** 0.5
    return jax.random.uniform(key, (cout,), jnp.float32, -bound, bound)


def _lin_w(key, nout, nin):
    bound = (1.0 / nin) ** 0.5
    return jax.random.uniform(key, (nout, nin), jnp.float32, -bound, bound)


def _lin_b(key, nout, nin):
    bound = (1.0 / nin) ** 0.5
    return jax.random.uniform(key, (nout,), jnp.float32, -bound, bound)


def _prep_conv(w, b):
    """(Cout,Cin,3,3) torch layout -> (Cout, 9*Cin) bf16 + (Cout,1) f32 bias."""
    cout, cin = w.shape[0], w.shape[1]
    wm = jnp.transpose(w, (0, 2, 3, 1)).reshape(cout, 9 * cin).astype(jnp.bfloat16)
    return wm, b.reshape(cout, 1).astype(jnp.float32)


def _prep_fc1(w, b):
    """(128,K) torch layout -> (Kpad,128) bf16 (pre-transposed, K zero-padded)."""
    k = w.shape[1]
    kp = _round_up(k, _FC_TILE_K) if k > _FC_TILE_K else k
    wt = jnp.transpose(w).astype(jnp.bfloat16)
    if kp != k:
        wt = jnp.pad(wt, ((0, kp - k), (0, 0)))
    return wt, b.reshape(1, -1).astype(jnp.float32)


def _prep_cls(w, b):
    return jnp.transpose(w).astype(jnp.float32), b.reshape(1, -1).astype(jnp.float32)


def init_params(key):
    ks = iter(jax.random.split(key, 32))

    def conv(cout, cin):
        return _prep_conv(_conv_w(next(ks), cout, cin), _conv_b(next(ks), cout, cin))

    # bc1: Normal_VS_Infected (Linear biases are zero per nn.init.constant_)
    c1 = conv(8, 1); c2 = conv(8, 8); c3 = conv(16, 8)
    c4 = conv(16, 16); c5 = conv(32, 16); c6 = conv(32, 32)
    f1 = _prep_fc1(_lin_w(next(ks), 128, 5 * 5 * 32), jnp.zeros((128,), jnp.float32))
    cl = _prep_cls(_lin_w(next(ks), 2, 128), jnp.zeros((2,), jnp.float32))
    bc1 = dict(c1_w=c1[0], c1_b=c1[1], c2_w=c2[0], c2_b=c2[1],
               c3_w=c3[0], c3_b=c3[1], c4_w=c4[0], c4_b=c4[1],
               c5_w=c5[0], c5_b=c5[1], c6_w=c6[0], c6_b=c6[1],
               fc1_w=f1[0], fc1_b=f1[1], cls_w=cl[0], cls_b=cl[1])

    # bc2: NonCovid_VS_Covid (default PyTorch init)
    d1 = conv(8, 1); d2 = conv(8, 8)
    f1b = _prep_fc1(_lin_w(next(ks), 128, 75 * 75 * 8),
                    _lin_b(next(ks), 128, 75 * 75 * 8))
    clb = _prep_cls(_lin_w(next(ks), 2, 128), _lin_b(next(ks), 2, 128))
    bc2 = dict(c1_w=d1[0], c1_b=d1[1], c2_w=d2[0], c2_b=d2[1],
               fc1_w=f1b[0], fc1_b=f1b[1], cls_w=clb[0], cls_b=clb[1])
    return dict(bc1=bc1, bc2=bc2)


# ----------------------------------------------------------------------------

if __name__ == "__main__":
    key = jax.random.PRNGKey(0)
    pkey, xkey = jax.random.split(key)
    params = init_params(pkey)

    # Input spatial size 150x150 is forced by the FC dims (5*5*32 and 75*75*8);
    # batch must be 1 (the PyTorch forward calls int(...) on the argmax).
    x = jax.random.normal(xkey, (1, 1, 150, 150), jnp.float32)

    out = two_binary_classifiers_forward(x, params)
    out = jax.block_until_ready(out)
    assert out.shape == (1, 3)
    assert float(jnp.sum(out)) == 1.0
    print("KERNEL_OK")
</pallas_src>

<mosaic_0001>
module attributes {stable_mosaic.version = 11 : i64} {
  func.func @_conv_gemm_kernel(%arg0: i32, %arg1: memref<8x9xbf16, #tpu.memory_space<vmem>>, %arg2: memref<9x2048xbf16, #tpu.memory_space<vmem>>, %arg3: memref<8x1xf32, #tpu.memory_space<vmem>>, %arg4: memref<8x2048xbf16, #tpu.memory_space<vmem>>) attributes {dimension_semantics = [#tpu.dimension_semantics<parallel>], iteration_bounds = array<i64: 11>, scalar_prefetch = 0 : i64, scratch_operands = 0 : i64, tpu.core_type = #tpu.core_type<tc>, window_params = [{pipeline_mode = #tpu.pipeline_mode<synchronous>, transform_indices = @transform_0, window_bounds = array<i64: 8, 9>}, {transform_indices = @transform_1, window_bounds = array<i64: 9, 2048>}, {pipeline_mode = #tpu.pipeline_mode<synchronous>, transform_indices = @transform_2, window_bounds = array<i64: 8, 1>}, {transform_indices = @transform_3, window_bounds = array<i64: 8, 2048>}]} {
    %c0 = arith.constant 0 : index
    %c0_0 = arith.constant 0 : index
    %0 = vector.load %arg1[%c0, %c0_0] : memref<8x9xbf16, #tpu.memory_space<vmem>>, vector<8x9xbf16>
    %c0_1 = arith.constant 0 : index
    %c0_2 = arith.constant 0 : index
    %1 = vector.load %arg2[%c0_1, %c0_2] : memref<9x2048xbf16, #tpu.memory_space<vmem>>, vector<9x2048xbf16>
    %cst = arith.constant dense<0.000000e+00> : vector<8x2048xf32>
    %2 = tpu.matmul %0, %1, %cst {dimension_numbers = #tpu.dot_dimension_numbers<[1], [0], [0], [1], [0, 0, 1, 1], [], []>} : vector<8x9xbf16>, vector<9x2048xbf16>, vector<8x2048xf32> -> vector<8x2048xf32>
    %c0_3 = arith.constant 0 : index
    %c0_4 = arith.constant 0 : index
    %3 = vector.load %arg3[%c0_3, %c0_4] : memref<8x1xf32, #tpu.memory_space<vmem>>, vector<8x1xf32>
    %4 = vector.broadcast %3 : vector<8x1xf32> to vector<8x2048xf32>
    %5 = arith.addf %2, %4 : vector<8x2048xf32>
    %cst_5 = arith.constant 0.000000e+00 : f32
    %6 = vector.broadcast %cst_5 : f32 to vector<8x2048xf32>
    %7 = arith.maximumf %5, %6 : vector<8x2048xf32>
    %8 = arith.truncf %7 : vector<8x2048xf32> to vector<8x2048xbf16>
    %c0_6 = arith.constant 0 : index
    %c0_7 = arith.constant 0 : index
    %9 = vector.load %arg4[%c0_6, %c0_7] : memref<8x2048xbf16, #tpu.memory_space<vmem>>, vector<8x2048xbf16>
    tpu.vector_store %arg4[%c0_6, %c0_7], %8 {strides = array<i32>} : memref<8x2048xbf16, #tpu.memory_space<vmem>>, vector<8x2048xbf16>,
    return
  }
  func.func @transform_0(%arg0: i32) -> (i32, i32) {
    %c0_i32 = arith.constant 0 : i32
    %c0_i32_0 = arith.constant 0 : i32
    %c0_i32_1 = arith.constant 0 : i32
    return %c0_i32, %c0_i32_0 : i32, i32
  }
  func.func @transform_1(%arg0: i32) -> (i32, i32) {
    %c0_i32 = arith.constant 0 : i32
    %c0_i32_0 = arith.constant 0 : i32
    return %c0_i32, %arg0 : i32, i32
  }
  func.func @transform_2(%arg0: i32) -> (i32, i32) {
    %c0_i32 = arith.constant 0 : i32
    %c0_i32_0 = arith.constant 0 : i32
    %c0_i32_1 = arith.constant 0 : i32
    return %c0_i32, %c0_i32_0 : i32, i32
  }
  func.func @transform_3(%arg0: i32) -> (i32, i32) {
    %c0_i32 = arith.constant 0 : i32
    %c0_i32_0 = arith.constant 0 : i32
    return %c0_i32, %arg0 : i32, i32
  }
}

module attributes {stable_mosaic.version = 11 : i64} {
  func.func @_conv_gemm_kernel(%arg0: i32, %arg1: memref<8x72xbf16, #tpu.memory_space<vmem>>, %arg2: memref<72x2048xbf16, #tpu.memory_space<vmem>>, %arg3: memref<8x1xf32, #tpu.memory_space<vmem>>, %arg4: memref<8x2048xbf16, #tpu.memory_space<vmem>>) attributes {dimension_semantics = [#tpu.dimension_semantics<parallel>], iteration_bounds = array<i64: 11>, scalar_prefetch = 0 : i64, scratch_operands = 0 : i64, tpu.core_type = #tpu.core_type<tc>, window_params = [{pipeline_mode = #tpu.pipeline_mode<synchronous>, transform_indices = @transform_0, window_bounds = array<i64: 8, 72>}, {transform_indices = @transform_1, window_bounds = array<i64: 72, 2048>}, {pipeline_mode = #tpu.pipeline_mode<synchronous>, transform_indices = @transform_2, window_bounds = array<i64: 8, 1>}, {transform_indices = @transform_3, window_bounds = array<i64: 8, 2048>}]} {
    %c0 = arith.constant 0 : index
    %c0_0 = arith.constant 0 : index
    %0 = vector.load %arg1[%c0, %c0_0] : memref<8x72xbf16, #tpu.memory_space<vmem>>, vector<8x72xbf16>
    %c0_1 = arith.constant 0 : index
    %c0_2 = arith.constant 0 : index
    %1 = vector.load %arg2[%c0_1, %c0_2] : memref<72x2048xbf16, #tpu.memory_space<vmem>>, vector<72x2048xbf16>
    %cst = arith.constant dense<0.000000e+00> : vector<8x2048xf32>
    %2 = tpu.matmul %0, %1, %cst {dimension_numbers = #tpu.dot_dimension_numbers<[1], [0], [0], [1], [0, 0, 1, 1], [], []>} : vector<8x72xbf16>, vector<72x2048xbf16>, vector<8x2048xf32> -> vector<8x2048xf32>
    %c0_3 = arith.constant 0 : index
    %c0_4 = arith.constant 0 : index
    %3 = vector.load %arg3[%c0_3, %c0_4] : memref<8x1xf32, #tpu.memory_space<vmem>>, vector<8x1xf32>
    %4 = vector.broadcast %3 : vector<8x1xf32> to vector<8x2048xf32>
    %5 = arith.addf %2, %4 : vector<8x2048xf32>
    %cst_5 = arith.constant 0.000000e+00 : f32
    %6 = vector.broadcast %cst_5 : f32 to vector<8x2048xf32>
    %7 = arith.maximumf %5, %6 : vector<8x2048xf32>
    %8 = arith.truncf %7 : vector<8x2048xf32> to vector<8x2048xbf16>
    %c0_6 = arith.constant 0 : index
    %c0_7 = arith.constant 0 : index
    %9 = vector.load %arg4[%c0_6, %c0_7] : memref<8x2048xbf16, #tpu.memory_space<vmem>>, vector<8x2048xbf16>
    tpu.vector_store %arg4[%c0_6, %c0_7], %8 {strides = array<i32>} : memref<8x2048xbf16, #tpu.memory_space<vmem>>, vector<8x2048xbf16>,
    return
  }
  func.func @transform_0(%arg0: i32) -> (i32, i32) {
    %c0_i32 = arith.constant 0 : i32
    %c0_i32_0 = arith.constant 0 : i32
    %c0_i32_1 = arith.constant 0 : i32
    return %c0_i32, %c0_i32_0 : i32, i32
  }
  func.func @transform_1(%arg0: i32) -> (i32, i32) {
    %c0_i32 = arith.constant 0 : i32
    %c0_i32_0 = arith.constant 0 : i32
    return %c0_i32, %arg0 : i32, i32
  }
  func.func @transform_2(%arg0: i32) -> (i32, i32) {
    %c0_i32 = arith.constant 0 : i32
    %c0_i32_0 = arith.constant 0 : i32
    %c0_i32_1 = arith.constant 0 : i32
    return %c0_i32, %c0_i32_0 : i32, i32
  }
  func.func @transform_3(%arg0: i32) -> (i32, i32) {
    %c0_i32 = arith.constant 0 : i32
    %c0_i32_0 = arith.constant 0 : i32
    return %c0_i32, %arg0 : i32, i32
  }
}

module attributes {stable_mosaic.version = 11 : i64} {
  func.func @_maxpool_kernel(%arg0: i32, %arg1: memref<4x8x5625xbf16, #tpu.memory_space<vmem>>, %arg2: memref<8x5625xbf16, #tpu.memory_space<vmem>>) attributes {dimension_semantics = [#tpu.dimension_semantics<arbitrary>], iteration_bounds = array<i64: 1>, scalar_prefetch = 0 : i64, scratch_operands = 0 : i64, tpu.core_type = #tpu.core_type<tc>, window_params = [{pipeline_mode = #tpu.pipeline_mode<synchronous>, transform_indices = @transform_0, window_bounds = array<i64: 4, 8, 5625>}, {pipeline_mode = #tpu.pipeline_mode<synchronous>, transform_indices = @transform_1, window_bounds = array<i64: 8, 5625>}]} {
    %c0 = arith.constant 0 : index
    %c0_0 = arith.constant 0 : index
    %c0_1 = arith.constant 0 : index
    %0 = vector.load %arg1[%c0, %c0_0, %c0_1] : memref<4x8x5625xbf16, #tpu.memory_space<vmem>>, vector<1x8x5625xbf16>
    %1 = vector.shape_cast %0 : vector<1x8x5625xbf16> to vector<8x5625xbf16>
    %c1 = arith.constant 1 : index
    %c0_2 = arith.constant 0 : index
    %c0_3 = arith.constant 0 : index
    %2 = vector.load %arg1[%c1, %c0_2, %c0_3] : memref<4x8x5625xbf16, #tpu.memory_space<vmem>>, vector<1x8x5625xbf16>
    %3 = vector.shape_cast %2 : vector<1x8x5625xbf16> to vector<8x5625xbf16>
    %4 = arith.maximumf %1, %3 : vector<8x5625xbf16>
    %c2 = arith.constant 2 : index
    %c0_4 = arith.constant 0 : index
    %c0_5 = arith.constant 0 : index
    %5 = vector.load %arg1[%c2, %c0_4, %c0_5] : memref<4x8x5625xbf16, #tpu.memory_space<vmem>>, vector<1x8x5625xbf16>
    %6 = vector.shape_cast %5 : vector<1x8x5625xbf16> to vector<8x5625xbf16>
    %7 = arith.maximumf %4, %6 : vector<8x5625xbf16>
    %c3 = arith.constant 3 : index
    %c0_6 = arith.constant 0 : index
    %c0_7 = arith.constant 0 : index
    %8 = vector.load %arg1[%c3, %c0_6, %c0_7] : memref<4x8x5625xbf16, #tpu.memory_space<vmem>>, vector<1x8x5625xbf16>
    %9 = vector.shape_cast %8 : vector<1x8x5625xbf16> to vector<8x5625xbf16>
    %10 = arith.maximumf %7, %9 : vector<8x5625xbf16>
    %c0_8 = arith.constant 0 : index
    %c0_9 = arith.constant 0 : index
    %11 = vector.load %arg2[%c0_8, %c0_9] : memref<8x5625xbf16, #tpu.memory_space<vmem>>, vector<8x5625xbf16>
    tpu.vector_store %arg2[%c0_8, %c0_9], %10 {strides = array<i32>} : memref<8x5625xbf16, #tpu.memory_space<vmem>>, vector<8x5625xbf16>,
    return
  }
  func.func @transform_0(%arg0: i32) -> (i32, i32, i32) {
    %c0_i32 = arith.constant 0 : i32
    %c0_i32_0 = arith.constant 0 : i32
    %c0_i32_1 = arith.constant 0 : i32
    %c0_i32_2 = arith.constant 0 : i32
    return %c0_i32, %c0_i32_0, %c0_i32_1 : i32, i32, i32
  }
  func.func @transform_1(%arg0: i32) -> (i32, i32) {
    %c0_i32 = arith.constant 0 : i32
    %c0_i32_0 = arith.constant 0 : i32
    %c0_i32_1 = arith.constant 0 : i32
    return %c0_i32, %c0_i32_0 : i32, i32
  }
}

module attributes {stable_mosaic.version = 11 : i64} {
  func.func @_conv_gemm_kernel(%arg0: i32, %arg1: memref<16x72xbf16, #tpu.memory_space<vmem>>, %arg2: memref<72x2048xbf16, #tpu.memory_space<vmem>>, %arg3: memref<16x1xf32, #tpu.memory_space<vmem>>, %arg4: memref<16x2048xbf16, #tpu.memory_space<vmem>>) attributes {dimension_semantics = [#tpu.dimension_semantics<parallel>], iteration_bounds = array<i64: 3>, scalar_prefetch = 0 : i64, scratch_operands = 0 : i64, tpu.core_type = #tpu.core_type<tc>, window_params = [{pipeline_mode = #tpu.pipeline_mode<synchronous>, transform_indices = @transform_0, window_bounds = array<i64: 16, 72>}, {transform_indices = @transform_1, window_bounds = array<i64: 72, 2048>}, {pipeline_mode = #tpu.pipeline_mode<synchronous>, transform_indices = @transform_2, window_bounds = array<i64: 16, 1>}, {transform_indices = @transform_3, window_bounds = array<i64: 16, 2048>}]} {
    %c0 = arith.constant 0 : index
    %c0_0 = arith.constant 0 : index
    %0 = vector.load %arg1[%c0, %c0_0] : memref<16x72xbf16, #tpu.memory_space<vmem>>, vector<16x72xbf16>
    %c0_1 = arith.constant 0 : index
    %c0_2 = arith.constant 0 : index
    %1 = vector.load %arg2[%c0_1, %c0_2] : memref<72x2048xbf16, #tpu.memory_space<vmem>>, vector<72x2048xbf16>
    %cst = arith.constant dense<0.000000e+00> : vector<16x2048xf32>
    %2 = tpu.matmul %0, %1, %cst {dimension_numbers = #tpu.dot_dimension_numbers<[1], [0], [0], [1], [0, 0, 1, 1], [], []>} : vector<16x72xbf16>, vector<72x2048xbf16>, vector<16x2048xf32> -> vector<16x2048xf32>
    %c0_3 = arith.constant 0 : index
    %c0_4 = arith.constant 0 : index
    %3 = vector.load %arg3[%c0_3, %c0_4] : memref<16x1xf32, #tpu.memory_space<vmem>>, vector<16x1xf32>
    %4 = vector.broadcast %3 : vector<16x1xf32> to vector<16x2048xf32>
    %5 = arith.addf %2, %4 : vector<16x2048xf32>
    %cst_5 = arith.constant 0.000000e+00 : f32
    %6 = vector.broadcast %cst_5 : f32 to vector<16x2048xf32>
    %7 = arith.maximumf %5, %6 : vector<16x2048xf32>
    %8 = arith.truncf %7 : vector<16x2048xf32> to vector<16x2048xbf16>
    %c0_6 = arith.constant 0 : index
    %c0_7 = arith.constant 0 : index
    %9 = vector.load %arg4[%c0_6, %c0_7] : memref<16x2048xbf16, #tpu.memory_space<vmem>>, vector<16x2048xbf16>
    tpu.vector_store %arg4[%c0_6, %c0_7], %8 {strides = array<i32>} : memref<16x2048xbf16, #tpu.memory_space<vmem>>, vector<16x2048xbf16>,
    return
  }
  func.func @transform_0(%arg0: i32) -> (i32, i32) {
    %c0_i32 = arith.constant 0 : i32
    %c0_i32_0 = arith.constant 0 : i32
    %c0_i32_1 = arith.constant 0 : i32
    return %c0_i32, %c0_i32_0 : i32, i32
  }
  func.func @transform_1(%arg0: i32) -> (i32, i32) {
    %c0_i32 = arith.constant 0 : i32
    %c0_i32_0 = arith.constant 0 : i32
    return %c0_i32, %arg0 : i32, i32
  }
  func.func @transform_2(%arg0: i32) -> (i32, i32) {
    %c0_i32 = arith.constant 0 : i32
    %c0_i32_0 = arith.constant 0 : i32
    %c0_i32_1 = arith.constant 0 : i32
    return %c0_i32, %c0_i32_0 : i32, i32
  }
  func.func @transform_3(%arg0: i32) -> (i32, i32) {
    %c0_i32 = arith.constant 0 : i32
    %c0_i32_0 = arith.constant 0 : i32
    return %c0_i32, %arg0 : i32, i32
  }
}

module attributes {stable_mosaic.version = 11 : i64} {
  func.func @_conv_gemm_kernel(%arg0: i32, %arg1: memref<16x144xbf16, #tpu.memory_space<vmem>>, %arg2: memref<144x2048xbf16, #tpu.memory_space<vmem>>, %arg3: memref<16x1xf32, #tpu.memory_space<vmem>>, %arg4: memref<16x2048xbf16, #tpu.memory_space<vmem>>) attributes {dimension_semantics = [#tpu.dimension_semantics<parallel>], iteration_bounds = array<i64: 3>, scalar_prefetch = 0 : i64, scratch_operands = 0 : i64, tpu.core_type = #tpu.core_type<tc>, window_params = [{pipeline_mode = #tpu.pipeline_mode<synchronous>, transform_indices = @transform_0, window_bounds = array<i64: 16, 144>}, {transform_indices = @transform_1, window_bounds = array<i64: 144, 2048>}, {pipeline_mode = #tpu.pipeline_mode<synchronous>, transform_indices = @transform_2, window_bounds = array<i64: 16, 1>}, {transform_indices = @transform_3, window_bounds = array<i64: 16, 2048>}]} {
    %c0 = arith.constant 0 : index
    %c0_0 = arith.constant 0 : index
    %0 = vector.load %arg1[%c0, %c0_0] : memref<16x144xbf16, #tpu.memory_space<vmem>>, vector<16x144xbf16>
    %c0_1 = arith.constant 0 : index
    %c0_2 = arith.constant 0 : index
    %1 = vector.load %arg2[%c0_1, %c0_2] : memref<144x2048xbf16, #tpu.memory_space<vmem>>, vector<144x2048xbf16>
    %cst = arith.constant dense<0.000000e+00> : vector<16x2048xf32>
    %2 = tpu.matmul %0, %1, %cst {dimension_numbers = #tpu.dot_dimension_numbers<[1], [0], [0], [1], [0, 0, 1, 1], [], []>} : vector<16x144xbf16>, vector<144x2048xbf16>, vector<16x2048xf32> -> vector<16x2048xf32>
    %c0_3 = arith.constant 0 : index
    %c0_4 = arith.constant 0 : index
    %3 = vector.load %arg3[%c0_3, %c0_4] : memref<16x1xf32, #tpu.memory_space<vmem>>, vector<16x1xf32>
    %4 = vector.broadcast %3 : vector<16x1xf32> to vector<16x2048xf32>
    %5 = arith.addf %2, %4 : vector<16x2048xf32>
    %cst_5 = arith.constant 0.000000e+00 : f32
    %6 = vector.broadcast %cst_5 : f32 to vector<16x2048xf32>
    %7 = arith.maximumf %5, %6 : vector<16x2048xf32>
    %8 = arith.truncf %7 : vector<16x2048xf32> to vector<16x2048xbf16>
    %c0_6 = arith.constant 0 : index
    %c0_7 = arith.constant 0 : index
    %9 = vector.load %arg4[%c0_6, %c0_7] : memref<16x2048xbf16, #tpu.memory_space<vmem>>, vector<16x2048xbf16>
    tpu.vector_store %arg4[%c0_6, %c0_7], %8 {strides = array<i32>} : memref<16x2048xbf16, #tpu.memory_space<vmem>>, vector<16x2048xbf16>,
    return
  }
  func.func @transform_0(%arg0: i32) -> (i32, i32) {
    %c0_i32 = arith.constant 0 : i32
    %c0_i32_0 = arith.constant 0 : i32
    %c0_i32_1 = arith.constant 0 : i32
    return %c0_i32, %c0_i32_0 : i32, i32
  }
  func.func @transform_1(%arg0: i32) -> (i32, i32) {
    %c0_i32 = arith.constant 0 : i32
    %c0_i32_0 = arith.constant 0 : i32
    return %c0_i32, %arg0 : i32, i32
  }
  func.func @transform_2(%arg0: i32) -> (i32, i32) {
    %c0_i32 = arith.constant 0 : i32
    %c0_i32_0 = arith.constant 0 : i32
    %c0_i32_1 = arith.constant 0 : i32
    return %c0_i32, %c0_i32_0 : i32, i32
  }
  func.func @transform_3(%arg0: i32) -> (i32, i32) {
    %c0_i32 = arith.constant 0 : i32
    %c0_i32_0 = arith.constant 0 : i32
    return %c0_i32, %arg0 : i32, i32
  }
}

module attributes {stable_mosaic.version = 11 : i64} {
  func.func @_maxpool_kernel(%arg0: i32, %arg1: memref<9x16x625xbf16, #tpu.memory_space<vmem>>, %arg2: memref<16x625xbf16, #tpu.memory_space<vmem>>) attributes {dimension_semantics = [#tpu.dimension_semantics<arbitrary>], iteration_bounds = array<i64: 1>, scalar_prefetch = 0 : i64, scratch_operands = 0 : i64, tpu.core_type = #tpu.core_type<tc>, window_params = [{pipeline_mode = #tpu.pipeline_mode<synchronous>, transform_indices = @transform_0, window_bounds = array<i64: 9, 16, 625>}, {pipeline_mode = #tpu.pipeline_mode<synchronous>, transform_indices = @transform_1, window_bounds = array<i64: 16, 625>}]} {
    %c0 = arith.constant 0 : index
    %c0_0 = arith.constant 0 : index
    %c0_1 = arith.constant 0 : index
    %0 = vector.load %arg1[%c0, %c0_0, %c0_1] : memref<9x16x625xbf16, #tpu.memory_space<vmem>>, vector<1x16x625xbf16>
    %1 = vector.shape_cast %0 : vector<1x16x625xbf16> to vector<16x625xbf16>
    %c1 = arith.constant 1 : index
    %c0_2 = arith.constant 0 : index
    %c0_3 = arith.constant 0 : index
    %2 = vector.load %arg1[%c1, %c0_2, %c0_3] : memref<9x16x625xbf16, #tpu.memory_space<vmem>>, vector<1x16x625xbf16>
    %3 = vector.shape_cast %2 : vector<1x16x625xbf16> to vector<16x625xbf16>
    %4 = arith.maximumf %1, %3 : vector<16x625xbf16>
    %c2 = arith.constant 2 : index
    %c0_4 = arith.constant 0 : index
    %c0_5 = arith.constant 0 : index
    %5 = vector.load %arg1[%c2, %c0_4, %c0_5] : memref<9x16x625xbf16, #tpu.memory_space<vmem>>, vector<1x16x625xbf16>
    %6 = vector.shape_cast %5 : vector<1x16x625xbf16> to vector<16x625xbf16>
    %7 = arith.maximumf %4, %6 : vector<16x625xbf16>
    %c3 = arith.constant 3 : index
    %c0_6 = arith.constant 0 : index
    %c0_7 = arith.constant 0 : index
    %8 = vector.load %arg1[%c3, %c0_6, %c0_7] : memref<9x16x625xbf16, #tpu.memory_space<vmem>>, vector<1x16x625xbf16>
    %9 = vector.shape_cast %8 : vector<1x16x625xbf16> to vector<16x625xbf16>
    %10 = arith.maximumf %7, %9 : vector<16x625xbf16>
    %c4 = arith.constant 4 : index
    %c0_8 = arith.constant 0 : index
    %c0_9 = arith.constant 0 : index
    %11 = vector.load %arg1[%c4, %c0_8, %c0_9] : memref<9x16x625xbf16, #tpu.memory_space<vmem>>, vector<1x16x625xbf16>
    %12 = vector.shape_cast %11 : vector<1x16x625xbf16> to vector<16x625xbf16>
    %13 = arith.maximumf %10, %12 : vector<16x625xbf16>
    %c5 = arith.constant 5 : index
    %c0_10 = arith.constant 0 : index
    %c0_11 = arith.constant 0 : index
    %14 = vector.load %arg1[%c5, %c0_10, %c0_11] : memref<9x16x625xbf16, #tpu.memory_space<vmem>>, vector<1x16x625xbf16>
    %15 = vector.shape_cast %14 : vector<1x16x625xbf16> to vector<16x625xbf16>
    %16 = arith.maximumf %13, %15 : vector<16x625xbf16>
    %c6 = arith.constant 6 : index
    %c0_12 = arith.constant 0 : index
    %c0_13 = arith.constant 0 : index
    %17 = vector.load %arg1[%c6, %c0_12, %c0_13] : memref<9x16x625xbf16, #tpu.memory_space<vmem>>, vector<1x16x625xbf16>
    %18 = vector.shape_cast %17 : vector<1x16x625xbf16> to vector<16x625xbf16>
    %19 = arith.maximumf %16, %18 : vector<16x625xbf16>
    %c7 = arith.constant 7 : index
    %c0_14 = arith.constant 0 : index
    %c0_15 = arith.constant 0 : index
    %20 = vector.load %arg1[%c7, %c0_14, %c0_15] : memref<9x16x625xbf16, #tpu.memory_space<vmem>>, vector<1x16x625xbf16>
    %21 = vector.shape_cast %20 : vector<1x16x625xbf16> to vector<16x625xbf16>
    %22 = arith.maximumf %19, %21 : vector<16x625xbf16>
    %c8 = arith.constant 8 : index
    %c0_16 = arith.constant 0 : index
    %c0_17 = arith.constant 0 : index
    %23 = vector.load %arg1[%c8, %c0_16, %c0_17] : memref<9x16x625xbf16, #tpu.memory_space<vmem>>, vector<1x16x625xbf16>
    %24 = vector.shape_cast %23 : vector<1x16x625xbf16> to vector<16x625xbf16>
    %25 = arith.maximumf %22, %24 : vector<16x625xbf16>
    %c0_18 = arith.constant 0 : index
    %c0_19 = arith.constant 0 : index
    %26 = vector.load %arg2[%c0_18, %c0_19] : memref<16x625xbf16, #tpu.memory_space<vmem>>, vector<16x625xbf16>
    tpu.vector_store %arg2[%c0_18, %c0_19], %25 {strides = array<i32>} : memref<16x625xbf16, #tpu.memory_space<vmem>>, vector<16x625xbf16>,
    return
  }
  func.func @transform_0(%arg0: i32) -> (i32, i32, i32) {
    %c0_i32 = arith.constant 0 : i32
    %c0_i32_0 = arith.constant 0 : i32
    %c0_i32_1 = arith.constant 0 : i32
    %c0_i32_2 = arith.constant 0 : i32
    return %c0_i32, %c0_i32_0, %c0_i32_1 : i32, i32, i32
  }
  func.func @transform_1(%arg0: i32) -> (i32, i32) {
    %c0_i32 = arith.constant 0 : i32
    %c0_i32_0 = arith.constant 0 : i32
    %c0_i32_1 = arith.constant 0 : i32
    return %c0_i32, %c0_i32_0 : i32, i32
  }
}

module attributes {stable_mosaic.version = 11 : i64} {
  func.func @_conv_gemm_kernel(%arg0: i32, %arg1: memref<32x144xbf16, #tpu.memory_space<vmem>>, %arg2: memref<144x640xbf16, #tpu.memory_space<vmem>>, %arg3: memref<32x1xf32, #tpu.memory_space<vmem>>, %arg4: memref<32x640xbf16, #tpu.memory_space<vmem>>) attributes {dimension_semantics = [#tpu.dimension_semantics<parallel>], iteration_bounds = array<i64: 1>, scalar_prefetch = 0 : i64, scratch_operands = 0 : i64, tpu.core_type = #tpu.core_type<tc>, window_params = [{pipeline_mode = #tpu.pipeline_mode<synchronous>, transform_indices = @transform_0, window_bounds = array<i64: 32, 144>}, {transform_indices = @transform_1, window_bounds = array<i64: 144, 640>}, {pipeline_mode = #tpu.pipeline_mode<synchronous>, transform_indices = @transform_2, window_bounds = array<i64: 32, 1>}, {transform_indices = @transform_3, window_bounds = array<i64: 32, 640>}]} {
    %c0 = arith.constant 0 : index
    %c0_0 = arith.constant 0 : index
    %0 = vector.load %arg1[%c0, %c0_0] : memref<32x144xbf16, #tpu.memory_space<vmem>>, vector<32x144xbf16>
    %c0_1 = arith.constant 0 : index
    %c0_2 = arith.constant 0 : index
    %1 = vector.load %arg2[%c0_1, %c0_2] : memref<144x640xbf16, #tpu.memory_space<vmem>>, vector<144x640xbf16>
    %cst = arith.constant dense<0.000000e+00> : vector<32x640xf32>
    %2 = tpu.matmul %0, %1, %cst {dimension_numbers = #tpu.dot_dimension_numbers<[1], [0], [0], [1], [0, 0, 1, 1], [], []>} : vector<32x144xbf16>, vector<144x640xbf16>, vector<32x640xf32> -> vector<32x640xf32>
    %c0_3 = arith.constant 0 : index
    %c0_4 = arith.constant 0 : index
    %3 = vector.load %arg3[%c0_3, %c0_4] : memref<32x1xf32, #tpu.memory_space<vmem>>, vector<32x1xf32>
    %4 = vector.broadcast %3 : vector<32x1xf32> to vector<32x640xf32>
    %5 = arith.addf %2, %4 : vector<32x640xf32>
    %cst_5 = arith.constant 0.000000e+00 : f32
    %6 = vector.broadcast %cst_5 : f32 to vector<32x640xf32>
    %7 = arith.maximumf %5, %6 : vector<32x640xf32>
    %8 = arith.truncf %7 : vector<32x640xf32> to vector<32x640xbf16>
    %c0_6 = arith.constant 0 : index
    %c0_7 = arith.constant 0 : index
    %9 = vector.load %arg4[%c0_6, %c0_7] : memref<32x640xbf16, #tpu.memory_space<vmem>>, vector<32x640xbf16>
    tpu.vector_store %arg4[%c0_6, %c0_7], %8 {strides = array<i32>} : memref<32x640xbf16, #tpu.memory_space<vmem>>, vector<32x640xbf16>,
    return
  }
  func.func @transform_0(%arg0: i32) -> (i32, i32) {
    %c0_i32 = arith.constant 0 : i32
    %c0_i32_0 = arith.constant 0 : i32
    %c0_i32_1 = arith.constant 0 : i32
    return %c0_i32, %c0_i32_0 : i32, i32
  }
  func.func @transform_1(%arg0: i32) -> (i32, i32) {
    %c0_i32 = arith.constant 0 : i32
    %c0_i32_0 = arith.constant 0 : i32
    return %c0_i32, %arg0 : i32, i32
  }
  func.func @transform_2(%arg0: i32) -> (i32, i32) {
    %c0_i32 = arith.constant 0 : i32
    %c0_i32_0 = arith.constant 0 : i32
    %c0_i32_1 = arith.constant 0 : i32
    return %c0_i32, %c0_i32_0 : i32, i32
  }
  func.func @transform_3(%arg0: i32) -> (i32, i32) {
    %c0_i32 = arith.constant 0 : i32
    %c0_i32_0 = arith.constant 0 : i32
    return %c0_i32, %arg0 : i32, i32
  }
}

module attributes {stable_mosaic.version = 11 : i64} {
  func.func @_conv_gemm_kernel(%arg0: i32, %arg1: memref<32x288xbf16, #tpu.memory_space<vmem>>, %arg2: memref<288x640xbf16, #tpu.memory_space<vmem>>, %arg3: memref<32x1xf32, #tpu.memory_space<vmem>>, %arg4: memref<32x640xbf16, #tpu.memory_space<vmem>>) attributes {dimension_semantics = [#tpu.dimension_semantics<parallel>], iteration_bounds = array<i64: 1>, scalar_prefetch = 0 : i64, scratch_operands = 0 : i64, tpu.core_type = #tpu.core_type<tc>, window_params = [{pipeline_mode = #tpu.pipeline_mode<synchronous>, transform_indices = @transform_0, window_bounds = array<i64: 32, 288>}, {transform_indices = @transform_1, window_bounds = array<i64: 288, 640>}, {pipeline_mode = #tpu.pipeline_mode<synchronous>, transform_indices = @transform_2, window_bounds = array<i64: 32, 1>}, {transform_indices = @transform_3, window_bounds = array<i64: 32, 640>}]} {
    %c0 = arith.constant 0 : index
    %c0_0 = arith.constant 0 : index
    %0 = vector.load %arg1[%c0, %c0_0] : memref<32x288xbf16, #tpu.memory_space<vmem>>, vector<32x288xbf16>
    %c0_1 = arith.constant 0 : index
    %c0_2 = arith.constant 0 : index
    %1 = vector.load %arg2[%c0_1, %c0_2] : memref<288x640xbf16, #tpu.memory_space<vmem>>, vector<288x640xbf16>
    %cst = arith.constant dense<0.000000e+00> : vector<32x640xf32>
    %2 = tpu.matmul %0, %1, %cst {dimension_numbers = #tpu.dot_dimension_numbers<[1], [0], [0], [1], [0, 0, 1, 1], [], []>} : vector<32x288xbf16>, vector<288x640xbf16>, vector<32x640xf32> -> vector<32x640xf32>
    %c0_3 = arith.constant 0 : index
    %c0_4 = arith.constant 0 : index
    %3 = vector.load %arg3[%c0_3, %c0_4] : memref<32x1xf32, #tpu.memory_space<vmem>>, vector<32x1xf32>
    %4 = vector.broadcast %3 : vector<32x1xf32> to vector<32x640xf32>
    %5 = arith.addf %2, %4 : vector<32x640xf32>
    %cst_5 = arith.constant 0.000000e+00 : f32
    %6 = vector.broadcast %cst_5 : f32 to vector<32x640xf32>
    %7 = arith.maximumf %5, %6 : vector<32x640xf32>
    %8 = arith.truncf %7 : vector<32x640xf32> to vector<32x640xbf16>
    %c0_6 = arith.constant 0 : index
    %c0_7 = arith.constant 0 : index
    %9 = vector.load %arg4[%c0_6, %c0_7] : memref<32x640xbf16, #tpu.memory_space<vmem>>, vector<32x640xbf16>
    tpu.vector_store %arg4[%c0_6, %c0_7], %8 {strides = array<i32>} : memref<32x640xbf16, #tpu.memory_space<vmem>>, vector<32x640xbf16>,
    return
  }
  func.func @transform_0(%arg0: i32) -> (i32, i32) {
    %c0_i32 = arith.constant 0 : i32
    %c0_i32_0 = arith.constant 0 : i32
    %c0_i32_1 = arith.constant 0 : i32
    return %c0_i32, %c0_i32_0 : i32, i32
  }
  func.func @transform_1(%arg0: i32) -> (i32, i32) {
    %c0_i32 = arith.constant 0 : i32
    %c0_i32_0 = arith.constant 0 : i32
    return %c0_i32, %arg0 : i32, i32
  }
  func.func @transform_2(%arg0: i32) -> (i32, i32) {
    %c0_i32 = arith.constant 0 : i32
    %c0_i32_0 = arith.constant 0 : i32
    %c0_i32_1 = arith.constant 0 : i32
    return %c0_i32, %c0_i32_0 : i32, i32
  }
  func.func @transform_3(%arg0: i32) -> (i32, i32) {
    %c0_i32 = arith.constant 0 : i32
    %c0_i32_0 = arith.constant 0 : i32
    return %c0_i32, %arg0 : i32, i32
  }
}

module attributes {stable_mosaic.version = 11 : i64} {
  func.func @_maxpool_kernel(%arg0: i32, %arg1: memref<25x32x25xbf16, #tpu.memory_space<vmem>>, %arg2: memref<32x25xbf16, #tpu.memory_space<vmem>>) attributes {dimension_semantics = [#tpu.dimension_semantics<arbitrary>], iteration_bounds = array<i64: 1>, scalar_prefetch = 0 : i64, scratch_operands = 0 : i64, tpu.core_type = #tpu.core_type<tc>, window_params = [{pipeline_mode = #tpu.pipeline_mode<synchronous>, transform_indices = @transform_0, window_bounds = array<i64: 25, 32, 25>}, {pipeline_mode = #tpu.pipeline_mode<synchronous>, transform_indices = @transform_1, window_bounds = array<i64: 32, 25>}]} {
    %c0 = arith.constant 0 : index
    %c0_0 = arith.constant 0 : index
    %c0_1 = arith.constant 0 : index
    %0 = vector.load %arg1[%c0, %c0_0, %c0_1] : memref<25x32x25xbf16, #tpu.memory_space<vmem>>, vector<1x32x25xbf16>
    %1 = vector.shape_cast %0 : vector<1x32x25xbf16> to vector<32x25xbf16>
    %c1 = arith.constant 1 : index
    %c0_2 = arith.constant 0 : index
    %c0_3 = arith.constant 0 : index
    %2 = vector.load %arg1[%c1, %c0_2, %c0_3] : memref<25x32x25xbf16, #tpu.memory_space<vmem>>, vector<1x32x25xbf16>
    %3 = vector.shape_cast %2 : vector<1x32x25xbf16> to vector<32x25xbf16>
    %4 = arith.maximumf %1, %3 : vector<32x25xbf16>
    %c2 = arith.constant 2 : index
    %c0_4 = arith.constant 0 : index
    %c0_5 = arith.constant 0 : index
    %5 = vector.load %arg1[%c2, %c0_4, %c0_5] : memref<25x32x25xbf16, #tpu.memory_space<vmem>>, vector<1x32x25xbf16>
    %6 = vector.shape_cast %5 : vector<1x32x25xbf16> to vector<32x25xbf16>
    %7 = arith.maximumf %4, %6 : vector<32x25xbf16>
    %c3 = arith.constant 3 : index
    %c0_6 = arith.constant 0 : index
    %c0_7 = arith.constant 0 : index
    %8 = vector.load %arg1[%c3, %c0_6, %c0_7] : memref<25x32x25xbf16, #tpu.memory_space<vmem>>, vector<1x32x25xbf16>
    %9 = vector.shape_cast %8 : vector<1x32x25xbf16> to vector<32x25xbf16>
    %10 = arith.maximumf %7, %9 : vector<32x25xbf16>
    %c4 = arith.constant 4 : index
    %c0_8 = arith.constant 0 : index
    %c0_9 = arith.constant 0 : index
    %11 = vector.load %arg1[%c4, %c0_8, %c0_9] : memref<25x32x25xbf16, #tpu.memory_space<vmem>>, vector<1x32x25xbf16>
    %12 = vector.shape_cast %11 : vector<1x32x25xbf16> to vector<32x25xbf16>
    %13 = arith.maximumf %10, %12 : vector<32x25xbf16>
    %c5 = arith.constant 5 : index
    %c0_10 = arith.constant 0 : index
    %c0_11 = arith.constant 0 : index
    %14 = vector.load %arg1[%c5, %c0_10, %c0_11] : memref<25x32x25xbf16, #tpu.memory_space<vmem>>, vector<1x32x25xbf16>
    %15 = vector.shape_cast %14 : vector<1x32x25xbf16> to vector<32x25xbf16>
    %16 = arith.maximumf %13, %15 : vector<32x25xbf16>
    %c6 = arith.constant 6 : index
    %c0_12 = arith.constant 0 : index
    %c0_13 = arith.constant 0 : index
    %17 = vector.load %arg1[%c6, %c0_12, %c0_13] : memref<25x32x25xbf16, #tpu.memory_space<vmem>>, vector<1x32x25xbf16>
    %18 = vector.shape_cast %17 : vector<1x32x25xbf16> to vector<32x25xbf16>
    %19 = arith.maximumf %16, %18 : vector<32x25xbf16>
    %c7 = arith.constant 7 : index
    %c0_14 = arith.constant 0 : index
    %c0_15 = arith.constant 0 : index
    %20 = vector.load %arg1[%c7, %c0_14, %c0_15] : memref<25x32x25xbf16, #tpu.memory_space<vmem>>, vector<1x32x25xbf16>
    %21 = vector.shape_cast %20 : vector<1x32x25xbf16> to vector<32x25xbf16>
    %22 = arith.maximumf %19, %21 : vector<32x25xbf16>
    %c8 = arith.constant 8 : index
    %c0_16 = arith.constant 0 : index
    %c0_17 = arith.constant 0 : index
    %23 = vector.load %arg1[%c8, %c0_16, %c0_17] : memref<25x32x25xbf16, #tpu.memory_space<vmem>>, vector<1x32x25xbf16>
    %24 = vector.shape_cast %23 : vector<1x32x25xbf16> to vector<32x25xbf16>
    %25 = arith.maximumf %22, %24 : vector<32x25xbf16>
    %c9 = arith.constant 9 : index
    %c0_18 = arith.constant 0 : index
    %c0_19 = arith.constant 0 : index
    %26 = vector.load %arg1[%c9, %c0_18, %c0_19] : memref<25x32x25xbf16, #tpu.memory_space<vmem>>, vector<1x32x25xbf16>
    %27 = vector.shape_cast %26 : vector<1x32x25xbf16> to vector<32x25xbf16>
    %28 = arith.maximumf %25, %27 : vector<32x25xbf16>
    %c10 = arith.constant 10 : index
    %c0_20 = arith.constant 0 : index
    %c0_21 = arith.constant 0 : index
    %29 = vector.load %arg1[%c10, %c0_20, %c0_21] : memref<25x32x25xbf16, #tpu.memory_space<vmem>>, vector<1x32x25xbf16>
    %30 = vector.shape_cast %29 : vector<1x32x25xbf16> to vector<32x25xbf16>
    %31 = arith.maximumf %28, %30 : vector<32x25xbf16>
    %c11 = arith.constant 11 : index
    %c0_22 = arith.constant 0 : index
    %c0_23 = arith.constant 0 : index
    %32 = vector.load %arg1[%c11, %c0_22, %c0_23] : memref<25x32x25xbf16, #tpu.memory_space<vmem>>, vector<1x32x25xbf16>
    %33 = vector.shape_cast %32 : vector<1x32x25xbf16> to vector<32x25xbf16>
    %34 = arith.maximumf %31, %33 : vector<32x25xbf16>
    %c12 = arith.constant 12 : index
    %c0_24 = arith.constant 0 : index
    %c0_25 = arith.constant 0 : index
    %35 = vector.load %arg1[%c12, %c0_24, %c0_25] : memref<25x32x25xbf16, #tpu.memory_space<vmem>>, vector<1x32x25xbf16>
    %36 = vector.shape_cast %35 : vector<1x32x25xbf16> to vector<32x25xbf16>
    %37 = arith.maximumf %34, %36 : vector<32x25xbf16>
    %c13 = arith.constant 13 : index
    %c0_26 = arith.constant 0 : index
    %c0_27 = arith.constant 0 : index
    %38 = vector.load %arg1[%c13, %c0_26, %c0_27] : memref<25x32x25xbf16, #tpu.memory_space<vmem>>, vector<1x32x25xbf16>
    %39 = vector.shape_cast %38 : vector<1x32x25xbf16> to vector<32x25xbf16>
    %40 = arith.maximumf %37, %39 : vector<32x25xbf16>
    %c14 = arith.constant 14 : index
    %c0_28 = arith.constant 0 : index
    %c0_29 = arith.constant 0 : index
    %41 = vector.load %arg1[%c14, %c0_28, %c0_29] : memref<25x32x25xbf16, #tpu.memory_space<vmem>>, vector<1x32x25xbf16>
    %42 = vector.shape_cast %41 : vector<1x32x25xbf16> to vector<32x25xbf16>
    %43 = arith.maximumf %40, %42 : vector<32x25xbf16>
    %c15 = arith.constant 15 : index
    %c0_30 = arith.constant 0 : index
    %c0_31 = arith.constant 0 : index
    %44 = vector.load %arg1[%c15, %c0_30, %c0_31] : memref<25x32x25xbf16, #tpu.memory_space<vmem>>, vector<1x32x25xbf16>
    %45 = vector.shape_cast %44 : vector<1x32x25xbf16> to vector<32x25xbf16>
    %46 = arith.maximumf %43, %45 : vector<32x25xbf16>
    %c16 = arith.constant 16 : index
    %c0_32 = arith.constant 0 : index
    %c0_33 = arith.constant 0 : index
    %47 = vector.load %arg1[%c16, %c0_32, %c0_33] : memref<25x32x25xbf16, #tpu.memory_space<vmem>>, vector<1x32x25xbf16>
    %48 = vector.shape_cast %47 : vector<1x32x25xbf16> to vector<32x25xbf16>
    %49 = arith.maximumf %46, %48 : vector<32x25xbf16>
    %c17 = arith.constant 17 : index
    %c0_34 = arith.constant 0 : index
    %c0_35 = arith.constant 0 : index
    %50 = vector.load %arg1[%c17, %c0_34, %c0_35] : memref<25x32x25xbf16, #tpu.memory_space<vmem>>, vector<1x32x25xbf16>
    %51 = vector.shape_cast %50 : vector<1x32x25xbf16> to vector<32x25xbf16>
    %52 = arith.maximumf %49, %51 : vector<32x25xbf16>
    %c18 = arith.constant 18 : index
    %c0_36 = arith.constant 0 : index
    %c0_37 = arith.constant 0 : index
    %53 = vector.load %arg1[%c18, %c0_36, %c0_37] : memref<25x32x25xbf16, #tpu.memory_space<vmem>>, vector<1x32x25xbf16>
    %54 = vector.shape_cast %53 : vector<1x32x25xbf16> to vector<32x25xbf16>
    %55 = arith.maximumf %52, %54 : vector<32x25xbf16>
    %c19 = arith.constant 19 : index
    %c0_38 = arith.constant 0 : index
    %c0_39 = arith.constant 0 : index
    %56 = vector.load %arg1[%c19, %c0_38, %c0_39] : memref<25x32x25xbf16, #tpu.memory_space<vmem>>, vector<1x32x25xbf16>
    %57 = vector.shape_cast %56 : vector<1x32x25xbf16> to vector<32x25xbf16>
    %58 = arith.maximumf %55, %57 : vector<32x25xbf16>
    %c20 = arith.constant 20 : index
    %c0_40 = arith.constant 0 : index
    %c0_41 = arith.constant 0 : index
    %59 = vector.load %arg1[%c20, %c0_40, %c0_41] : memref<25x32x25xbf16, #tpu.memory_space<vmem>>, vector<1x32x25xbf16>
    %60 = vector.shape_cast %59 : vector<1x32x25xbf16> to vector<32x25xbf16>
    %61 = arith.maximumf %58, %60 : vector<32x25xbf16>
    %c21 = arith.constant 21 : index
    %c0_42 = arith.constant 0 : index
    %c0_43 = arith.constant 0 : index
    %62 = vector.load %arg1[%c21, %c0_42, %c0_43] : memref<25x32x25xbf16, #tpu.memory_space<vmem>>, vector<1x32x25xbf16>
    %63 = vector.shape_cast %62 : vector<1x32x25xbf16> to vector<32x25xbf16>
    %64 = arith.maximumf %61, %63 : vector<32x25xbf16>
    %c22 = arith.constant 22 : index
    %c0_44 = arith.constant 0 : index
    %c0_45 = arith.constant 0 : index
    %65 = vector.load %arg1[%c22, %c0_44, %c0_45] : memref<25x32x25xbf16, #tpu.memory_space<vmem>>, vector<1x32x25xbf16>
    %66 = vector.shape_cast %65 : vector<1x32x25xbf16> to vector<32x25xbf16>
    %67 = arith.maximumf %64, %66 : vector<32x25xbf16>
    %c23 = arith.constant 23 : index
    %c0_46 = arith.constant 0 : index
    %c0_47 = arith.constant 0 : index
    %68 = vector.load %arg1[%c23, %c0_46, %c0_47] : memref<25x32x25xbf16, #tpu.memory_space<vmem>>, vector<1x32x25xbf16>
    %69 = vector.shape_cast %68 : vector<1x32x25xbf16> to vector<32x25xbf16>
    %70 = arith.maximumf %67, %69 : vector<32x25xbf16>
    %c24 = arith.constant 24 : index
    %c0_48 = arith.constant 0 : index
    %c0_49 = arith.constant 0 : index
    %71 = vector.load %arg1[%c24, %c0_48, %c0_49] : memref<25x32x25xbf16, #tpu.memory_space<vmem>>, vector<1x32x25xbf16>
    %72 = vector.shape_cast %71 : vector<1x32x25xbf16> to vector<32x25xbf16>
    %73 = arith.maximumf %70, %72 : vector<32x25xbf16>
    %c0_50 = arith.constant 0 : index
    %c0_51 = arith.constant 0 : index
    %74 = vector.load %arg2[%c0_50, %c0_51] : memref<32x25xbf16, #tpu.memory_space<vmem>>, vector<32x25xbf16>
    tpu.vector_store %arg2[%c0_50, %c0_51], %73 {strides = array<i32>} : memref<32x25xbf16, #tpu.memory_space<vmem>>, vector<32x25xbf16>,
    return
  }
  func.func @transform_0(%arg0: i32) -> (i32, i32, i32) {
    %c0_i32 = arith.constant 0 : i32
    %c0_i32_0 = arith.constant 0 : i32
    %c0_i32_1 = arith.constant 0 : i32
    %c0_i32_2 = arith.constant 0 : i32
    return %c0_i32, %c0_i32_0, %c0_i32_1 : i32, i32, i32
  }
  func.func @transform_1(%arg0: i32) -> (i32, i32) {
    %c0_i32 = arith.constant 0 : i32
    %c0_i32_0 = arith.constant 0 : i32
    %c0_i32_1 = arith.constant 0 : i32
    return %c0_i32, %c0_i32_0 : i32, i32
  }
}

module attributes {stable_mosaic.version = 11 : i64} {
  func.func @_head_kernel(%arg0: i32, %arg1: memref<1x800xbf16, #tpu.memory_space<vmem>>, %arg2: memref<800x128xbf16, #tpu.memory_space<vmem>>, %arg3: memref<1x128xf32, #tpu.memory_space<vmem>>, %arg4: memref<128x2xf32, #tpu.memory_space<vmem>>, %arg5: memref<1x2xf32, #tpu.memory_space<vmem>>, %arg6: memref<1x2xf32, #tpu.memory_space<vmem>>, %arg7: memref<1x128xf32, #tpu.memory_space<vmem>>) attributes {dimension_semantics = [#tpu.dimension_semantics<arbitrary>], iteration_bounds = array<i64: 1>, scalar_prefetch = 0 : i64, scratch_operands = 1 : i64, tpu.core_type = #tpu.core_type<tc>, window_params = [{transform_indices = @transform_0, window_bounds = array<i64: 1, 800>}, {transform_indices = @transform_1, window_bounds = array<i64: 800, 128>}, {pipeline_mode = #tpu.pipeline_mode<synchronous>, transform_indices = @transform_2, window_bounds = array<i64: 1, 128>}, {pipeline_mode = #tpu.pipeline_mode<synchronous>, transform_indices = @transform_3, window_bounds = array<i64: 128, 2>}, {pipeline_mode = #tpu.pipeline_mode<synchronous>, transform_indices = @transform_4, window_bounds = array<i64: 1, 2>}, {pipeline_mode = #tpu.pipeline_mode<synchronous>, transform_indices = @transform_5, window_bounds = array<i64: 1, 2>}]} {
    %c0_i32 = arith.constant 0 : i32
    %0 = arith.cmpi eq, %arg0, %c0_i32 : i32
    %1 = arith.extui %0 : i1 to i32
    %c0_i32_0 = arith.constant 0 : i32
    %2 = arith.cmpi ne, %1, %c0_i32_0 : i32
    scf.if %2 {
      %cst_10 = arith.constant 0.000000e+00 : f32
      %12 = vector.broadcast %cst_10 : f32 to vector<1x128xf32>
      %c0_11 = arith.constant 0 : index
      %c0_12 = arith.constant 0 : index
      %13 = vector.load %arg7[%c0_11, %c0_12] : memref<1x128xf32, #tpu.memory_space<vmem>>, vector<1x128xf32>
      tpu.vector_store %arg7[%c0_11, %c0_12], %12 {strides = array<i32>} : memref<1x128xf32, #tpu.memory_space<vmem>>, vector<1x128xf32>,
    } else {
    }
    %c0 = arith.constant 0 : index
    %c0_1 = arith.constant 0 : index
    %3 = vector.load %arg7[%c0, %c0_1] : memref<1x128xf32, #tpu.memory_space<vmem>>, vector<1x128xf32>
    %c0_2 = arith.constant 0 : index
    %c0_3 = arith.constant 0 : index
    %4 = vector.load %arg1[%c0_2, %c0_3] : memref<1x800xbf16, #tpu.memory_space<vmem>>, vector<1x800xbf16>
    %c0_4 = arith.constant 0 : index
    %c0_5 = arith.constant 0 : index
    %5 = vector.load %arg2[%c0_4, %c0_5] : memref<800x128xbf16, #tpu.memory_space<vmem>>, vector<800x128xbf16>
    %cst = arith.constant dense<0.000000e+00> : vector<1x128xf32>
    %6 = tpu.matmul %4, %5, %cst {dimension_numbers = #tpu.dot_dimension_numbers<[1], [0], [0], [1], [0, 0, 1, 1], [], []>} : vector<1x800xbf16>, vector<800x128xbf16>, vector<1x128xf32> -> vector<1x128xf32>
    %7 = arith.addf %3, %6 : vector<1x128xf32>
    %c0_6 = arith.constant 0 : index
    %c0_7 = arith.constant 0 : index
    %8 = vector.load %arg7[%c0_6, %c0_7] : memref<1x128xf32, #tpu.memory_space<vmem>>, vector<1x128xf32>
    tpu.vector_store %arg7[%c0_6, %c0_7], %7 {strides = array<i32>} : memref<1x128xf32, #tpu.memory_space<vmem>>, vector<1x128xf32>,
    %c0_i32_8 = arith.constant 0 : i32
    %9 = arith.cmpi eq, %arg0, %c0_i32_8 : i32
    %10 = arith.extui %9 : i1 to i32
    %c0_i32_9 = arith.constant 0 : i32
    %11 = arith.cmpi ne, %10, %c0_i32_9 : i32
    scf.if %11 {
      %c0_10 = arith.constant 0 : index
      %c0_11 = arith.constant 0 : index
      %12 = vector.load %arg7[%c0_10, %c0_11] : memref<1x128xf32, #tpu.memory_space<vmem>>, vector<1x128xf32>
      %c0_12 = arith.constant 0 : index
      %c0_13 = arith.constant 0 : index
      %13 = vector.load %arg3[%c0_12, %c0_13] : memref<1x128xf32, #tpu.memory_space<vmem>>, vector<1x128xf32>
      %14 = arith.addf %12, %13 : vector<1x128xf32>
      %c0_14 = arith.constant 0 : index
      %c0_15 = arith.constant 0 : index
      %15 = vector.load %arg4[%c0_14, %c0_15] : memref<128x2xf32, #tpu.memory_space<vmem>>, vector<128x2xf32>
      %cst_16 = arith.constant dense<0.000000e+00> : vector<1x2xf32>
      %16 = tpu.matmul %14, %15, %cst_16 {dimension_numbers = #tpu.dot_dimension_numbers<[1], [0], [0], [1], [0, 0, 1, 1], [], []>} : vector<1x128xf32>, vector<128x2xf32>, vector<1x2xf32> -> vector<1x2xf32>
      %c0_17 = arith.constant 0 : index
      %c0_18 = arith.constant 0 : index
      %17 = vector.load %arg5[%c0_17, %c0_18] : memref<1x2xf32, #tpu.memory_space<vmem>>, vector<1x2xf32>
      %18 = arith.addf %16, %17 : vector<1x2xf32>
      %cst_19 = arith.constant dense<0xFF800000> : vector<1xf32>
      %19 = vector.multi_reduction <maximumf>, %18, %cst_19 [1] : vector<1x2xf32> to vector<1xf32>
      %20 = vector.shape_cast %19 : vector<1xf32> to vector<1x1xf32>
      %21 = vector.broadcast %20 : vector<1x1xf32> to vector<1x2xf32>
      %22 = arith.subf %18, %21 : vector<1x2xf32>
      %23 = math.exp %22 : vector<1x2xf32>
      %cst_20 = arith.constant dense<0.000000e+00> : vector<1xf32>
      %24 = vector.multi_reduction <add>, %23, %cst_20 [1] : vector<1x2xf32> to vector<1xf32>
      %25 = vector.shape_cast %24 : vector<1xf32> to vector<1x1xf32>
      %26 = math.log %25 : vector<1x1xf32>
      %27 = arith.addf %26, %20 : vector<1x1xf32>
      %28 = vector.broadcast %27 : vector<1x1xf32> to vector<1x2xf32>
      %29 = arith.subf %18, %28 : vector<1x2xf32>
      %c0_21 = arith.constant 0 : index
      %c0_22 = arith.constant 0 : index
      %30 = vector.load %arg6[%c0_21, %c0_22] : memref<1x2xf32, #tpu.memory_space<vmem>>, vector<1x2xf32>
      tpu.vector_store %arg6[%c0_21, %c0_22], %29 {strides = array<i32>} : memref<1x2xf32, #tpu.memory_space<vmem>>, vector<1x2xf32>,
    } else {
    }
    return
  }
  func.func @transform_0(%arg0: i32) -> (i32, i32) {
    %c0_i32 = arith.constant 0 : i32
    %c0_i32_0 = arith.constant 0 : i32
    return %c0_i32, %arg0 : i32, i32
  }
  func.func @transform_1(%arg0: i32) -> (i32, i32) {
    %c0_i32 = arith.constant 0 : i32
    %c0_i32_0 = arith.constant 0 : i32
    return %arg0, %c0_i32 : i32, i32
  }
  func.func @transform_2(%arg0: i32) -> (i32, i32) {
    %c0_i32 = arith.constant 0 : i32
    %c0_i32_0 = arith.constant 0 : i32
    %c0_i32_1 = arith.constant 0 : i32
    return %c0_i32, %c0_i32_0 : i32, i32
  }
  func.func @transform_3(%arg0: i32) -> (i32, i32) {
    %c0_i32 = arith.constant 0 : i32
    %c0_i32_0 = arith.constant 0 : i32
    %c0_i32_1 = arith.constant 0 : i32
    return %c0_i32, %c0_i32_0 : i32, i32
  }
  func.func @transform_4(%arg0: i32) -> (i32, i32) {
    %c0_i32 = arith.constant 0 : i32
    %c0_i32_0 = arith.constant 0 : i32
    %c0_i32_1 = arith.constant 0 : i32
    return %c0_i32, %c0_i32_0 : i32, i32
  }
  func.func @transform_5(%arg0: i32) -> (i32, i32) {
    %c0_i32 = arith.constant 0 : i32
    %c0_i32_0 = arith.constant 0 : i32
    %c0_i32_1 = arith.constant 0 : i32
    return %c0_i32, %c0_i32_0 : i32, i32
  }
}

</mosaic_0001>

<bundles_post_ra>
// kernel: _normal_vs_infected.10
= control target key start
LH: loop header
LB: loop body
LE: loop exit
PB: predicated region body
PF: predicated region fallthrough
CT: control target
= control target key end

     0   :  { %s972_s12 = smov 0   ;;  %s974_s13 = smov 0   ;;  %s1129_s0 = inlined_call_operand.vmem [shape: bf16[8,9], index: 0, kind: input, shape index: {}]   ;;  %s1130_s1 = inlined_call_operand.vmem [shape: bf16[9,22528], index: 1, kind: input, shape index: {}]   ;;  %s1131_s2 = inlined_call_operand.vmem [shape: f32[8,1], index: 2, kind: input, shape index: {}]   ;;  %s1132_s3 = inlined_call_operand.vmem [shape: bf16[8,22528], index: 3, kind: output, shape index: {}]  }
   0x1   :  { %s976_s14 = smov 0  }
   0x2 LB: > { %s845_s15 = sadd.s32 4294967295, %s948_s14   ;;  %s989_s16 = sadd.s32 1, %s948_s14   ;;  %s948_s14 = sphi %s976_s14, %s1135_s14   ;;  %s944_s13 = sphi %s974_s13, %s1134_s13   ;;  %s940_s12 = sphi %s972_s12, %s1133_s12  }
   0x3   : > { %s38_s17 = ssub.s32 %s948_s14, %s989_s16  ;;  %s41_s18 = sadd.s32 1, %s944_s13 }
   0x4   : > { %p39_p0 = scmp.eq.s32.totalorder %s38_s17, 0  ;;  %p48_p1 = scmp.ne.s32.totalorder %s944_s13, %s940_s12 }
   0x5   : > { %p49_p2 = scmp.eq.s32.totalorder %s948_s14, 0  ;;  %p848_p4 = scmp.ge.s32.totalorder %s948_s14, 11 }
   0x6   : > { %s998_s19 = scalar_select %p39_p0, %s944_s13, %s41_s18  }
   0x7   : > { %p50_p3 = por %p49_p2, %p48_p1  ;;  %127 = sbr.rel (%p848_p4) target bundleno = 26 (0x1a), region = 24 }
   0xe   : > { %130 = sbr.rel (!%p50_p3) target bundleno = 26 (0x1a), region = 28  ;;  %s132_s20 = sand.u32 (%p50_p3), 1, %s944_s13  }
   0xf   : > { %s890_s21 = sshll.u32 (%p50_p3), %s948_s14, 6  ;;  %s849_s22 = sshll.u32 (%p50_p3), %s132_s20, 7 }
  0x10   : > { %s1006_s25 = scalar_lea.vmem (%p50_p3), %s1130_s1, %s890_s21  ;;  %s134_s26 = scalar_lea.vmem (%p50_p3), [#allocation2], %s849_s22 }
  0x11   : > { %v150_v0 = vld [vmem:[%s1006_s25] sm:$0xff] (%p50_p3)  ;;  %v152_v1 = vld [vmem:[%s1006_s25 + $0x8] sm:$0xff] (%p50_p3)  ;;  %v154_v2 = vld [vmem:[%s1006_s25 + $0x10] sm:$0xff] (%p50_p3) }
  0x12   : > { %151 = vst [vmem:[%s134_s26] sm:$0xff] (%p50_p3), %v150_v0  ;;  %153 = vst [vmem:[%s134_s26 + $0x8] sm:$0xff] (%p50_p3), %v152_v1  ;;  %v156_v3 = vld [vmem:[%s1006_s25 + $0x18] sm:$0xff] (%p50_p3)  ;;  %v158_v4 = vld [vmem:[%s1006_s25 + $0x20] sm:$0xff] (%p50_p3) }
  0x13   : > { %155 = vst [vmem:[%s134_s26 + $0x10] sm:$0xff] (%p50_p3), %v154_v2  ;;  %v160_v5 = vld [vmem:[%s1006_s25 + $0x28] sm:$0xff] (%p50_p3)  ;;  %157 = vst [vmem:[%s134_s26 + $0x18] sm:$0xff] (%p50_p3), %v156_v3  ;;  %v162_v6 = vld [vmem:[%s1006_s25 + $0x30] sm:$0xff] (%p50_p3) }
  0x14   : > { %159 = vst [vmem:[%s134_s26 + $0x20] sm:$0xff] (%p50_p3), %v158_v4  ;;  %161 = vst [vmem:[%s134_s26 + $0x28] sm:$0xff] (%p50_p3), %v160_v5  ;;  %v164_v7 = vld [vmem:[%s1006_s25 + $0x38] sm:$0xff] (%p50_p3)  ;;  %v166_v8 = vld [vmem:[%s1006_s25 + $0x2c0] sm:$0xff] (%p50_p3) }
  0x15   : > { %163 = vst [vmem:[%s134_s26 + $0x30] sm:$0xff] %v162_v6  ;;  %165 = vst [vmem:[%s134_s26 + $0x38] sm:$0xff] %v164_v7  ;;  %v168_v9 = vld [vmem:[%s1006_s25 + $0x2c8] sm:$0xff]  ;;  %v170_v10 = vld [vmem:[%s1006_s25 + $0x2d0] sm:$0xff] }
  0x16   : > { %167 = vst [vmem:[%s134_s26 + $0x40] sm:$0xff] %v166_v8  ;;  %v172_v11 = vld [vmem:[%s1006_s25 + $0x2d8] sm:$0xff]  ;;  %169 = vst [vmem:[%s134_s26 + $0x48] sm:$0xff] %v168_v9  ;;  %v174_v12 = vld [vmem:[%s1006_s25 + $0x2e0] sm:$0xff] }
  0x17   : > { %171 = vst [vmem:[%s134_s26 + $0x50] sm:$0xff] %v170_v10  ;;  %173 = vst [vmem:[%s134_s26 + $0x58] sm:$0xff] %v172_v11  ;;  %v176_v13 = vld [vmem:[%s1006_s25 + $0x2e8] sm:$0xff]  ;;  %v178_v14 = vld [vmem:[%s1006_s25 + $0x2f0] sm:$0xff] }
  0x18   : > { %175 = vst [vmem:[%s134_s26 + $0x60] sm:$0xff] %v174_v12  ;;  %177 = vst [vmem:[%s134_s26 + $0x68] sm:$0xff] %v176_v13  ;;  %v180_v15 = vld [vmem:[%s1006_s25 + $0x2f8] sm:$0xff] }
  0x19   : > { %179 = vst [vmem:[%s134_s26 + $0x70] sm:$0xff] %v178_v14  ;;  %181 = vst [vmem:[%s134_s26 + $0x78] sm:$0xff] %v180_v15 }
  0x1a PF: > { %p852_p5 = scmp.ge.s32.totalorder %s948_s14, 1  ;;  %p186_p6 = scmp.lt.s32.totalorder %s948_s14, 12 }
  0x1c   : > { %p187_p7 = pnand %p852_p5, %p186_p6 }
  0x1d   : > { %s193_s27 = sand.u32 (!%p187_p7), 1, %s940_s12   ;;  %vm315_vm0 = vcmask (!%p187_p7), 1043456   ;;  %vm316_vm1 = vcmask (!%p187_p7), 1044480   ;;  %v241_v16 = vld [vmem:[%s1131_s2] sm:$0xff] (!%p187_p7)  ;;  %v950_v17 = vmov (!%p187_p7), 65535   ;;  %v951_v19 = vmov (!%p187_p7), 0  }
  0x1e   : > { %190 = sbr.rel (%p187_p7) target bundleno = 287 (0x11f), region = 51  ;;  %s853_s30 = sshll.u32 (!%p187_p7), %s193_s27, 7  ;;  %v317_v18 = vsel (!%p187_p7), %vm315_vm0, 4294967295, %v950_v17  ;;  %399 = vmatprep.mubr.bf16.mxu0 (!%p187_p7), %v951_v19  ;;  %440 = vmatprep.mubr.bf16.mxu1 (!%p187_p7), %v951_v19  ;;  %v224_v48 = vld [vmem:[%s1129_s0] sm:$0xf] (!%p187_p7)  ;;  %vm311_vm2 = vcmask (!%p187_p7), 72704  }
  0x1f   : > { %925 = vset.pattern.permute.xlu0 (!%p187_p7), %v951_v19  ;;  %s1033_s4 = scalar_lea.vmem (!%p187_p7), [#allocation2], %s853_s30  ;;  %v1037_v22 = vsel (!%p187_p7), %vm316_vm1, %v317_v18, 0  ;;  %s854_s7 = sshll.u32 (!%p187_p7), %s845_s15, 4 }
  0x20   : > { %v225_v20 = vld [vmem:[%s1033_s4] sm:$0xff] (!%p187_p7)  ;;  %v226_v23 = vld [vmem:[%s1033_s4 + $0x8] sm:$0xff] (!%p187_p7)  ;;  %244 = vperm.xlu0 (!%p187_p7), %925, %v241_v16   ;;  %v227_v27 = vld [vmem:[%s1033_s4 + $0x10] sm:$0xff] (!%p187_p7)  ;;  %p218_p8 = scmp.lt.s32.totalorder (!%p187_p7), %s854_s7, 175 }
  0x21   : > { %v233_v21 = vld [vmem:[%s1033_s4 + $0x40] sm:$0x11] (!%p187_p7)  ;;  %v234_v25 = vld [vmem:[%s1033_s4 + $0x48] sm:$0x11] (!%p187_p7)  ;;  %v235_v28 = vld [vmem:[%s1033_s4 + $0x50] sm:$0x11] (!%p187_p7) }
  0x22   : > { %v857_v24 = vcombine.high (!%p187_p7), %v225_v20, %v233_v21  ;;  %v856_v26 = vcombine.low (!%p187_p7), %v225_v20, %v233_v21  ;;  %v859_v29 = vcombine.high (!%p187_p7), %v226_v23, %v234_v25  ;;  %v858_v30 = vcombine.low (!%p187_p7), %v226_v23, %v234_v25  ;;  %v228_v33 = vld [vmem:[%s1033_s4 + $0x18] sm:$0xff] (!%p187_p7)  ;;  %v229_v35 = vld [vmem:[%s1033_s4 + $0x20] sm:$0xff] (!%p187_p7)  ;;  %v230_v41 = vld [vmem:[%s1033_s4 + $0x28] sm:$0xff] (!%p187_p7) }
  0x23   : > { %v860_v31 = vcombine.low (!%p187_p7), %v227_v27, %v235_v28  ;;  %v861_v32 = vcombine.high (!%p187_p7), %v227_v27, %v235_v28  ;;  %v236_v34 = vld [vmem:[%s1033_s4 + $0x58] sm:$0x11] (!%p187_p7)  ;;  %v237_v40 = vld [vmem:[%s1033_s4 + $0x60] sm:$0x11] (!%p187_p7)  ;;  %v238_v42 = vld [vmem:[%s1033_s4 + $0x68] sm:$0x11] (!%p187_p7) }
  0x24   : > { %v323_v36 = vand.u32 (!%p187_p7), %v857_v24, %v1037_v22  ;;  %v320_v37 = vand.u32 (!%p187_p7), %v856_v26, %v1037_v22  ;;  %v862_v38 = vcombine.low (!%p187_p7), %v228_v33, %v236_v34  ;;  %v863_v39 = vcombine.high (!%p187_p7), %v228_v33, %v236_v34  ;;  %v231_v54 = vld [vmem:[%s1033_s4 + $0x30] sm:$0xff] (!%p187_p7)  ;;  %v232_v57 = vld [vmem:[%s1033_s4 + $0x38] sm:$0xff] (!%p187_p7) }
  0x25   : > { %v329_v43 = vand.u32 %v859_v29, %v1037_v22  ;;  %v326_v44 = vand.u32 %v858_v30, %v1037_v22  ;;  %v335_v45 = vand.u32 %v861_v32, %v1037_v22  ;;  %v865_v47 = vcombine.high %v229_v35, %v237_v40  ;;  %v239_v55 = vld [vmem:[%s1033_s4 + $0x70] sm:$0x11]  ;;  %v240_v58 = vld [vmem:[%s1033_s4 + $0x78] sm:$0x11]  ;;  %s1137_s7 = smov (!%p218_p8, %s854_s7), 175 }
  0x26   : > { %367 = vmatprep.subr.bf16.mxu0 %v323_v36  ;;  %v341_v46 = vand.u32 %v863_v39, %v1037_v22  ;;  %v332_v49 = vand.u32 %v860_v31, %v1037_v22  ;;  %v867_v50 = vcombine.high %v230_v41, %v238_v42  ;;  %v338_v51 = vand.u32 %v862_v38, %v1037_v22  ;;  %s855_s8 = sshll.u32 %s1137_s7, 2 }
  0x27   : > { %408 = vmatprep.subr.bf16.mxu1 %v329_v43  ;;  %368 = vmatpush1.bf16.msra.mxu0 %v320_v37  ;;  %v347_v52 = vand.u32 %v865_v47, %v1037_v22  ;;  %v864_v56 = vcombine.low %v229_v35, %v237_v40  ;;  %v866_v59 = vcombine.low %v230_v41, %v238_v42  ;;  %s1097_s11 = scalar_lea.vmem %s1132_s3, %s855_s8 }
  0x28   : > { %409 = vmatpush1.bf16.msra.mxu1 %v326_v44  ;;  %449 = vmatprep.subr.bf16.mxu0 %v335_v45  ;;  %v353_v53 = vand.u32 %v867_v50, %v1037_v22  ;;  %v869_v60 = vcombine.high %v231_v54, %v239_v55  ;;  %v871_v61 = vcombine.high %v232_v57, %v240_v58 }
  0x29   : > { %490 = vmatprep.subr.bf16.mxu1 %v341_v46  ;;  %v344_v62 = vand.u32 %v864_v56, %v1037_v22  ;;  %v350_v63 = vand.u32 %v866_v59, %v1037_v22  ;;  %v868_v2 = vcombine.low %v231_v54, %v239_v55  ;;  %v870_v3 = vcombine.low %v232_v57, %v240_v58 }
  0x2a   : > { %872 = vmatmul.mubr.msk.bf16.vlgmr.msra.gmra.mrb[0].mxu0 %vm311_vm2, %v224_v48  ;;  %v359_v0 = vand.u32 %v869_v60, %v1037_v22  ;;  %v365_v1 = vand.u32 %v871_v61, %v1037_v22 }
  0x2b   : > { %873 = vmatmul.mubr.msk.bf16.vlgmr.msra.gmra.mrb[0].mxu1 %vm311_vm2, %v224_v48  ;;  %450 = vmatpush1.bf16.msra.mxu0 %v332_v49  ;;  %v356_v4 = vand.u32 %v868_v2, %v1037_v22  ;;  %v362_v5 = vand.u32 %v870_v3, %v1037_v22 }
  0x2c   : > { %491 = vmatpush1.bf16.msra.mxu1 %v338_v51  ;;  %481 = vmatprep.mubr.bf16.mxu0 %v951_v19 }
  0x2d   : > { %522 = vmatprep.mubr.bf16.mxu1 %v951_v19  ;;  %531 = vmatprep.subr.bf16.mxu0 %v347_v52 }
  0x2e   : > { %572 = vmatprep.subr.bf16.mxu1 %v353_v53 }
  0x32   : > { %874 = vmatmul.mubr.msk.bf16.vlgmr.msra.gmra.mrb[4].mxu0 %vm311_vm2, %v224_v48 }
  0x33   : > { %875 = vmatmul.mubr.msk.bf16.vlgmr.msra.gmra.mrb[4].mxu1 %vm311_vm2, %v224_v48  ;;  %532 = vmatpush1.bf16.msra.mxu0 %v344_v62 }
  0x34   : > { %573 = vmatpush1.bf16.msra.mxu1 %v350_v63  ;;  %563 = vmatprep.mubr.bf16.mxu0 %v951_v19 }
  0x35   : > { %604 = vmatprep.mubr.bf16.mxu1 %v951_v19  ;;  %613 = vmatprep.subr.bf16.mxu0 %v359_v0 }
  0x36   : > { %654 = vmatprep.subr.bf16.mxu1 %v365_v1 }
  0x3a   : > { %876 = vmatmul.mubr.msk.bf16.vlgmr.msra.gmra.mrb[8].mxu0 %vm311_vm2, %v224_v48 }
  0x3b   : > { %877 = vmatmul.mubr.msk.bf16.vlgmr.msra.gmra.mrb[8].mxu1 %vm311_vm2, %v224_v48  ;;  %614 = vmatpush1.bf16.msra.mxu0 %v356_v4 }
  0x3c   : > { %655 = vmatpush1.bf16.msra.mxu1 %v362_v5  ;;  %645 = vmatprep.mubr.bf16.mxu0 %v951_v19 }
  0x3d   : > { %686 = vmatprep.mubr.bf16.mxu1 %v951_v19 }
  0x42   : > { %878 = vmatmul.mubr.msk.bf16.vlgmr.msra.gmra.mrb[12].mxu0 %vm311_vm2, %v224_v48 }
  0x43   : > { %879 = vmatmul.mubr.msk.bf16.vlgmr.msra.gmra.mrb[12].mxu1 %vm311_vm2, %v224_v48 }
  0x9f   : > { %v1088_v6 = vpop.permute.xlu0 %244 }
  0xfd   : > { %v401_v7 = vpop.f32.mrb[0].mxu0 }
  0xfe   : > { %v442_v8 = vpop.f32.mrb[0].mxu1  ;;  %v402_v9 = vadd.f32 %v401_v7, %v1088_v6  ;;  %v403_v10 = vpop.f32.mrb[1].mxu0 }
  0xff   : > { %v404_v11 = vadd.f32 %v403_v10, %v1088_v6  ;;  %v443_v12 = vadd.f32 %v442_v8, %v1088_v6  ;;  %v444_v13 = vpop.f32.mrb[1].mxu1  ;;  %v405_v14 = vpop.f32.mrb[2].mxu0 }
 0x100   : > { %v695_v15 = vmax.f32 %v402_v9, 0.0  ;;  %v445_v16 = vadd.f32 %v444_v13, %v1088_v6  ;;  %v446_v17 = vpop.f32.mrb[2].mxu1  ;;  %v406_v18 = vpop.f32.mrb[3].mxu0 }
 0x101   : > { %v696_v19 = vmax.f32 %v404_v11, 0.0  ;;  %v697_v20 = vmax.f32 %v443_v12, 0.0  ;;  %v447_v21 = vpop.f32.mrb[3].mxu1 }
 0x102   : > { %v698_v22 = vmax.f32 %v445_v16, 0.0 }
 0x103   : > { %v891_v23 = vpack.c.bf16 %v696_v19, %v695_v15 }
 0x104   : > { %v892_v24 = vpack.c.bf16 %v698_v22, %v697_v20 }
 0x105   : > { %775 = vst [vmem:[%s1097_s11] sm:$0xff] %v891_v23  ;;  %v483_v25 = vpop.f32.mrb[4].mxu0 }
 0x106   : > { %776 = vst [vmem:[%s1097_s11 + $0x8] sm:$0xff] %v892_v24  ;;  %v484_v26 = vadd.f32 %v483_v25, %v1088_v6  ;;  %v524_v27 = vpop.f32.mrb[4].mxu1  ;;  %v485_v28 = vpop.f32.mrb[5].mxu0 }
 0x107   : > { %v525_v29 = vadd.f32 %v524_v27, %v1088_v6  ;;  %v486_v30 = vadd.f32 %v485_v28, %v1088_v6  ;;  %v526_v31 = vpop.f32.mrb[5].mxu1  ;;  %v487_v32 = vpop.f32.mrb[6].mxu0 }
 0x108   : > { %v699_v33 = vmax.f32 %v484_v26, 0.0  ;;  %v527_v34 = vadd.f32 %v526_v31, %v1088_v6  ;;  %v528_v35 = vpop.f32.mrb[6].mxu1  ;;  %v488_v36 = vpop.f32.mrb[7].mxu0 }
 0x109   : > { %v701_v37 = vmax.f32 %v525_v29, 0.0  ;;  %v700_v38 = vmax.f32 %v486_v30, 0.0  ;;  %v529_v39 = vpop.f32.mrb[7].mxu1 }
 0x10a   : > { %v702_v40 = vmax.f32 %v527_v34, 0.0 }
 0x10b   : > { %v893_v41 = vpack.c.bf16 %v700_v38, %v699_v33 }
 0x10c   : > { %v894_v42 = vpack.c.bf16 %v702_v40, %v701_v37 }
 0x10d   : > { %777 = vst [vmem:[%s1097_s11 + $0x10] sm:$0xff] %v893_v41  ;;  %v565_v43 = vpop.f32.mrb[8].mxu0 }
 0x10e   : > { %778 = vst [vmem:[%s1097_s11 + $0x18] sm:$0xff] %v894_v42  ;;  %v566_v44 = vadd.f32 %v565_v43, %v1088_v6  ;;  %v606_v45 = vpop.f32.mrb[8].mxu1  ;;  %v567_v46 = vpop.f32.mrb[9].mxu0 }
 0x10f   : > { %v607_v47 = vadd.f32 %v606_v45, %v1088_v6  ;;  %v568_v48 = vadd.f32 %v567_v46, %v1088_v6  ;;  %v608_v49 = vpop.f32.mrb[9].mxu1  ;;  %v569_v50 = vpop.f32.mrb[10].mxu0 }
 0x110   : > { %v703_v51 = vmax.f32 %v566_v44, 0.0  ;;  %v609_v52 = vadd.f32 %v608_v49, %v1088_v6  ;;  %v610_v53 = vpop.f32.mrb[10].mxu1  ;;  %v570_v54 = vpop.f32.mrb[11].mxu0 }
 0x111   : > { %v705_v55 = vmax.f32 %v607_v47, 0.0  ;;  %v704_v56 = vmax.f32 %v568_v48, 0.0  ;;  %v611_v57 = vpop.f32.mrb[11].mxu1 }
 0x112   : > { %v706_v58 = vmax.f32 %v609_v52, 0.0 }
 0x113   : > { %v895_v59 = vpack.c.bf16 %v704_v56, %v703_v51 }
 0x114   : > { %v896_v60 = vpack.c.bf16 %v706_v58, %v705_v55 }
 0x115   : > { %779 = vst [vmem:[%s1097_s11 + $0x20] sm:$0xff] %v895_v59  ;;  %v647_v61 = vpop.f32.mrb[12].mxu0 }
 0x116   : > { %780 = vst [vmem:[%s1097_s11 + $0x28] sm:$0xff] %v896_v60  ;;  %v648_v62 = vadd.f32 %v647_v61, %v1088_v6  ;;  %v688_v63 = vpop.f32.mrb[12].mxu1  ;;  %v649_v0 = vpop.f32.mrb[13].mxu0 }
 0x117   : > { %v689_v1 = vadd.f32 %v688_v63, %v1088_v6  ;;  %v650_v2 = vadd.f32 %v649_v0, %v1088_v6  ;;  %v690_v3 = vpop.f32.mrb[13].mxu1  ;;  %v651_v4 = vpop.f32.mrb[14].mxu0 }
 0x118   : > { %v707_v5 = vmax.f32 %v648_v62, 0.0  ;;  %v691_v7 = vadd.f32 %v690_v3, %v1088_v6  ;;  %v692_v8 = vpop.f32.mrb[14].mxu1  ;;  %v652_v9 = vpop.f32.mrb[15].mxu0 }
 0x119   : > { %v709_v10 = vmax.f32 %v689_v1, 0.0  ;;  %v708_v11 = vmax.f32 %v650_v2, 0.0  ;;  %v693_v12 = vpop.f32.mrb[15].mxu1 }
 0x11a   : > { %v710_v13 = vmax.f32 %v691_v7, 0.0 }
 0x11b   : > { %v897_v14 = vpack.c.bf16 %v708_v11, %v707_v5 }
 0x11c   : > { %v898_v15 = vpack.c.bf16 %v710_v13, %v709_v10 }
 0x11d   : > { %781 = vst [vmem:[%s1097_s11 + $0x30] sm:$0xff] %v897_v14 }
 0x11e   : > { %782 = vst [vmem:[%s1097_s11 + $0x38] sm:$0xff] %v898_v15 }
 0x11f PF: > { %p10_p9 = scmp.ge.s32.totalorder %s989_s16, 13   ;;  %s1133_s12 = smov %s944_s13 }
 0x120   : > { %s1134_s13 = smov %s998_s19  ;;  %s1135_s14 = smov %s989_s16 }
 0x121   :  { %12 = sbr.rel (!%p10_p9) target bundleno = 2 (0x2), region = 90 }

// kernel: _normal_vs_infected.11
= control target key start
LH: loop header
LB: loop body
LE: loop exit
PB: predicated region body
PF: predicated region fallthrough
CT: control target
= control target key end

     0   :  { %s1519_s12 = smov 0   ;;  %s1521_s13 = smov 0   ;;  %s1870_s0 = inlined_call_operand.vmem [shape: bf16[8,72], index: 0, kind: input, shape index: {}]   ;;  %s1871_s1 = inlined_call_operand.vmem [shape: bf16[72,22528], index: 1, kind: input, shape index: {}]   ;;  %s1872_s2 = inlined_call_operand.vmem [shape: f32[8,1], index: 2, kind: input, shape index: {}]   ;;  %s1873_s3 = inlined_call_operand.vmem [shape: bf16[8,22528], index: 3, kind: output, shape index: {}]  }
   0x1   :  { %s1523_s14 = smov 0  }
   0x2 LB: > { %s1306_s15 = sadd.s32 4294967295, %s1496_s14   ;;  %s1536_s16 = sadd.s32 1, %s1496_s14   ;;  %s1496_s14 = sphi %s1523_s14, %s1876_s14   ;;  %s1492_s13 = sphi %s1521_s13, %s1875_s13   ;;  %s1488_s12 = sphi %s1519_s12, %s1874_s12  }
   0x3   : > { %s38_s17 = ssub.s32 %s1496_s14, %s1536_s16  ;;  %s41_s18 = sadd.s32 1, %s1492_s13 }
   0x4   : > { %p39_p0 = scmp.eq.s32.totalorder %s38_s17, 0  ;;  %p48_p1 = scmp.ne.s32.totalorder %s1492_s13, %s1488_s12 }
   0x5   : > { %p49_p2 = scmp.eq.s32.totalorder %s1496_s14, 0  ;;  %p1309_p4 = scmp.ge.s32.totalorder %s1496_s14, 11 }
   0x6   : > { %s1545_s19 = scalar_select %p39_p0, %s1492_s13, %s41_s18  }
   0x7   : > { %p50_p3 = por %p49_p2, %p48_p1  ;;  %127 = sbr.rel (%p1309_p4) target bundleno = 55 (0x37), region = 24 }
   0xe   : > { %130 = sbr.rel (!%p50_p3) target bundleno = 55 (0x37), region = 28  ;;  %s132_s20 = sand.u32 (%p50_p3), 1, %s1492_s13  }
   0xf   : > { %s1421_s21 = sshll.u32 (%p50_p3), %s1496_s14, 6  ;;  %s1430_s22 = smul.u32 (%p50_p3), 576, %s132_s20 }
  0x10   : > { %s1553_s25 = scalar_lea.vmem (%p50_p3), %s1871_s1, %s1421_s21 }
  0x11   : > { %v150_v0 = vld [vmem:[%s1553_s25] sm:$0xff] (%p50_p3)  ;;  %v152_v1 = vld [vmem:[%s1553_s25 + $0x8] sm:$0xff] (%p50_p3)  ;;  %v154_v2 = vld [vmem:[%s1553_s25 + $0x10] sm:$0xff] (%p50_p3)  ;;  %s1561_s26 = scalar_lea.vmem (%p50_p3), [#allocation2], %s1430_s22 }
  0x12   : > { %v156_v3 = vld [vmem:[%s1553_s25 + $0x18] sm:$0xff] (%p50_p3)  ;;  %v158_v4 = vld [vmem:[%s1553_s25 + $0x20] sm:$0xff] (%p50_p3)  ;;  %v160_v5 = vld [vmem:[%s1553_s25 + $0x28] sm:$0xff] (%p50_p3)  ;;  %151 = vst [vmem:[%s1561_s26] sm:$0xff] (%p50_p3), %v150_v0 }
  0x13   : > { %153 = vst [vmem:[%s1561_s26 + $0x8] sm:$0xff] (%p50_p3), %v152_v1  ;;  %155 = vst [vmem:[%s1561_s26 + $0x10] sm:$0xff] (%p50_p3), %v154_v2  ;;  %v162_v6 = vld [vmem:[%s1553_s25 + $0x30] sm:$0xff] (%p50_p3)  ;;  %v164_v7 = vld [vmem:[%s1553_s25 + $0x38] sm:$0xff] (%p50_p3) }
  0x14   : > { %157 = vst [vmem:[%s1561_s26 + $0x18] sm:$0xff] (%p50_p3), %v156_v3  ;;  %159 = vst [vmem:[%s1561_s26 + $0x20] sm:$0xff] (%p50_p3), %v158_v4  ;;  %v166_v8 = vld [vmem:[%s1553_s25 + $0x2c0] sm:$0xff] (%p50_p3)  ;;  %v168_v9 = vld [vmem:[%s1553_s25 + $0x2c8] sm:$0xff] (%p50_p3) }
  0x15   : > { %161 = vst [vmem:[%s1561_s26 + $0x28] sm:$0xff] %v160_v5  ;;  %163 = vst [vmem:[%s1561_s26 + $0x30] sm:$0xff] %v162_v6  ;;  %v170_v10 = vld [vmem:[%s1553_s25 + $0x2d0] sm:$0xff]  ;;  %v172_v11 = vld [vmem:[%s1553_s25 + $0x2d8] sm:$0xff] }
  0x16   : > { %165 = vst [vmem:[%s1561_s26 + $0x38] sm:$0xff] %v164_v7  ;;  %167 = vst [vmem:[%s1561_s26 + $0x40] sm:$0xff] %v166_v8  ;;  %v174_v12 = vld [vmem:[%s1553_s25 + $0x2e0] sm:$0xff]  ;;  %v176_v13 = vld [vmem:[%s1553_s25 + $0x2e8] sm:$0xff] }
  0x17   : > { %169 = vst [vmem:[%s1561_s26 + $0x48] sm:$0xff] %v168_v9  ;;  %171 = vst [vmem:[%s1561_s26 + $0x50] sm:$0xff] %v170_v10  ;;  %v178_v14 = vld [vmem:[%s1553_s25 + $0x2f0] sm:$0xff]  ;;  %v180_v15 = vld [vmem:[%s1553_s25 + $0x2f8] sm:$0xff] }
  0x18   : > { %173 = vst [vmem:[%s1561_s26 + $0x58] sm:$0xff] %v172_v11  ;;  %175 = vst [vmem:[%s1561_s26 + $0x60] sm:$0xff] %v174_v12  ;;  %v182_v16 = vld [vmem:[%s1553_s25 + $0x580] sm:$0xff]  ;;  %v184_v17 = vld [vmem:[%s1553_s25 + $0x588] sm:$0xff] }
  0x19   : > { %177 = vst [vmem:[%s1561_s26 + $0x68] sm:$0xff] %v176_v13  ;;  %179 = vst [vmem:[%s1561_s26 + $0x70] sm:$0xff] %v178_v14  ;;  %v186_v18 = vld [vmem:[%s1553_s25 + $0x590] sm:$0xff]  ;;  %v188_v19 = vld [vmem:[%s1553_s25 + $0x598] sm:$0xff] }
  0x1a   : > { %181 = vst [vmem:[%s1561_s26 + $0x78] sm:$0xff] %v180_v15  ;;  %183 = vst [vmem:[%s1561_s26 + $0x80] sm:$0xff] %v182_v16  ;;  %v190_v20 = vld [vmem:[%s1553_s25 + $0x5a0] sm:$0xff]  ;;  %v192_v21 = vld [vmem:[%s1553_s25 + $0x5a8] sm:$0xff] }
  0x1b   : > { %185 = vst [vmem:[%s1561_s26 + $0x88] sm:$0xff] %v184_v17  ;;  %187 = vst [vmem:[%s1561_s26 + $0x90] sm:$0xff] %v186_v18  ;;  %v194_v22 = vld [vmem:[%s1553_s25 + $0x5b0] sm:$0xff]  ;;  %v196_v23 = vld [vmem:[%s1553_s25 + $0x5b8] sm:$0xff] }
  0x1c   : > { %189 = vst [vmem:[%s1561_s26 + $0x98] sm:$0xff] %v188_v19  ;;  %191 = vst [vmem:[%s1561_s26 + $0xa0] sm:$0xff] %v190_v20  ;;  %v198_v24 = vld [vmem:[%s1553_s25 + $0x840] sm:$0xff]  ;;  %v200_v25 = vld [vmem:[%s1553_s25 + $0x848] sm:$0xff] }
  0x1d   : > { %193 = vst [vmem:[%s1561_s26 + $0xa8] sm:$0xff] %v192_v21  ;;  %195 = vst [vmem:[%s1561_s26 + $0xb0] sm:$0xff] %v194_v22  ;;  %v202_v26 = vld [vmem:[%s1553_s25 + $0x850] sm:$0xff]  ;;  %v204_v27 = vld [vmem:[%s1553_s25 + $0x858] sm:$0xff] }
  0x1e   : > { %197 = vst [vmem:[%s1561_s26 + $0xb8] sm:$0xff] %v196_v23  ;;  %199 = vst [vmem:[%s1561_s26 + $0xc0] sm:$0xff] %v198_v24  ;;  %v206_v28 = vld [vmem:[%s1553_s25 + $0x860] sm:$0xff]  ;;  %v208_v29 = vld [vmem:[%s1553_s25 + $0x868] sm:$0xff] }
  0x1f   : > { %201 = vst [vmem:[%s1561_s26 + $0xc8] sm:$0xff] %v200_v25  ;;  %203 = vst [vmem:[%s1561_s26 + $0xd0] sm:$0xff] %v202_v26  ;;  %v210_v30 = vld [vmem:[%s1553_s25 + $0x870] sm:$0xff]  ;;  %v212_v31 = vld [vmem:[%s1553_s25 + $0x878] sm:$0xff] }
  0x20   : > { %205 = vst [vmem:[%s1561_s26 + $0xd8] sm:$0xff] %v204_v27  ;;  %207 = vst [vmem:[%s1561_s26 + $0xe0] sm:$0xff] %v206_v28  ;;  %v214_v32 = vld [vmem:[%s1553_s25 + $0xb00] sm:$0xff]  ;;  %v216_v33 = vld [vmem:[%s1553_s25 + $0xb08] sm:$0xff] }
  0x21   : > { %209 = vst [vmem:[%s1561_s26 + $0xe8] sm:$0xff] %v208_v29  ;;  %211 = vst [vmem:[%s1561_s26 + $0xf0] sm:$0xff] %v210_v30  ;;  %v218_v34 = vld [vmem:[%s1553_s25 + $0xb10] sm:$0xff]  ;;  %v220_v35 = vld [vmem:[%s1553_s25 + $0xb18] sm:$0xff] }
  0x22   : > { %213 = vst [vmem:[%s1561_s26 + $0xf8] sm:$0xff] %v212_v31  ;;  %215 = vst [vmem:[%s1561_s26 + $0x100] sm:$0xff] %v214_v32  ;;  %v222_v36 = vld [vmem:[%s1553_s25 + $0xb20] sm:$0xff]  ;;  %v224_v37 = vld [vmem:[%s1553_s25 + $0xb28] sm:$0xff] }
  0x23   : > { %217 = vst [vmem:[%s1561_s26 + $0x108] sm:$0xff] %v216_v33  ;;  %219 = vst [vmem:[%s1561_s26 + $0x110] sm:$0xff] %v218_v34  ;;  %v226_v38 = vld [vmem:[%s1553_s25 + $0xb30] sm:$0xff]  ;;  %v228_v39 = vld [vmem:[%s1553_s25 + $0xb38] sm:$0xff] }
  0x24   : > { %221 = vst [vmem:[%s1561_s26 + $0x118] sm:$0xff] %v220_v35  ;;  %223 = vst [vmem:[%s1561_s26 + $0x120] sm:$0xff] %v222_v36  ;;  %v230_v40 = vld [vmem:[%s1553_s25 + $0xdc0] sm:$0xff]  ;;  %v232_v41 = vld [vmem:[%s1553_s25 + $0xdc8] sm:$0xff] }
  0x25   : > { %225 = vst [vmem:[%s1561_s26 + $0x128] sm:$0xff] %v224_v37  ;;  %227 = vst [vmem:[%s1561_s26 + $0x130] sm:$0xff] %v226_v38  ;;  %v234_v42 = vld [vmem:[%s1553_s25 + $0xdd0] sm:$0xff]  ;;  %v236_v43 = vld [vmem:[%s1553_s25 + $0xdd8] sm:$0xff] }
  0x26   : > { %229 = vst [vmem:[%s1561_s26 + $0x138] sm:$0xff] %v228_v39  ;;  %231 = vst [vmem:[%s1561_s26 + $0x140] sm:$0xff] %v230_v40  ;;  %v238_v44 = vld [vmem:[%s1553_s25 + $0xde0] sm:$0xff]  ;;  %v240_v45 = vld [vmem:[%s1553_s25 + $0xde8] sm:$0xff] }
  0x27   : > { %233 = vst [vmem:[%s1561_s26 + $0x148] sm:$0xff] %v232_v41  ;;  %235 = vst [vmem:[%s1561_s26 + $0x150] sm:$0xff] %v234_v42  ;;  %v242_v46 = vld [vmem:[%s1553_s25 + $0xdf0] sm:$0xff]  ;;  %v244_v47 = vld [vmem:[%s1553_s25 + $0xdf8] sm:$0xff] }
  0x28   : > { %237 = vst [vmem:[%s1561_s26 + $0x158] sm:$0xff] %v236_v43  ;;  %239 = vst [vmem:[%s1561_s26 + $0x160] sm:$0xff] %v238_v44  ;;  %v246_v48 = vld [vmem:[%s1553_s25 + $0x1080] sm:$0xff]  ;;  %v248_v49 = vld [vmem:[%s1553_s25 + $0x1088] sm:$0xff] }
  0x29   : > { %241 = vst [vmem:[%s1561_s26 + $0x168] sm:$0xff] %v240_v45  ;;  %243 = vst [vmem:[%s1561_s26 + $0x170] sm:$0xff] %v242_v46  ;;  %v250_v50 = vld [vmem:[%s1553_s25 + $0x1090] sm:$0xff]  ;;  %v252_v51 = vld [vmem:[%s1553_s25 + $0x1098] sm:$0xff] }
  0x2a   : > { %245 = vst [vmem:[%s1561_s26 + $0x178] sm:$0xff] %v244_v47  ;;  %247 = vst [vmem:[%s1561_s26 + $0x180] sm:$0xff] %v246_v48  ;;  %v254_v52 = vld [vmem:[%s1553_s25 + $0x10a0] sm:$0xff]  ;;  %v256_v53 = vld [vmem:[%s1553_s25 + $0x10a8] sm:$0xff] }
  0x2b   : > { %249 = vst [vmem:[%s1561_s26 + $0x188] sm:$0xff] %v248_v49  ;;  %251 = vst [vmem:[%s1561_s26 + $0x190] sm:$0xff] %v250_v50  ;;  %v258_v54 = vld [vmem:[%s1553_s25 + $0x10b0] sm:$0xff]  ;;  %v260_v55 = vld [vmem:[%s1553_s25 + $0x10b8] sm:$0xff] }
  0x2c   : > { %253 = vst [vmem:[%s1561_s26 + $0x198] sm:$0xff] %v252_v51  ;;  %255 = vst [vmem:[%s1561_s26 + $0x1a0] sm:$0xff] %v254_v52  ;;  %v262_v56 = vld [vmem:[%s1553_s25 + $0x1340] sm:$0xff]  ;;  %v264_v57 = vld [vmem:[%s1553_s25 + $0x1348] sm:$0xff] }
  0x2d   : > { %257 = vst [vmem:[%s1561_s26 + $0x1a8] sm:$0xff] %v256_v53  ;;  %259 = vst [vmem:[%s1561_s26 + $0x1b0] sm:$0xff] %v258_v54  ;;  %v266_v58 = vld [vmem:[%s1553_s25 + $0x1350] sm:$0xff]  ;;  %v268_v59 = vld [vmem:[%s1553_s25 + $0x1358] sm:$0xff] }
  0x2e   : > { %261 = vst [vmem:[%s1561_s26 + $0x1b8] sm:$0xff] %v260_v55  ;;  %263 = vst [vmem:[%s1561_s26 + $0x1c0] sm:$0xff] %v262_v56  ;;  %v270_v60 = vld [vmem:[%s1553_s25 + $0x1360] sm:$0xff]  ;;  %v272_v61 = vld [vmem:[%s1553_s25 + $0x1368] sm:$0xff] }
  0x2f   : > { %265 = vst [vmem:[%s1561_s26 + $0x1c8] sm:$0xff] %v264_v57  ;;  %267 = vst [vmem:[%s1561_s26 + $0x1d0] sm:$0xff] %v266_v58  ;;  %v274_v62 = vld [vmem:[%s1553_s25 + $0x1370] sm:$0xff]  ;;  %v276_v63 = vld [vmem:[%s1553_s25 + $0x1378] sm:$0xff] }
  0x30   : > { %269 = vst [vmem:[%s1561_s26 + $0x1d8] sm:$0xff] %v268_v59  ;;  %271 = vst [vmem:[%s1561_s26 + $0x1e0] sm:$0xff] %v270_v60  ;;  %v278_v0 = vld [vmem:[%s1553_s25 + $0x1600] sm:$0xff]  ;;  %v280_v1 = vld [vmem:[%s1553_s25 + $0x1608] sm:$0xff] }
  0x31   : > { %273 = vst [vmem:[%s1561_s26 + $0x1e8] sm:$0xff] %v272_v61  ;;  %275 = vst [vmem:[%s1561_s26 + $0x1f0] sm:$0xff] %v274_v62  ;;  %v282_v2 = vld [vmem:[%s1553_s25 + $0x1610] sm:$0xff]  ;;  %v284_v3 = vld [vmem:[%s1553_s25 + $0x1618] sm:$0xff] }
  0x32   : > { %277 = vst [vmem:[%s1561_s26 + $0x1f8] sm:$0xff] %v276_v63  ;;  %279 = vst [vmem:[%s1561_s26 + $0x200] sm:$0xff] %v278_v0  ;;  %v286_v4 = vld [vmem:[%s1553_s25 + $0x1620] sm:$0xff]  ;;  %v288_v5 = vld [vmem:[%s1553_s25 + $0x1628] sm:$0xff] }
  0x33   : > { %281 = vst [vmem:[%s1561_s26 + $0x208] sm:$0xff] %v280_v1  ;;  %283 = vst [vmem:[%s1561_s26 + $0x210] sm:$0xff] %v282_v2  ;;  %v290_v6 = vld [vmem:[%s1553_s25 + $0x1630] sm:$0xff]  ;;  %v292_v7 = vld [vmem:[%s1553_s25 + $0x1638] sm:$0xff] }
  0x34   : > { %285 = vst [vmem:[%s1561_s26 + $0x218] sm:$0xff] %v284_v3  ;;  %287 = vst [vmem:[%s1561_s26 + $0x220] sm:$0xff] %v286_v4 }
  0x35   : > { %289 = vst [vmem:[%s1561_s26 + $0x228] sm:$0xff] %v288_v5  ;;  %291 = vst [vmem:[%s1561_s26 + $0x230] sm:$0xff] %v290_v6 }
  0x36   : > { %293 = vst [vmem:[%s1561_s26 + $0x238] sm:$0xff] %v292_v7 }
  0x37 PF: > { %p1312_p5 = scmp.ge.s32.totalorder %s1496_s14, 1  ;;  %p298_p6 = scmp.lt.s32.totalorder %s1496_s14, 12 }
  0x39   : > { %p299_p7 = pnand %p1312_p5, %p298_p6 }
  0x3a   : > { %s305_s27 = sand.u32 (!%p299_p7), 1, %s1488_s12   ;;  %v1498_v8 = vmov (!%p299_p7), 0   ;;  %v409_v9 = vld [vmem:[%s1872_s2] sm:$0xff] (!%p299_p7)  ;;  %vm779_vm0 = vcmask (!%p299_p7), 1043456   ;;  %vm775_vm1 = vcmask (!%p299_p7), 588800   ;;  %s1313_s7 = sshll.u32 (!%p299_p7), %s1306_s15, 4 }
  0x3b   : > { %302 = sbr.rel (%p299_p7) target bundleno = 367 (0x16f), region = 51  ;;  %860 = vmatprep.mubr.bf16.mxu0 (!%p299_p7), %v1498_v8  ;;  %901 = vmatprep.mubr.bf16.mxu1 (!%p299_p7), %v1498_v8  ;;  %v1745_v60 = vld [vmem:[%s1870_s0] sm:$0xf] (!%p299_p7)  ;;  %p330_p8 = scmp.lt.s32.totalorder (!%p299_p7), %s1313_s7, 175 }
  0x3c   : > { %s1431_s28 = smul.u32 (!%p299_p7), 576, %s305_s27  ;;  %1457 = vset.pattern.permute.xlu0 (!%p299_p7), %v1498_v8 }
  0x3d   : > { %412 = vperm.xlu0 (!%p299_p7), %1457, %v409_v9  }
  0x3e   : > { %s1710_s4 = scalar_lea.vmem (!%p299_p7), [#allocation2], %s1431_s28 }
  0x3f   : > { %v337_v10 = vld [vmem:[%s1710_s4] sm:$0xff] (!%p299_p7)  ;;  %v338_v12 = vld [vmem:[%s1710_s4 + $0x8] sm:$0xff] (!%p299_p7)  ;;  %v339_v48 = vld [vmem:[%s1710_s4 + $0x10] sm:$0xff] (!%p299_p7) }
  0x40   : > { %v345_v11 = vld [vmem:[%s1710_s4 + $0x40] sm:$0xff] (!%p299_p7)  ;;  %v346_v14 = vld [vmem:[%s1710_s4 + $0x48] sm:$0xff] (!%p299_p7)  ;;  %v347_v49 = vld [vmem:[%s1710_s4 + $0x50] sm:$0xff] (!%p299_p7) }
  0x41   : > { %v1316_v13 = vcombine.high (!%p299_p7), %v337_v10, %v345_v11  ;;  %v1315_v15 = vcombine.low (!%p299_p7), %v337_v10, %v345_v11  ;;  %v353_v16 = vld [vmem:[%s1710_s4 + $0x80] sm:$0xff] (!%p299_p7)  ;;  %v1318_v18 = vcombine.high (!%p299_p7), %v338_v12, %v346_v14  ;;  %v1317_v19 = vcombine.low (!%p299_p7), %v338_v12, %v346_v14  ;;  %v354_v21 = vld [vmem:[%s1710_s4 + $0x88] sm:$0xff] (!%p299_p7)  ;;  %v340_v50 = vld [vmem:[%s1710_s4 + $0x18] sm:$0xff] (!%p299_p7) }
  0x42   : > { %v361_v17 = vld [vmem:[%s1710_s4 + $0xc0] sm:$0xff]  ;;  %v362_v22 = vld [vmem:[%s1710_s4 + $0xc8] sm:$0xff]  ;;  %v348_v51 = vld [vmem:[%s1710_s4 + $0x58] sm:$0xff]  ;;  %v1320_v53 = vcombine.high %v339_v48, %v347_v49  ;;  %v1319_v61 = vcombine.low %v339_v48, %v347_v49  ;;  %s1878_s7 = smov (!%p330_p8, %s1313_s7), 175 }
  0x43   : > { %v1332_v20 = vcombine.high %v353_v16, %v361_v17  ;;  %v369_v23 = vld [vmem:[%s1710_s4 + $0x100] sm:$0xff]  ;;  %828 = vmatprep.subr.bf16.mxu0 %v1316_v13  ;;  %v1334_v24 = vcombine.high %v354_v21, %v362_v22  ;;  %v370_v26 = vld [vmem:[%s1710_s4 + $0x108] sm:$0xff]  ;;  %869 = vmatprep.subr.bf16.mxu1 %v1318_v18  ;;  %v1331_v28 = vcombine.low %v353_v16, %v361_v17  ;;  %v355_v56 = vld [vmem:[%s1710_s4 + $0x90] sm:$0xff]  ;;  %s1314_s8 = sshll.u32 %s1878_s7, 2 }
  0x44   : > { %v377_v25 = vld [vmem:[%s1710_s4 + $0x140] sm:$0xff]  ;;  %v378_v27 = vld [vmem:[%s1710_s4 + $0x148] sm:$0xff]  ;;  %829 = vmatpush1.bf16.msra.mxu0 %v1315_v15  ;;  %870 = vmatpush1.bf16.msra.mxu1 %v1317_v19  ;;  %v1333_v29 = vcombine.low %v354_v21, %v362_v22  ;;  %v1322_v55 = vcombine.high %v340_v50, %v348_v51  ;;  %v363_v57 = vld [vmem:[%s1710_s4 + $0xd0] sm:$0xff]  ;;  %v1321_v62 = vcombine.low %v340_v50, %v348_v51  ;;  %s1838_s11 = scalar_lea.vmem %s1873_s3, %s1314_s8 }
  0x45   : > { %830 = vmatprep.subr.bf16.mxu0 %v1332_v20  ;;  %v1348_v30 = vcombine.high %v369_v23, %v377_v25  ;;  %871 = vmatprep.subr.bf16.mxu1 %v1334_v24  ;;  %v1350_v31 = vcombine.high %v370_v26, %v378_v27  ;;  %v385_v32 = vld [vmem:[%s1710_s4 + $0x180] sm:$0xff]  ;;  %v386_v34 = vld [vmem:[%s1710_s4 + $0x188] sm:$0xff]  ;;  %v1347_v36 = vcombine.low %v369_v23, %v377_v25  ;;  %v356_v58 = vld [vmem:[%s1710_s4 + $0x98] sm:$0xff] }
  0x46   : > { %v393_v33 = vld [vmem:[%s1710_s4 + $0x1c0] sm:$0xff]  ;;  %v394_v35 = vld [vmem:[%s1710_s4 + $0x1c8] sm:$0xff]  ;;  %v1349_v37 = vcombine.low %v370_v26, %v378_v27  ;;  %v364_v59 = vld [vmem:[%s1710_s4 + $0xd8] sm:$0xff]  ;;  %v1336_v63 = vcombine.high %v355_v56, %v363_v57  ;;  %v1335_v5 = vcombine.low %v355_v56, %v363_v57 }
  0x47   : > { %v1364_v38 = vcombine.high %v385_v32, %v393_v33  ;;  %v1366_v39 = vcombine.high %v386_v34, %v394_v35  ;;  %v401_v40 = vld [vmem:[%s1710_s4 + $0x200] sm:$0xff]  ;;  %v402_v41 = vld [vmem:[%s1710_s4 + $0x208] sm:$0xff]  ;;  %v1363_v42 = vcombine.low %v385_v32, %v393_v33  ;;  %v1365_v43 = vcombine.low %v386_v34, %v394_v35  ;;  %v371_v1 = vld [vmem:[%s1710_s4 + $0x110] sm:$0xff] }
  0x48   : > { %831 = vmatpush1.bf16.msra.mxu0 %v1331_v28  ;;  %872 = vmatpush1.bf16.msra.mxu1 %v1333_v29  ;;  %v1380_v44 = vcombine.high %v401_v40, %v401_v40  ;;  %v1379_v45 = vcombine.low %v401_v40, %v401_v40  ;;  %v1382_v46 = vcombine.high %v402_v41, %v402_v41  ;;  %v379_v2 = vld [vmem:[%s1710_s4 + $0x150] sm:$0xff]  ;;  %v372_v3 = vld [vmem:[%s1710_s4 + $0x118] sm:$0xff]  ;;  %v341_v26 = vld [vmem:[%s1710_s4 + $0x20] sm:$0xff] }
  0x49   : > { %832 = vmatprep.subr.bf16.mxu0 %v1348_v30  ;;  %873 = vmatprep.subr.bf16.mxu1 %v1350_v31  ;;  %v1381_v47 = vcombine.low %v402_v41, %v402_v41  ;;  %v1338_v0 = vcombine.high %v356_v58, %v364_v59  ;;  %v380_v4 = vld [vmem:[%s1710_s4 + $0x158] sm:$0xff]  ;;  %v1337_v6 = vcombine.low %v356_v58, %v364_v59  ;;  %v387_v10 = vld [vmem:[%s1710_s4 + $0x190] sm:$0xff]  ;;  %v349_v27 = vld [vmem:[%s1710_s4 + $0x60] sm:$0xff] }
  0x4a   : > { %v781_v52 = vsel %vm779_vm0, %v1379_v45, 0  ;;  %v1352_v7 = vcombine.high %v371_v1, %v379_v2  ;;  %v1354_v9 = vcombine.high %v372_v3, %v380_v4  ;;  %v395_v11 = vld [vmem:[%s1710_s4 + $0x1d0] sm:$0xff]  ;;  %v388_v12 = vld [vmem:[%s1710_s4 + $0x198] sm:$0xff]  ;;  %v1351_v14 = vcombine.low %v371_v1, %v379_v2  ;;  %v342_v28 = vld [vmem:[%s1710_s4 + $0x28] sm:$0xff] }
  0x4b   : > { %v787_v54 = vsel %vm779_vm0, %v1381_v47, 0  ;;  %v396_v13 = vld [vmem:[%s1710_s4 + $0x1d8] sm:$0xff]  ;;  %v1353_v15 = vcombine.low %v372_v3, %v380_v4  ;;  %v1368_v16 = vcombine.high %v387_v10, %v395_v11  ;;  %v403_v18 = vld [vmem:[%s1710_s4 + $0x210] sm:$0xff]  ;;  %v1367_v20 = vcombine.low %v387_v10, %v395_v11  ;;  %v350_v29 = vld [vmem:[%s1710_s4 + $0x68] sm:$0xff] }
  0x4c   : > { %833 = vmatpush1.bf16.msra.mxu0 %v1347_v36  ;;  %874 = vmatpush1.bf16.msra.mxu1 %v1349_v37  ;;  %v1370_v17 = vcombine.high %v388_v12, %v396_v13  ;;  %v404_v19 = vld [vmem:[%s1710_s4 + $0x218] sm:$0xff]  ;;  %v1369_v21 = vcombine.low %v388_v12, %v396_v13  ;;  %v1384_v22 = vcombine.high %v403_v18, %v403_v18  ;;  %v357_v34 = vld [vmem:[%s1710_s4 + $0xa0] sm:$0xff]  ;;  %v358_v36 = vld [vmem:[%s1710_s4 + $0xa8] sm:$0xff] }
  0x4d   : > { %834 = vmatprep.subr.bf16.mxu0 %v1364_v38  ;;  %875 = vmatprep.subr.bf16.mxu1 %v1366_v39  ;;  %v1383_v23 = vcombine.low %v403_v18, %v403_v18  ;;  %v1386_v24 = vcombine.high %v404_v19, %v404_v19  ;;  %v1385_v25 = vcombine.low %v404_v19, %v404_v19  ;;  %v365_v35 = vld [vmem:[%s1710_s4 + $0xe0] sm:$0xff]  ;;  %v366_v37 = vld [vmem:[%s1710_s4 + $0xe8] sm:$0xff]  ;;  %v343_v3 = vld [vmem:[%s1710_s4 + $0x30] sm:$0xff] }
  0x4e   : > { %v1324_v31 = vcombine.high %v341_v26, %v349_v27  ;;  %v1326_v33 = vcombine.high %v342_v28, %v350_v29  ;;  %v1323_v38 = vcombine.low %v341_v26, %v349_v27  ;;  %v1325_v39 = vcombine.low %v342_v28, %v350_v29  ;;  %v382_v45 = vld [vmem:[%s1710_s4 + $0x168] sm:$0xff]  ;;  %v389_v50 = vld [vmem:[%s1710_s4 + $0x1a0] sm:$0xff]  ;;  %v351_v4 = vld [vmem:[%s1710_s4 + $0x70] sm:$0xff] }
  0x4f   : > { %v793_v30 = vsel %vm779_vm0, %v1383_v23, 0  ;;  %v799_v32 = vsel %vm779_vm0, %v1385_v25, 0  ;;  %v1340_v40 = vcombine.high %v357_v34, %v365_v35  ;;  %v1342_v41 = vcombine.high %v358_v36, %v366_v37  ;;  %v397_v51 = vld [vmem:[%s1710_s4 + $0x1e0] sm:$0xff]  ;;  %v406_v59 = vld [vmem:[%s1710_s4 + $0x228] sm:$0xff]  ;;  %v359_v12 = vld [vmem:[%s1710_s4 + $0xb0] sm:$0xff] }
  0x50   : > { %835 = vmatpush1.bf16.msra.mxu0 %v1363_v42  ;;  %876 = vmatpush1.bf16.msra.mxu1 %v1365_v43  ;;  %v373_v42 = vld [vmem:[%s1710_s4 + $0x120] sm:$0xff]  ;;  %v1341_v47 = vcombine.low %v358_v36, %v366_v37  ;;  %v1372_v56 = vcombine.high %v389_v50, %v397_v51  ;;  %v1390_v1 = vcombine.high %v406_v59, %v406_v59  ;;  %v367_v13 = vld [vmem:[%s1710_s4 + $0xf0] sm:$0xff]  ;;  %v384_v23 = vld [vmem:[%s1710_s4 + $0x178] sm:$0xff] }
  0x51   : > { %1395 = vmatprep.subr.msk.bf16.mxu0 %vm779_vm0, %v1380_v44  ;;  %1397 = vmatprep.subr.msk.bf16.mxu1 %vm779_vm0, %v1382_v46  ;;  %v381_v43 = vld [vmem:[%s1710_s4 + $0x160] sm:$0xff]  ;;  %v374_v44 = vld [vmem:[%s1710_s4 + $0x128] sm:$0xff]  ;;  %v1339_v46 = vcombine.low %v357_v34, %v365_v35  ;;  %v1389_v2 = vcombine.low %v406_v59, %v406_v59  ;;  %v1344_v18 = vcombine.high %v359_v12, %v367_v13  ;;  %v391_v28 = vld [vmem:[%s1710_s4 + $0x1b0] sm:$0xff] }
  0x52   : > { %v1356_v48 = vcombine.high %v373_v42, %v381_v43  ;;  %v1358_v49 = vcombine.high %v374_v44, %v382_v45  ;;  %v405_v58 = vld [vmem:[%s1710_s4 + $0x220] sm:$0xff]  ;;  %v399_v29 = vld [vmem:[%s1710_s4 + $0x1f0] sm:$0xff]  ;;  %v408_v37 = vld [vmem:[%s1710_s4 + $0x238] sm:$0xff] }
  0x53   : > { %v811_v10 = vsel %vm779_vm0, %v1389_v2, 0  ;;  %v1376_v34 = vcombine.high %v391_v28, %v399_v29  ;;  %v407_v36 = vld [vmem:[%s1710_s4 + $0x230] sm:$0xff] }
  0x54   : > { %837 = vmatpush1.bf16.msra.mxu0 %v781_v52  ;;  %878 = vmatpush1.bf16.msra.mxu1 %v787_v54  ;;  %v390_v52 = vld [vmem:[%s1710_s4 + $0x1a8] sm:$0xff]  ;;  %v1355_v54 = vcombine.low %v373_v42, %v381_v43  ;;  %v1393_v42 = vcombine.low %v408_v37, %v408_v37 }
  0x55   : > { %910 = vmatprep.subr.bf16.mxu0 %v1320_v53  ;;  %951 = vmatprep.subr.bf16.mxu1 %v1322_v55  ;;  %v398_v53 = vld [vmem:[%s1710_s4 + $0x1e8] sm:$0xff]  ;;  %v1357_v55 = vcombine.low %v374_v44, %v382_v45 }
  0x56   : > { %v1374_v57 = vcombine.high %v390_v52, %v398_v53  ;;  %v823_v44 = vsel %vm779_vm0, %v1393_v42, 0 }
  0x57   : > { %1396 = vmatmul.mubr.msk.bf16.vlgmr.msra.gmra.mrb[0].mxu0 %vm775_vm1, %v1745_v60  ;;  %1398 = vmatmul.mubr.msk.bf16.vlgmr.msra.gmra.mrb[0].mxu1 %vm775_vm1, %v1745_v60 }
  0x58   : > { %911 = vmatpush1.bf16.msra.mxu0 %v1319_v61  ;;  %952 = vmatpush1.bf16.msra.mxu1 %v1321_v62  ;;  %v1371_v61 = vcombine.low %v389_v50, %v397_v51  ;;  %v1373_v62 = vcombine.low %v390_v52, %v398_v53 }
  0x59   : > { %912 = vmatprep.subr.bf16.mxu0 %v1336_v63  ;;  %953 = vmatprep.subr.bf16.mxu1 %v1338_v0  ;;  %v1388_v63 = vcombine.high %v405_v58, %v405_v58  ;;  %v1387_v0 = vcombine.low %v405_v58, %v405_v58 }
  0x5a   : > { %942 = vmatprep.mubr.bf16.mxu0 %v1498_v8  ;;  %983 = vmatprep.mubr.bf16.mxu1 %v1498_v8 }
  0x5c   : > { %913 = vmatpush1.bf16.msra.mxu0 %v1335_v5  ;;  %954 = vmatpush1.bf16.msra.mxu1 %v1337_v6  ;;  %v344_v5 = vld [vmem:[%s1710_s4 + $0x38] sm:$0xff] }
  0x5d   : > { %914 = vmatprep.subr.bf16.mxu0 %v1352_v7  ;;  %955 = vmatprep.subr.bf16.mxu1 %v1354_v9  ;;  %v352_v6 = vld [vmem:[%s1710_s4 + $0x78] sm:$0xff]  ;;  %v805_v7 = vsel %vm779_vm0, %v1387_v0, 0  ;;  %v1328_v9 = vcombine.high %v343_v3, %v351_v4 }
  0x5e   : > { %v1330_v11 = vcombine.high %v344_v5, %v352_v6 }
  0x60   : > { %915 = vmatpush1.bf16.msra.mxu0 %v1351_v14  ;;  %956 = vmatpush1.bf16.msra.mxu1 %v1353_v15  ;;  %v360_v14 = vld [vmem:[%s1710_s4 + $0xb8] sm:$0xff] }
  0x61   : > { %916 = vmatprep.subr.bf16.mxu0 %v1368_v16  ;;  %957 = vmatprep.subr.bf16.mxu1 %v1370_v17  ;;  %v368_v15 = vld [vmem:[%s1710_s4 + $0xf8] sm:$0xff]  ;;  %v1327_v16 = vcombine.low %v343_v3, %v351_v4  ;;  %v1329_v17 = vcombine.low %v344_v5, %v352_v6 }
  0x62   : > { %v1346_v19 = vcombine.high %v360_v14, %v368_v15  ;;  %v1345_v25 = vcombine.low %v360_v14, %v368_v15 }
  0x64   : > { %917 = vmatpush1.bf16.msra.mxu0 %v1367_v20  ;;  %958 = vmatpush1.bf16.msra.mxu1 %v1369_v21  ;;  %v375_v20 = vld [vmem:[%s1710_s4 + $0x130] sm:$0xff] }
  0x65   : > { %1399 = vmatprep.subr.msk.bf16.mxu0 %vm779_vm0, %v1384_v22  ;;  %1401 = vmatprep.subr.msk.bf16.mxu1 %vm779_vm0, %v1386_v24  ;;  %v383_v21 = vld [vmem:[%s1710_s4 + $0x170] sm:$0xff]  ;;  %v376_v22 = vld [vmem:[%s1710_s4 + $0x138] sm:$0xff]  ;;  %v1343_v24 = vcombine.low %v359_v12, %v367_v13 }
  0x66   : > { %v1360_v26 = vcombine.high %v375_v20, %v383_v21  ;;  %v1362_v27 = vcombine.high %v376_v22, %v384_v23 }
  0x68   : > { %919 = vmatpush1.bf16.msra.mxu0 %v793_v30  ;;  %960 = vmatpush1.bf16.msra.mxu1 %v799_v32  ;;  %v392_v30 = vld [vmem:[%s1710_s4 + $0x1b8] sm:$0xff]  ;;  %v1359_v32 = vcombine.low %v375_v20, %v383_v21 }
  0x69   : > { %992 = vmatprep.subr.bf16.mxu0 %v1324_v31  ;;  %1033 = vmatprep.subr.bf16.mxu1 %v1326_v33  ;;  %v400_v31 = vld [vmem:[%s1710_s4 + $0x1f8] sm:$0xff]  ;;  %v1361_v33 = vcombine.low %v376_v22, %v384_v23 }
  0x6a   : > { %v1378_v35 = vcombine.high %v392_v30, %v400_v31 }
  0x6b   : > { %1400 = vmatmul.mubr.msk.bf16.vlgmr.msra.gmra.mrb[4].mxu0 %vm775_vm1, %v1745_v60  ;;  %1402 = vmatmul.mubr.msk.bf16.vlgmr.msra.gmra.mrb[4].mxu1 %vm775_vm1, %v1745_v60 }
  0x6c   : > { %993 = vmatpush1.bf16.msra.mxu0 %v1323_v38  ;;  %1034 = vmatpush1.bf16.msra.mxu1 %v1325_v39  ;;  %v1375_v38 = vcombine.low %v391_v28, %v399_v29  ;;  %v1377_v39 = vcombine.low %v392_v30, %v400_v31 }
  0x6d   : > { %994 = vmatprep.subr.bf16.mxu0 %v1340_v40  ;;  %1035 = vmatprep.subr.bf16.mxu1 %v1342_v41  ;;  %v1392_v40 = vcombine.high %v407_v36, %v407_v36  ;;  %v1391_v41 = vcombine.low %v407_v36, %v407_v36 }
  0x6e   : > { %1024 = vmatprep.mubr.bf16.mxu0 %v1498_v8  ;;  %1065 = vmatprep.mubr.bf16.mxu1 %v1498_v8 }
  0x6f   : > { %v817_v43 = vsel %vm779_vm0, %v1391_v41, 0 }
  0x70   : > { %995 = vmatpush1.bf16.msra.mxu0 %v1339_v46  ;;  %1036 = vmatpush1.bf16.msra.mxu1 %v1341_v47 }
  0x71   : > { %996 = vmatprep.subr.bf16.mxu0 %v1356_v48  ;;  %1037 = vmatprep.subr.bf16.mxu1 %v1358_v49 }
  0x74   : > { %997 = vmatpush1.bf16.msra.mxu0 %v1355_v54  ;;  %1038 = vmatpush1.bf16.msra.mxu1 %v1357_v55 }
  0x75   : > { %998 = vmatprep.subr.bf16.mxu0 %v1372_v56  ;;  %1039 = vmatprep.subr.bf16.mxu1 %v1374_v57 }
  0x78   : > { %999 = vmatpush1.bf16.msra.mxu0 %v1371_v61  ;;  %1040 = vmatpush1.bf16.msra.mxu1 %v1373_v62 }
  0x79   : > { %1403 = vmatprep.subr.msk.bf16.mxu0 %vm779_vm0, %v1388_v63  ;;  %1405 = vmatprep.subr.msk.bf16.mxu1 %vm779_vm0, %v1390_v1 }
  0x7c   : > { %1001 = vmatpush1.bf16.msra.mxu0 %v805_v7  ;;  %1042 = vmatpush1.bf16.msra.mxu1 %v811_v10 }
  0x7d   : > { %1074 = vmatprep.subr.bf16.mxu0 %v1328_v9  ;;  %1115 = vmatprep.subr.bf16.mxu1 %v1330_v11 }
  0x7f   : > { %1404 = vmatmul.mubr.msk.bf16.vlgmr.msra.gmra.mrb[8].mxu0 %vm775_vm1, %v1745_v60  ;;  %1406 = vmatmul.mubr.msk.bf16.vlgmr.msra.gmra.mrb[8].mxu1 %vm775_vm1, %v1745_v60 }
  0x80   : > { %1075 = vmatpush1.bf16.msra.mxu0 %v1327_v16  ;;  %1116 = vmatpush1.bf16.msra.mxu1 %v1329_v17 }
  0x81   : > { %1076 = vmatprep.subr.bf16.mxu0 %v1344_v18  ;;  %1117 = vmatprep.subr.bf16.mxu1 %v1346_v19 }
  0x82   : > { %1106 = vmatprep.mubr.bf16.mxu0 %v1498_v8  ;;  %1147 = vmatprep.mubr.bf16.mxu1 %v1498_v8  ;;  %v1394_v8 = vcombine.high %v408_v37, %v408_v37 }
  0x84   : > { %1077 = vmatpush1.bf16.msra.mxu0 %v1343_v24  ;;  %1118 = vmatpush1.bf16.msra.mxu1 %v1345_v25 }
  0x85   : > { %1078 = vmatprep.subr.bf16.mxu0 %v1360_v26  ;;  %1119 = vmatprep.subr.bf16.mxu1 %v1362_v27 }
  0x88   : > { %1079 = vmatpush1.bf16.msra.mxu0 %v1359_v32  ;;  %1120 = vmatpush1.bf16.msra.mxu1 %v1361_v33 }
  0x89   : > { %1080 = vmatprep.subr.bf16.mxu0 %v1376_v34  ;;  %1121 = vmatprep.subr.bf16.mxu1 %v1378_v35 }
  0x8c   : > { %1081 = vmatpush1.bf16.msra.mxu0 %v1375_v38  ;;  %1122 = vmatpush1.bf16.msra.mxu1 %v1377_v39 }
  0x8d   : > { %1407 = vmatprep.subr.msk.bf16.mxu0 %vm779_vm0, %v1392_v40  ;;  %1409 = vmatprep.subr.msk.bf16.mxu1 %vm779_vm0, %v1394_v8 }
  0x90   : > { %1083 = vmatpush1.bf16.msra.mxu0 %v817_v43  ;;  %1124 = vmatpush1.bf16.msra.mxu1 %v823_v44 }
  0x93   : > { %1408 = vmatmul.mubr.msk.bf16.vlgmr.msra.gmra.mrb[12].mxu0 %vm775_vm1, %v1745_v60  ;;  %1410 = vmatmul.mubr.msk.bf16.vlgmr.msra.gmra.mrb[12].mxu1 %vm775_vm1, %v1745_v60 }
  0xbc   : > { %v1829_v45 = vpop.permute.xlu0 %412 }
 0x12a   : > { %v862_v46 = vpop.f32.mrb[0].mxu0  ;;  %v903_v47 = vpop.f32.mrb[0].mxu1 }
 0x12b   : > { %v863_v48 = vadd.f32 %v862_v46, %v1829_v45  ;;  %v864_v49 = vpop.f32.mrb[1].mxu0  ;;  %v904_v51 = vadd.f32 %v903_v47, %v1829_v45  ;;  %v905_v52 = vpop.f32.mrb[1].mxu1 }
 0x12c   : > { %v865_v50 = vadd.f32 %v864_v49, %v1829_v45  ;;  %v866_v53 = vpop.f32.mrb[2].mxu0  ;;  %v906_v60 = vadd.f32 %v905_v52, %v1829_v45  ;;  %v907_v55 = vpop.f32.mrb[2].mxu1 }
 0x12d   : > { %v1156_v54 = vmax.f32 %v863_v48, 0.0  ;;  %v867_v56 = vpop.f32.mrb[3].mxu0  ;;  %v1158_v58 = vmax.f32 %v904_v51, 0.0  ;;  %v908_v59 = vpop.f32.mrb[3].mxu1 }
 0x12e   : > { %v1157_v57 = vmax.f32 %v865_v50, 0.0  ;;  %v1159_v61 = vmax.f32 %v906_v60, 0.0 }
 0x130   : > { %v1422_v62 = vpack.c.bf16 %v1157_v57, %v1156_v54  ;;  %v1423_v63 = vpack.c.bf16 %v1159_v61, %v1158_v58 }
 0x132   : > { %1236 = vst [vmem:[%s1838_s11] sm:$0xff] %v1422_v62  ;;  %1237 = vst [vmem:[%s1838_s11 + $0x8] sm:$0xff] %v1423_v63 }
 0x13e   : > { %v944_v0 = vpop.f32.mrb[4].mxu0  ;;  %v985_v2 = vpop.f32.mrb[4].mxu1 }
 0x13f   : > { %v945_v1 = vadd.f32 %v944_v0, %v1829_v45  ;;  %v946_v3 = vpop.f32.mrb[5].mxu0  ;;  %v986_v4 = vadd.f32 %v985_v2, %v1829_v45  ;;  %v987_v6 = vpop.f32.mrb[5].mxu1 }
 0x140   : > { %v947_v5 = vadd.f32 %v946_v3, %v1829_v45  ;;  %v948_v7 = vpop.f32.mrb[6].mxu0  ;;  %v988_v10 = vadd.f32 %v987_v6, %v1829_v45  ;;  %v989_v11 = vpop.f32.mrb[6].mxu1 }
 0x141   : > { %v1160_v9 = vmax.f32 %v945_v1, 0.0  ;;  %v949_v12 = vpop.f32.mrb[7].mxu0  ;;  %v1162_v13 = vmax.f32 %v986_v4, 0.0  ;;  %v990_v15 = vpop.f32.mrb[7].mxu1 }
 0x142   : > { %v1161_v14 = vmax.f32 %v947_v5, 0.0  ;;  %v1163_v16 = vmax.f32 %v988_v10, 0.0 }
 0x144   : > { %v1424_v17 = vpack.c.bf16 %v1161_v14, %v1160_v9  ;;  %v1425_v18 = vpack.c.bf16 %v1163_v16, %v1162_v13 }
 0x146   : > { %1238 = vst [vmem:[%s1838_s11 + $0x10] sm:$0xff] %v1424_v17  ;;  %1239 = vst [vmem:[%s1838_s11 + $0x18] sm:$0xff] %v1425_v18 }
 0x152   : > { %v1026_v19 = vpop.f32.mrb[8].mxu0  ;;  %v1067_v21 = vpop.f32.mrb[8].mxu1 }
 0x153   : > { %v1027_v20 = vadd.f32 %v1026_v19, %v1829_v45  ;;  %v1028_v22 = vpop.f32.mrb[9].mxu0  ;;  %v1068_v23 = vadd.f32 %v1067_v21, %v1829_v45  ;;  %v1069_v25 = vpop.f32.mrb[9].mxu1 }
 0x154   : > { %v1029_v24 = vadd.f32 %v1028_v22, %v1829_v45  ;;  %v1030_v26 = vpop.f32.mrb[10].mxu0  ;;  %v1070_v28 = vadd.f32 %v1069_v25, %v1829_v45  ;;  %v1071_v29 = vpop.f32.mrb[10].mxu1 }
 0x155   : > { %v1164_v27 = vmax.f32 %v1027_v20, 0.0  ;;  %v1031_v30 = vpop.f32.mrb[11].mxu0  ;;  %v1166_v31 = vmax.f32 %v1068_v23, 0.0  ;;  %v1072_v33 = vpop.f32.mrb[11].mxu1 }
 0x156   : > { %v1165_v32 = vmax.f32 %v1029_v24, 0.0  ;;  %v1167_v34 = vmax.f32 %v1070_v28, 0.0 }
 0x158   : > { %v1426_v35 = vpack.c.bf16 %v1165_v32, %v1164_v27  ;;  %v1427_v36 = vpack.c.bf16 %v1167_v34, %v1166_v31 }
 0x15a   : > { %1240 = vst [vmem:[%s1838_s11 + $0x20] sm:$0xff] %v1426_v35  ;;  %1241 = vst [vmem:[%s1838_s11 + $0x28] sm:$0xff] %v1427_v36 }
 0x166   : > { %v1108_v37 = vpop.f32.mrb[12].mxu0  ;;  %v1149_v39 = vpop.f32.mrb[12].mxu1 }
 0x167   : > { %v1109_v38 = vadd.f32 %v1108_v37, %v1829_v45  ;;  %v1110_v40 = vpop.f32.mrb[13].mxu0  ;;  %v1150_v41 = vadd.f32 %v1149_v39, %v1829_v45  ;;  %v1151_v42 = vpop.f32.mrb[13].mxu1 }
 0x168   : > { %v1111_v8 = vadd.f32 %v1110_v40, %v1829_v45  ;;  %v1112_v43 = vpop.f32.mrb[14].mxu0  ;;  %v1152_v46 = vadd.f32 %v1151_v42, %v1829_v45  ;;  %v1153_v47 = vpop.f32.mrb[14].mxu1 }
 0x169   : > { %v1168_v44 = vmax.f32 %v1109_v38, 0.0  ;;  %v1113_v48 = vpop.f32.mrb[15].mxu0  ;;  %v1170_v49 = vmax.f32 %v1150_v41, 0.0  ;;  %v1154_v51 = vpop.f32.mrb[15].mxu1 }
 0x16a   : > { %v1169_v50 = vmax.f32 %v1111_v8, 0.0  ;;  %v1171_v52 = vmax.f32 %v1152_v46, 0.0 }
 0x16c   : > { %v1428_v53 = vpack.c.bf16 %v1169_v50, %v1168_v44  ;;  %v1429_v54 = vpack.c.bf16 %v1171_v52, %v1170_v49 }
 0x16e   : > { %1242 = vst [vmem:[%s1838_s11 + $0x30] sm:$0xff] %v1428_v53  ;;  %1243 = vst [vmem:[%s1838_s11 + $0x38] sm:$0xff] %v1429_v54 }
 0x16f PF: > { %p10_p9 = scmp.ge.s32.totalorder %s1536_s16, 13   ;;  %s1874_s12 = smov %s1492_s13 }
 0x170   : > { %s1875_s13 = smov %s1545_s19  ;;  %s1876_s14 = smov %s1536_s16 }
 0x171   :  { %12 = sbr.rel (!%p10_p9) target bundleno = 2 (0x2), region = 90 }

// kernel: _normal_vs_infected.12
= control target key start
LH: loop header
LB: loop body
LE: loop exit
PB: predicated region body
PF: predicated region fallthrough
CT: control target
= control target key end

     0   :  { %vm186_vm0 = vcmask 1043456   ;;  %vm187_vm1 = vcmask 990212   ;;  %s600_s0 = inlined_call_operand.vmem [shape: bf16[4,8,5625], index: 0, kind: input, shape index: {}]   ;;  %s601_s1 = inlined_call_operand.vmem [shape: bf16[8,5625], index: 1, kind: output, shape index: {}]  }
   0x1   :  { %v8_v0 = vld [vmem:[%s600_s0] sm:$0xff]  ;;  %v194_v1 = vld [vmem:[%s600_s0 + $0xb0] sm:$0xff]  ;;  %v9_v4 = vld [vmem:[%s600_s0 + $0x8] sm:$0xff] }
   0x2   :  { %v216_v2 = vld [vmem:[%s600_s0 + $0x160] sm:$0xff]  ;;  %v53_v3 = vmax.bf16 %v194_v1, %v8_v0  ;;  %v195_v5 = vld [vmem:[%s600_s0 + $0xb8] sm:$0xff]  ;;  %v238_v6 = vld [vmem:[%s600_s0 + $0x210] sm:$0xff] }
   0x3   :  { %v54_v7 = vmax.bf16 %v195_v5, %v9_v4  ;;  %v217_v8 = vld [vmem:[%s600_s0 + $0x168] sm:$0xff]  ;;  %v10_v9 = vld [vmem:[%s600_s0 + $0x10] sm:$0xff]  ;;  %v239_v11 = vld [vmem:[%s600_s0 + $0x218] sm:$0xff] }
   0x4   :  { %v98_v10 = vmax.bf16 %v216_v2, %v53_v3  ;;  %v196_v12 = vld [vmem:[%s600_s0 + $0xc0] sm:$0xff]  ;;  %v218_v13 = vld [vmem:[%s600_s0 + $0x170] sm:$0xff]  ;;  %v11_v16 = vld [vmem:[%s600_s0 + $0x18] sm:$0xff] }
   0x5   :  { %v99_v14 = vmax.bf16 %v217_v8, %v54_v7  ;;  %v55_v15 = vmax.bf16 %v196_v12, %v10_v9  ;;  %v197_v17 = vld [vmem:[%s600_s0 + $0xc8] sm:$0xff]  ;;  %v219_v18 = vld [vmem:[%s600_s0 + $0x178] sm:$0xff]  ;;  %v240_v20 = vld [vmem:[%s600_s0 + $0x220] sm:$0xff] }
   0x6   :  { %v143_v19 = vmax.bf16 %v238_v6, %v98_v10  ;;  %v56_v21 = vmax.bf16 %v197_v17, %v11_v16  ;;  %v12_v22 = vld [vmem:[%s600_s0 + $0x20] sm:$0xff]  ;;  %v198_v23 = vld [vmem:[%s600_s0 + $0xd0] sm:$0xff]  ;;  %v241_v26 = vld [vmem:[%s600_s0 + $0x228] sm:$0xff] }
   0x7   :  { %v144_v24 = vmax.bf16 %v239_v11, %v99_v14  ;;  %v100_v25 = vmax.bf16 %v218_v13, %v55_v15  ;;  %v57_v27 = vmax.bf16 %v198_v23, %v12_v22  ;;  %v220_v28 = vld [vmem:[%s600_s0 + $0x180] sm:$0xff]  ;;  %v13_v29 = vld [vmem:[%s600_s0 + $0x28] sm:$0xff]  ;;  %v242_v31 = vld [vmem:[%s600_s0 + $0x230] sm:$0xff] }
   0x8   :  { %165 = vst [vmem:[%s601_s1] sm:$0xff] %v143_v19  ;;  %v101_v30 = vmax.bf16 %v219_v18, %v56_v21  ;;  %v199_v32 = vld [vmem:[%s600_s0 + $0xd8] sm:$0xff]  ;;  %v221_v33 = vld [vmem:[%s600_s0 + $0x188] sm:$0xff]  ;;  %v14_v37 = vld [vmem:[%s600_s0 + $0x30] sm:$0xff] }
   0x9   :  { %166 = vst [vmem:[%s601_s1 + $0x8] sm:$0xff] %v144_v24  ;;  %v145_v34 = vmax.bf16 %v240_v20, %v100_v25  ;;  %v102_v35 = vmax.bf16 %v220_v28, %v57_v27  ;;  %v58_v36 = vmax.bf16 %v199_v32, %v13_v29  ;;  %v200_v38 = vld [vmem:[%s600_s0 + $0xe0] sm:$0xff]  ;;  %v222_v39 = vld [vmem:[%s600_s0 + $0x190] sm:$0xff]  ;;  %v243_v41 = vld [vmem:[%s600_s0 + $0x238] sm:$0xff] }
   0xa   :  { %v146_v40 = vmax.bf16 %v241_v26, %v101_v30  ;;  %v59_v42 = vmax.bf16 %v200_v38, %v14_v37  ;;  %v15_v43 = vld [vmem:[%s600_s0 + $0x38] sm:$0xff]  ;;  %v201_v44 = vld [vmem:[%s600_s0 + $0xe8] sm:$0xff]  ;;  %v244_v47 = vld [vmem:[%s600_s0 + $0x240] sm:$0xff] }
   0xb   :  { %167 = vst [vmem:[%s601_s1 + $0x10] sm:$0xff] %v145_v34  ;;  %v147_v45 = vmax.bf16 %v242_v31, %v102_v35  ;;  %v103_v46 = vmax.bf16 %v221_v33, %v58_v36  ;;  %v60_v48 = vmax.bf16 %v201_v44, %v15_v43  ;;  %v223_v49 = vld [vmem:[%s600_s0 + $0x198] sm:$0xff]  ;;  %v16_v50 = vld [vmem:[%s600_s0 + $0x40] sm:$0xff]  ;;  %v245_v52 = vld [vmem:[%s600_s0 + $0x248] sm:$0xff] }
   0xc   :  { %168 = vst [vmem:[%s601_s1 + $0x18] sm:$0xff] %v146_v40  ;;  %v104_v51 = vmax.bf16 %v222_v39, %v59_v42  ;;  %v202_v53 = vld [vmem:[%s600_s0 + $0xf0] sm:$0xff]  ;;  %v224_v54 = vld [vmem:[%s600_s0 + $0x1a0] sm:$0xff]  ;;  %v17_v58 = vld [vmem:[%s600_s0 + $0x48] sm:$0xff] }
   0xd   :  { %169 = vst [vmem:[%s601_s1 + $0x20] sm:$0xff] %v147_v45  ;;  %v148_v55 = vmax.bf16 %v243_v41, %v103_v46  ;;  %v105_v56 = vmax.bf16 %v223_v49, %v60_v48  ;;  %v61_v57 = vmax.bf16 %v202_v53, %v16_v50  ;;  %v203_v59 = vld [vmem:[%s600_s0 + $0xf8] sm:$0xff]  ;;  %v225_v60 = vld [vmem:[%s600_s0 + $0x1a8] sm:$0xff]  ;;  %v246_v62 = vld [vmem:[%s600_s0 + $0x250] sm:$0xff] }
   0xe   :  { %v149_v61 = vmax.bf16 %v244_v47, %v104_v51  ;;  %v62_v63 = vmax.bf16 %v203_v59, %v17_v58  ;;  %v18_v0 = vld [vmem:[%s600_s0 + $0x50] sm:$0xff]  ;;  %v204_v1 = vld [vmem:[%s600_s0 + $0x100] sm:$0xff]  ;;  %v247_v4 = vld [vmem:[%s600_s0 + $0x258] sm:$0xff] }
   0xf   :  { %170 = vst [vmem:[%s601_s1 + $0x28] sm:$0xff] %v148_v55  ;;  %v150_v2 = vmax.bf16 %v245_v52, %v105_v56  ;;  %v106_v3 = vmax.bf16 %v224_v54, %v61_v57  ;;  %v63_v5 = vmax.bf16 %v204_v1, %v18_v0  ;;  %v226_v6 = vld [vmem:[%s600_s0 + $0x1b0] sm:$0xff]  ;;  %v19_v7 = vld [vmem:[%s600_s0 + $0x58] sm:$0xff]  ;;  %v248_v9 = vld [vmem:[%s600_s0 + $0x260] sm:$0xff] }
  0x10   :  { %171 = vst [vmem:[%s601_s1 + $0x30] sm:$0xff] %v149_v61  ;;  %v107_v8 = vmax.bf16 %v225_v60, %v62_v63  ;;  %v205_v10 = vld [vmem:[%s600_s0 + $0x108] sm:$0xff]  ;;  %v227_v11 = vld [vmem:[%s600_s0 + $0x1b8] sm:$0xff]  ;;  %v20_v15 = vld [vmem:[%s600_s0 + $0x60] sm:$0xff] }
  0x11   :  { %172 = vst [vmem:[%s601_s1 + $0x38] sm:$0xff] %v150_v2  ;;  %v151_v12 = vmax.bf16 %v246_v62, %v106_v3  ;;  %v108_v13 = vmax.bf16 %v226_v6, %v63_v5  ;;  %v64_v14 = vmax.bf16 %v205_v10, %v19_v7  ;;  %v206_v16 = vld [vmem:[%s600_s0 + $0x110] sm:$0xff]  ;;  %v228_v17 = vld [vmem:[%s600_s0 + $0x1c0] sm:$0xff]  ;;  %v249_v19 = vld [vmem:[%s600_s0 + $0x268] sm:$0xff] }
  0x12   :  { %v152_v18 = vmax.bf16 %v247_v4, %v107_v8  ;;  %v65_v20 = vmax.bf16 %v206_v16, %v20_v15  ;;  %v21_v21 = vld [vmem:[%s600_s0 + $0x68] sm:$0xff]  ;;  %v207_v22 = vld [vmem:[%s600_s0 + $0x118] sm:$0xff]  ;;  %v250_v25 = vld [vmem:[%s600_s0 + $0x270] sm:$0xff] }
  0x13   :  { %173 = vst [vmem:[%s601_s1 + $0x40] sm:$0xff] %v151_v12  ;;  %v153_v23 = vmax.bf16 %v248_v9, %v108_v13  ;;  %v109_v24 = vmax.bf16 %v227_v11, %v64_v14  ;;  %v66_v26 = vmax.bf16 %v207_v22, %v21_v21  ;;  %v229_v27 = vld [vmem:[%s600_s0 + $0x1c8] sm:$0xff]  ;;  %v22_v28 = vld [vmem:[%s600_s0 + $0x70] sm:$0xff]  ;;  %v251_v30 = vld [vmem:[%s600_s0 + $0x278] sm:$0xff] }
  0x14   :  { %174 = vst [vmem:[%s601_s1 + $0x48] sm:$0xff] %v152_v18  ;;  %v110_v29 = vmax.bf16 %v228_v17, %v65_v20  ;;  %v208_v31 = vld [vmem:[%s600_s0 + $0x120] sm:$0xff]  ;;  %v230_v32 = vld [vmem:[%s600_s0 + $0x1d0] sm:$0xff]  ;;  %v23_v36 = vld [vmem:[%s600_s0 + $0x78] sm:$0xff] }
  0x15   :  { %175 = vst [vmem:[%s601_s1 + $0x50] sm:$0xff] %v153_v23  ;;  %v154_v33 = vmax.bf16 %v249_v19, %v109_v24  ;;  %v111_v34 = vmax.bf16 %v229_v27, %v66_v26  ;;  %v67_v35 = vmax.bf16 %v208_v31, %v22_v28  ;;  %v209_v37 = vld [vmem:[%s600_s0 + $0x128] sm:$0xff]  ;;  %v231_v38 = vld [vmem:[%s600_s0 + $0x1d8] sm:$0xff]  ;;  %v252_v40 = vld [vmem:[%s600_s0 + $0x280] sm:$0xff] }
  0x16   :  { %v155_v39 = vmax.bf16 %v250_v25, %v110_v29  ;;  %v68_v41 = vmax.bf16 %v209_v37, %v23_v36  ;;  %v24_v42 = vld [vmem:[%s600_s0 + $0x80] sm:$0xff]  ;;  %v210_v43 = vld [vmem:[%s600_s0 + $0x130] sm:$0xff]  ;;  %v253_v46 = vld [vmem:[%s600_s0 + $0x288] sm:$0xff] }
  0x17   :  { %176 = vst [vmem:[%s601_s1 + $0x58] sm:$0xff] %v154_v33  ;;  %v156_v44 = vmax.bf16 %v251_v30, %v111_v34  ;;  %v112_v45 = vmax.bf16 %v230_v32, %v67_v35  ;;  %v69_v47 = vmax.bf16 %v210_v43, %v24_v42  ;;  %v232_v48 = vld [vmem:[%s600_s0 + $0x1e0] sm:$0xff]  ;;  %v25_v49 = vld [vmem:[%s600_s0 + $0x88] sm:$0xff]  ;;  %v254_v51 = vld [vmem:[%s600_s0 + $0x290] sm:$0xff] }
  0x18   :  { %177 = vst [vmem:[%s601_s1 + $0x60] sm:$0xff] %v155_v39  ;;  %v113_v50 = vmax.bf16 %v231_v38, %v68_v41  ;;  %v211_v52 = vld [vmem:[%s600_s0 + $0x138] sm:$0xff]  ;;  %v233_v53 = vld [vmem:[%s600_s0 + $0x1e8] sm:$0xff]  ;;  %v26_v57 = vld [vmem:[%s600_s0 + $0x90] sm:$0xff] }
  0x19   :  { %178 = vst [vmem:[%s601_s1 + $0x68] sm:$0xff] %v156_v44  ;;  %v157_v54 = vmax.bf16 %v252_v40, %v112_v45  ;;  %v114_v55 = vmax.bf16 %v232_v48, %v69_v47  ;;  %v70_v56 = vmax.bf16 %v211_v52, %v25_v49  ;;  %v212_v58 = vld [vmem:[%s600_s0 + $0x140] sm:$0xff]  ;;  %v234_v59 = vld [vmem:[%s600_s0 + $0x1f0] sm:$0xff]  ;;  %v255_v61 = vld [vmem:[%s600_s0 + $0x298] sm:$0xff] }
  0x1a   :  { %v158_v60 = vmax.bf16 %v253_v46, %v113_v50  ;;  %v71_v62 = vmax.bf16 %v212_v58, %v26_v57  ;;  %v27_v63 = vld [vmem:[%s600_s0 + $0x98] sm:$0xff]  ;;  %v213_v0 = vld [vmem:[%s600_s0 + $0x148] sm:$0xff]  ;;  %v256_v3 = vld [vmem:[%s600_s0 + $0x2a0] sm:$0xff] }
  0x1b   :  { %179 = vst [vmem:[%s601_s1 + $0x70] sm:$0xff] %v157_v54  ;;  %v159_v1 = vmax.bf16 %v254_v51, %v114_v55  ;;  %v115_v2 = vmax.bf16 %v233_v53, %v70_v56  ;;  %v72_v4 = vmax.bf16 %v213_v0, %v27_v63  ;;  %v235_v5 = vld [vmem:[%s600_s0 + $0x1f8] sm:$0xff]  ;;  %v28_v6 = vld [vmem:[%s600_s0 + $0xa0] sm:$0xff]  ;;  %v257_v8 = vld [vmem:[%s600_s0 + $0x2a8] sm:$0xff] }
  0x1c   :  { %180 = vst [vmem:[%s601_s1 + $0x78] sm:$0xff] %v158_v60  ;;  %v116_v7 = vmax.bf16 %v234_v59, %v71_v62  ;;  %v214_v9 = vld [vmem:[%s600_s0 + $0x150] sm:$0xff]  ;;  %v236_v10 = vld [vmem:[%s600_s0 + $0x200] sm:$0xff]  ;;  %v29_v14 = vld [vmem:[%s600_s0 + $0xa8] sm:$0xff] }
  0x1d   :  { %181 = vst [vmem:[%s601_s1 + $0x80] sm:$0xff] %v159_v1  ;;  %v160_v11 = vmax.bf16 %v255_v61, %v115_v2  ;;  %v117_v12 = vmax.bf16 %v235_v5, %v72_v4  ;;  %v73_v13 = vmax.bf16 %v214_v9, %v28_v6  ;;  %v215_v15 = vld [vmem:[%s600_s0 + $0x158] sm:$0xff]  ;;  %v237_v16 = vld [vmem:[%s600_s0 + $0x208] sm:$0xff]  ;;  %v258_v18 = vld [vmem:[%s600_s0 + $0x2b0] sm:$0xff] }
  0x1e   :  { %v161_v17 = vmax.bf16 %v256_v3, %v116_v7  ;;  %v74_v19 = vmax.bf16 %v215_v15, %v29_v14  ;;  %v259_v22 = vld [vmem:[%s600_s0 + $0x2b8] sm:$0xff]  ;;  %vm188_vm2 = vmor %vm187_vm1, %vm186_vm0 }
  0x1f   :  { %182 = vst [vmem:[%s601_s1 + $0x88] sm:$0xff] %v160_v11  ;;  %v162_v20 = vmax.bf16 %v257_v8, %v117_v12  ;;  %v118_v21 = vmax.bf16 %v236_v10, %v73_v13 }
  0x20   :  { %183 = vst [vmem:[%s601_s1 + $0x90] sm:$0xff] %v161_v17  ;;  %v119_v23 = vmax.bf16 %v237_v16, %v74_v19 }
  0x21   :  { %184 = vst [vmem:[%s601_s1 + $0x98] sm:$0xff] %v162_v20  ;;  %v163_v24 = vmax.bf16 %v258_v18, %v118_v21 }
  0x22   :  { %v164_v25 = vmax.bf16 %v259_v22, %v119_v23 }
  0x23   :  { %185 = vst [vmem:[%s601_s1 + $0xa0] sm:$0xff] %v163_v24 }
  0x24   :  { %189 = vst.msk [vmem:[%s601_s1 + $0xa8] sm:$0xff] %vm188_vm2, %v164_v25 }

// kernel: _normal_vs_infected.13
= control target key start
LH: loop header
LB: loop body
LE: loop exit
PB: predicated region body
PF: predicated region fallthrough
CT: control target
= control target key end

     0   :  { %s1669_s12 = smov 0   ;;  %s1671_s13 = smov 0   ;;  %s2077_s0 = inlined_call_operand.vmem [shape: bf16[16,72], index: 0, kind: input, shape index: {}]   ;;  %s2078_s1 = inlined_call_operand.vmem [shape: bf16[72,6144], index: 1, kind: input, shape index: {}]   ;;  %s2079_s2 = inlined_call_operand.vmem [shape: f32[16,1], index: 2, kind: input, shape index: {}]   ;;  %s2080_s3 = inlined_call_operand.vmem [shape: bf16[16,6144], index: 3, kind: output, shape index: {}]  }
   0x1   :  { %s1673_s14 = smov 0  }
   0x2 LB: > { %s1435_s15 = sadd.s32 4294967295, %s1646_s14   ;;  %s1686_s16 = sadd.s32 1, %s1646_s14   ;;  %s1646_s14 = sphi %s1673_s14, %s2084_s14   ;;  %s1642_s13 = sphi %s1671_s13, %s2083_s13   ;;  %s1638_s12 = sphi %s1669_s12, %s2082_s12  }
   0x3   : > { %s38_s17 = ssub.s32 %s1646_s14, %s1686_s16  ;;  %s41_s18 = sadd.s32 1, %s1642_s13 }
   0x4   : > { %p39_p0 = scmp.eq.s32.totalorder %s38_s17, 0  ;;  %p48_p1 = scmp.ne.s32.totalorder %s1642_s13, %s1638_s12 }
   0x5   : > { %p49_p2 = scmp.eq.s32.totalorder %s1646_s14, 0  ;;  %p99_p3 = scmp.eq.s32.totalorder %s1435_s15, 2 }
   0x6   : > { %s1697_s19 = scalar_select %p39_p0, %s1642_s13, %s41_s18  }
   0x7   : > { %p50_p4 = por %p49_p2, %p48_p1  ;;  %p1699_p5 = por %p99_p3, %p48_p1 }
   0x8   : > { %p1438_p6 = scmp.ge.s32.totalorder %s1646_s14, 3 }
   0xa   : > { %127 = sbr.rel (%p1438_p6) target bundleno = 58 (0x3a), region = 24 }
  0x11   : > { %130 = sbr.rel (!%p50_p4) target bundleno = 58 (0x3a), region = 28  ;;  %s132_s21 = sand.u32 (%p50_p4), 1, %s1642_s13  }
  0x12   : > { %s1561_s22 = sshll.u32 (%p50_p4), %s1646_s14, 6  ;;  %s1579_s23 = smul.u32 (%p50_p4), 576, %s132_s21 }
  0x13   : > { %s1709_s26 = scalar_lea.vmem (%p50_p4), %s2078_s1, %s1561_s22 }
  0x14   : > { %v150_v0 = vld [vmem:[%s1709_s26] sm:$0xff] (%p50_p4)  ;;  %v152_v1 = vld [vmem:[%s1709_s26 + $0x8] sm:$0xff] (%p50_p4)  ;;  %v154_v2 = vld [vmem:[%s1709_s26 + $0x10] sm:$0xff] (%p50_p4)  ;;  %s1717_s27 = scalar_lea.vmem (%p50_p4), [#allocation2], %s1579_s23 }
  0x15   : > { %v156_v3 = vld [vmem:[%s1709_s26 + $0x18] sm:$0xff] (%p50_p4)  ;;  %v158_v4 = vld [vmem:[%s1709_s26 + $0x20] sm:$0xff] (%p50_p4)  ;;  %v160_v5 = vld [vmem:[%s1709_s26 + $0x28] sm:$0xff] (%p50_p4)  ;;  %151 = vst [vmem:[%s1717_s27] sm:$0xff] (%p50_p4), %v150_v0 }
  0x16   : > { %153 = vst [vmem:[%s1717_s27 + $0x8] sm:$0xff] (%p50_p4), %v152_v1  ;;  %155 = vst [vmem:[%s1717_s27 + $0x10] sm:$0xff] (%p50_p4), %v154_v2  ;;  %v162_v6 = vld [vmem:[%s1709_s26 + $0x30] sm:$0xff] (%p50_p4)  ;;  %v164_v7 = vld [vmem:[%s1709_s26 + $0x38] sm:$0xff] (%p50_p4) }
  0x17   : > { %157 = vst [vmem:[%s1717_s27 + $0x18] sm:$0xff] (%p50_p4), %v156_v3  ;;  %159 = vst [vmem:[%s1717_s27 + $0x20] sm:$0xff] (%p50_p4), %v158_v4  ;;  %v166_v8 = vld [vmem:[%s1709_s26 + $0xc0] sm:$0xff] (%p50_p4)  ;;  %v168_v9 = vld [vmem:[%s1709_s26 + $0xc8] sm:$0xff] (%p50_p4) }
  0x18   : > { %161 = vst [vmem:[%s1717_s27 + $0x28] sm:$0xff] %v160_v5  ;;  %163 = vst [vmem:[%s1717_s27 + $0x30] sm:$0xff] %v162_v6  ;;  %v170_v10 = vld [vmem:[%s1709_s26 + $0xd0] sm:$0xff]  ;;  %v172_v11 = vld [vmem:[%s1709_s26 + $0xd8] sm:$0xff] }
  0x19   : > { %165 = vst [vmem:[%s1717_s27 + $0x38] sm:$0xff] %v164_v7  ;;  %167 = vst [vmem:[%s1717_s27 + $0x40] sm:$0xff] %v166_v8  ;;  %v174_v12 = vld [vmem:[%s1709_s26 + $0xe0] sm:$0xff]  ;;  %v176_v13 = vld [vmem:[%s1709_s26 + $0xe8] sm:$0xff] }
  0x1a   : > { %169 = vst [vmem:[%s1717_s27 + $0x48] sm:$0xff] %v168_v9  ;;  %171 = vst [vmem:[%s1717_s27 + $0x50] sm:$0xff] %v170_v10  ;;  %v178_v14 = vld [vmem:[%s1709_s26 + $0xf0] sm:$0xff]  ;;  %v180_v15 = vld [vmem:[%s1709_s26 + $0xf8] sm:$0xff] }
  0x1b   : > { %173 = vst [vmem:[%s1717_s27 + $0x58] sm:$0xff] %v172_v11  ;;  %175 = vst [vmem:[%s1717_s27 + $0x60] sm:$0xff] %v174_v12  ;;  %v182_v16 = vld [vmem:[%s1709_s26 + $0x180] sm:$0xff]  ;;  %v184_v17 = vld [vmem:[%s1709_s26 + $0x188] sm:$0xff] }
  0x1c   : > { %177 = vst [vmem:[%s1717_s27 + $0x68] sm:$0xff] %v176_v13  ;;  %179 = vst [vmem:[%s1717_s27 + $0x70] sm:$0xff] %v178_v14  ;;  %v186_v18 = vld [vmem:[%s1709_s26 + $0x190] sm:$0xff]  ;;  %v188_v19 = vld [vmem:[%s1709_s26 + $0x198] sm:$0xff] }
  0x1d   : > { %181 = vst [vmem:[%s1717_s27 + $0x78] sm:$0xff] %v180_v15  ;;  %183 = vst [vmem:[%s1717_s27 + $0x80] sm:$0xff] %v182_v16  ;;  %v190_v20 = vld [vmem:[%s1709_s26 + $0x1a0] sm:$0xff]  ;;  %v192_v21 = vld [vmem:[%s1709_s26 + $0x1a8] sm:$0xff] }
  0x1e   : > { %185 = vst [vmem:[%s1717_s27 + $0x88] sm:$0xff] %v184_v17  ;;  %187 = vst [vmem:[%s1717_s27 + $0x90] sm:$0xff] %v186_v18  ;;  %v194_v22 = vld [vmem:[%s1709_s26 + $0x1b0] sm:$0xff]  ;;  %v196_v23 = vld [vmem:[%s1709_s26 + $0x1b8] sm:$0xff] }
  0x1f   : > { %189 = vst [vmem:[%s1717_s27 + $0x98] sm:$0xff] %v188_v19  ;;  %191 = vst [vmem:[%s1717_s27 + $0xa0] sm:$0xff] %v190_v20  ;;  %v198_v24 = vld [vmem:[%s1709_s26 + $0x240] sm:$0xff]  ;;  %v200_v25 = vld [vmem:[%s1709_s26 + $0x248] sm:$0xff] }
  0x20   : > { %193 = vst [vmem:[%s1717_s27 + $0xa8] sm:$0xff] %v192_v21  ;;  %195 = vst [vmem:[%s1717_s27 + $0xb0] sm:$0xff] %v194_v22  ;;  %v202_v26 = vld [vmem:[%s1709_s26 + $0x250] sm:$0xff]  ;;  %v204_v27 = vld [vmem:[%s1709_s26 + $0x258] sm:$0xff] }
  0x21   : > { %197 = vst [vmem:[%s1717_s27 + $0xb8] sm:$0xff] %v196_v23  ;;  %199 = vst [vmem:[%s1717_s27 + $0xc0] sm:$0xff] %v198_v24  ;;  %v206_v28 = vld [vmem:[%s1709_s26 + $0x260] sm:$0xff]  ;;  %v208_v29 = vld [vmem:[%s1709_s26 + $0x268] sm:$0xff] }
  0x22   : > { %201 = vst [vmem:[%s1717_s27 + $0xc8] sm:$0xff] %v200_v25  ;;  %203 = vst [vmem:[%s1717_s27 + $0xd0] sm:$0xff] %v202_v26  ;;  %v210_v30 = vld [vmem:[%s1709_s26 + $0x270] sm:$0xff]  ;;  %v212_v31 = vld [vmem:[%s1709_s26 + $0x278] sm:$0xff] }
  0x23   : > { %205 = vst [vmem:[%s1717_s27 + $0xd8] sm:$0xff] %v204_v27  ;;  %207 = vst [vmem:[%s1717_s27 + $0xe0] sm:$0xff] %v206_v28  ;;  %v214_v32 = vld [vmem:[%s1709_s26 + $0x300] sm:$0xff]  ;;  %v216_v33 = vld [vmem:[%s1709_s26 + $0x308] sm:$0xff] }
  0x24   : > { %209 = vst [vmem:[%s1717_s27 + $0xe8] sm:$0xff] %v208_v29  ;;  %211 = vst [vmem:[%s1717_s27 + $0xf0] sm:$0xff] %v210_v30  ;;  %v218_v34 = vld [vmem:[%s1709_s26 + $0x310] sm:$0xff]  ;;  %v220_v35 = vld [vmem:[%s1709_s26 + $0x318] sm:$0xff] }
  0x25   : > { %213 = vst [vmem:[%s1717_s27 + $0xf8] sm:$0xff] %v212_v31  ;;  %215 = vst [vmem:[%s1717_s27 + $0x100] sm:$0xff] %v214_v32  ;;  %v222_v36 = vld [vmem:[%s1709_s26 + $0x320] sm:$0xff]  ;;  %v224_v37 = vld [vmem:[%s1709_s26 + $0x328] sm:$0xff] }
  0x26   : > { %217 = vst [vmem:[%s1717_s27 + $0x108] sm:$0xff] %v216_v33  ;;  %219 = vst [vmem:[%s1717_s27 + $0x110] sm:$0xff] %v218_v34  ;;  %v226_v38 = vld [vmem:[%s1709_s26 + $0x330] sm:$0xff]  ;;  %v228_v39 = vld [vmem:[%s1709_s26 + $0x338] sm:$0xff] }
  0x27   : > { %221 = vst [vmem:[%s1717_s27 + $0x118] sm:$0xff] %v220_v35  ;;  %223 = vst [vmem:[%s1717_s27 + $0x120] sm:$0xff] %v222_v36  ;;  %v230_v40 = vld [vmem:[%s1709_s26 + $0x3c0] sm:$0xff]  ;;  %v232_v41 = vld [vmem:[%s1709_s26 + $0x3c8] sm:$0xff] }
  0x28   : > { %225 = vst [vmem:[%s1717_s27 + $0x128] sm:$0xff] %v224_v37  ;;  %227 = vst [vmem:[%s1717_s27 + $0x130] sm:$0xff] %v226_v38  ;;  %v234_v42 = vld [vmem:[%s1709_s26 + $0x3d0] sm:$0xff]  ;;  %v236_v43 = vld [vmem:[%s1709_s26 + $0x3d8] sm:$0xff] }
  0x29   : > { %229 = vst [vmem:[%s1717_s27 + $0x138] sm:$0xff] %v228_v39  ;;  %231 = vst [vmem:[%s1717_s27 + $0x140] sm:$0xff] %v230_v40  ;;  %v238_v44 = vld [vmem:[%s1709_s26 + $0x3e0] sm:$0xff]  ;;  %v240_v45 = vld [vmem:[%s1709_s26 + $0x3e8] sm:$0xff] }
  0x2a   : > { %233 = vst [vmem:[%s1717_s27 + $0x148] sm:$0xff] %v232_v41  ;;  %235 = vst [vmem:[%s1717_s27 + $0x150] sm:$0xff] %v234_v42  ;;  %v242_v46 = vld [vmem:[%s1709_s26 + $0x3f0] sm:$0xff]  ;;  %v244_v47 = vld [vmem:[%s1709_s26 + $0x3f8] sm:$0xff] }
  0x2b   : > { %237 = vst [vmem:[%s1717_s27 + $0x158] sm:$0xff] %v236_v43  ;;  %239 = vst [vmem:[%s1717_s27 + $0x160] sm:$0xff] %v238_v44  ;;  %v246_v48 = vld [vmem:[%s1709_s26 + $0x480] sm:$0xff]  ;;  %v248_v49 = vld [vmem:[%s1709_s26 + $0x488] sm:$0xff] }
  0x2c   : > { %241 = vst [vmem:[%s1717_s27 + $0x168] sm:$0xff] %v240_v45  ;;  %243 = vst [vmem:[%s1717_s27 + $0x170] sm:$0xff] %v242_v46  ;;  %v250_v50 = vld [vmem:[%s1709_s26 + $0x490] sm:$0xff]  ;;  %v252_v51 = vld [vmem:[%s1709_s26 + $0x498] sm:$0xff] }
  0x2d   : > { %245 = vst [vmem:[%s1717_s27 + $0x178] sm:$0xff] %v244_v47  ;;  %247 = vst [vmem:[%s1717_s27 + $0x180] sm:$0xff] %v246_v48  ;;  %v254_v52 = vld [vmem:[%s1709_s26 + $0x4a0] sm:$0xff]  ;;  %v256_v53 = vld [vmem:[%s1709_s26 + $0x4a8] sm:$0xff] }
  0x2e   : > { %249 = vst [vmem:[%s1717_s27 + $0x188] sm:$0xff] %v248_v49  ;;  %251 = vst [vmem:[%s1717_s27 + $0x190] sm:$0xff] %v250_v50  ;;  %v258_v54 = vld [vmem:[%s1709_s26 + $0x4b0] sm:$0xff]  ;;  %v260_v55 = vld [vmem:[%s1709_s26 + $0x4b8] sm:$0xff] }
  0x2f   : > { %253 = vst [vmem:[%s1717_s27 + $0x198] sm:$0xff] %v252_v51  ;;  %255 = vst [vmem:[%s1717_s27 + $0x1a0] sm:$0xff] %v254_v52  ;;  %v262_v56 = vld [vmem:[%s1709_s26 + $0x540] sm:$0xff]  ;;  %v264_v57 = vld [vmem:[%s1709_s26 + $0x548] sm:$0xff] }
  0x30   : > { %257 = vst [vmem:[%s1717_s27 + $0x1a8] sm:$0xff] %v256_v53  ;;  %259 = vst [vmem:[%s1717_s27 + $0x1b0] sm:$0xff] %v258_v54  ;;  %v266_v58 = vld [vmem:[%s1709_s26 + $0x550] sm:$0xff]  ;;  %v268_v59 = vld [vmem:[%s1709_s26 + $0x558] sm:$0xff] }
  0x31   : > { %261 = vst [vmem:[%s1717_s27 + $0x1b8] sm:$0xff] %v260_v55  ;;  %263 = vst [vmem:[%s1717_s27 + $0x1c0] sm:$0xff] %v262_v56  ;;  %v270_v60 = vld [vmem:[%s1709_s26 + $0x560] sm:$0xff]  ;;  %v272_v61 = vld [vmem:[%s1709_s26 + $0x568] sm:$0xff] }
  0x32   : > { %265 = vst [vmem:[%s1717_s27 + $0x1c8] sm:$0xff] %v264_v57  ;;  %267 = vst [vmem:[%s1717_s27 + $0x1d0] sm:$0xff] %v266_v58  ;;  %v274_v62 = vld [vmem:[%s1709_s26 + $0x570] sm:$0xff]  ;;  %v276_v63 = vld [vmem:[%s1709_s26 + $0x578] sm:$0xff] }
  0x33   : > { %269 = vst [vmem:[%s1717_s27 + $0x1d8] sm:$0xff] %v268_v59  ;;  %271 = vst [vmem:[%s1717_s27 + $0x1e0] sm:$0xff] %v270_v60  ;;  %v278_v0 = vld [vmem:[%s1709_s26 + $0x600] sm:$0xff]  ;;  %v280_v1 = vld [vmem:[%s1709_s26 + $0x608] sm:$0xff] }
  0x34   : > { %273 = vst [vmem:[%s1717_s27 + $0x1e8] sm:$0xff] %v272_v61  ;;  %275 = vst [vmem:[%s1717_s27 + $0x1f0] sm:$0xff] %v274_v62  ;;  %v282_v2 = vld [vmem:[%s1709_s26 + $0x610] sm:$0xff]  ;;  %v284_v3 = vld [vmem:[%s1709_s26 + $0x618] sm:$0xff] }
  0x35   : > { %277 = vst [vmem:[%s1717_s27 + $0x1f8] sm:$0xff] %v276_v63  ;;  %279 = vst [vmem:[%s1717_s27 + $0x200] sm:$0xff] %v278_v0  ;;  %v286_v4 = vld [vmem:[%s1709_s26 + $0x620] sm:$0xff]  ;;  %v288_v5 = vld [vmem:[%s1709_s26 + $0x628] sm:$0xff] }
  0x36   : > { %281 = vst [vmem:[%s1717_s27 + $0x208] sm:$0xff] %v280_v1  ;;  %283 = vst [vmem:[%s1717_s27 + $0x210] sm:$0xff] %v282_v2  ;;  %v290_v6 = vld [vmem:[%s1709_s26 + $0x630] sm:$0xff]  ;;  %v292_v7 = vld [vmem:[%s1709_s26 + $0x638] sm:$0xff] }
  0x37   : > { %285 = vst [vmem:[%s1717_s27 + $0x218] sm:$0xff] %v284_v3  ;;  %287 = vst [vmem:[%s1717_s27 + $0x220] sm:$0xff] %v286_v4 }
  0x38   : > { %289 = vst [vmem:[%s1717_s27 + $0x228] sm:$0xff] %v288_v5  ;;  %291 = vst [vmem:[%s1717_s27 + $0x230] sm:$0xff] %v290_v6 }
  0x39   : > { %293 = vst [vmem:[%s1717_s27 + $0x238] sm:$0xff] %v292_v7 }
  0x3a PF: > { %p1441_p7 = scmp.ge.s32.totalorder %s1646_s14, 1  ;;  %p298_p8 = scmp.lt.s32.totalorder %s1646_s14, 4 }
  0x3c   : > { %p299_p9 = pnand %p1441_p7, %p298_p8 }
  0x3d   : > { %s305_s28 = sand.u32 (!%p299_p9), 1, %s1638_s12   ;;  %v1648_v8 = vmov (!%p299_p9), 0   ;;  %v404_v9 = vld [vmem:[%s2079_s2] sm:$0xff] (!%p299_p9)  ;;  %v405_v10 = vld [vmem:[%s2079_s2 + $0x8] sm:$0xff] (!%p299_p9)  ;;  %vm785_vm0 = vcmask (!%p299_p9), 1043456   ;;  %vm781_vm1 = vcmask (!%p299_p9), 588800  }
  0x3e   : > { %302 = sbr.rel (%p299_p9) target bundleno = 380 (0x17c), region = 51  ;;  %866 = vmatprep.mubr.bf16.mxu0 (!%p299_p9), %v1648_v8  ;;  %909 = vmatprep.mubr.bf16.mxu1 (!%p299_p9), %v1648_v8  ;;  %v1904_v59 = vld [vmem:[%s2077_s0] sm:$0xff] (!%p299_p9)   ;;  %s1442_s10 = sshll.u32 (!%p299_p9), %s305_s28, 7 }
  0x3f   : > { %s1580_s29 = smul.u32 (!%p299_p9), 576, %s305_s28  ;;  %1606 = vset.pattern.permute.xlu0 (!%p299_p9), %v1648_v8  ;;  %s2002_s11 = scalar_lea.vmem (!%p299_p9), [#allocation3], %s1442_s10 }
  0x40   : > { %408 = vperm.xlu0 (!%p299_p9), %1606, %v404_v9  }
  0x41   : > { %s1871_s7 = scalar_lea.vmem (!%p299_p9), [#allocation2], %s1580_s29 }
  0x42   : > { %v332_v11 = vld [vmem:[%s1871_s7] sm:$0xff] (!%p299_p9)  ;;  %v333_v13 = vld [vmem:[%s1871_s7 + $0x8] sm:$0xff] (!%p299_p9)  ;;  %v334_v49 = vld [vmem:[%s1871_s7 + $0x10] sm:$0xff] (!%p299_p9) }
  0x43   : > { %v340_v12 = vld [vmem:[%s1871_s7 + $0x40] sm:$0xff] (!%p299_p9)  ;;  %v341_v15 = vld [vmem:[%s1871_s7 + $0x48] sm:$0xff] (!%p299_p9)  ;;  %v342_v50 = vld [vmem:[%s1871_s7 + $0x50] sm:$0xff] (!%p299_p9) }
  0x44   : > { %v1445_v14 = vcombine.high (!%p299_p9), %v332_v11, %v340_v12  ;;  %v1444_v16 = vcombine.low (!%p299_p9), %v332_v11, %v340_v12  ;;  %v348_v17 = vld [vmem:[%s1871_s7 + $0x80] sm:$0xff] (!%p299_p9)  ;;  %v1447_v19 = vcombine.high (!%p299_p9), %v333_v13, %v341_v15  ;;  %v1446_v20 = vcombine.low (!%p299_p9), %v333_v13, %v341_v15  ;;  %v349_v22 = vld [vmem:[%s1871_s7 + $0x88] sm:$0xff] (!%p299_p9)  ;;  %413 = vperm.xlu0 (!%p299_p9), %1606, %v405_v10   ;;  %v335_v51 = vld [vmem:[%s1871_s7 + $0x18] sm:$0xff] (!%p299_p9) }
  0x45   : > { %v356_v18 = vld [vmem:[%s1871_s7 + $0xc0] sm:$0xff]  ;;  %v357_v23 = vld [vmem:[%s1871_s7 + $0xc8] sm:$0xff]  ;;  %v343_v52 = vld [vmem:[%s1871_s7 + $0x58] sm:$0xff]  ;;  %v1449_v54 = vcombine.high %v334_v49, %v342_v50  ;;  %v1448_v62 = vcombine.low %v334_v49, %v342_v50  ;;  %s1578_s12 = sshll.u32 (%p1699_p5), %s1435_s15, 6 }
  0x46   : > { %v1461_v21 = vcombine.high %v348_v17, %v356_v18  ;;  %v364_v24 = vld [vmem:[%s1871_s7 + $0x100] sm:$0xff]  ;;  %834 = vmatprep.subr.bf16.mxu0 %v1445_v14  ;;  %v1463_v25 = vcombine.high %v349_v22, %v357_v23  ;;  %v365_v27 = vld [vmem:[%s1871_s7 + $0x108] sm:$0xff]  ;;  %877 = vmatprep.subr.bf16.mxu1 %v1447_v19  ;;  %v1460_v29 = vcombine.low %v348_v17, %v356_v18  ;;  %v350_v57 = vld [vmem:[%s1871_s7 + $0x90] sm:$0xff]  ;;  %s1331_s20 = scalar_lea.vmem (%p1699_p5), %s2080_s3, %s1578_s12 }
  0x47   : > { %v372_v26 = vld [vmem:[%s1871_s7 + $0x140] sm:$0xff]  ;;  %v373_v28 = vld [vmem:[%s1871_s7 + $0x148] sm:$0xff]  ;;  %835 = vmatpush1.bf16.msra.mxu0 %v1444_v16  ;;  %878 = vmatpush1.bf16.msra.mxu1 %v1446_v20  ;;  %v1462_v30 = vcombine.low %v349_v22, %v357_v23  ;;  %v1451_v56 = vcombine.high %v335_v51, %v343_v52  ;;  %v358_v58 = vld [vmem:[%s1871_s7 + $0xd0] sm:$0xff]  ;;  %v1450_v63 = vcombine.low %v335_v51, %v343_v52 }
  0x48   : > { %836 = vmatprep.subr.bf16.mxu0 %v1461_v21  ;;  %v1477_v31 = vcombine.high %v364_v24, %v372_v26  ;;  %879 = vmatprep.subr.bf16.mxu1 %v1463_v25  ;;  %v1479_v32 = vcombine.high %v365_v27, %v373_v28  ;;  %v380_v33 = vld [vmem:[%s1871_s7 + $0x180] sm:$0xff]  ;;  %v381_v35 = vld [vmem:[%s1871_s7 + $0x188] sm:$0xff]  ;;  %v1476_v37 = vcombine.low %v364_v24, %v372_v26  ;;  %v351_v60 = vld [vmem:[%s1871_s7 + $0x98] sm:$0xff] }
  0x49   : > { %v388_v34 = vld [vmem:[%s1871_s7 + $0x1c0] sm:$0xff]  ;;  %v389_v36 = vld [vmem:[%s1871_s7 + $0x1c8] sm:$0xff]  ;;  %v1478_v38 = vcombine.low %v365_v27, %v373_v28  ;;  %v359_v61 = vld [vmem:[%s1871_s7 + $0xd8] sm:$0xff]  ;;  %v1465_v0 = vcombine.high %v350_v57, %v358_v58  ;;  %v1464_v6 = vcombine.low %v350_v57, %v358_v58 }
  0x4a   : > { %v1493_v39 = vcombine.high %v380_v33, %v388_v34  ;;  %v1495_v40 = vcombine.high %v381_v35, %v389_v36  ;;  %v396_v41 = vld [vmem:[%s1871_s7 + $0x200] sm:$0xff]  ;;  %v397_v42 = vld [vmem:[%s1871_s7 + $0x208] sm:$0xff]  ;;  %v1492_v43 = vcombine.low %v380_v33, %v388_v34  ;;  %v1494_v44 = vcombine.low %v381_v35, %v389_v36  ;;  %v366_v2 = vld [vmem:[%s1871_s7 + $0x110] sm:$0xff] }
  0x4b   : > { %837 = vmatpush1.bf16.msra.mxu0 %v1460_v29  ;;  %880 = vmatpush1.bf16.msra.mxu1 %v1462_v30  ;;  %v1509_v45 = vcombine.high %v396_v41, %v396_v41  ;;  %v1508_v46 = vcombine.low %v396_v41, %v396_v41  ;;  %v1511_v47 = vcombine.high %v397_v42, %v397_v42  ;;  %v374_v3 = vld [vmem:[%s1871_s7 + $0x150] sm:$0xff]  ;;  %v367_v4 = vld [vmem:[%s1871_s7 + $0x118] sm:$0xff]  ;;  %v336_v27 = vld [vmem:[%s1871_s7 + $0x20] sm:$0xff] }
  0x4c   : > { %838 = vmatprep.subr.bf16.mxu0 %v1477_v31  ;;  %881 = vmatprep.subr.bf16.mxu1 %v1479_v32  ;;  %v1510_v48 = vcombine.low %v397_v42, %v397_v42  ;;  %v1467_v1 = vcombine.high %v351_v60, %v359_v61  ;;  %v375_v5 = vld [vmem:[%s1871_s7 + $0x158] sm:$0xff]  ;;  %v1466_v7 = vcombine.low %v351_v60, %v359_v61  ;;  %v382_v11 = vld [vmem:[%s1871_s7 + $0x190] sm:$0xff]  ;;  %v344_v28 = vld [vmem:[%s1871_s7 + $0x60] sm:$0xff] }
  0x4d   : > { %v787_v53 = vsel %vm785_vm0, %v1508_v46, 0  ;;  %v1481_v9 = vcombine.high %v366_v2, %v374_v3  ;;  %v1483_v10 = vcombine.high %v367_v4, %v375_v5  ;;  %v390_v12 = vld [vmem:[%s1871_s7 + $0x1d0] sm:$0xff]  ;;  %v383_v13 = vld [vmem:[%s1871_s7 + $0x198] sm:$0xff]  ;;  %v1480_v15 = vcombine.low %v366_v2, %v374_v3  ;;  %v337_v29 = vld [vmem:[%s1871_s7 + $0x28] sm:$0xff] }
  0x4e   : > { %v793_v55 = vsel %vm785_vm0, %v1510_v48, 0  ;;  %v391_v14 = vld [vmem:[%s1871_s7 + $0x1d8] sm:$0xff]  ;;  %v1482_v16 = vcombine.low %v367_v4, %v375_v5  ;;  %v1497_v17 = vcombine.high %v382_v11, %v390_v12  ;;  %v398_v19 = vld [vmem:[%s1871_s7 + $0x210] sm:$0xff]  ;;  %v1496_v21 = vcombine.low %v382_v11, %v390_v12  ;;  %v345_v30 = vld [vmem:[%s1871_s7 + $0x68] sm:$0xff] }
  0x4f   : > { %839 = vmatpush1.bf16.msra.mxu0 %v1476_v37  ;;  %882 = vmatpush1.bf16.msra.mxu1 %v1478_v38  ;;  %v1499_v18 = vcombine.high %v383_v13, %v391_v14  ;;  %v399_v20 = vld [vmem:[%s1871_s7 + $0x218] sm:$0xff]  ;;  %v1498_v22 = vcombine.low %v383_v13, %v391_v14  ;;  %v1513_v23 = vcombine.high %v398_v19, %v398_v19  ;;  %v352_v35 = vld [vmem:[%s1871_s7 + $0xa0] sm:$0xff]  ;;  %v353_v37 = vld [vmem:[%s1871_s7 + $0xa8] sm:$0xff] }
  0x50   : > { %840 = vmatprep.subr.bf16.mxu0 %v1493_v39  ;;  %883 = vmatprep.subr.bf16.mxu1 %v1495_v40  ;;  %v1512_v24 = vcombine.low %v398_v19, %v398_v19  ;;  %v1515_v25 = vcombine.high %v399_v20, %v399_v20  ;;  %v1514_v26 = vcombine.low %v399_v20, %v399_v20  ;;  %v360_v36 = vld [vmem:[%s1871_s7 + $0xe0] sm:$0xff]  ;;  %v361_v38 = vld [vmem:[%s1871_s7 + $0xe8] sm:$0xff]  ;;  %v338_v4 = vld [vmem:[%s1871_s7 + $0x30] sm:$0xff] }
  0x51   : > { %v1453_v32 = vcombine.high %v336_v27, %v344_v28  ;;  %v1455_v34 = vcombine.high %v337_v29, %v345_v30  ;;  %v1452_v39 = vcombine.low %v336_v27, %v344_v28  ;;  %v1454_v40 = vcombine.low %v337_v29, %v345_v30  ;;  %v377_v46 = vld [vmem:[%s1871_s7 + $0x168] sm:$0xff]  ;;  %v384_v51 = vld [vmem:[%s1871_s7 + $0x1a0] sm:$0xff]  ;;  %v346_v5 = vld [vmem:[%s1871_s7 + $0x70] sm:$0xff] }
  0x52   : > { %v799_v31 = vsel %vm785_vm0, %v1512_v24, 0  ;;  %v805_v33 = vsel %vm785_vm0, %v1514_v26, 0  ;;  %v1469_v41 = vcombine.high %v352_v35, %v360_v36  ;;  %v1471_v42 = vcombine.high %v353_v37, %v361_v38  ;;  %v392_v52 = vld [vmem:[%s1871_s7 + $0x1e0] sm:$0xff]  ;;  %v401_v61 = vld [vmem:[%s1871_s7 + $0x228] sm:$0xff]  ;;  %v354_v13 = vld [vmem:[%s1871_s7 + $0xb0] sm:$0xff] }
  0x53   : > { %841 = vmatpush1.bf16.msra.mxu0 %v1492_v43  ;;  %884 = vmatpush1.bf16.msra.mxu1 %v1494_v44  ;;  %v368_v43 = vld [vmem:[%s1871_s7 + $0x120] sm:$0xff]  ;;  %v1470_v48 = vcombine.low %v353_v37, %v361_v38  ;;  %v1501_v57 = vcombine.high %v384_v51, %v392_v52  ;;  %v1519_v2 = vcombine.high %v401_v61, %v401_v61  ;;  %v362_v14 = vld [vmem:[%s1871_s7 + $0xf0] sm:$0xff]  ;;  %v379_v24 = vld [vmem:[%s1871_s7 + $0x178] sm:$0xff] }
  0x54   : > { %1524 = vmatprep.subr.msk.bf16.mxu0 %vm785_vm0, %v1509_v45  ;;  %1526 = vmatprep.subr.msk.bf16.mxu1 %vm785_vm0, %v1511_v47  ;;  %v376_v44 = vld [vmem:[%s1871_s7 + $0x160] sm:$0xff]  ;;  %v369_v45 = vld [vmem:[%s1871_s7 + $0x128] sm:$0xff]  ;;  %v1468_v47 = vcombine.low %v352_v35, %v360_v36  ;;  %v1518_v3 = vcombine.low %v401_v61, %v401_v61  ;;  %v1473_v19 = vcombine.high %v354_v13, %v362_v14  ;;  %v386_v29 = vld [vmem:[%s1871_s7 + $0x1b0] sm:$0xff] }
  0x55   : > { %v1485_v49 = vcombine.high %v368_v43, %v376_v44  ;;  %v1487_v50 = vcombine.high %v369_v45, %v377_v46  ;;  %v400_v60 = vld [vmem:[%s1871_s7 + $0x220] sm:$0xff]  ;;  %v394_v30 = vld [vmem:[%s1871_s7 + $0x1f0] sm:$0xff]  ;;  %v403_v38 = vld [vmem:[%s1871_s7 + $0x238] sm:$0xff] }
  0x56   : > { %v817_v11 = vsel %vm785_vm0, %v1518_v3, 0  ;;  %v1505_v35 = vcombine.high %v386_v29, %v394_v30  ;;  %v402_v37 = vld [vmem:[%s1871_s7 + $0x230] sm:$0xff] }
  0x57   : > { %843 = vmatpush1.bf16.msra.mxu0 %v787_v53  ;;  %886 = vmatpush1.bf16.msra.mxu1 %v793_v55  ;;  %v385_v53 = vld [vmem:[%s1871_s7 + $0x1a8] sm:$0xff]  ;;  %v1484_v55 = vcombine.low %v368_v43, %v376_v44  ;;  %v1523_v43 = vcombine.high %v403_v38, %v403_v38 }
  0x58   : > { %920 = vmatprep.subr.bf16.mxu0 %v1449_v54  ;;  %963 = vmatprep.subr.bf16.mxu1 %v1451_v56  ;;  %v393_v54 = vld [vmem:[%s1871_s7 + $0x1e8] sm:$0xff]  ;;  %v1486_v56 = vcombine.low %v369_v45, %v377_v46 }
  0x59   : > { %v1503_v58 = vcombine.high %v385_v53, %v393_v54 }
  0x5a   : > { %1525 = vmatmul.mubr.msk.bf16.vlgmr.msra.gmra.mrb[0].mxu0 %vm781_vm1, %v1904_v59  ;;  %1527 = vmatmul.mubr.msk.bf16.vlgmr.msra.gmra.mrb[0].mxu1 %vm781_vm1, %v1904_v59 }
  0x5b   : > { %921 = vmatpush1.bf16.msra.mxu0 %v1448_v62  ;;  %964 = vmatpush1.bf16.msra.mxu1 %v1450_v63  ;;  %v1500_v62 = vcombine.low %v384_v51, %v392_v52  ;;  %v1502_v63 = vcombine.low %v385_v53, %v393_v54 }
  0x5c   : > { %922 = vmatprep.subr.bf16.mxu0 %v1465_v0  ;;  %965 = vmatprep.subr.bf16.mxu1 %v1467_v1  ;;  %v1517_v0 = vcombine.high %v400_v60, %v400_v60  ;;  %v1516_v1 = vcombine.low %v400_v60, %v400_v60 }
  0x5d   : > { %952 = vmatprep.mubr.bf16.mxu0 %v1648_v8  ;;  %995 = vmatprep.mubr.bf16.mxu1 %v1648_v8 }
  0x5f   : > { %923 = vmatpush1.bf16.msra.mxu0 %v1464_v6  ;;  %966 = vmatpush1.bf16.msra.mxu1 %v1466_v7  ;;  %v339_v6 = vld [vmem:[%s1871_s7 + $0x38] sm:$0xff] }
  0x60   : > { %924 = vmatprep.subr.bf16.mxu0 %v1481_v9  ;;  %967 = vmatprep.subr.bf16.mxu1 %v1483_v10  ;;  %v347_v7 = vld [vmem:[%s1871_s7 + $0x78] sm:$0xff]  ;;  %v811_v9 = vsel %vm785_vm0, %v1516_v1, 0  ;;  %v1457_v10 = vcombine.high %v338_v4, %v346_v5 }
  0x61   : > { %v1459_v12 = vcombine.high %v339_v6, %v347_v7 }
  0x63   : > { %925 = vmatpush1.bf16.msra.mxu0 %v1480_v15  ;;  %968 = vmatpush1.bf16.msra.mxu1 %v1482_v16  ;;  %v355_v15 = vld [vmem:[%s1871_s7 + $0xb8] sm:$0xff] }
  0x64   : > { %926 = vmatprep.subr.bf16.mxu0 %v1497_v17  ;;  %969 = vmatprep.subr.bf16.mxu1 %v1499_v18  ;;  %v363_v16 = vld [vmem:[%s1871_s7 + $0xf8] sm:$0xff]  ;;  %v1456_v17 = vcombine.low %v338_v4, %v346_v5  ;;  %v1458_v18 = vcombine.low %v339_v6, %v347_v7 }
  0x65   : > { %v1475_v20 = vcombine.high %v355_v15, %v363_v16  ;;  %v1474_v26 = vcombine.low %v355_v15, %v363_v16 }
  0x67   : > { %927 = vmatpush1.bf16.msra.mxu0 %v1496_v21  ;;  %970 = vmatpush1.bf16.msra.mxu1 %v1498_v22  ;;  %v370_v21 = vld [vmem:[%s1871_s7 + $0x130] sm:$0xff] }
  0x68   : > { %1528 = vmatprep.subr.msk.bf16.mxu0 %vm785_vm0, %v1513_v23  ;;  %1530 = vmatprep.subr.msk.bf16.mxu1 %vm785_vm0, %v1515_v25  ;;  %v378_v22 = vld [vmem:[%s1871_s7 + $0x170] sm:$0xff]  ;;  %v371_v23 = vld [vmem:[%s1871_s7 + $0x138] sm:$0xff]  ;;  %v1472_v25 = vcombine.low %v354_v13, %v362_v14 }
  0x69   : > { %v1489_v27 = vcombine.high %v370_v21, %v378_v22  ;;  %v1491_v28 = vcombine.high %v371_v23, %v379_v24 }
  0x6b   : > { %929 = vmatpush1.bf16.msra.mxu0 %v799_v31  ;;  %972 = vmatpush1.bf16.msra.mxu1 %v805_v33  ;;  %v387_v31 = vld [vmem:[%s1871_s7 + $0x1b8] sm:$0xff]  ;;  %v1488_v33 = vcombine.low %v370_v21, %v378_v22 }
  0x6c   : > { %1006 = vmatprep.subr.bf16.mxu0 %v1453_v32  ;;  %1049 = vmatprep.subr.bf16.mxu1 %v1455_v34  ;;  %v395_v32 = vld [vmem:[%s1871_s7 + $0x1f8] sm:$0xff]  ;;  %v1490_v34 = vcombine.low %v371_v23, %v379_v24 }
  0x6d   : > { %v1507_v36 = vcombine.high %v387_v31, %v395_v32 }
  0x6e   : > { %1529 = vmatmul.mubr.msk.bf16.vlgmr.msra.gmra.mrb[4].mxu0 %vm781_vm1, %v1904_v59  ;;  %1531 = vmatmul.mubr.msk.bf16.vlgmr.msra.gmra.mrb[4].mxu1 %vm781_vm1, %v1904_v59 }
  0x6f   : > { %1007 = vmatpush1.bf16.msra.mxu0 %v1452_v39  ;;  %1050 = vmatpush1.bf16.msra.mxu1 %v1454_v40  ;;  %v1504_v39 = vcombine.low %v386_v29, %v394_v30  ;;  %v1506_v40 = vcombine.low %v387_v31, %v395_v32 }
  0x70   : > { %1008 = vmatprep.subr.bf16.mxu0 %v1469_v41  ;;  %1051 = vmatprep.subr.bf16.mxu1 %v1471_v42  ;;  %v1521_v41 = vcombine.high %v402_v37, %v402_v37  ;;  %v1520_v42 = vcombine.low %v402_v37, %v402_v37 }
  0x71   : > { %1038 = vmatprep.mubr.bf16.mxu0 %v1648_v8  ;;  %1081 = vmatprep.mubr.bf16.mxu1 %v1648_v8 }
  0x72   : > { %v823_v44 = vsel %vm785_vm0, %v1520_v42, 0 }
  0x73   : > { %1009 = vmatpush1.bf16.msra.mxu0 %v1468_v47  ;;  %1052 = vmatpush1.bf16.msra.mxu1 %v1470_v48 }
  0x74   : > { %1010 = vmatprep.subr.bf16.mxu0 %v1485_v49  ;;  %1053 = vmatprep.subr.bf16.mxu1 %v1487_v50 }
  0x77   : > { %1011 = vmatpush1.bf16.msra.mxu0 %v1484_v55  ;;  %1054 = vmatpush1.bf16.msra.mxu1 %v1486_v56 }
  0x78   : > { %1012 = vmatprep.subr.bf16.mxu0 %v1501_v57  ;;  %1055 = vmatprep.subr.bf16.mxu1 %v1503_v58 }
  0x7b   : > { %1013 = vmatpush1.bf16.msra.mxu0 %v1500_v62  ;;  %1056 = vmatpush1.bf16.msra.mxu1 %v1502_v63 }
  0x7c   : > { %1532 = vmatprep.subr.msk.bf16.mxu0 %vm785_vm0, %v1517_v0  ;;  %1534 = vmatprep.subr.msk.bf16.mxu1 %vm785_vm0, %v1519_v2 }
  0x7f   : > { %1015 = vmatpush1.bf16.msra.mxu0 %v811_v9  ;;  %1058 = vmatpush1.bf16.msra.mxu1 %v817_v11 }
  0x80   : > { %1092 = vmatprep.subr.bf16.mxu0 %v1457_v10  ;;  %1135 = vmatprep.subr.bf16.mxu1 %v1459_v12 }
  0x82   : > { %1533 = vmatmul.mubr.msk.bf16.vlgmr.msra.gmra.mrb[8].mxu0 %vm781_vm1, %v1904_v59  ;;  %1535 = vmatmul.mubr.msk.bf16.vlgmr.msra.gmra.mrb[8].mxu1 %vm781_vm1, %v1904_v59 }
  0x83   : > { %1093 = vmatpush1.bf16.msra.mxu0 %v1456_v17  ;;  %1136 = vmatpush1.bf16.msra.mxu1 %v1458_v18 }
  0x84   : > { %1094 = vmatprep.subr.bf16.mxu0 %v1473_v19  ;;  %1137 = vmatprep.subr.bf16.mxu1 %v1475_v20 }
  0x85   : > { %1124 = vmatprep.mubr.bf16.mxu0 %v1648_v8  ;;  %1167 = vmatprep.mubr.bf16.mxu1 %v1648_v8  ;;  %v1522_v8 = vcombine.low %v403_v38, %v403_v38 }
  0x87   : > { %1095 = vmatpush1.bf16.msra.mxu0 %v1472_v25  ;;  %1138 = vmatpush1.bf16.msra.mxu1 %v1474_v26  ;;  %v829_v45 = vsel %vm785_vm0, %v1522_v8, 0 }
  0x88   : > { %1096 = vmatprep.subr.bf16.mxu0 %v1489_v27  ;;  %1139 = vmatprep.subr.bf16.mxu1 %v1491_v28 }
  0x8b   : > { %1097 = vmatpush1.bf16.msra.mxu0 %v1488_v33  ;;  %1140 = vmatpush1.bf16.msra.mxu1 %v1490_v34 }
  0x8c   : > { %1098 = vmatprep.subr.bf16.mxu0 %v1505_v35  ;;  %1141 = vmatprep.subr.bf16.mxu1 %v1507_v36 }
  0x8f   : > { %1099 = vmatpush1.bf16.msra.mxu0 %v1504_v39  ;;  %1142 = vmatpush1.bf16.msra.mxu1 %v1506_v40 }
  0x90   : > { %1536 = vmatprep.subr.msk.bf16.mxu0 %vm785_vm0, %v1521_v41  ;;  %1538 = vmatprep.subr.msk.bf16.mxu1 %vm785_vm0, %v1523_v43 }
  0x93   : > { %1101 = vmatpush1.bf16.msra.mxu0 %v823_v44  ;;  %1144 = vmatpush1.bf16.msra.mxu1 %v829_v45 }
  0x96   : > { %1537 = vmatmul.mubr.msk.bf16.vlgmr.msra.gmra.mrb[12].mxu0 %vm781_vm1, %v1904_v59  ;;  %1539 = vmatmul.mubr.msk.bf16.vlgmr.msra.gmra.mrb[12].mxu1 %vm781_vm1, %v1904_v59 }
  0xbf   : > { %v1988_v46 = vpop.permute.xlu0 %408 }
  0xc3   : > { %v1990_v48 = vpop.permute.xlu0 %413 }
 0x12d   : > { %v868_v47 = vpop.f32.mrb[0].mxu0  ;;  %v911_v50 = vpop.f32.mrb[0].mxu1 }
 0x12e   : > { %v869_v49 = vadd.f32 %v868_v47, %v1988_v46  ;;  %v870_v51 = vpop.f32.mrb[1].mxu0  ;;  %v912_v52 = vadd.f32 %v911_v50, %v1988_v46  ;;  %v913_v54 = vpop.f32.mrb[1].mxu1 }
 0x12f   : > { %v871_v53 = vadd.f32 %v870_v51, %v1988_v46  ;;  %v872_v55 = vpop.f32.mrb[2].mxu0  ;;  %v914_v59 = vadd.f32 %v913_v54, %v1988_v46  ;;  %v915_v58 = vpop.f32.mrb[2].mxu1 }
 0x130   : > { %v1178_v56 = vmax.f32 %v869_v49, 0.0  ;;  %v873_v57 = vadd.f32 %v872_v55, %v1990_v48  ;;  %v874_v60 = vpop.f32.mrb[3].mxu0  ;;  %v1180_v61 = vmax.f32 %v912_v52, 0.0  ;;  %v916_v63 = vadd.f32 %v915_v58, %v1990_v48  ;;  %v917_v1 = vpop.f32.mrb[3].mxu1 }
 0x131   : > { %v1179_v62 = vmax.f32 %v871_v53, 0.0  ;;  %v875_v0 = vadd.f32 %v874_v60, %v1990_v48  ;;  %v1181_v2 = vmax.f32 %v914_v59, 0.0  ;;  %v918_v4 = vadd.f32 %v917_v1, %v1990_v48 }
 0x132   : > { %v1194_v3 = vmax.f32 %v873_v57, 0.0  ;;  %v1196_v6 = vmax.f32 %v916_v63, 0.0 }
 0x133   : > { %v1562_v5 = vpack.c.bf16 %v1179_v62, %v1178_v56  ;;  %v1195_v7 = vmax.f32 %v875_v0, 0.0  ;;  %v1563_v9 = vpack.c.bf16 %v1181_v2, %v1180_v61  ;;  %v1197_v10 = vmax.f32 %v918_v4, 0.0 }
 0x135   : > { %1306 = vst [vmem:[%s2002_s11] sm:$0xff] %v1562_v5  ;;  %v1570_v11 = vpack.c.bf16 %v1195_v7, %v1194_v3  ;;  %1307 = vst [vmem:[%s2002_s11 + $0x8] sm:$0xff] %v1563_v9  ;;  %v1571_v12 = vpack.c.bf16 %v1197_v10, %v1196_v6 }
 0x137   : > { %1314 = vst [vmem:[%s2002_s11 + $0x40] sm:$0xff] %v1570_v11  ;;  %1315 = vst [vmem:[%s2002_s11 + $0x48] sm:$0xff] %v1571_v12 }
 0x141   : > { %v954_v13 = vpop.f32.mrb[4].mxu0  ;;  %v997_v15 = vpop.f32.mrb[4].mxu1 }
 0x142   : > { %v955_v14 = vadd.f32 %v954_v13, %v1988_v46  ;;  %v956_v16 = vpop.f32.mrb[5].mxu0  ;;  %v998_v17 = vadd.f32 %v997_v15, %v1988_v46  ;;  %v999_v19 = vpop.f32.mrb[5].mxu1 }
 0x143   : > { %v957_v18 = vadd.f32 %v956_v16, %v1988_v46  ;;  %v958_v20 = vpop.f32.mrb[6].mxu0  ;;  %v1000_v22 = vadd.f32 %v999_v19, %v1988_v46  ;;  %v1001_v24 = vpop.f32.mrb[6].mxu1 }
 0x144   : > { %v1182_v21 = vmax.f32 %v955_v14, 0.0  ;;  %v959_v23 = vadd.f32 %v958_v20, %v1990_v48  ;;  %v960_v25 = vpop.f32.mrb[7].mxu0  ;;  %v1184_v26 = vmax.f32 %v998_v17, 0.0  ;;  %v1002_v28 = vadd.f32 %v1001_v24, %v1990_v48  ;;  %v1003_v30 = vpop.f32.mrb[7].mxu1 }
 0x145   : > { %v1183_v27 = vmax.f32 %v957_v18, 0.0  ;;  %v961_v29 = vadd.f32 %v960_v25, %v1990_v48  ;;  %v1185_v31 = vmax.f32 %v1000_v22, 0.0  ;;  %v1004_v33 = vadd.f32 %v1003_v30, %v1990_v48 }
 0x146   : > { %v1198_v32 = vmax.f32 %v959_v23, 0.0  ;;  %v1200_v35 = vmax.f32 %v1002_v28, 0.0 }
 0x147   : > { %v1564_v34 = vpack.c.bf16 %v1183_v27, %v1182_v21  ;;  %v1199_v36 = vmax.f32 %v961_v29, 0.0  ;;  %v1565_v37 = vpack.c.bf16 %v1185_v31, %v1184_v26  ;;  %v1201_v38 = vmax.f32 %v1004_v33, 0.0 }
 0x149   : > { %1308 = vst [vmem:[%s2002_s11 + $0x10] sm:$0xff] %v1564_v34  ;;  %v1572_v39 = vpack.c.bf16 %v1199_v36, %v1198_v32  ;;  %1309 = vst [vmem:[%s2002_s11 + $0x18] sm:$0xff] %v1565_v37  ;;  %v1573_v40 = vpack.c.bf16 %v1201_v38, %v1200_v35  ;;  %v1346_v34 = vld [vmem:[%s2002_s11 + $0x8] sm:$0xff] (%p1699_p5) }
 0x14a   : > { %1347 = vst [vmem:[%s1331_s20 + $0x8] sm:$0xff] (%p1699_p5), %v1346_v34 }
 0x14b   : > { %1316 = vst [vmem:[%s2002_s11 + $0x50] sm:$0xff] %v1572_v39  ;;  %1317 = vst [vmem:[%s2002_s11 + $0x58] sm:$0xff] %v1573_v40 }
 0x150   : > { %v1348_v35 = vld [vmem:[%s2002_s11 + $0x10] sm:$0xff] (%p1699_p5)  ;;  %v1350_v36 = vld [vmem:[%s2002_s11 + $0x18] sm:$0xff] (%p1699_p5) }
 0x151   : > { %1349 = vst [vmem:[%s1331_s20 + $0x10] sm:$0xff] (%p1699_p5), %v1348_v35  ;;  %1351 = vst [vmem:[%s1331_s20 + $0x18] sm:$0xff] (%p1699_p5), %v1350_v36 }
 0x155   : > { %v1040_v41 = vpop.f32.mrb[8].mxu0  ;;  %v1083_v43 = vpop.f32.mrb[8].mxu1 }
 0x156   : > { %v1041_v42 = vadd.f32 %v1040_v41, %v1988_v46  ;;  %v1042_v8 = vpop.f32.mrb[9].mxu0  ;;  %v1084_v44 = vadd.f32 %v1083_v43, %v1988_v46  ;;  %v1085_v47 = vpop.f32.mrb[9].mxu1  ;;  %v1360_v41 = vld [vmem:[%s2002_s11 + $0x40] sm:$0xff] (%p1699_p5)  ;;  %v1364_v43 = vld [vmem:[%s2002_s11 + $0x50] sm:$0xff] (%p1699_p5) }
 0x157   : > { %v1043_v45 = vadd.f32 %v1042_v8, %v1988_v46  ;;  %v1044_v49 = vpop.f32.mrb[10].mxu0  ;;  %v1086_v51 = vadd.f32 %v1085_v47, %v1988_v46  ;;  %v1087_v53 = vpop.f32.mrb[10].mxu1  ;;  %1361 = vst [vmem:[%s1331_s20 + $0xc0] sm:$0xff] (%p1699_p5), %v1360_v41  ;;  %v1366_v8 = vld [vmem:[%s2002_s11 + $0x58] sm:$0xff] (%p1699_p5)  ;;  %1365 = vst [vmem:[%s1331_s20 + $0xd0] sm:$0xff] (%p1699_p5), %v1364_v43 }
 0x158   : > { %v1186_v50 = vmax.f32 %v1041_v42, 0.0  ;;  %v1045_v52 = vadd.f32 %v1044_v49, %v1990_v48  ;;  %v1046_v54 = vpop.f32.mrb[11].mxu0  ;;  %v1188_v55 = vmax.f32 %v1084_v44, 0.0  ;;  %v1088_v59 = vadd.f32 %v1087_v53, %v1990_v48  ;;  %v1089_v58 = vpop.f32.mrb[11].mxu1  ;;  %v1362_v42 = vld [vmem:[%s2002_s11 + $0x48] sm:$0xff] (%p1699_p5)  ;;  %1367 = vst [vmem:[%s1331_s20 + $0xd8] sm:$0xff] (%p1699_p5), %v1366_v8 }
 0x159   : > { %v1187_v56 = vmax.f32 %v1043_v45, 0.0  ;;  %v1047_v57 = vadd.f32 %v1046_v54, %v1990_v48  ;;  %v1189_v60 = vmax.f32 %v1086_v51, 0.0  ;;  %v1090_v62 = vadd.f32 %v1089_v58, %v1990_v48  ;;  %1363 = vst [vmem:[%s1331_s20 + $0xc8] sm:$0xff] (%p1699_p5), %v1362_v42 }
 0x15a   : > { %v1202_v61 = vmax.f32 %v1045_v52, 0.0  ;;  %v1204_v0 = vmax.f32 %v1088_v59, 0.0 }
 0x15b   : > { %v1566_v63 = vpack.c.bf16 %v1187_v56, %v1186_v50  ;;  %v1203_v1 = vmax.f32 %v1047_v57, 0.0  ;;  %v1567_v2 = vpack.c.bf16 %v1189_v60, %v1188_v55  ;;  %v1205_v3 = vmax.f32 %v1090_v62, 0.0 }
 0x15d   : > { %1310 = vst [vmem:[%s2002_s11 + $0x20] sm:$0xff] %v1566_v63  ;;  %v1574_v4 = vpack.c.bf16 %v1203_v1, %v1202_v61  ;;  %1311 = vst [vmem:[%s2002_s11 + $0x28] sm:$0xff] %v1567_v2  ;;  %v1575_v5 = vpack.c.bf16 %v1205_v3, %v1204_v0 }
 0x15f   : > { %1318 = vst [vmem:[%s2002_s11 + $0x60] sm:$0xff] %v1574_v4  ;;  %1319 = vst [vmem:[%s2002_s11 + $0x68] sm:$0xff] %v1575_v5 }
 0x164   : > { %v1352_v37 = vld [vmem:[%s2002_s11 + $0x20] sm:$0xff] (%p1699_p5)  ;;  %v1354_v38 = vld [vmem:[%s2002_s11 + $0x28] sm:$0xff] (%p1699_p5) }
 0x165   : > { %1353 = vst [vmem:[%s1331_s20 + $0x20] sm:$0xff] (%p1699_p5), %v1352_v37  ;;  %1355 = vst [vmem:[%s1331_s20 + $0x28] sm:$0xff] (%p1699_p5), %v1354_v38 }
 0x166   : > { %v1368_v44 = vld [vmem:[%s2002_s11 + $0x60] sm:$0xff] (%p1699_p5)  ;;  %v1370_v45 = vld [vmem:[%s2002_s11 + $0x68] sm:$0xff] (%p1699_p5) }
 0x167   : > { %1369 = vst [vmem:[%s1331_s20 + $0xe0] sm:$0xff] (%p1699_p5), %v1368_v44  ;;  %1371 = vst [vmem:[%s1331_s20 + $0xe8] sm:$0xff] (%p1699_p5), %v1370_v45 }
 0x169   : > { %v1126_v6 = vpop.f32.mrb[12].mxu0  ;;  %v1169_v9 = vpop.f32.mrb[12].mxu1 }
 0x16a   : > { %v1127_v7 = vadd.f32 %v1126_v6, %v1988_v46  ;;  %v1128_v10 = vpop.f32.mrb[13].mxu0  ;;  %v1170_v11 = vadd.f32 %v1169_v9, %v1988_v46  ;;  %v1171_v13 = vpop.f32.mrb[13].mxu1 }
 0x16b   : > { %v1129_v12 = vadd.f32 %v1128_v10, %v1988_v46  ;;  %v1130_v14 = vpop.f32.mrb[14].mxu0  ;;  %v1172_v16 = vadd.f32 %v1171_v13, %v1988_v46  ;;  %v1173_v18 = vpop.f32.mrb[14].mxu1 }
 0x16c   : > { %v1190_v15 = vmax.f32 %v1127_v7, 0.0  ;;  %v1131_v17 = vadd.f32 %v1130_v14, %v1990_v48  ;;  %v1132_v19 = vpop.f32.mrb[15].mxu0  ;;  %v1192_v20 = vmax.f32 %v1170_v11, 0.0  ;;  %v1174_v22 = vadd.f32 %v1173_v18, %v1990_v48  ;;  %v1175_v24 = vpop.f32.mrb[15].mxu1 }
 0x16d   : > { %v1191_v21 = vmax.f32 %v1129_v12, 0.0  ;;  %v1133_v23 = vadd.f32 %v1132_v19, %v1990_v48  ;;  %v1193_v25 = vmax.f32 %v1172_v16, 0.0  ;;  %v1176_v27 = vadd.f32 %v1175_v24, %v1990_v48  ;;  %1328 = sbr.rel (!%p1699_p5) target bundleno = 380 (0x17c), region = 59  ;;  %v1344_v48 = vld [vmem:[%s2002_s11] sm:$0xff] (%p1699_p5) }
 0x16e   : > { %v1206_v26 = vmax.f32 %v1131_v17, 0.0  ;;  %v1208_v28 = vmax.f32 %v1174_v22, 0.0  ;;  %1345 = vst [vmem:[%s1331_s20] sm:$0xff] (%p1699_p5), %v1344_v48 }
 0x16f   : > { %v1568_v46 = vpack.c.bf16 %v1191_v21, %v1190_v15  ;;  %v1207_v29 = vmax.f32 %v1133_v23, 0.0  ;;  %v1569_v30 = vpack.c.bf16 %v1193_v25, %v1192_v20  ;;  %v1209_v31 = vmax.f32 %v1176_v27, 0.0 }
 0x171   : > { %1312 = vst [vmem:[%s2002_s11 + $0x30] sm:$0xff] %v1568_v46  ;;  %v1576_v32 = vpack.c.bf16 %v1207_v29, %v1206_v26  ;;  %1313 = vst [vmem:[%s2002_s11 + $0x38] sm:$0xff] %v1569_v30  ;;  %v1577_v33 = vpack.c.bf16 %v1209_v31, %v1208_v28 }
 0x173   : > { %1320 = vst [vmem:[%s2002_s11 + $0x70] sm:$0xff] %v1576_v32  ;;  %1321 = vst [vmem:[%s2002_s11 + $0x78] sm:$0xff] %v1577_v33 }
 0x178   : > { %v1356_v39 = vld [vmem:[%s2002_s11 + $0x30] sm:$0xff]  ;;  %v1358_v40 = vld [vmem:[%s2002_s11 + $0x38] sm:$0xff] }
 0x179   : > { %1357 = vst [vmem:[%s1331_s20 + $0x30] sm:$0xff] %v1356_v39  ;;  %1359 = vst [vmem:[%s1331_s20 + $0x38] sm:$0xff] %v1358_v40 }
 0x17a   : > { %v1372_v47 = vld [vmem:[%s2002_s11 + $0x70] sm:$0xff]  ;;  %v1374_v49 = vld [vmem:[%s2002_s11 + $0x78] sm:$0xff] }
 0x17b   : > { %1373 = vst [vmem:[%s1331_s20 + $0xf0] sm:$0xff] %v1372_v47  ;;  %1375 = vst [vmem:[%s1331_s20 + $0xf8] sm:$0xff] %v1374_v49 }
 0x17c PF: > { %p10_p10 = scmp.ge.s32.totalorder %s1686_s16, 5   ;;  %s2082_s12 = smov %s1642_s13 }
 0x17d   : > { %s2083_s13 = smov %s1697_s19  ;;  %s2084_s14 = smov %s1686_s16 }
 0x17e   :  { %12 = sbr.rel (!%p10_p10) target bundleno = 2 (0x2), region = 113 }

// kernel: _normal_vs_infected.14
= control target key start
LH: loop header
LB: loop body
LE: loop exit
PB: predicated region body
PF: predicated region fallthrough
CT: control target
= control target key end

     0   :  { %s2243_s12 = smov 0   ;;  %s2245_s13 = smov 0   ;;  %s2855_s0 = inlined_call_operand.vmem [shape: bf16[16,144], index: 0, kind: input, shape index: {}]   ;;  %s2856_s1 = inlined_call_operand.vmem [shape: bf16[144,6144], index: 1, kind: input, shape index: {}]   ;;  %s2857_s2 = inlined_call_operand.vmem [shape: f32[16,1], index: 2, kind: input, shape index: {}]   ;;  %s2858_s3 = inlined_call_operand.vmem [shape: bf16[16,6144], index: 3, kind: output, shape index: {}]  }
   0x1   :  { %s2247_s14 = smov 0  }
   0x2 LB: > { %s1966_s15 = sadd.s32 4294967295, %s2220_s14   ;;  %s2260_s16 = sadd.s32 1, %s2220_s14   ;;  %s2220_s14 = sphi %s2247_s14, %s2862_s14   ;;  %s2216_s13 = sphi %s2245_s13, %s2861_s13   ;;  %s2212_s12 = sphi %s2243_s12, %s2860_s12  }
   0x3   : > { %s38_s17 = ssub.s32 %s2220_s14, %s2260_s16  ;;  %s41_s18 = sadd.s32 1, %s2216_s13 }
   0x4   : > { %p39_p0 = scmp.eq.s32.totalorder %s38_s17, 0  ;;  %p48_p1 = scmp.ne.s32.totalorder %s2216_s13, %s2212_s12 }
   0x5   : > { %p49_p2 = scmp.eq.s32.totalorder %s2220_s14, 0  ;;  %p99_p3 = scmp.eq.s32.totalorder %s1966_s15, 2 }
   0x6   : > { %s2271_s19 = scalar_select %p39_p0, %s2216_s13, %s41_s18  }
   0x7   : > { %p50_p4 = por %p49_p2, %p48_p1  ;;  %p2273_p5 = por %p99_p3, %p48_p1 }
   0x8   : > { %p1969_p6 = scmp.ge.s32.totalorder %s2220_s14, 3 }
   0xa   : > { %127 = sbr.rel (%p1969_p6) target bundleno = 94 (0x5e), region = 24 }
  0x11   : > { %130 = sbr.rel (!%p50_p4) target bundleno = 94 (0x5e), region = 28  ;;  %s132_s21 = sand.u32 (%p50_p4), 1, %s2216_s13  }
  0x12   : > { %s2149_s22 = sshll.u32 (%p50_p4), %s2220_s14, 6  ;;  %s2167_s23 = smul.u32 (%p50_p4), 1152, %s132_s21 }
  0x13   : > { %s2283_s26 = scalar_lea.vmem (%p50_p4), %s2856_s1, %s2149_s22 }
  0x14   : > { %v150_v0 = vld [vmem:[%s2283_s26] sm:$0xff] (%p50_p4)  ;;  %v152_v1 = vld [vmem:[%s2283_s26 + $0x8] sm:$0xff] (%p50_p4)  ;;  %v154_v2 = vld [vmem:[%s2283_s26 + $0x10] sm:$0xff] (%p50_p4)  ;;  %s2291_s27 = scalar_lea.vmem (%p50_p4), [#allocation2], %s2167_s23 }
  0x15   : > { %v156_v3 = vld [vmem:[%s2283_s26 + $0x18] sm:$0xff] (%p50_p4)  ;;  %v158_v4 = vld [vmem:[%s2283_s26 + $0x20] sm:$0xff] (%p50_p4)  ;;  %v160_v5 = vld [vmem:[%s2283_s26 + $0x28] sm:$0xff] (%p50_p4)  ;;  %151 = vst [vmem:[%s2291_s27] sm:$0xff] (%p50_p4), %v150_v0 }
  0x16   : > { %153 = vst [vmem:[%s2291_s27 + $0x8] sm:$0xff] (%p50_p4), %v152_v1  ;;  %155 = vst [vmem:[%s2291_s27 + $0x10] sm:$0xff] (%p50_p4), %v154_v2  ;;  %v162_v6 = vld [vmem:[%s2283_s26 + $0x30] sm:$0xff] (%p50_p4)  ;;  %v164_v7 = vld [vmem:[%s2283_s26 + $0x38] sm:$0xff] (%p50_p4) }
  0x17   : > { %157 = vst [vmem:[%s2291_s27 + $0x18] sm:$0xff] (%p50_p4), %v156_v3  ;;  %159 = vst [vmem:[%s2291_s27 + $0x20] sm:$0xff] (%p50_p4), %v158_v4  ;;  %v166_v8 = vld [vmem:[%s2283_s26 + $0xc0] sm:$0xff] (%p50_p4)  ;;  %v168_v9 = vld [vmem:[%s2283_s26 + $0xc8] sm:$0xff] (%p50_p4) }
  0x18   : > { %161 = vst [vmem:[%s2291_s27 + $0x28] sm:$0xff] %v160_v5  ;;  %163 = vst [vmem:[%s2291_s27 + $0x30] sm:$0xff] %v162_v6  ;;  %v170_v10 = vld [vmem:[%s2283_s26 + $0xd0] sm:$0xff]  ;;  %v172_v11 = vld [vmem:[%s2283_s26 + $0xd8] sm:$0xff] }
  0x19   : > { %165 = vst [vmem:[%s2291_s27 + $0x38] sm:$0xff] %v164_v7  ;;  %167 = vst [vmem:[%s2291_s27 + $0x40] sm:$0xff] %v166_v8  ;;  %v174_v12 = vld [vmem:[%s2283_s26 + $0xe0] sm:$0xff]  ;;  %v176_v13 = vld [vmem:[%s2283_s26 + $0xe8] sm:$0xff] }
  0x1a   : > { %169 = vst [vmem:[%s2291_s27 + $0x48] sm:$0xff] %v168_v9  ;;  %171 = vst [vmem:[%s2291_s27 + $0x50] sm:$0xff] %v170_v10  ;;  %v178_v14 = vld [vmem:[%s2283_s26 + $0xf0] sm:$0xff]  ;;  %v180_v15 = vld [vmem:[%s2283_s26 + $0xf8] sm:$0xff] }
  0x1b   : > { %173 = vst [vmem:[%s2291_s27 + $0x58] sm:$0xff] %v172_v11  ;;  %175 = vst [vmem:[%s2291_s27 + $0x60] sm:$0xff] %v174_v12  ;;  %v182_v16 = vld [vmem:[%s2283_s26 + $0x180] sm:$0xff]  ;;  %v184_v17 = vld [vmem:[%s2283_s26 + $0x188] sm:$0xff] }
  0x1c   : > { %177 = vst [vmem:[%s2291_s27 + $0x68] sm:$0xff] %v176_v13  ;;  %179 = vst [vmem:[%s2291_s27 + $0x70] sm:$0xff] %v178_v14  ;;  %v186_v18 = vld [vmem:[%s2283_s26 + $0x190] sm:$0xff]  ;;  %v188_v19 = vld [vmem:[%s2283_s26 + $0x198] sm:$0xff] }
  0x1d   : > { %181 = vst [vmem:[%s2291_s27 + $0x78] sm:$0xff] %v180_v15  ;;  %183 = vst [vmem:[%s2291_s27 + $0x80] sm:$0xff] %v182_v16  ;;  %v190_v20 = vld [vmem:[%s2283_s26 + $0x1a0] sm:$0xff]  ;;  %v192_v21 = vld [vmem:[%s2283_s26 + $0x1a8] sm:$0xff] }
  0x1e   : > { %185 = vst [vmem:[%s2291_s27 + $0x88] sm:$0xff] %v184_v17  ;;  %187 = vst [vmem:[%s2291_s27 + $0x90] sm:$0xff] %v186_v18  ;;  %v194_v22 = vld [vmem:[%s2283_s26 + $0x1b0] sm:$0xff]  ;;  %v196_v23 = vld [vmem:[%s2283_s26 + $0x1b8] sm:$0xff] }
  0x1f   : > { %189 = vst [vmem:[%s2291_s27 + $0x98] sm:$0xff] %v188_v19  ;;  %191 = vst [vmem:[%s2291_s27 + $0xa0] sm:$0xff] %v190_v20  ;;  %v198_v24 = vld [vmem:[%s2283_s26 + $0x240] sm:$0xff]  ;;  %v200_v25 = vld [vmem:[%s2283_s26 + $0x248] sm:$0xff] }
  0x20   : > { %193 = vst [vmem:[%s2291_s27 + $0xa8] sm:$0xff] %v192_v21  ;;  %195 = vst [vmem:[%s2291_s27 + $0xb0] sm:$0xff] %v194_v22  ;;  %v202_v26 = vld [vmem:[%s2283_s26 + $0x250] sm:$0xff]  ;;  %v204_v27 = vld [vmem:[%s2283_s26 + $0x258] sm:$0xff] }
  0x21   : > { %197 = vst [vmem:[%s2291_s27 + $0xb8] sm:$0xff] %v196_v23  ;;  %199 = vst [vmem:[%s2291_s27 + $0xc0] sm:$0xff] %v198_v24  ;;  %v206_v28 = vld [vmem:[%s2283_s26 + $0x260] sm:$0xff]  ;;  %v208_v29 = vld [vmem:[%s2283_s26 + $0x268] sm:$0xff] }
  0x22   : > { %201 = vst [vmem:[%s2291_s27 + $0xc8] sm:$0xff] %v200_v25  ;;  %203 = vst [vmem:[%s2291_s27 + $0xd0] sm:$0xff] %v202_v26  ;;  %v210_v30 = vld [vmem:[%s2283_s26 + $0x270] sm:$0xff]  ;;  %v212_v31 = vld [vmem:[%s2283_s26 + $0x278] sm:$0xff] }
  0x23   : > { %205 = vst [vmem:[%s2291_s27 + $0xd8] sm:$0xff] %v204_v27  ;;  %207 = vst [vmem:[%s2291_s27 + $0xe0] sm:$0xff] %v206_v28  ;;  %v214_v32 = vld [vmem:[%s2283_s26 + $0x300] sm:$0xff]  ;;  %v216_v33 = vld [vmem:[%s2283_s26 + $0x308] sm:$0xff] }
  0x24   : > { %209 = vst [vmem:[%s2291_s27 + $0xe8] sm:$0xff] %v208_v29  ;;  %211 = vst [vmem:[%s2291_s27 + $0xf0] sm:$0xff] %v210_v30  ;;  %v218_v34 = vld [vmem:[%s2283_s26 + $0x310] sm:$0xff]  ;;  %v220_v35 = vld [vmem:[%s2283_s26 + $0x318] sm:$0xff] }
  0x25   : > { %213 = vst [vmem:[%s2291_s27 + $0xf8] sm:$0xff] %v212_v31  ;;  %215 = vst [vmem:[%s2291_s27 + $0x100] sm:$0xff] %v214_v32  ;;  %v222_v36 = vld [vmem:[%s2283_s26 + $0x320] sm:$0xff]  ;;  %v224_v37 = vld [vmem:[%s2283_s26 + $0x328] sm:$0xff] }
  0x26   : > { %217 = vst [vmem:[%s2291_s27 + $0x108] sm:$0xff] %v216_v33  ;;  %219 = vst [vmem:[%s2291_s27 + $0x110] sm:$0xff] %v218_v34  ;;  %v226_v38 = vld [vmem:[%s2283_s26 + $0x330] sm:$0xff]  ;;  %v228_v39 = vld [vmem:[%s2283_s26 + $0x338] sm:$0xff] }
  0x27   : > { %221 = vst [vmem:[%s2291_s27 + $0x118] sm:$0xff] %v220_v35  ;;  %223 = vst [vmem:[%s2291_s27 + $0x120] sm:$0xff] %v222_v36  ;;  %v230_v40 = vld [vmem:[%s2283_s26 + $0x3c0] sm:$0xff]  ;;  %v232_v41 = vld [vmem:[%s2283_s26 + $0x3c8] sm:$0xff] }
  0x28   : > { %225 = vst [vmem:[%s2291_s27 + $0x128] sm:$0xff] %v224_v37  ;;  %227 = vst [vmem:[%s2291_s27 + $0x130] sm:$0xff] %v226_v38  ;;  %v234_v42 = vld [vmem:[%s2283_s26 + $0x3d0] sm:$0xff]  ;;  %v236_v43 = vld [vmem:[%s2283_s26 + $0x3d8] sm:$0xff] }
  0x29   : > { %229 = vst [vmem:[%s2291_s27 + $0x138] sm:$0xff] %v228_v39  ;;  %231 = vst [vmem:[%s2291_s27 + $0x140] sm:$0xff] %v230_v40  ;;  %v238_v44 = vld [vmem:[%s2283_s26 + $0x3e0] sm:$0xff]  ;;  %v240_v45 = vld [vmem:[%s2283_s26 + $0x3e8] sm:$0xff] }
  0x2a   : > { %233 = vst [vmem:[%s2291_s27 + $0x148] sm:$0xff] %v232_v41  ;;  %235 = vst [vmem:[%s2291_s27 + $0x150] sm:$0xff] %v234_v42  ;;  %v242_v46 = vld [vmem:[%s2283_s26 + $0x3f0] sm:$0xff]  ;;  %v244_v47 = vld [vmem:[%s2283_s26 + $0x3f8] sm:$0xff] }
  0x2b   : > { %237 = vst [vmem:[%s2291_s27 + $0x158] sm:$0xff] %v236_v43  ;;  %239 = vst [vmem:[%s2291_s27 + $0x160] sm:$0xff] %v238_v44  ;;  %v246_v48 = vld [vmem:[%s2283_s26 + $0x480] sm:$0xff]  ;;  %v248_v49 = vld [vmem:[%s2283_s26 + $0x488] sm:$0xff] }
  0x2c   : > { %241 = vst [vmem:[%s2291_s27 + $0x168] sm:$0xff] %v240_v45  ;;  %243 = vst [vmem:[%s2291_s27 + $0x170] sm:$0xff] %v242_v46  ;;  %v250_v50 = vld [vmem:[%s2283_s26 + $0x490] sm:$0xff]  ;;  %v252_v51 = vld [vmem:[%s2283_s26 + $0x498] sm:$0xff] }
  0x2d   : > { %245 = vst [vmem:[%s2291_s27 + $0x178] sm:$0xff] %v244_v47  ;;  %247 = vst [vmem:[%s2291_s27 + $0x180] sm:$0xff] %v246_v48  ;;  %v254_v52 = vld [vmem:[%s2283_s26 + $0x4a0] sm:$0xff]  ;;  %v256_v53 = vld [vmem:[%s2283_s26 + $0x4a8] sm:$0xff] }
  0x2e   : > { %249 = vst [vmem:[%s2291_s27 + $0x188] sm:$0xff] %v248_v49  ;;  %251 = vst [vmem:[%s2291_s27 + $0x190] sm:$0xff] %v250_v50  ;;  %v258_v54 = vld [vmem:[%s2283_s26 + $0x4b0] sm:$0xff]  ;;  %v260_v55 = vld [vmem:[%s2283_s26 + $0x4b8] sm:$0xff] }
  0x2f   : > { %253 = vst [vmem:[%s2291_s27 + $0x198] sm:$0xff] %v252_v51  ;;  %255 = vst [vmem:[%s2291_s27 + $0x1a0] sm:$0xff] %v254_v52  ;;  %v262_v56 = vld [vmem:[%s2283_s26 + $0x540] sm:$0xff]  ;;  %v264_v57 = vld [vmem:[%s2283_s26 + $0x548] sm:$0xff] }
  0x30   : > { %257 = vst [vmem:[%s2291_s27 + $0x1a8] sm:$0xff] %v256_v53  ;;  %259 = vst [vmem:[%s2291_s27 + $0x1b0] sm:$0xff] %v258_v54  ;;  %v266_v58 = vld [vmem:[%s2283_s26 + $0x550] sm:$0xff]  ;;  %v268_v59 = vld [vmem:[%s2283_s26 + $0x558] sm:$0xff] }
  0x31   : > { %261 = vst [vmem:[%s2291_s27 + $0x1b8] sm:$0xff] %v260_v55  ;;  %263 = vst [vmem:[%s2291_s27 + $0x1c0] sm:$0xff] %v262_v56  ;;  %v270_v60 = vld [vmem:[%s2283_s26 + $0x560] sm:$0xff]  ;;  %v272_v61 = vld [vmem:[%s2283_s26 + $0x568] sm:$0xff] }
  0x32   : > { %265 = vst [vmem:[%s2291_s27 + $0x1c8] sm:$0xff] %v264_v57  ;;  %267 = vst [vmem:[%s2291_s27 + $0x1d0] sm:$0xff] %v266_v58  ;;  %v274_v62 = vld [vmem:[%s2283_s26 + $0x570] sm:$0xff]  ;;  %v276_v63 = vld [vmem:[%s2283_s26 + $0x578] sm:$0xff] }
  0x33   : > { %269 = vst [vmem:[%s2291_s27 + $0x1d8] sm:$0xff] %v268_v59  ;;  %271 = vst [vmem:[%s2291_s27 + $0x1e0] sm:$0xff] %v270_v60  ;;  %v278_v0 = vld [vmem:[%s2283_s26 + $0x600] sm:$0xff]  ;;  %v280_v1 = vld [vmem:[%s2283_s26 + $0x608] sm:$0xff] }
  0x34   : > { %273 = vst [vmem:[%s2291_s27 + $0x1e8] sm:$0xff] %v272_v61  ;;  %275 = vst [vmem:[%s2291_s27 + $0x1f0] sm:$0xff] %v274_v62  ;;  %v282_v2 = vld [vmem:[%s2283_s26 + $0x610] sm:$0xff]  ;;  %v284_v3 = vld [vmem:[%s2283_s26 + $0x618] sm:$0xff] }
  0x35   : > { %277 = vst [vmem:[%s2291_s27 + $0x1f8] sm:$0xff] %v276_v63  ;;  %279 = vst [vmem:[%s2291_s27 + $0x200] sm:$0xff] %v278_v0  ;;  %v286_v4 = vld [vmem:[%s2283_s26 + $0x620] sm:$0xff]  ;;  %v288_v5 = vld [vmem:[%s2283_s26 + $0x628] sm:$0xff] }
  0x36   : > { %281 = vst [vmem:[%s2291_s27 + $0x208] sm:$0xff] %v280_v1  ;;  %283 = vst [vmem:[%s2291_s27 + $0x210] sm:$0xff] %v282_v2  ;;  %v290_v6 = vld [vmem:[%s2283_s26 + $0x630] sm:$0xff]  ;;  %v292_v7 = vld [vmem:[%s2283_s26 + $0x638] sm:$0xff] }
  0x37   : > { %285 = vst [vmem:[%s2291_s27 + $0x218] sm:$0xff] %v284_v3  ;;  %287 = vst [vmem:[%s2291_s27 + $0x220] sm:$0xff] %v286_v4  ;;  %v294_v8 = vld [vmem:[%s2283_s26 + $0x6c0] sm:$0xff]  ;;  %v296_v9 = vld [vmem:[%s2283_s26 + $0x6c8] sm:$0xff] }
  0x38   : > { %289 = vst [vmem:[%s2291_s27 + $0x228] sm:$0xff] %v288_v5  ;;  %291 = vst [vmem:[%s2291_s27 + $0x230] sm:$0xff] %v290_v6  ;;  %v298_v10 = vld [vmem:[%s2283_s26 + $0x6d0] sm:$0xff]  ;;  %v300_v11 = vld [vmem:[%s2283_s26 + $0x6d8] sm:$0xff] }
  0x39   : > { %293 = vst [vmem:[%s2291_s27 + $0x238] sm:$0xff] %v292_v7  ;;  %295 = vst [vmem:[%s2291_s27 + $0x240] sm:$0xff] %v294_v8  ;;  %v302_v12 = vld [vmem:[%s2283_s26 + $0x6e0] sm:$0xff]  ;;  %v304_v13 = vld [vmem:[%s2283_s26 + $0x6e8] sm:$0xff] }
  0x3a   : > { %297 = vst [vmem:[%s2291_s27 + $0x248] sm:$0xff] %v296_v9  ;;  %299 = vst [vmem:[%s2291_s27 + $0x250] sm:$0xff] %v298_v10  ;;  %v306_v14 = vld [vmem:[%s2283_s26 + $0x6f0] sm:$0xff]  ;;  %v308_v15 = vld [vmem:[%s2283_s26 + $0x6f8] sm:$0xff] }
  0x3b   : > { %301 = vst [vmem:[%s2291_s27 + $0x258] sm:$0xff] %v300_v11  ;;  %303 = vst [vmem:[%s2291_s27 + $0x260] sm:$0xff] %v302_v12  ;;  %v310_v16 = vld [vmem:[%s2283_s26 + $0x780] sm:$0xff]  ;;  %v312_v17 = vld [vmem:[%s2283_s26 + $0x788] sm:$0xff] }
  0x3c   : > { %305 = vst [vmem:[%s2291_s27 + $0x268] sm:$0xff] %v304_v13  ;;  %307 = vst [vmem:[%s2291_s27 + $0x270] sm:$0xff] %v306_v14  ;;  %v314_v18 = vld [vmem:[%s2283_s26 + $0x790] sm:$0xff]  ;;  %v316_v19 = vld [vmem:[%s2283_s26 + $0x798] sm:$0xff] }
  0x3d   : > { %309 = vst [vmem:[%s2291_s27 + $0x278] sm:$0xff] %v308_v15  ;;  %311 = vst [vmem:[%s2291_s27 + $0x280] sm:$0xff] %v310_v16  ;;  %v318_v20 = vld [vmem:[%s2283_s26 + $0x7a0] sm:$0xff]  ;;  %v320_v21 = vld [vmem:[%s2283_s26 + $0x7a8] sm:$0xff] }
  0x3e   : > { %313 = vst [vmem:[%s2291_s27 + $0x288] sm:$0xff] %v312_v17  ;;  %315 = vst [vmem:[%s2291_s27 + $0x290] sm:$0xff] %v314_v18  ;;  %v322_v22 = vld [vmem:[%s2283_s26 + $0x7b0] sm:$0xff]  ;;  %v324_v23 = vld [vmem:[%s2283_s26 + $0x7b8] sm:$0xff] }
  0x3f   : > { %317 = vst [vmem:[%s2291_s27 + $0x298] sm:$0xff] %v316_v19  ;;  %319 = vst [vmem:[%s2291_s27 + $0x2a0] sm:$0xff] %v318_v20  ;;  %v326_v24 = vld [vmem:[%s2283_s26 + $0x840] sm:$0xff]  ;;  %v328_v25 = vld [vmem:[%s2283_s26 + $0x848] sm:$0xff] }
  0x40   : > { %321 = vst [vmem:[%s2291_s27 + $0x2a8] sm:$0xff] %v320_v21  ;;  %323 = vst [vmem:[%s2291_s27 + $0x2b0] sm:$0xff] %v322_v22  ;;  %v330_v26 = vld [vmem:[%s2283_s26 + $0x850] sm:$0xff]  ;;  %v332_v27 = vld [vmem:[%s2283_s26 + $0x858] sm:$0xff] }
  0x41   : > { %325 = vst [vmem:[%s2291_s27 + $0x2b8] sm:$0xff] %v324_v23  ;;  %327 = vst [vmem:[%s2291_s27 + $0x2c0] sm:$0xff] %v326_v24  ;;  %v334_v28 = vld [vmem:[%s2283_s26 + $0x860] sm:$0xff]  ;;  %v336_v29 = vld [vmem:[%s2283_s26 + $0x868] sm:$0xff] }
  0x42   : > { %329 = vst [vmem:[%s2291_s27 + $0x2c8] sm:$0xff] %v328_v25  ;;  %331 = vst [vmem:[%s2291_s27 + $0x2d0] sm:$0xff] %v330_v26  ;;  %v338_v30 = vld [vmem:[%s2283_s26 + $0x870] sm:$0xff]  ;;  %v340_v31 = vld [vmem:[%s2283_s26 + $0x878] sm:$0xff] }
  0x43   : > { %333 = vst [vmem:[%s2291_s27 + $0x2d8] sm:$0xff] %v332_v27  ;;  %335 = vst [vmem:[%s2291_s27 + $0x2e0] sm:$0xff] %v334_v28  ;;  %v342_v32 = vld [vmem:[%s2283_s26 + $0x900] sm:$0xff]  ;;  %v344_v33 = vld [vmem:[%s2283_s26 + $0x908] sm:$0xff] }
  0x44   : > { %337 = vst [vmem:[%s2291_s27 + $0x2e8] sm:$0xff] %v336_v29  ;;  %339 = vst [vmem:[%s2291_s27 + $0x2f0] sm:$0xff] %v338_v30  ;;  %v346_v34 = vld [vmem:[%s2283_s26 + $0x910] sm:$0xff]  ;;  %v348_v35 = vld [vmem:[%s2283_s26 + $0x918] sm:$0xff] }
  0x45   : > { %341 = vst [vmem:[%s2291_s27 + $0x2f8] sm:$0xff] %v340_v31  ;;  %343 = vst [vmem:[%s2291_s27 + $0x300] sm:$0xff] %v342_v32  ;;  %v350_v36 = vld [vmem:[%s2283_s26 + $0x920] sm:$0xff]  ;;  %v352_v37 = vld [vmem:[%s2283_s26 + $0x928] sm:$0xff] }
  0x46   : > { %345 = vst [vmem:[%s2291_s27 + $0x308] sm:$0xff] %v344_v33  ;;  %347 = vst [vmem:[%s2291_s27 + $0x310] sm:$0xff] %v346_v34  ;;  %v354_v38 = vld [vmem:[%s2283_s26 + $0x930] sm:$0xff]  ;;  %v356_v39 = vld [vmem:[%s2283_s26 + $0x938] sm:$0xff] }
  0x47   : > { %349 = vst [vmem:[%s2291_s27 + $0x318] sm:$0xff] %v348_v35  ;;  %351 = vst [vmem:[%s2291_s27 + $0x320] sm:$0xff] %v350_v36  ;;  %v358_v40 = vld [vmem:[%s2283_s26 + $0x9c0] sm:$0xff]  ;;  %v360_v41 = vld [vmem:[%s2283_s26 + $0x9c8] sm:$0xff] }
  0x48   : > { %353 = vst [vmem:[%s2291_s27 + $0x328] sm:$0xff] %v352_v37  ;;  %355 = vst [vmem:[%s2291_s27 + $0x330] sm:$0xff] %v354_v38  ;;  %v362_v42 = vld [vmem:[%s2283_s26 + $0x9d0] sm:$0xff]  ;;  %v364_v43 = vld [vmem:[%s2283_s26 + $0x9d8] sm:$0xff] }
  0x49   : > { %357 = vst [vmem:[%s2291_s27 + $0x338] sm:$0xff] %v356_v39  ;;  %359 = vst [vmem:[%s2291_s27 + $0x340] sm:$0xff] %v358_v40  ;;  %v366_v44 = vld [vmem:[%s2283_s26 + $0x9e0] sm:$0xff]  ;;  %v368_v45 = vld [vmem:[%s2283_s26 + $0x9e8] sm:$0xff] }
  0x4a   : > { %361 = vst [vmem:[%s2291_s27 + $0x348] sm:$0xff] %v360_v41  ;;  %363 = vst [vmem:[%s2291_s27 + $0x350] sm:$0xff] %v362_v42  ;;  %v370_v46 = vld [vmem:[%s2283_s26 + $0x9f0] sm:$0xff]  ;;  %v372_v47 = vld [vmem:[%s2283_s26 + $0x9f8] sm:$0xff] }
  0x4b   : > { %365 = vst [vmem:[%s2291_s27 + $0x358] sm:$0xff] %v364_v43  ;;  %367 = vst [vmem:[%s2291_s27 + $0x360] sm:$0xff] %v366_v44  ;;  %v374_v48 = vld [vmem:[%s2283_s26 + $0xa80] sm:$0xff]  ;;  %v376_v49 = vld [vmem:[%s2283_s26 + $0xa88] sm:$0xff] }
  0x4c   : > { %369 = vst [vmem:[%s2291_s27 + $0x368] sm:$0xff] %v368_v45  ;;  %371 = vst [vmem:[%s2291_s27 + $0x370] sm:$0xff] %v370_v46  ;;  %v378_v50 = vld [vmem:[%s2283_s26 + $0xa90] sm:$0xff]  ;;  %v380_v51 = vld [vmem:[%s2283_s26 + $0xa98] sm:$0xff] }
  0x4d   : > { %373 = vst [vmem:[%s2291_s27 + $0x378] sm:$0xff] %v372_v47  ;;  %375 = vst [vmem:[%s2291_s27 + $0x380] sm:$0xff] %v374_v48  ;;  %v382_v52 = vld [vmem:[%s2283_s26 + $0xaa0] sm:$0xff]  ;;  %v384_v53 = vld [vmem:[%s2283_s26 + $0xaa8] sm:$0xff] }
  0x4e   : > { %377 = vst [vmem:[%s2291_s27 + $0x388] sm:$0xff] %v376_v49  ;;  %379 = vst [vmem:[%s2291_s27 + $0x390] sm:$0xff] %v378_v50  ;;  %v386_v54 = vld [vmem:[%s2283_s26 + $0xab0] sm:$0xff]  ;;  %v388_v55 = vld [vmem:[%s2283_s26 + $0xab8] sm:$0xff] }
  0x4f   : > { %381 = vst [vmem:[%s2291_s27 + $0x398] sm:$0xff] %v380_v51  ;;  %383 = vst [vmem:[%s2291_s27 + $0x3a0] sm:$0xff] %v382_v52  ;;  %v390_v56 = vld [vmem:[%s2283_s26 + $0xb40] sm:$0xff]  ;;  %v392_v57 = vld [vmem:[%s2283_s26 + $0xb48] sm:$0xff] }
  0x50   : > { %385 = vst [vmem:[%s2291_s27 + $0x3a8] sm:$0xff] %v384_v53  ;;  %387 = vst [vmem:[%s2291_s27 + $0x3b0] sm:$0xff] %v386_v54  ;;  %v394_v58 = vld [vmem:[%s2283_s26 + $0xb50] sm:$0xff]  ;;  %v396_v59 = vld [vmem:[%s2283_s26 + $0xb58] sm:$0xff] }
  0x51   : > { %389 = vst [vmem:[%s2291_s27 + $0x3b8] sm:$0xff] %v388_v55  ;;  %391 = vst [vmem:[%s2291_s27 + $0x3c0] sm:$0xff] %v390_v56  ;;  %v398_v60 = vld [vmem:[%s2283_s26 + $0xb60] sm:$0xff]  ;;  %v400_v61 = vld [vmem:[%s2283_s26 + $0xb68] sm:$0xff] }
  0x52   : > { %393 = vst [vmem:[%s2291_s27 + $0x3c8] sm:$0xff] %v392_v57  ;;  %395 = vst [vmem:[%s2291_s27 + $0x3d0] sm:$0xff] %v394_v58  ;;  %v402_v62 = vld [vmem:[%s2283_s26 + $0xb70] sm:$0xff]  ;;  %v404_v63 = vld [vmem:[%s2283_s26 + $0xb78] sm:$0xff] }
  0x53   : > { %397 = vst [vmem:[%s2291_s27 + $0x3d8] sm:$0xff] %v396_v59  ;;  %399 = vst [vmem:[%s2291_s27 + $0x3e0] sm:$0xff] %v398_v60  ;;  %v406_v0 = vld [vmem:[%s2283_s26 + $0xc00] sm:$0xff]  ;;  %v408_v1 = vld [vmem:[%s2283_s26 + $0xc08] sm:$0xff] }
  0x54   : > { %401 = vst [vmem:[%s2291_s27 + $0x3e8] sm:$0xff] %v400_v61  ;;  %403 = vst [vmem:[%s2291_s27 + $0x3f0] sm:$0xff] %v402_v62  ;;  %v410_v2 = vld [vmem:[%s2283_s26 + $0xc10] sm:$0xff]  ;;  %v412_v3 = vld [vmem:[%s2283_s26 + $0xc18] sm:$0xff] }
  0x55   : > { %405 = vst [vmem:[%s2291_s27 + $0x3f8] sm:$0xff] %v404_v63  ;;  %407 = vst [vmem:[%s2291_s27 + $0x400] sm:$0xff] %v406_v0  ;;  %v414_v4 = vld [vmem:[%s2283_s26 + $0xc20] sm:$0xff]  ;;  %v416_v5 = vld [vmem:[%s2283_s26 + $0xc28] sm:$0xff] }
  0x56   : > { %409 = vst [vmem:[%s2291_s27 + $0x408] sm:$0xff] %v408_v1  ;;  %411 = vst [vmem:[%s2291_s27 + $0x410] sm:$0xff] %v410_v2  ;;  %v418_v6 = vld [vmem:[%s2283_s26 + $0xc30] sm:$0xff]  ;;  %v420_v7 = vld [vmem:[%s2283_s26 + $0xc38] sm:$0xff] }
  0x57   : > { %413 = vst [vmem:[%s2291_s27 + $0x418] sm:$0xff] %v412_v3  ;;  %415 = vst [vmem:[%s2291_s27 + $0x420] sm:$0xff] %v414_v4  ;;  %v422_v8 = vld [vmem:[%s2283_s26 + $0xcc0] sm:$0xff]  ;;  %v424_v9 = vld [vmem:[%s2283_s26 + $0xcc8] sm:$0xff] }
  0x58   : > { %417 = vst [vmem:[%s2291_s27 + $0x428] sm:$0xff] %v416_v5  ;;  %419 = vst [vmem:[%s2291_s27 + $0x430] sm:$0xff] %v418_v6  ;;  %v426_v10 = vld [vmem:[%s2283_s26 + $0xcd0] sm:$0xff]  ;;  %v428_v11 = vld [vmem:[%s2283_s26 + $0xcd8] sm:$0xff] }
  0x59   : > { %421 = vst [vmem:[%s2291_s27 + $0x438] sm:$0xff] %v420_v7  ;;  %423 = vst [vmem:[%s2291_s27 + $0x440] sm:$0xff] %v422_v8  ;;  %v430_v12 = vld [vmem:[%s2283_s26 + $0xce0] sm:$0xff]  ;;  %v432_v13 = vld [vmem:[%s2283_s26 + $0xce8] sm:$0xff] }
  0x5a   : > { %425 = vst [vmem:[%s2291_s27 + $0x448] sm:$0xff] %v424_v9  ;;  %427 = vst [vmem:[%s2291_s27 + $0x450] sm:$0xff] %v426_v10  ;;  %v434_v14 = vld [vmem:[%s2283_s26 + $0xcf0] sm:$0xff]  ;;  %v436_v15 = vld [vmem:[%s2283_s26 + $0xcf8] sm:$0xff] }
  0x5b   : > { %429 = vst [vmem:[%s2291_s27 + $0x458] sm:$0xff] %v428_v11  ;;  %431 = vst [vmem:[%s2291_s27 + $0x460] sm:$0xff] %v430_v12 }
  0x5c   : > { %433 = vst [vmem:[%s2291_s27 + $0x468] sm:$0xff] %v432_v13  ;;  %435 = vst [vmem:[%s2291_s27 + $0x470] sm:$0xff] %v434_v14 }
  0x5d   : > { %437 = vst [vmem:[%s2291_s27 + $0x478] sm:$0xff] %v436_v15 }
  0x5e PF: > { %p1972_p7 = scmp.ge.s32.totalorder %s2220_s14, 1  ;;  %p442_p8 = scmp.lt.s32.totalorder %s2220_s14, 4 }
  0x60   : > { %p443_p9 = pnand %p1972_p7, %p442_p8 }
  0x61   : > { %s449_s28 = sand.u32 (!%p443_p9), 1, %s2212_s12   ;;  %v2581_v16 = vld [vmem:[%s2855_s0 + $0x4] ss:$8 sps:$4 sm:$0xff] (!%p443_p9)   ;;  %vm1361_vm0 = vcmask (!%p443_p9), 130048   ;;  %v2222_v18 = vmov (!%p443_p9), 0  }
  0x62   : > { %446 = sbr.rel (%p443_p9) target bundleno = 480 (0x1e0), region = 51  ;;  %v620_v17 = vld [vmem:[%s2857_s2] sm:$0xff] (!%p443_p9)  ;;  %2120 = vmatprep.mubr.msk.bf16.mxu0 (!%p443_p9), %vm1361_vm0, %v2581_v16  ;;  %2121 = vmatprep.mubr.msk.bf16.mxu1 (!%p443_p9), %vm1361_vm0, %v2581_v16  ;;  %v621_v38 = vld [vmem:[%s2857_s2 + $0x8] sm:$0xff] (!%p443_p9)  ;;  %s1973_s17 = sshll.u32 (!%p443_p9), %s449_s28, 7 }
  0x63   : > { %s2168_s4 = smul.u32 (!%p443_p9), 1152, %s449_s28  ;;  %2194 = vset.pattern.permute.xlu0 (!%p443_p9), %v2222_v18  ;;  %s2780_s12 = scalar_lea.vmem (!%p443_p9), [#allocation3], %s1973_s17 }
  0x64   : > { %624 = vperm.xlu0 (!%p443_p9), %2194, %v620_v17  }
  0x65   : > { %s2592_s7 = scalar_lea.vmem (!%p443_p9), [#allocation2], %s2168_s4 }
  0x66   : > { %v476_v19 = vld [vmem:[%s2592_s7] sm:$0xff] (!%p443_p9)  ;;  %v477_v21 = vld [vmem:[%s2592_s7 + $0x8] sm:$0xff] (!%p443_p9) }
  0x67   : > { %v484_v20 = vld [vmem:[%s2592_s7 + $0x40] sm:$0xff] (!%p443_p9)  ;;  %v485_v23 = vld [vmem:[%s2592_s7 + $0x48] sm:$0xff] (!%p443_p9) }
  0x68   : > { %v1977_v22 = vcombine.high (!%p443_p9), %v476_v19, %v484_v20  ;;  %v1976_v24 = vcombine.low (!%p443_p9), %v476_v19, %v484_v20  ;;  %v492_v25 = vld [vmem:[%s2592_s7 + $0x80] sm:$0xff] (!%p443_p9)  ;;  %v1979_v27 = vcombine.high (!%p443_p9), %v477_v21, %v485_v23  ;;  %v1978_v28 = vcombine.low (!%p443_p9), %v477_v21, %v485_v23  ;;  %v493_v30 = vld [vmem:[%s2592_s7 + $0x88] sm:$0xff] (!%p443_p9)  ;;  %629 = vperm.xlu0 (!%p443_p9), %2194, %v621_v38   ;;  %v495_v38 = vld [vmem:[%s2592_s7 + $0x98] sm:$0xff] (!%p443_p9) }
  0x69   : > { %v500_v26 = vld [vmem:[%s2592_s7 + $0xc0] sm:$0xff]  ;;  %v501_v31 = vld [vmem:[%s2592_s7 + $0xc8] sm:$0xff]  ;;  %s2166_s18 = sshll.u32 (%p2273_p5), %s1966_s15, 6 }
  0x6a   : > { %v1993_v29 = vcombine.high %v492_v25, %v500_v26  ;;  %v508_v32 = vld [vmem:[%s2592_s7 + $0x100] sm:$0xff]  ;;  %1365 = vmatprep.subr.bf16.mxu0 %v1977_v22  ;;  %v1995_v33 = vcombine.high %v493_v30, %v501_v31  ;;  %v509_v35 = vld [vmem:[%s2592_s7 + $0x108] sm:$0xff]  ;;  %1408 = vmatprep.subr.bf16.mxu1 %v1979_v27  ;;  %v1992_v37 = vcombine.low %v492_v25, %v500_v26  ;;  %v478_v27 = vld [vmem:[%s2592_s7 + $0x10] sm:$0xff]  ;;  %s1862_s20 = scalar_lea.vmem (%p2273_p5), %s2858_s3, %s2166_s18 }
  0x6b   : > { %v516_v34 = vld [vmem:[%s2592_s7 + $0x140] sm:$0xff]  ;;  %v517_v36 = vld [vmem:[%s2592_s7 + $0x148] sm:$0xff]  ;;  %1366 = vmatpush1.bf16.msra.mxu0 %v1976_v24  ;;  %1409 = vmatpush1.bf16.msra.mxu1 %v1978_v28  ;;  %v1994_v39 = vcombine.low %v493_v30, %v501_v31  ;;  %v486_v28 = vld [vmem:[%s2592_s7 + $0x50] sm:$0xff] }
  0x6c   : > { %1367 = vmatprep.subr.bf16.mxu0 %v1993_v29  ;;  %v2009_v40 = vcombine.high %v508_v32, %v516_v34  ;;  %1410 = vmatprep.subr.bf16.mxu1 %v1995_v33  ;;  %v2011_v41 = vcombine.high %v509_v35, %v517_v36  ;;  %v524_v42 = vld [vmem:[%s2592_s7 + $0x180] sm:$0xff]  ;;  %v525_v44 = vld [vmem:[%s2592_s7 + $0x188] sm:$0xff]  ;;  %v2008_v46 = vcombine.low %v508_v32, %v516_v34  ;;  %v479_v29 = vld [vmem:[%s2592_s7 + $0x18] sm:$0xff] }
  0x6d   : > { %v532_v43 = vld [vmem:[%s2592_s7 + $0x1c0] sm:$0xff]  ;;  %v533_v45 = vld [vmem:[%s2592_s7 + $0x1c8] sm:$0xff]  ;;  %v2010_v47 = vcombine.low %v509_v35, %v517_v36  ;;  %v487_v30 = vld [vmem:[%s2592_s7 + $0x58] sm:$0xff]  ;;  %v1981_v33 = vcombine.high %v478_v27, %v486_v28 }
  0x6e   : > { %v2025_v48 = vcombine.high %v524_v42, %v532_v43  ;;  %v2027_v49 = vcombine.high %v525_v44, %v533_v45  ;;  %v540_v50 = vld [vmem:[%s2592_s7 + $0x200] sm:$0xff]  ;;  %v541_v52 = vld [vmem:[%s2592_s7 + $0x208] sm:$0xff]  ;;  %v2024_v54 = vcombine.low %v524_v42, %v532_v43  ;;  %v2026_v55 = vcombine.low %v525_v44, %v533_v45  ;;  %v494_v35 = vld [vmem:[%s2592_s7 + $0x90] sm:$0xff] }
  0x6f   : > { %1368 = vmatpush1.bf16.msra.mxu0 %v1992_v37  ;;  %1411 = vmatpush1.bf16.msra.mxu1 %v1994_v39  ;;  %v548_v51 = vld [vmem:[%s2592_s7 + $0x240] sm:$0xff]  ;;  %v549_v53 = vld [vmem:[%s2592_s7 + $0x248] sm:$0xff]  ;;  %v1983_v34 = vcombine.high %v479_v29, %v487_v30  ;;  %v502_v36 = vld [vmem:[%s2592_s7 + $0xd0] sm:$0xff] }
  0x70   : > { %1369 = vmatprep.subr.bf16.mxu0 %v2009_v40  ;;  %1412 = vmatprep.subr.bf16.mxu1 %v2011_v41  ;;  %v2041_v56 = vcombine.high %v540_v50, %v548_v51  ;;  %v2043_v57 = vcombine.high %v541_v52, %v549_v53  ;;  %v556_v58 = vld [vmem:[%s2592_s7 + $0x280] sm:$0xff]  ;;  %v557_v60 = vld [vmem:[%s2592_s7 + $0x288] sm:$0xff]  ;;  %v2040_v62 = vcombine.low %v540_v50, %v548_v51  ;;  %v503_v39 = vld [vmem:[%s2592_s7 + $0xd8] sm:$0xff] }
  0x71   : > { %v564_v59 = vld [vmem:[%s2592_s7 + $0x2c0] sm:$0xff]  ;;  %v565_v61 = vld [vmem:[%s2592_s7 + $0x2c8] sm:$0xff]  ;;  %v2042_v63 = vcombine.low %v541_v52, %v549_v53  ;;  %v1980_v40 = vcombine.low %v478_v27, %v486_v28  ;;  %v1982_v41 = vcombine.low %v479_v29, %v487_v30  ;;  %v1997_v42 = vcombine.high %v494_v35, %v502_v36  ;;  %v510_v44 = vld [vmem:[%s2592_s7 + $0x110] sm:$0xff] }
  0x72   : > { %v2057_v0 = vcombine.high %v556_v58, %v564_v59  ;;  %v2059_v1 = vcombine.high %v557_v60, %v565_v61  ;;  %v572_v2 = vld [vmem:[%s2592_s7 + $0x300] sm:$0xff]  ;;  %v573_v4 = vld [vmem:[%s2592_s7 + $0x308] sm:$0xff]  ;;  %v2056_v6 = vcombine.low %v556_v58, %v564_v59  ;;  %v2058_v7 = vcombine.low %v557_v60, %v565_v61  ;;  %v518_v45 = vld [vmem:[%s2592_s7 + $0x150] sm:$0xff] }
  0x73   : > { %1370 = vmatpush1.bf16.msra.mxu0 %v2008_v46  ;;  %1413 = vmatpush1.bf16.msra.mxu1 %v2010_v47  ;;  %v580_v3 = vld [vmem:[%s2592_s7 + $0x340] sm:$0xff]  ;;  %v581_v5 = vld [vmem:[%s2592_s7 + $0x348] sm:$0xff]  ;;  %v1999_v43 = vcombine.high %v495_v38, %v503_v39  ;;  %v511_v46 = vld [vmem:[%s2592_s7 + $0x118] sm:$0xff]  ;;  %v2013_v50 = vcombine.high %v510_v44, %v518_v45 }
  0x74   : > { %1371 = vmatprep.subr.bf16.mxu0 %v2025_v48  ;;  %1414 = vmatprep.subr.bf16.mxu1 %v2027_v49  ;;  %v2073_v8 = vcombine.high %v572_v2, %v580_v3  ;;  %v2075_v9 = vcombine.high %v573_v4, %v581_v5  ;;  %v588_v10 = vld [vmem:[%s2592_s7 + $0x380] sm:$0xff]  ;;  %v589_v12 = vld [vmem:[%s2592_s7 + $0x388] sm:$0xff]  ;;  %v2072_v14 = vcombine.low %v572_v2, %v580_v3  ;;  %v519_v47 = vld [vmem:[%s2592_s7 + $0x158] sm:$0xff] }
  0x75   : > { %v596_v11 = vld [vmem:[%s2592_s7 + $0x3c0] sm:$0xff]  ;;  %v597_v13 = vld [vmem:[%s2592_s7 + $0x3c8] sm:$0xff]  ;;  %v2074_v15 = vcombine.low %v573_v4, %v581_v5  ;;  %v1996_v48 = vcombine.low %v494_v35, %v502_v36  ;;  %v1998_v49 = vcombine.low %v495_v38, %v503_v39  ;;  %v2015_v51 = vcombine.high %v511_v46, %v519_v47  ;;  %v526_v52 = vld [vmem:[%s2592_s7 + $0x190] sm:$0xff] }
  0x76   : > { %v2089_v17 = vcombine.high %v588_v10, %v596_v11  ;;  %v2091_v18 = vcombine.high %v589_v12, %v597_v13  ;;  %v604_v19 = vld [vmem:[%s2592_s7 + $0x400] sm:$0xff]  ;;  %v605_v21 = vld [vmem:[%s2592_s7 + $0x408] sm:$0xff]  ;;  %v2088_v23 = vcombine.low %v588_v10, %v596_v11  ;;  %v2090_v24 = vcombine.low %v589_v12, %v597_v13  ;;  %v534_v53 = vld [vmem:[%s2592_s7 + $0x1d0] sm:$0xff] }
  0x77   : > { %1372 = vmatpush1.bf16.msra.mxu0 %v2024_v54  ;;  %1415 = vmatpush1.bf16.msra.mxu1 %v2026_v55  ;;  %v612_v20 = vld [vmem:[%s2592_s7 + $0x440] sm:$0xff]  ;;  %v613_v22 = vld [vmem:[%s2592_s7 + $0x448] sm:$0xff]  ;;  %v527_v54 = vld [vmem:[%s2592_s7 + $0x198] sm:$0xff]  ;;  %v2029_v58 = vcombine.high %v526_v52, %v534_v53 }
  0x78   : > { %1373 = vmatprep.subr.bf16.mxu0 %v2041_v56  ;;  %1416 = vmatprep.subr.bf16.mxu1 %v2043_v57  ;;  %v2105_v25 = vcombine.high %v604_v19, %v612_v20  ;;  %v2107_v26 = vcombine.high %v605_v21, %v613_v22  ;;  %v2104_v31 = vcombine.low %v604_v19, %v612_v20  ;;  %v2642_v37 = vld [vmem:[%s2855_s0] ss:$8 sps:$4 sm:$0xff]   ;;  %v535_v55 = vld [vmem:[%s2592_s7 + $0x1d8] sm:$0xff]  ;;  %v542_v60 = vld [vmem:[%s2592_s7 + $0x210] sm:$0xff] }
  0x79   : > { %v2106_v32 = vcombine.low %v605_v21, %v613_v22  ;;  %v2012_v56 = vcombine.low %v510_v44, %v518_v45  ;;  %v2014_v57 = vcombine.low %v511_v46, %v519_v47  ;;  %v2031_v59 = vcombine.high %v527_v54, %v535_v55  ;;  %v550_v61 = vld [vmem:[%s2592_s7 + $0x250] sm:$0xff]  ;;  %v480_v38 = vld [vmem:[%s2592_s7 + $0x20] sm:$0xff] }
  0x7a   : > { %v2045_v2 = vcombine.high %v542_v60, %v550_v61  ;;  %v558_v4 = vld [vmem:[%s2592_s7 + $0x290] sm:$0xff]  ;;  %v488_v39 = vld [vmem:[%s2592_s7 + $0x60] sm:$0xff] }
  0x7b   : > { %1374 = vmatpush1.bf16.msra.mxu0 %v2040_v62  ;;  %1417 = vmatpush1.bf16.msra.mxu1 %v2042_v63  ;;  %v543_v62 = vld [vmem:[%s2592_s7 + $0x218] sm:$0xff]  ;;  %v566_v5 = vld [vmem:[%s2592_s7 + $0x2d0] sm:$0xff]  ;;  %v1985_v44 = vcombine.high %v480_v38, %v488_v39  ;;  %v496_v46 = vld [vmem:[%s2592_s7 + $0xa0] sm:$0xff] }
  0x7c   : > { %1375 = vmatprep.subr.bf16.mxu0 %v2057_v0  ;;  %1418 = vmatprep.subr.bf16.mxu1 %v2059_v1  ;;  %v551_v63 = vld [vmem:[%s2592_s7 + $0x258] sm:$0xff]  ;;  %v2028_v0 = vcombine.low %v526_v52, %v534_v53  ;;  %v2030_v1 = vcombine.low %v527_v54, %v535_v55  ;;  %v2061_v10 = vcombine.high %v558_v4, %v566_v5  ;;  %v574_v12 = vld [vmem:[%s2592_s7 + $0x310] sm:$0xff]  ;;  %v504_v47 = vld [vmem:[%s2592_s7 + $0xe0] sm:$0xff] }
  0x7d   : > { %v2047_v3 = vcombine.high %v543_v62, %v551_v63  ;;  %v582_v13 = vld [vmem:[%s2592_s7 + $0x350] sm:$0xff]  ;;  %v2001_v52 = vcombine.high %v496_v46, %v504_v47  ;;  %v512_v54 = vld [vmem:[%s2592_s7 + $0x120] sm:$0xff] }
  0x7e   : > { %v2077_v19 = vcombine.high %v574_v12, %v582_v13  ;;  %v590_v21 = vld [vmem:[%s2592_s7 + $0x390] sm:$0xff]  ;;  %v520_v55 = vld [vmem:[%s2592_s7 + $0x160] sm:$0xff] }
  0x7f   : > { %1376 = vmatpush1.bf16.msra.mxu0 %v2056_v6  ;;  %1419 = vmatpush1.bf16.msra.mxu1 %v2058_v7  ;;  %v559_v6 = vld [vmem:[%s2592_s7 + $0x298] sm:$0xff]  ;;  %v598_v22 = vld [vmem:[%s2592_s7 + $0x3d0] sm:$0xff] }
  0x80   : > { %1377 = vmatprep.subr.bf16.mxu0 %v2073_v8  ;;  %1420 = vmatprep.subr.bf16.mxu1 %v2075_v9  ;;  %v567_v7 = vld [vmem:[%s2592_s7 + $0x2d8] sm:$0xff]  ;;  %v2044_v8 = vcombine.low %v542_v60, %v550_v61  ;;  %v2046_v9 = vcombine.low %v543_v62, %v551_v63  ;;  %v2093_v27 = vcombine.high %v590_v21, %v598_v22  ;;  %v606_v29 = vld [vmem:[%s2592_s7 + $0x410] sm:$0xff]  ;;  %v528_v62 = vld [vmem:[%s2592_s7 + $0x1a0] sm:$0xff] }
  0x81   : > { %v2063_v11 = vcombine.high %v559_v6, %v567_v7  ;;  %v614_v30 = vld [vmem:[%s2592_s7 + $0x450] sm:$0xff]  ;;  %v2017_v60 = vcombine.high %v512_v54, %v520_v55  ;;  %v536_v63 = vld [vmem:[%s2592_s7 + $0x1e0] sm:$0xff] }
  0x82   : > { %v2109_v35 = vcombine.high %v606_v29, %v614_v30 }
  0x83   : > { %1378 = vmatpush1.bf16.msra.mxu0 %v2072_v14  ;;  %1421 = vmatpush1.bf16.msra.mxu1 %v2074_v15  ;;  %v575_v14 = vld [vmem:[%s2592_s7 + $0x318] sm:$0xff] }
  0x84   : > { %1379 = vmatprep.subr.bf16.mxu0 %v2089_v17  ;;  %1422 = vmatprep.subr.bf16.mxu1 %v2091_v18  ;;  %v583_v15 = vld [vmem:[%s2592_s7 + $0x358] sm:$0xff]  ;;  %v2060_v17 = vcombine.low %v558_v4, %v566_v5  ;;  %v2062_v18 = vcombine.low %v559_v6, %v567_v7  ;;  %v2033_v4 = vcombine.high %v528_v62, %v536_v63  ;;  %v544_v6 = vld [vmem:[%s2592_s7 + $0x220] sm:$0xff] }
  0x85   : > { %v2079_v20 = vcombine.high %v575_v14, %v583_v15  ;;  %v552_v7 = vld [vmem:[%s2592_s7 + $0x260] sm:$0xff] }
  0x87   : > { %1380 = vmatpush1.bf16.msra.mxu0 %v2088_v23  ;;  %1423 = vmatpush1.bf16.msra.mxu1 %v2090_v24  ;;  %v591_v23 = vld [vmem:[%s2592_s7 + $0x398] sm:$0xff] }
  0x88   : > { %1381 = vmatprep.subr.bf16.mxu0 %v2105_v25  ;;  %1424 = vmatprep.subr.bf16.mxu1 %v2107_v26  ;;  %v599_v24 = vld [vmem:[%s2592_s7 + $0x3d8] sm:$0xff]  ;;  %v2076_v25 = vcombine.low %v574_v12, %v582_v13  ;;  %v2078_v26 = vcombine.low %v575_v14, %v583_v15  ;;  %v2049_v12 = vcombine.high %v544_v6, %v552_v7  ;;  %v560_v14 = vld [vmem:[%s2592_s7 + $0x2a0] sm:$0xff] }
  0x89   : > { %v2095_v28 = vcombine.high %v591_v23, %v599_v24  ;;  %v568_v15 = vld [vmem:[%s2592_s7 + $0x2e0] sm:$0xff] }
  0x8b   : > { %1382 = vmatpush1.bf16.msra.mxu0 %v2104_v31  ;;  %1425 = vmatpush1.bf16.msra.mxu1 %v2106_v32  ;;  %v607_v31 = vld [vmem:[%s2592_s7 + $0x418] sm:$0xff] }
  0x8c   : > { %1451 = vmatprep.subr.bf16.mxu0 %v1981_v33  ;;  %1494 = vmatprep.subr.bf16.mxu1 %v1983_v34  ;;  %v615_v32 = vld [vmem:[%s2592_s7 + $0x458] sm:$0xff]  ;;  %v2092_v33 = vcombine.low %v590_v21, %v598_v22  ;;  %v2094_v34 = vcombine.low %v591_v23, %v599_v24  ;;  %v2065_v21 = vcombine.high %v560_v14, %v568_v15  ;;  %v576_v23 = vld [vmem:[%s2592_s7 + $0x320] sm:$0xff] }
  0x8d   : > { %v2111_v36 = vcombine.high %v607_v31, %v615_v32  ;;  %v584_v24 = vld [vmem:[%s2592_s7 + $0x360] sm:$0xff] }
  0x8e   : > { %1398 = vmatmul.mubr.bf16.vlgmr.msra.gmra.mrb[0].mxu0 %v2642_v37  ;;  %1441 = vmatmul.mubr.bf16.vlgmr.msra.gmra.mrb[0].mxu1 %v2642_v37 }
  0x8f   : > { %1452 = vmatpush1.bf16.msra.mxu0 %v1980_v40  ;;  %1495 = vmatpush1.bf16.msra.mxu1 %v1982_v41  ;;  %v481_v40 = vld [vmem:[%s2592_s7 + $0x28] sm:$0xff] }
  0x90   : > { %1453 = vmatprep.subr.bf16.mxu0 %v1997_v42  ;;  %1496 = vmatprep.subr.bf16.mxu1 %v1999_v43  ;;  %v489_v41 = vld [vmem:[%s2592_s7 + $0x68] sm:$0xff]  ;;  %v2108_v42 = vcombine.low %v606_v29, %v614_v30  ;;  %v2110_v43 = vcombine.low %v607_v31, %v615_v32  ;;  %v2081_v29 = vcombine.high %v576_v23, %v584_v24  ;;  %v592_v31 = vld [vmem:[%s2592_s7 + $0x3a0] sm:$0xff] }
  0x91   : > { %2122 = vmatprep.mubr.msk.bf16.mxu0 %vm1361_vm0, %v2581_v16  ;;  %2123 = vmatprep.mubr.msk.bf16.mxu1 %vm1361_vm0, %v2581_v16  ;;  %v1987_v45 = vcombine.high %v481_v40, %v489_v41  ;;  %v600_v32 = vld [vmem:[%s2592_s7 + $0x3e0] sm:$0xff] }
  0x93   : > { %1454 = vmatpush1.bf16.msra.mxu0 %v1996_v48  ;;  %1497 = vmatpush1.bf16.msra.mxu1 %v1998_v49  ;;  %v497_v48 = vld [vmem:[%s2592_s7 + $0xa8] sm:$0xff] }
  0x94   : > { %1455 = vmatprep.subr.bf16.mxu0 %v2013_v50  ;;  %1498 = vmatprep.subr.bf16.mxu1 %v2015_v51  ;;  %v505_v49 = vld [vmem:[%s2592_s7 + $0xe8] sm:$0xff]  ;;  %v1984_v50 = vcombine.low %v480_v38, %v488_v39  ;;  %v1986_v51 = vcombine.low %v481_v40, %v489_v41  ;;  %v2097_v38 = vcombine.high %v592_v31, %v600_v32  ;;  %v608_v40 = vld [vmem:[%s2592_s7 + $0x420] sm:$0xff] }
  0x95   : > { %v2003_v53 = vcombine.high %v497_v48, %v505_v49  ;;  %v616_v41 = vld [vmem:[%s2592_s7 + $0x460] sm:$0xff] }
  0x97   : > { %1456 = vmatpush1.bf16.msra.mxu0 %v2012_v56  ;;  %1499 = vmatpush1.bf16.msra.mxu1 %v2014_v57  ;;  %v513_v56 = vld [vmem:[%s2592_s7 + $0x128] sm:$0xff] }
  0x98   : > { %1457 = vmatprep.subr.bf16.mxu0 %v2029_v58  ;;  %1500 = vmatprep.subr.bf16.mxu1 %v2031_v59  ;;  %v521_v57 = vld [vmem:[%s2592_s7 + $0x168] sm:$0xff]  ;;  %v2000_v58 = vcombine.low %v496_v46, %v504_v47  ;;  %v2002_v59 = vcombine.low %v497_v48, %v505_v49  ;;  %v2113_v46 = vcombine.high %v608_v40, %v616_v41  ;;  %v482_v48 = vld [vmem:[%s2592_s7 + $0x30] sm:$0xff] }
  0x99   : > { %v2019_v61 = vcombine.high %v513_v56, %v521_v57  ;;  %v490_v49 = vld [vmem:[%s2592_s7 + $0x70] sm:$0xff] }
  0x9b   : > { %1458 = vmatpush1.bf16.msra.mxu0 %v2028_v0  ;;  %1501 = vmatpush1.bf16.msra.mxu1 %v2030_v1  ;;  %v529_v0 = vld [vmem:[%s2592_s7 + $0x1a8] sm:$0xff] }
  0x9c   : > { %1459 = vmatprep.subr.bf16.mxu0 %v2045_v2  ;;  %1502 = vmatprep.subr.bf16.mxu1 %v2047_v3  ;;  %v537_v1 = vld [vmem:[%s2592_s7 + $0x1e8] sm:$0xff]  ;;  %v2016_v2 = vcombine.low %v512_v54, %v520_v55  ;;  %v2018_v3 = vcombine.low %v513_v56, %v521_v57  ;;  %v1989_v54 = vcombine.high %v482_v48, %v490_v49  ;;  %v498_v56 = vld [vmem:[%s2592_s7 + $0xb0] sm:$0xff] }
  0x9d   : > { %v2035_v5 = vcombine.high %v529_v0, %v537_v1  ;;  %v506_v57 = vld [vmem:[%s2592_s7 + $0xf0] sm:$0xff] }
  0x9f   : > { %1460 = vmatpush1.bf16.msra.mxu0 %v2044_v8  ;;  %1503 = vmatpush1.bf16.msra.mxu1 %v2046_v9  ;;  %v545_v8 = vld [vmem:[%s2592_s7 + $0x228] sm:$0xff] }
  0xa0   : > { %1461 = vmatprep.subr.bf16.mxu0 %v2061_v10  ;;  %1504 = vmatprep.subr.bf16.mxu1 %v2063_v11  ;;  %v553_v9 = vld [vmem:[%s2592_s7 + $0x268] sm:$0xff]  ;;  %v2032_v10 = vcombine.low %v528_v62, %v536_v63  ;;  %v2034_v11 = vcombine.low %v529_v0, %v537_v1  ;;  %v2005_v62 = vcombine.high %v498_v56, %v506_v57  ;;  %v514_v0 = vld [vmem:[%s2592_s7 + $0x130] sm:$0xff] }
  0xa1   : > { %v2051_v13 = vcombine.high %v545_v8, %v553_v9  ;;  %v522_v1 = vld [vmem:[%s2592_s7 + $0x170] sm:$0xff] }
  0xa3   : > { %1462 = vmatpush1.bf16.msra.mxu0 %v2060_v17  ;;  %1505 = vmatpush1.bf16.msra.mxu1 %v2062_v18  ;;  %v561_v17 = vld [vmem:[%s2592_s7 + $0x2a8] sm:$0xff] }
  0xa4   : > { %1463 = vmatprep.subr.bf16.mxu0 %v2077_v19  ;;  %1506 = vmatprep.subr.bf16.mxu1 %v2079_v20  ;;  %v569_v18 = vld [vmem:[%s2592_s7 + $0x2e8] sm:$0xff]  ;;  %v2048_v19 = vcombine.low %v544_v6, %v552_v7  ;;  %v2050_v20 = vcombine.low %v545_v8, %v553_v9  ;;  %v2021_v6 = vcombine.high %v514_v0, %v522_v1  ;;  %v530_v8 = vld [vmem:[%s2592_s7 + $0x1b0] sm:$0xff] }
  0xa5   : > { %v2067_v22 = vcombine.high %v561_v17, %v569_v18  ;;  %v538_v9 = vld [vmem:[%s2592_s7 + $0x1f0] sm:$0xff] }
  0xa7   : > { %1464 = vmatpush1.bf16.msra.mxu0 %v2076_v25  ;;  %1507 = vmatpush1.bf16.msra.mxu1 %v2078_v26  ;;  %v577_v25 = vld [vmem:[%s2592_s7 + $0x328] sm:$0xff] }
  0xa8   : > { %1465 = vmatprep.subr.bf16.mxu0 %v2093_v27  ;;  %1508 = vmatprep.subr.bf16.mxu1 %v2095_v28  ;;  %v585_v26 = vld [vmem:[%s2592_s7 + $0x368] sm:$0xff]  ;;  %v2064_v27 = vcombine.low %v560_v14, %v568_v15  ;;  %v2066_v28 = vcombine.low %v561_v17, %v569_v18  ;;  %v2037_v14 = vcombine.high %v530_v8, %v538_v9  ;;  %v546_v17 = vld [vmem:[%s2592_s7 + $0x230] sm:$0xff] }
  0xa9   : > { %v2083_v30 = vcombine.high %v577_v25, %v585_v26  ;;  %v554_v18 = vld [vmem:[%s2592_s7 + $0x270] sm:$0xff] }
  0xab   : > { %1466 = vmatpush1.bf16.msra.mxu0 %v2092_v33  ;;  %1509 = vmatpush1.bf16.msra.mxu1 %v2094_v34  ;;  %v593_v33 = vld [vmem:[%s2592_s7 + $0x3a8] sm:$0xff] }
  0xac   : > { %1467 = vmatprep.subr.bf16.mxu0 %v2109_v35  ;;  %1510 = vmatprep.subr.bf16.mxu1 %v2111_v36  ;;  %v601_v34 = vld [vmem:[%s2592_s7 + $0x3e8] sm:$0xff]  ;;  %v2080_v35 = vcombine.low %v576_v23, %v584_v24  ;;  %v2082_v36 = vcombine.low %v577_v25, %v585_v26  ;;  %v562_v24 = vld [vmem:[%s2592_s7 + $0x2b0] sm:$0xff]  ;;  %v563_v26 = vld [vmem:[%s2592_s7 + $0x2b8] sm:$0xff] }
  0xad   : > { %v2099_v39 = vcombine.high %v593_v33, %v601_v34  ;;  %v570_v25 = vld [vmem:[%s2592_s7 + $0x2f0] sm:$0xff] }
  0xaf   : > { %1468 = vmatpush1.bf16.msra.mxu0 %v2108_v42  ;;  %1511 = vmatpush1.bf16.msra.mxu1 %v2110_v43  ;;  %v609_v42 = vld [vmem:[%s2592_s7 + $0x428] sm:$0xff] }
  0xb0   : > { %1537 = vmatprep.subr.bf16.mxu0 %v1985_v44  ;;  %1580 = vmatprep.subr.bf16.mxu1 %v1987_v45  ;;  %v617_v43 = vld [vmem:[%s2592_s7 + $0x468] sm:$0xff]  ;;  %v2096_v44 = vcombine.low %v592_v31, %v600_v32  ;;  %v2098_v45 = vcombine.low %v593_v33, %v601_v34  ;;  %v578_v32 = vld [vmem:[%s2592_s7 + $0x330] sm:$0xff]  ;;  %v579_v34 = vld [vmem:[%s2592_s7 + $0x338] sm:$0xff] }
  0xb1   : > { %v2115_v47 = vcombine.high %v609_v42, %v617_v43  ;;  %v586_v33 = vld [vmem:[%s2592_s7 + $0x370] sm:$0xff] }
  0xb2   : > { %1484 = vmatmul.mubr.bf16.vlgmr.msra.gmra.mrb[4].mxu0 %v2642_v37  ;;  %1527 = vmatmul.mubr.bf16.vlgmr.msra.gmra.mrb[4].mxu1 %v2642_v37 }
  0xb3   : > { %1538 = vmatpush1.bf16.msra.mxu0 %v1984_v50  ;;  %1581 = vmatpush1.bf16.msra.mxu1 %v1986_v51  ;;  %v483_v50 = vld [vmem:[%s2592_s7 + $0x38] sm:$0xff] }
  0xb4   : > { %1539 = vmatprep.subr.bf16.mxu0 %v2001_v52  ;;  %1582 = vmatprep.subr.bf16.mxu1 %v2003_v53  ;;  %v491_v51 = vld [vmem:[%s2592_s7 + $0x78] sm:$0xff]  ;;  %v2112_v52 = vcombine.low %v608_v40, %v616_v41  ;;  %v2114_v53 = vcombine.low %v609_v42, %v617_v43  ;;  %v594_v41 = vld [vmem:[%s2592_s7 + $0x3b0] sm:$0xff] }
  0xb5   : > { %2124 = vmatprep.mubr.msk.bf16.mxu0 %vm1361_vm0, %v2581_v16  ;;  %2125 = vmatprep.mubr.msk.bf16.mxu1 %vm1361_vm0, %v2581_v16  ;;  %v1991_v55 = vcombine.high %v483_v50, %v491_v51  ;;  %v602_v42 = vld [vmem:[%s2592_s7 + $0x3f0] sm:$0xff]  ;;  %v595_v43 = vld [vmem:[%s2592_s7 + $0x3b8] sm:$0xff] }
  0xb7   : > { %1540 = vmatpush1.bf16.msra.mxu0 %v2000_v58  ;;  %1583 = vmatpush1.bf16.msra.mxu1 %v2002_v59  ;;  %v499_v58 = vld [vmem:[%s2592_s7 + $0xb8] sm:$0xff] }
  0xb8   : > { %1541 = vmatprep.subr.bf16.mxu0 %v2017_v60  ;;  %1584 = vmatprep.subr.bf16.mxu1 %v2019_v61  ;;  %v507_v59 = vld [vmem:[%s2592_s7 + $0xf8] sm:$0xff]  ;;  %v1988_v60 = vcombine.low %v482_v48, %v490_v49  ;;  %v1990_v61 = vcombine.low %v483_v50, %v491_v51  ;;  %v610_v49 = vld [vmem:[%s2592_s7 + $0x430] sm:$0xff] }
  0xb9   : > { %v2007_v63 = vcombine.high %v499_v58, %v507_v59  ;;  %v618_v50 = vld [vmem:[%s2592_s7 + $0x470] sm:$0xff]  ;;  %v611_v51 = vld [vmem:[%s2592_s7 + $0x438] sm:$0xff] }
  0xbb   : > { %1542 = vmatpush1.bf16.msra.mxu0 %v2016_v2  ;;  %1585 = vmatpush1.bf16.msra.mxu1 %v2018_v3  ;;  %v515_v2 = vld [vmem:[%s2592_s7 + $0x138] sm:$0xff] }
  0xbc   : > { %1543 = vmatprep.subr.bf16.mxu0 %v2033_v4  ;;  %1586 = vmatprep.subr.bf16.mxu1 %v2035_v5  ;;  %v523_v3 = vld [vmem:[%s2592_s7 + $0x178] sm:$0xff]  ;;  %v2004_v4 = vcombine.low %v498_v56, %v506_v57  ;;  %v2006_v5 = vcombine.low %v499_v58, %v507_v59  ;;  %v2116_v57 = vcombine.low %v610_v49, %v618_v50 }
  0xbd   : > { %v2023_v7 = vcombine.high %v515_v2, %v523_v3 }
  0xbf   : > { %1544 = vmatpush1.bf16.msra.mxu0 %v2032_v10  ;;  %1587 = vmatpush1.bf16.msra.mxu1 %v2034_v11  ;;  %v531_v10 = vld [vmem:[%s2592_s7 + $0x1b8] sm:$0xff] }
  0xc0   : > { %1545 = vmatprep.subr.bf16.mxu0 %v2049_v12  ;;  %1588 = vmatprep.subr.bf16.mxu1 %v2051_v13  ;;  %v539_v11 = vld [vmem:[%s2592_s7 + $0x1f8] sm:$0xff]  ;;  %v2020_v12 = vcombine.low %v514_v0, %v522_v1  ;;  %v2022_v13 = vcombine.low %v515_v2, %v523_v3 }
  0xc1   : > { %v2039_v15 = vcombine.high %v531_v10, %v539_v11 }
  0xc3   : > { %1546 = vmatpush1.bf16.msra.mxu0 %v2048_v19  ;;  %1589 = vmatpush1.bf16.msra.mxu1 %v2050_v20  ;;  %v547_v19 = vld [vmem:[%s2592_s7 + $0x238] sm:$0xff] }
  0xc4   : > { %1547 = vmatprep.subr.bf16.mxu0 %v2065_v21  ;;  %1590 = vmatprep.subr.bf16.mxu1 %v2067_v22  ;;  %v555_v20 = vld [vmem:[%s2592_s7 + $0x278] sm:$0xff]  ;;  %v2036_v21 = vcombine.low %v530_v8, %v538_v9  ;;  %v2053_v22 = vcombine.high %v546_v17, %v554_v18 }
  0xc5   : > { %v2055_v23 = vcombine.high %v547_v19, %v555_v20 }
  0xc7   : > { %1548 = vmatpush1.bf16.msra.mxu0 %v2064_v27  ;;  %1591 = vmatpush1.bf16.msra.mxu1 %v2066_v28  ;;  %v571_v27 = vld [vmem:[%s2592_s7 + $0x2f8] sm:$0xff]  ;;  %v2052_v28 = vcombine.low %v546_v17, %v554_v18 }
  0xc8   : > { %1549 = vmatprep.subr.bf16.mxu0 %v2081_v29  ;;  %1592 = vmatprep.subr.bf16.mxu1 %v2083_v30  ;;  %v2054_v29 = vcombine.low %v547_v19, %v555_v20  ;;  %v2069_v30 = vcombine.high %v562_v24, %v570_v25  ;;  %v2071_v31 = vcombine.high %v563_v26, %v571_v27 }
  0xcb   : > { %1550 = vmatpush1.bf16.msra.mxu0 %v2080_v35  ;;  %1593 = vmatpush1.bf16.msra.mxu1 %v2082_v36  ;;  %v587_v35 = vld [vmem:[%s2592_s7 + $0x378] sm:$0xff]  ;;  %v2068_v36 = vcombine.low %v562_v24, %v570_v25 }
  0xcc   : > { %1551 = vmatprep.subr.bf16.mxu0 %v2097_v38  ;;  %1594 = vmatprep.subr.bf16.mxu1 %v2099_v39  ;;  %v2070_v38 = vcombine.low %v563_v26, %v571_v27  ;;  %v2085_v39 = vcombine.high %v578_v32, %v586_v33  ;;  %v2087_v40 = vcombine.high %v579_v34, %v587_v35 }
  0xcf   : > { %1552 = vmatpush1.bf16.msra.mxu0 %v2096_v44  ;;  %1595 = vmatpush1.bf16.msra.mxu1 %v2098_v45  ;;  %v603_v44 = vld [vmem:[%s2592_s7 + $0x3f8] sm:$0xff]  ;;  %v2084_v45 = vcombine.low %v578_v32, %v586_v33 }
  0xd0   : > { %1553 = vmatprep.subr.bf16.mxu0 %v2113_v46  ;;  %1596 = vmatprep.subr.bf16.mxu1 %v2115_v47  ;;  %v2086_v46 = vcombine.low %v579_v34, %v587_v35  ;;  %v2101_v47 = vcombine.high %v594_v41, %v602_v42  ;;  %v2103_v48 = vcombine.high %v595_v43, %v603_v44 }
  0xd3   : > { %1554 = vmatpush1.bf16.msra.mxu0 %v2112_v52  ;;  %1597 = vmatpush1.bf16.msra.mxu1 %v2114_v53  ;;  %v619_v52 = vld [vmem:[%s2592_s7 + $0x478] sm:$0xff]  ;;  %v2100_v53 = vcombine.low %v594_v41, %v602_v42 }
  0xd4   : > { %1623 = vmatprep.subr.bf16.mxu0 %v1989_v54  ;;  %1666 = vmatprep.subr.bf16.mxu1 %v1991_v55  ;;  %v2102_v54 = vcombine.low %v595_v43, %v603_v44  ;;  %v2117_v55 = vcombine.high %v610_v49, %v618_v50  ;;  %v2119_v56 = vcombine.high %v611_v51, %v619_v52 }
  0xd5   : > { %v2118_v58 = vcombine.low %v611_v51, %v619_v52 }
  0xd6   : > { %1570 = vmatmul.mubr.bf16.vlgmr.msra.gmra.mrb[8].mxu0 %v2642_v37  ;;  %1613 = vmatmul.mubr.bf16.vlgmr.msra.gmra.mrb[8].mxu1 %v2642_v37 }
  0xd7   : > { %1624 = vmatpush1.bf16.msra.mxu0 %v1988_v60  ;;  %1667 = vmatpush1.bf16.msra.mxu1 %v1990_v61 }
  0xd8   : > { %1625 = vmatprep.subr.bf16.mxu0 %v2005_v62  ;;  %1668 = vmatprep.subr.bf16.mxu1 %v2007_v63 }
  0xd9   : > { %2126 = vmatprep.mubr.msk.bf16.mxu0 %vm1361_vm0, %v2581_v16  ;;  %2127 = vmatprep.mubr.msk.bf16.mxu1 %vm1361_vm0, %v2581_v16  ;;  %v2038_v16 = vcombine.low %v531_v10, %v539_v11 }
  0xdb   : > { %1626 = vmatpush1.bf16.msra.mxu0 %v2004_v4  ;;  %1669 = vmatpush1.bf16.msra.mxu1 %v2006_v5 }
  0xdc   : > { %1627 = vmatprep.subr.bf16.mxu0 %v2021_v6  ;;  %1670 = vmatprep.subr.bf16.mxu1 %v2023_v7 }
  0xdf   : > { %1628 = vmatpush1.bf16.msra.mxu0 %v2020_v12  ;;  %1671 = vmatpush1.bf16.msra.mxu1 %v2022_v13 }
  0xe0   : > { %1629 = vmatprep.subr.bf16.mxu0 %v2037_v14  ;;  %1672 = vmatprep.subr.bf16.mxu1 %v2039_v15 }
  0xe3   : > { %1630 = vmatpush1.bf16.msra.mxu0 %v2036_v21  ;;  %1673 = vmatpush1.bf16.msra.mxu1 %v2038_v16  ;;  %v2766_v59 = vpop.permute.xlu0 %624 }
  0xe4   : > { %1631 = vmatprep.subr.bf16.mxu0 %v2053_v22  ;;  %1674 = vmatprep.subr.bf16.mxu1 %v2055_v23 }
  0xe7   : > { %1632 = vmatpush1.bf16.msra.mxu0 %v2052_v28  ;;  %1675 = vmatpush1.bf16.msra.mxu1 %v2054_v29  ;;  %v2768_v61 = vpop.permute.xlu0 %629 }
  0xe8   : > { %1633 = vmatprep.subr.bf16.mxu0 %v2069_v30  ;;  %1676 = vmatprep.subr.bf16.mxu1 %v2071_v31 }
  0xeb   : > { %1634 = vmatpush1.bf16.msra.mxu0 %v2068_v36  ;;  %1677 = vmatpush1.bf16.msra.mxu1 %v2070_v38 }
  0xec   : > { %1635 = vmatprep.subr.bf16.mxu0 %v2085_v39  ;;  %1678 = vmatprep.subr.bf16.mxu1 %v2087_v40 }
  0xef   : > { %1636 = vmatpush1.bf16.msra.mxu0 %v2084_v45  ;;  %1679 = vmatpush1.bf16.msra.mxu1 %v2086_v46 }
  0xf0   : > { %1637 = vmatprep.subr.bf16.mxu0 %v2101_v47  ;;  %1680 = vmatprep.subr.bf16.mxu1 %v2103_v48 }
  0xf3   : > { %1638 = vmatpush1.bf16.msra.mxu0 %v2100_v53  ;;  %1681 = vmatpush1.bf16.msra.mxu1 %v2102_v54 }
  0xf4   : > { %1639 = vmatprep.subr.bf16.mxu0 %v2117_v55  ;;  %1682 = vmatprep.subr.bf16.mxu1 %v2119_v56 }
  0xf7   : > { %1640 = vmatpush1.bf16.msra.mxu0 %v2116_v57  ;;  %1683 = vmatpush1.bf16.msra.mxu1 %v2118_v58 }
  0xfa   : > { %1656 = vmatmul.mubr.bf16.vlgmr.msra.gmra.mrb[12].mxu0 %v2642_v37  ;;  %1699 = vmatmul.mubr.bf16.vlgmr.msra.gmra.mrb[12].mxu1 %v2642_v37 }
 0x161   : > { %v1399_v60 = vpop.f32.mrb[0].mxu0  ;;  %v1442_v63 = vpop.f32.mrb[0].mxu1 }
 0x162   : > { %v1400_v62 = vadd.f32 %v1399_v60, %v2766_v59  ;;  %v1401_v0 = vpop.f32.mrb[1].mxu0  ;;  %v1443_v1 = vadd.f32 %v1442_v63, %v2766_v59  ;;  %v1444_v3 = vpop.f32.mrb[1].mxu1 }
 0x163   : > { %v1402_v2 = vadd.f32 %v1401_v0, %v2766_v59  ;;  %v1403_v4 = vpop.f32.mrb[2].mxu0  ;;  %v1445_v37 = vadd.f32 %v1444_v3, %v2766_v59  ;;  %v1446_v7 = vpop.f32.mrb[2].mxu1 }
 0x164   : > { %v1709_v5 = vmax.f32 %v1400_v62, 0.0  ;;  %v1404_v6 = vadd.f32 %v1403_v4, %v2768_v61  ;;  %v1405_v8 = vpop.f32.mrb[3].mxu0  ;;  %v1711_v9 = vmax.f32 %v1443_v1, 0.0  ;;  %v1447_v11 = vadd.f32 %v1446_v7, %v2768_v61  ;;  %v1448_v13 = vpop.f32.mrb[3].mxu1 }
 0x165   : > { %v1710_v10 = vmax.f32 %v1402_v2, 0.0  ;;  %v1406_v12 = vadd.f32 %v1405_v8, %v2768_v61  ;;  %v1712_v14 = vmax.f32 %v1445_v37, 0.0  ;;  %v1449_v17 = vadd.f32 %v1448_v13, %v2768_v61 }
 0x166   : > { %v1725_v15 = vmax.f32 %v1404_v6, 0.0  ;;  %v1727_v19 = vmax.f32 %v1447_v11, 0.0 }
 0x167   : > { %v2150_v18 = vpack.c.bf16 %v1710_v10, %v1709_v5  ;;  %v1726_v20 = vmax.f32 %v1406_v12, 0.0  ;;  %v2151_v21 = vpack.c.bf16 %v1712_v14, %v1711_v9  ;;  %v1728_v16 = vmax.f32 %v1449_v17, 0.0 }
 0x169   : > { %1837 = vst [vmem:[%s2780_s12] sm:$0xff] %v2150_v18  ;;  %v2158_v22 = vpack.c.bf16 %v1726_v20, %v1725_v15  ;;  %1838 = vst [vmem:[%s2780_s12 + $0x8] sm:$0xff] %v2151_v21  ;;  %v2159_v23 = vpack.c.bf16 %v1728_v16, %v1727_v19 }
 0x16b   : > { %1845 = vst [vmem:[%s2780_s12 + $0x40] sm:$0xff] %v2158_v22  ;;  %1846 = vst [vmem:[%s2780_s12 + $0x48] sm:$0xff] %v2159_v23 }
 0x185   : > { %v1485_v24 = vpop.f32.mrb[4].mxu0  ;;  %v1528_v26 = vpop.f32.mrb[4].mxu1 }
 0x186   : > { %v1486_v25 = vadd.f32 %v1485_v24, %v2766_v59  ;;  %v1487_v27 = vpop.f32.mrb[5].mxu0  ;;  %v1529_v28 = vadd.f32 %v1528_v26, %v2766_v59  ;;  %v1530_v30 = vpop.f32.mrb[5].mxu1 }
 0x187   : > { %v1488_v29 = vadd.f32 %v1487_v27, %v2766_v59  ;;  %v1489_v31 = vpop.f32.mrb[6].mxu0  ;;  %v1531_v33 = vadd.f32 %v1530_v30, %v2766_v59  ;;  %v1532_v35 = vpop.f32.mrb[6].mxu1 }
 0x188   : > { %v1713_v32 = vmax.f32 %v1486_v25, 0.0  ;;  %v1490_v34 = vadd.f32 %v1489_v31, %v2768_v61  ;;  %v1491_v36 = vpop.f32.mrb[7].mxu0  ;;  %v1715_v38 = vmax.f32 %v1529_v28, 0.0  ;;  %v1533_v40 = vadd.f32 %v1532_v35, %v2768_v61  ;;  %v1534_v42 = vpop.f32.mrb[7].mxu1 }
 0x189   : > { %v1714_v39 = vmax.f32 %v1488_v29, 0.0  ;;  %v1492_v41 = vadd.f32 %v1491_v36, %v2768_v61  ;;  %v1716_v43 = vmax.f32 %v1531_v33, 0.0  ;;  %v1535_v45 = vadd.f32 %v1534_v42, %v2768_v61 }
 0x18a   : > { %v1729_v44 = vmax.f32 %v1490_v34, 0.0  ;;  %v1731_v47 = vmax.f32 %v1533_v40, 0.0 }
 0x18b   : > { %v2152_v46 = vpack.c.bf16 %v1714_v39, %v1713_v32  ;;  %v1730_v48 = vmax.f32 %v1492_v41, 0.0  ;;  %v2153_v49 = vpack.c.bf16 %v1716_v43, %v1715_v38  ;;  %v1732_v50 = vmax.f32 %v1535_v45, 0.0 }
 0x18d   : > { %1839 = vst [vmem:[%s2780_s12 + $0x10] sm:$0xff] %v2152_v46  ;;  %v2160_v51 = vpack.c.bf16 %v1730_v48, %v1729_v44  ;;  %1840 = vst [vmem:[%s2780_s12 + $0x18] sm:$0xff] %v2153_v49  ;;  %v2161_v52 = vpack.c.bf16 %v1732_v50, %v1731_v47  ;;  %v1877_v46 = vld [vmem:[%s2780_s12 + $0x8] sm:$0xff] (%p2273_p5) }
 0x18e   : > { %1878 = vst [vmem:[%s1862_s20 + $0x8] sm:$0xff] (%p2273_p5), %v1877_v46 }
 0x18f   : > { %1847 = vst [vmem:[%s2780_s12 + $0x50] sm:$0xff] %v2160_v51  ;;  %1848 = vst [vmem:[%s2780_s12 + $0x58] sm:$0xff] %v2161_v52 }
 0x194   : > { %v1879_v47 = vld [vmem:[%s2780_s12 + $0x10] sm:$0xff] (%p2273_p5)  ;;  %v1881_v48 = vld [vmem:[%s2780_s12 + $0x18] sm:$0xff] (%p2273_p5) }
 0x195   : > { %1880 = vst [vmem:[%s1862_s20 + $0x10] sm:$0xff] (%p2273_p5), %v1879_v47  ;;  %1882 = vst [vmem:[%s1862_s20 + $0x18] sm:$0xff] (%p2273_p5), %v1881_v48 }
 0x1a9   : > { %v1571_v53 = vpop.f32.mrb[8].mxu0  ;;  %v1614_v55 = vpop.f32.mrb[8].mxu1 }
 0x1aa   : > { %v1572_v54 = vadd.f32 %v1571_v53, %v2766_v59  ;;  %v1573_v56 = vpop.f32.mrb[9].mxu0  ;;  %v1615_v57 = vadd.f32 %v1614_v55, %v2766_v59  ;;  %v1616_v60 = vpop.f32.mrb[9].mxu1  ;;  %v1891_v53 = vld [vmem:[%s2780_s12 + $0x40] sm:$0xff] (%p2273_p5)  ;;  %v1895_v55 = vld [vmem:[%s2780_s12 + $0x50] sm:$0xff] (%p2273_p5) }
 0x1ab   : > { %v1574_v58 = vadd.f32 %v1573_v56, %v2766_v59  ;;  %v1575_v62 = vpop.f32.mrb[10].mxu0  ;;  %v1617_v0 = vadd.f32 %v1616_v60, %v2766_v59  ;;  %v1618_v2 = vpop.f32.mrb[10].mxu1  ;;  %1892 = vst [vmem:[%s1862_s20 + $0xc0] sm:$0xff] (%p2273_p5), %v1891_v53  ;;  %v1897_v56 = vld [vmem:[%s2780_s12 + $0x58] sm:$0xff] (%p2273_p5)  ;;  %1896 = vst [vmem:[%s1862_s20 + $0xd0] sm:$0xff] (%p2273_p5), %v1895_v55 }
 0x1ac   : > { %v1717_v63 = vmax.f32 %v1572_v54, 0.0  ;;  %v1576_v1 = vadd.f32 %v1575_v62, %v2768_v61  ;;  %v1577_v3 = vpop.f32.mrb[11].mxu0  ;;  %v1719_v4 = vmax.f32 %v1615_v57, 0.0  ;;  %v1619_v37 = vadd.f32 %v1618_v2, %v2768_v61  ;;  %v1620_v7 = vpop.f32.mrb[11].mxu1  ;;  %v1893_v54 = vld [vmem:[%s2780_s12 + $0x48] sm:$0xff] (%p2273_p5)  ;;  %1898 = vst [vmem:[%s1862_s20 + $0xd8] sm:$0xff] (%p2273_p5), %v1897_v56 }
 0x1ad   : > { %v1718_v5 = vmax.f32 %v1574_v58, 0.0  ;;  %v1578_v6 = vadd.f32 %v1577_v3, %v2768_v61  ;;  %v1720_v8 = vmax.f32 %v1617_v0, 0.0  ;;  %v1621_v10 = vadd.f32 %v1620_v7, %v2768_v61  ;;  %1894 = vst [vmem:[%s1862_s20 + $0xc8] sm:$0xff] (%p2273_p5), %v1893_v54 }
 0x1ae   : > { %v1733_v9 = vmax.f32 %v1576_v1, 0.0  ;;  %v1735_v12 = vmax.f32 %v1619_v37, 0.0 }
 0x1af   : > { %v2154_v11 = vpack.c.bf16 %v1718_v5, %v1717_v63  ;;  %v1734_v13 = vmax.f32 %v1578_v6, 0.0  ;;  %v2155_v14 = vpack.c.bf16 %v1720_v8, %v1719_v4  ;;  %v1736_v15 = vmax.f32 %v1621_v10, 0.0 }
 0x1b1   : > { %1841 = vst [vmem:[%s2780_s12 + $0x20] sm:$0xff] %v2154_v11  ;;  %v2162_v17 = vpack.c.bf16 %v1734_v13, %v1733_v9  ;;  %1842 = vst [vmem:[%s2780_s12 + $0x28] sm:$0xff] %v2155_v14  ;;  %v2163_v18 = vpack.c.bf16 %v1736_v15, %v1735_v12 }
 0x1b3   : > { %1849 = vst [vmem:[%s2780_s12 + $0x60] sm:$0xff] %v2162_v17  ;;  %1850 = vst [vmem:[%s2780_s12 + $0x68] sm:$0xff] %v2163_v18 }
 0x1b8   : > { %v1883_v49 = vld [vmem:[%s2780_s12 + $0x20] sm:$0xff] (%p2273_p5)  ;;  %v1885_v50 = vld [vmem:[%s2780_s12 + $0x28] sm:$0xff] (%p2273_p5) }
 0x1b9   : > { %1884 = vst [vmem:[%s1862_s20 + $0x20] sm:$0xff] (%p2273_p5), %v1883_v49  ;;  %1886 = vst [vmem:[%s1862_s20 + $0x28] sm:$0xff] (%p2273_p5), %v1885_v50 }
 0x1ba   : > { %v1899_v57 = vld [vmem:[%s2780_s12 + $0x60] sm:$0xff] (%p2273_p5)  ;;  %v1901_v58 = vld [vmem:[%s2780_s12 + $0x68] sm:$0xff] (%p2273_p5) }
 0x1bb   : > { %1900 = vst [vmem:[%s1862_s20 + $0xe0] sm:$0xff] (%p2273_p5), %v1899_v57  ;;  %1902 = vst [vmem:[%s1862_s20 + $0xe8] sm:$0xff] (%p2273_p5), %v1901_v58 }
 0x1cd   : > { %v1657_v19 = vpop.f32.mrb[12].mxu0  ;;  %v1700_v21 = vpop.f32.mrb[12].mxu1 }
 0x1ce   : > { %v1658_v20 = vadd.f32 %v1657_v19, %v2766_v59  ;;  %v1659_v16 = vpop.f32.mrb[13].mxu0  ;;  %v1701_v22 = vadd.f32 %v1700_v21, %v2766_v59  ;;  %v1702_v24 = vpop.f32.mrb[13].mxu1 }
 0x1cf   : > { %v1660_v23 = vadd.f32 %v1659_v16, %v2766_v59  ;;  %v1661_v25 = vpop.f32.mrb[14].mxu0  ;;  %v1703_v27 = vadd.f32 %v1702_v24, %v2766_v59  ;;  %v1704_v29 = vpop.f32.mrb[14].mxu1 }
 0x1d0   : > { %v1721_v26 = vmax.f32 %v1658_v20, 0.0  ;;  %v1662_v28 = vadd.f32 %v1661_v25, %v2768_v61  ;;  %v1663_v30 = vpop.f32.mrb[15].mxu0  ;;  %v1723_v31 = vmax.f32 %v1701_v22, 0.0  ;;  %v1705_v33 = vadd.f32 %v1704_v29, %v2768_v61  ;;  %v1706_v35 = vpop.f32.mrb[15].mxu1 }
 0x1d1   : > { %v1722_v32 = vmax.f32 %v1660_v23, 0.0  ;;  %v1664_v34 = vadd.f32 %v1663_v30, %v2768_v61  ;;  %v1724_v36 = vmax.f32 %v1703_v27, 0.0  ;;  %v1707_v39 = vadd.f32 %v1706_v35, %v2768_v61  ;;  %1859 = sbr.rel (!%p2273_p5) target bundleno = 480 (0x1e0), region = 59  ;;  %v1875_v61 = vld [vmem:[%s2780_s12] sm:$0xff] (%p2273_p5) }
 0x1d2   : > { %v1737_v38 = vmax.f32 %v1662_v28, 0.0  ;;  %v1739_v40 = vmax.f32 %v1705_v33, 0.0  ;;  %1876 = vst [vmem:[%s1862_s20] sm:$0xff] (%p2273_p5), %v1875_v61 }
 0x1d3   : > { %v2156_v59 = vpack.c.bf16 %v1722_v32, %v1721_v26  ;;  %v1738_v41 = vmax.f32 %v1664_v34, 0.0  ;;  %v2157_v42 = vpack.c.bf16 %v1724_v36, %v1723_v31  ;;  %v1740_v43 = vmax.f32 %v1707_v39, 0.0 }
 0x1d5   : > { %1843 = vst [vmem:[%s2780_s12 + $0x30] sm:$0xff] %v2156_v59  ;;  %v2164_v44 = vpack.c.bf16 %v1738_v41, %v1737_v38  ;;  %1844 = vst [vmem:[%s2780_s12 + $0x38] sm:$0xff] %v2157_v42  ;;  %v2165_v45 = vpack.c.bf16 %v1740_v43, %v1739_v40 }
 0x1d7   : > { %1851 = vst [vmem:[%s2780_s12 + $0x70] sm:$0xff] %v2164_v44  ;;  %1852 = vst [vmem:[%s2780_s12 + $0x78] sm:$0xff] %v2165_v45 }
 0x1dc   : > { %v1887_v51 = vld [vmem:[%s2780_s12 + $0x30] sm:$0xff]  ;;  %v1889_v52 = vld [vmem:[%s2780_s12 + $0x38] sm:$0xff] }
 0x1dd   : > { %1888 = vst [vmem:[%s1862_s20 + $0x30] sm:$0xff] %v1887_v51  ;;  %1890 = vst [vmem:[%s1862_s20 + $0x38] sm:$0xff] %v1889_v52 }
 0x1de   : > { %v1903_v60 = vld [vmem:[%s2780_s12 + $0x70] sm:$0xff]  ;;  %v1905_v62 = vld [vmem:[%s2780_s12 + $0x78] sm:$0xff] }
 0x1df   : > { %1904 = vst [vmem:[%s1862_s20 + $0xf0] sm:$0xff] %v1903_v60  ;;  %1906 = vst [vmem:[%s1862_s20 + $0xf8] sm:$0xff] %v1905_v62 }
 0x1e0 PF: > { %p10_p10 = scmp.ge.s32.totalorder %s2260_s16, 5   ;;  %s2860_s12 = smov %s2216_s13 }
 0x1e1   : > { %s2861_s13 = smov %s2271_s19  ;;  %s2862_s14 = smov %s2260_s16 }
 0x1e2   :  { %12 = sbr.rel (!%p10_p10) target bundleno = 2 (0x2), region = 113 }

// kernel: _normal_vs_infected.15
= control target key start
LH: loop header
LB: loop body
LE: loop exit
PB: predicated region body
PF: predicated region fallthrough
CT: control target
= control target key end

     0   :  { %vm120_vm0 = vcmask 920576   ;;  %s369_s0 = inlined_call_operand.vmem [shape: bf16[9,16,625], index: 0, kind: input, shape index: {}]   ;;  %s370_s1 = inlined_call_operand.vmem [shape: bf16[16,625], index: 1, kind: output, shape index: {}]  }
   0x1   :  { %v8_v0 = vld [vmem:[%s369_s0] sm:$0xff]  ;;  %v129_v1 = vld [vmem:[%s369_s0 + $0x28] sm:$0xff]  ;;  %v135_v2 = vld [vmem:[%s369_s0 + $0x50] sm:$0xff] }
   0x2   :  { %v21_v3 = vmax.bf16 %v129_v1, %v8_v0  ;;  %v141_v4 = vld [vmem:[%s369_s0 + $0x78] sm:$0xff]  ;;  %v9_v6 = vld [vmem:[%s369_s0 + $0x8] sm:$0xff]  ;;  %v130_v7 = vld [vmem:[%s369_s0 + $0x30] sm:$0xff] }
   0x3   :  { %v136_v8 = vld [vmem:[%s369_s0 + $0x58] sm:$0xff]  ;;  %v147_v9 = vld [vmem:[%s369_s0 + $0xa0] sm:$0xff]  ;;  %v22_v10 = vmax.bf16 %v130_v7, %v9_v6  ;;  %v153_v12 = vld [vmem:[%s369_s0 + $0xc8] sm:$0xff] }
   0x4   :  { %v34_v5 = vmax.bf16 %v135_v2, %v21_v3  ;;  %v142_v13 = vld [vmem:[%s369_s0 + $0x80] sm:$0xff]  ;;  %v10_v15 = vld [vmem:[%s369_s0 + $0x10] sm:$0xf]  ;;  %v131_v16 = vld [vmem:[%s369_s0 + $0x38] sm:$0xf] }
   0x5   :  { %v35_v14 = vmax.bf16 %v136_v8, %v22_v10  ;;  %v137_v17 = vld [vmem:[%s369_s0 + $0x60] sm:$0xf]  ;;  %v148_v19 = vld [vmem:[%s369_s0 + $0xa8] sm:$0xff]  ;;  %v23_v20 = vmax.bf16 %v131_v16, %v10_v15  ;;  %v159_v21 = vld [vmem:[%s369_s0 + $0xf0] sm:$0xff] }
   0x6   :  { %v47_v11 = vmax.bf16 %v141_v4, %v34_v5  ;;  %v154_v23 = vld [vmem:[%s369_s0 + $0xd0] sm:$0xff]  ;;  %v143_v24 = vld [vmem:[%s369_s0 + $0x88] sm:$0xf]  ;;  %v132_v28 = vld [vmem:[%s369_s0 + $0x3c] sm:$0xff] }
   0x7   :  { %v48_v22 = vmax.bf16 %v142_v13, %v35_v14  ;;  %v36_v26 = vmax.bf16 %v137_v17, %v23_v20  ;;  %v11_v27 = vld [vmem:[%s369_s0 + $0x14] sm:$0xff]  ;;  %v138_v29 = vld [vmem:[%s369_s0 + $0x64] sm:$0xff]  ;;  %v149_v33 = vld [vmem:[%s369_s0 + $0xb0] sm:$0xf] }
   0x8   :  { %v60_v18 = vmax.bf16 %v147_v9, %v47_v11  ;;  %v165_v30 = vld [vmem:[%s369_s0 + $0x118] sm:$0xff]  ;;  %v171_v31 = vld [vmem:[%s369_s0 + $0x140] sm:$0xff]  ;;  %v24_v34 = vmax.bf16 %v132_v28, %v11_v27  ;;  %v144_v39 = vld [vmem:[%s369_s0 + $0x8c] sm:$0xff] }
   0x9   :  { %v61_v32 = vmax.bf16 %v148_v19, %v48_v22  ;;  %v160_v36 = vld [vmem:[%s369_s0 + $0xf8] sm:$0xff]  ;;  %v49_v37 = vmax.bf16 %v143_v24, %v36_v26  ;;  %v133_v43 = vld [vmem:[%s369_s0 + $0x44] sm:$0xff]  ;;  %v139_v44 = vld [vmem:[%s369_s0 + $0x6c] sm:$0xff] }
   0xa   :  { %v73_v25 = vmax.bf16 %v153_v12, %v60_v18  ;;  %v155_v38 = vld [vmem:[%s369_s0 + $0xd8] sm:$0xf]  ;;  %v37_v41 = vmax.bf16 %v138_v29, %v24_v34  ;;  %v12_v42 = vld [vmem:[%s369_s0 + $0x1c] sm:$0xff]  ;;  %v172_v47 = vld [vmem:[%s369_s0 + $0x148] sm:$0xff] }
   0xb   :  { %v74_v40 = vmax.bf16 %v154_v23, %v61_v32  ;;  %v166_v46 = vld [vmem:[%s369_s0 + $0x120] sm:$0xff]  ;;  %v62_v48 = vmax.bf16 %v149_v33, %v49_v37  ;;  %v150_v49 = vld [vmem:[%s369_s0 + $0xb4] sm:$0xff]  ;;  %v25_v50 = vmax.bf16 %v133_v43, %v12_v42  ;;  %v134_v60 = vld [vmem:[%s369_s0 + $0x4c] sm:$0xf] }
   0xc   :  { %v86_v35 = vmax.bf16 %v159_v21, %v73_v25  ;;  %v161_v52 = vld [vmem:[%s369_s0 + $0x100] sm:$0xf]  ;;  %v50_v53 = vmax.bf16 %v144_v39, %v37_v41  ;;  %v145_v55 = vld [vmem:[%s369_s0 + $0x94] sm:$0xff]  ;;  %v13_v59 = vld [vmem:[%s369_s0 + $0x24] sm:$0xf] }
   0xd   :  { %v87_v51 = vmax.bf16 %v160_v36, %v74_v40  ;;  %v156_v54 = vld [vmem:[%s369_s0 + $0xdc] sm:$0xff]  ;;  %v75_v57 = vmax.bf16 %v155_v38, %v62_v48  ;;  %v38_v58 = vmax.bf16 %v139_v44, %v25_v50  ;;  %v140_v61 = vld [vmem:[%s369_s0 + $0x74] sm:$0xf]  ;;  %v167_v63 = vld [vmem:[%s369_s0 + $0x128] sm:$0xf]  ;;  %v26_v2 = vmax.bf16 %v134_v60, %v13_v59 }
   0xe   :  { %v99_v45 = vmax.bf16 %v165_v30, %v86_v35  ;;  %v63_v0 = vmax.bf16 %v150_v49, %v50_v53  ;;  %v151_v1 = vld [vmem:[%s369_s0 + $0xbc] sm:$0xff]  ;;  %v162_v4 = vld [vmem:[%s369_s0 + $0x104] sm:$0xff]  ;;  %v173_v8 = vld [vmem:[%s369_s0 + $0x150] sm:$0xf] }
   0xf   :  { %v100_v62 = vmax.bf16 %v166_v46, %v87_v51  ;;  %v88_v3 = vmax.bf16 %v161_v52, %v75_v57  ;;  %v51_v5 = vmax.bf16 %v145_v55, %v38_v58  ;;  %v146_v6 = vld [vmem:[%s369_s0 + $0x9c] sm:$0xf]  ;;  %v157_v10 = vld [vmem:[%s369_s0 + $0xe4] sm:$0xff]  ;;  %v39_v11 = vmax.bf16 %v140_v61, %v26_v2  ;;  %v168_v13 = vld [vmem:[%s369_s0 + $0x12c] sm:$0xff] }
  0x10   :  { %v112_v56 = vmax.bf16 %v171_v31, %v99_v45  ;;  %v76_v9 = vmax.bf16 %v156_v54, %v63_v0  ;;  %v152_v15 = vld [vmem:[%s369_s0 + $0xc4] sm:$0xf]  ;;  %v163_v17 = vld [vmem:[%s369_s0 + $0x10c] sm:$0xff]  ;;  %v174_v20 = vld [vmem:[%s369_s0 + $0x154] sm:$0xff] }
  0x11   :  { %v113_v7 = vmax.bf16 %v172_v47, %v100_v62  ;;  %v101_v12 = vmax.bf16 %v167_v63, %v88_v3  ;;  %v64_v14 = vmax.bf16 %v151_v1, %v51_v5  ;;  %v52_v18 = vmax.bf16 %v146_v6, %v39_v11  ;;  %v158_v22 = vld [vmem:[%s369_s0 + $0xec] sm:$0xf]  ;;  %v169_v24 = vld [vmem:[%s369_s0 + $0x134] sm:$0xff]  ;;  %v175_v29 = vld [vmem:[%s369_s0 + $0x15c] sm:$0xff] }
  0x12   :  { %118 = vst [vmem:[%s370_s1] sm:$0xff] %v112_v56  ;;  %v89_v16 = vmax.bf16 %v162_v4, %v76_v9  ;;  %v164_v27 = vld [vmem:[%s369_s0 + $0x114] sm:$0xf]  ;;  %v170_v32 = vld [vmem:[%s369_s0 + $0x13c] sm:$0xf]  ;;  %v176_v35 = vld [vmem:[%s369_s0 + $0x164] sm:$0xf] }
  0x13   :  { %119 = vst [vmem:[%s370_s1 + $0x8] sm:$0xff] %v113_v7  ;;  %v114_v19 = vmax.bf16 %v173_v8, %v101_v12  ;;  %v77_v21 = vmax.bf16 %v157_v10, %v64_v14  ;;  %v65_v25 = vmax.bf16 %v152_v15, %v52_v18 }
  0x14   :  { %v102_v23 = vmax.bf16 %v168_v13, %v89_v16 }
  0x15   :  { %121 = vst.msk [vmem:[%s370_s1 + $0x10] sm:$0xf] %vm120_vm0, %v114_v19  ;;  %v90_v26 = vmax.bf16 %v163_v17, %v77_v21  ;;  %v78_v30 = vmax.bf16 %v158_v22, %v65_v25 }
  0x16   :  { %v115_v28 = vmax.bf16 %v174_v20, %v102_v23 }
  0x17   :  { %v103_v31 = vmax.bf16 %v169_v24, %v90_v26  ;;  %v91_v33 = vmax.bf16 %v164_v27, %v78_v30 }
  0x18   :  { %122 = vst [vmem:[%s370_s1 + $0x14] sm:$0xff] %v115_v28 }
  0x19   :  { %v116_v34 = vmax.bf16 %v175_v29, %v103_v31  ;;  %v104_v36 = vmax.bf16 %v170_v32, %v91_v33 }
  0x1b   :  { %123 = vst [vmem:[%s370_s1 + $0x1c] sm:$0xff] %v116_v34  ;;  %v117_v37 = vmax.bf16 %v176_v35, %v104_v36 }
  0x1d   :  { %124 = vst.msk [vmem:[%s370_s1 + $0x24] sm:$0xf] %vm120_vm0, %v117_v37 }

// kernel: _normal_vs_infected.16
= control target key start
LH: loop header
LB: loop body
LE: loop exit
PB: predicated region body
PF: predicated region fallthrough
CT: control target
= control target key end

     0   :  { %v780_v1 = vmov 0   ;;  %vm349_vm0 = vcmask 130048   ;;  %s1048_s1 = inlined_call_operand.vmem [shape: bf16[144,640], index: 1, kind: input, shape index: {}]   ;;  %s1049_s0 = inlined_call_operand.vmem [shape: bf16[32,144], index: 0, kind: input, shape index: {}]   ;;  %s1050_s2 = inlined_call_operand.vmem [shape: f32[32,1], index: 2, kind: input, shape index: {}]   ;;  %s1051_s3 = inlined_call_operand.vmem [shape: bf16[32,640], index: 3, kind: output, shape index: {}]  }
   0x1   :  { %v711_v0 = vld [vmem:[%s1048_s1 + $0x4] ss:$20 sps:$4 sm:$0xff]   ;;  %709 = vset.pattern.permute.xlu0 %v780_v1  ;;  %710 = vset.pattern.permute.xlu1 %v780_v1  ;;  %v713_v2 = vld [vmem:[%s1048_s1 + $0xc] ss:$20 sps:$4 sm:$0xff]   ;;  %v716_v4 = vld [vmem:[%s1048_s1 + $0x8] ss:$20 sps:$4 sm:$0xff]  }
   0x2   :  { %356 = vmatprep.subr.bf16.mxu0 %v711_v0  ;;  %v715_v3 = vld [vmem:[%s1048_s1] ss:$20 sps:$4 sm:$0xff]   ;;  %409 = vmatprep.subr.bf16.mxu1 %v713_v2  ;;  %v721_v7 = vld [vmem:[%s1048_s1 + $0x28] ss:$20 sps:$4 sm:$0xff]   ;;  %v722_v8 = vld [vmem:[%s1048_s1 + $0x30] ss:$20 sps:$4 sm:$0xff]  }
   0x3   :  { %v717_v5 = vld [vmem:[%s1048_s1 + $0x2c] ss:$20 sps:$4 sm:$0xff]   ;;  %357 = vmatpush1.bf16.msra.mxu0 %v715_v3  ;;  %410 = vmatpush1.bf16.msra.mxu1 %v716_v4  ;;  %v719_v6 = vld [vmem:[%s1048_s1 + $0x34] ss:$20 sps:$4 sm:$0xff]   ;;  %v725_v10 = vld [vmem:[%s1048_s1 + $0x5c] ss:$20 sps:$4 sm:$0xff]  }
   0x4   :  { %358 = vmatprep.subr.bf16.mxu0 %v717_v5  ;;  %411 = vmatprep.subr.bf16.mxu1 %v719_v6  ;;  %v723_v9 = vld [vmem:[%s1048_s1 + $0x54] ss:$20 sps:$4 sm:$0xff]   ;;  %v727_v11 = vld [vmem:[%s1048_s1 + $0x50] ss:$20 sps:$4 sm:$0xff]   ;;  %v728_v12 = vld [vmem:[%s1048_s1 + $0x58] ss:$20 sps:$4 sm:$0xff]  }
   0x5   :  { %v729_v13 = vld [vmem:[%s1048_s1 + $0x7c] ss:$20 sps:$4 sm:$0xff]   ;;  %v731_v14 = vld [vmem:[%s1048_s1 + $0x84] ss:$20 sps:$4 sm:$0xff]   ;;  %v734_v16 = vld [vmem:[%s1048_s1 + $0x80] ss:$20 sps:$4 sm:$0xff]  }
   0x6   :  { %v733_v15 = vld [vmem:[%s1048_s1 + $0x78] ss:$20 sps:$4 sm:$0xff]   ;;  %v739_v19 = vld [vmem:[%s1048_s1 + $0xa0] ss:$20 sps:$4 sm:$0xff]   ;;  %v740_v20 = vld [vmem:[%s1048_s1 + $0xa8] ss:$20 sps:$4 sm:$0xff]  }
   0x7   :  { %359 = vmatpush1.bf16.msra.mxu0 %v721_v7  ;;  %412 = vmatpush1.bf16.msra.mxu1 %v722_v8  ;;  %v735_v17 = vld [vmem:[%s1048_s1 + $0xa4] ss:$20 sps:$4 sm:$0xff]   ;;  %v737_v18 = vld [vmem:[%s1048_s1 + $0xac] ss:$20 sps:$4 sm:$0xff]   ;;  %v743_v22 = vld [vmem:[%s1048_s1 + $0xd4] ss:$20 sps:$4 sm:$0xff]  }
   0x8   :  { %360 = vmatprep.subr.bf16.mxu0 %v723_v9  ;;  %413 = vmatprep.subr.bf16.mxu1 %v725_v10  ;;  %v741_v21 = vld [vmem:[%s1048_s1 + $0xcc] ss:$20 sps:$4 sm:$0xff]   ;;  %v745_v23 = vld [vmem:[%s1048_s1 + $0xc8] ss:$20 sps:$4 sm:$0xff]   ;;  %v746_v24 = vld [vmem:[%s1048_s1 + $0xd0] ss:$20 sps:$4 sm:$0xff]  }
   0x9   :  { %v747_v25 = vld [vmem:[%s1048_s1 + $0xf4] ss:$20 sps:$4 sm:$0xff]   ;;  %v749_v26 = vld [vmem:[%s1048_s1 + $0xfc] ss:$20 sps:$4 sm:$0xff]   ;;  %v752_v28 = vld [vmem:[%s1048_s1 + $0xf8] ss:$20 sps:$4 sm:$0xff]  }
   0xa   :  { %v751_v27 = vld [vmem:[%s1048_s1 + $0xf0] ss:$20 sps:$4 sm:$0xff]   ;;  %v757_v32 = vld [vmem:[%s1048_s1 + $0x118] ss:$20 sps:$4 sm:$0xff]   ;;  %v758_v33 = vld [vmem:[%s1048_s1 + $0x120] ss:$20 sps:$4 sm:$0xff]  }
   0xb   :  { %361 = vmatpush1.bf16.msra.mxu0 %v727_v11  ;;  %414 = vmatpush1.bf16.msra.mxu1 %v728_v12  ;;  %v753_v29 = vld [vmem:[%s1048_s1 + $0x11c] ss:$20 sps:$4 sm:$0xff]   ;;  %v765_v30 = vld [vmem:[%s1049_s0 + $0x4] ss:$8 sps:$4 sm:$0xff]   ;;  %v763_v36 = vld [vmem:[%s1048_s1 + $0x140] ss:$20 sps:$4 sm:$0xff]  }
   0xc   :  { %362 = vmatprep.subr.bf16.mxu0 %v729_v13  ;;  %415 = vmatprep.subr.bf16.mxu1 %v731_v14  ;;  %v755_v31 = vld [vmem:[%s1048_s1 + $0x124] ss:$20 sps:$4 sm:$0xff]   ;;  %v761_v35 = vld [vmem:[%s1048_s1 + $0x14c] ss:$20 sps:$4 sm:$0xff]   ;;  %v764_v37 = vld [vmem:[%s1048_s1 + $0x148] ss:$20 sps:$4 sm:$0xff]  }
   0xd   :  { %660 = vmatprep.mubr.msk.bf16.mxu0 %vm349_vm0, %v765_v30  ;;  %662 = vmatprep.mubr.msk.bf16.mxu1 %vm349_vm0, %v765_v30  ;;  %v759_v34 = vld [vmem:[%s1048_s1 + $0x144] ss:$20 sps:$4 sm:$0xff]   ;;  %v919_v38 = vld [vmem:[%s1049_s0] ss:$8 sps:$4 sm:$0xff]   ;;  %v75_v41 = vld [vmem:[%s1050_s2 + $0x10] sm:$0xff] }
   0xe   :  { %v73_v39 = vld [vmem:[%s1050_s2] sm:$0xff]  ;;  %v774_v42 = vld [vmem:[%s1049_s0 + $0x14] ss:$8 sps:$4 sm:$0xff]   ;;  %89 = vperm.xlu1 %710, %v75_v41   ;;  %v769_v43 = vld [vmem:[%s1048_s1 + $0x38] ss:$20 sps:$4 sm:$0xff]  }
   0xf   :  { %363 = vmatpush1.bf16.msra.mxu0 %v733_v15  ;;  %416 = vmatpush1.bf16.msra.mxu1 %v734_v16  ;;  %v768_v40 = vld [vmem:[%s1048_s1 + $0x10] ss:$20 sps:$4 sm:$0xff]   ;;  %v74_v44 = vld [vmem:[%s1050_s2 + $0x8] sm:$0xff]  ;;  %v76_v45 = vld [vmem:[%s1050_s2 + $0x18] sm:$0xff] }
  0x10   :  { %364 = vmatprep.subr.bf16.mxu0 %v735_v17  ;;  %417 = vmatprep.subr.bf16.mxu1 %v737_v18  ;;  %v776_v46 = vld [vmem:[%s1049_s0 + $0x10] ss:$8 sps:$4 sm:$0xff]   ;;  %v770_v47 = vld [vmem:[%s1048_s1 + $0x60] ss:$20 sps:$4 sm:$0xff]   ;;  %v771_v48 = vld [vmem:[%s1048_s1 + $0x88] ss:$20 sps:$4 sm:$0xff]  }
  0x11   :  { %79 = vperm.xlu0 %709, %v73_v39   ;;  %v772_v49 = vld [vmem:[%s1048_s1 + $0xb0] ss:$20 sps:$4 sm:$0xff]   ;;  %v773_v50 = vld [vmem:[%s1048_s1 + $0xd8] ss:$20 sps:$4 sm:$0xff]   ;;  %v777_v51 = vld [vmem:[%s1048_s1 + $0x100] ss:$20 sps:$4 sm:$0xff]  }
  0x12   :  { %94 = vperm.xlu1 %710, %v76_v45   ;;  %v778_v52 = vld [vmem:[%s1048_s1 + $0x128] ss:$20 sps:$4 sm:$0xff]   ;;  %v779_v53 = vld [vmem:[%s1048_s1 + $0x150] ss:$20 sps:$4 sm:$0xff]  }
  0x13   :  { %365 = vmatpush1.bf16.msra.mxu0 %v739_v19  ;;  %418 = vmatpush1.bf16.msra.mxu1 %v740_v20 }
  0x14   :  { %366 = vmatprep.subr.bf16.mxu0 %v741_v21  ;;  %419 = vmatprep.subr.bf16.mxu1 %v743_v22 }
  0x15   :  { %84 = vperm.xlu0 %709, %v74_v44  }
  0x17   :  { %367 = vmatpush1.bf16.msra.mxu0 %v745_v23  ;;  %420 = vmatpush1.bf16.msra.mxu1 %v746_v24 }
  0x18   :  { %368 = vmatprep.subr.bf16.mxu0 %v747_v25  ;;  %421 = vmatprep.subr.bf16.mxu1 %v749_v26 }
  0x1b   :  { %369 = vmatpush1.bf16.msra.mxu0 %v751_v27  ;;  %422 = vmatpush1.bf16.msra.mxu1 %v752_v28 }
  0x1c   :  { %370 = vmatprep.subr.bf16.mxu0 %v753_v29  ;;  %423 = vmatprep.subr.bf16.mxu1 %v755_v31 }
  0x1f   :  { %371 = vmatpush1.bf16.msra.mxu0 %v757_v32  ;;  %424 = vmatpush1.bf16.msra.mxu1 %v758_v33 }
  0x20   :  { %372 = vmatprep.subr.bf16.mxu0 %v759_v34  ;;  %425 = vmatprep.subr.bf16.mxu1 %v761_v35 }
  0x23   :  { %373 = vmatpush1.bf16.msra.mxu0 %v763_v36  ;;  %426 = vmatpush1.bf16.msra.mxu1 %v764_v37 }
  0x24   :  { %462 = vmatprep.subr.bf16.mxu0 %v780_v1  ;;  %690 = vmatprep.subr.bf16.mxu1 %v780_v1 }
  0x26   :  { %389 = vmatmul.mubr.bf16.vlgmr.msra.gmra.mrb[0].mxu0 %v919_v38  ;;  %442 = vmatmul.mubr.bf16.vlgmr.msra.gmra.mrb[0].mxu1 %v919_v38 }
  0x27   :  { %463 = vmatpush1.bf16.msra.mxu0 %v768_v40  ;;  %699 = vmatpush1.bf16.msra.mxu1 %v768_v40 }
  0x28   :  { %464 = vmatprep.subr.bf16.mxu0 %v780_v1  ;;  %691 = vmatprep.subr.bf16.mxu1 %v780_v1 }
  0x29   :  { %661 = vmatprep.mubr.msk.bf16.mxu0 %vm349_vm0, %v774_v42  ;;  %663 = vmatprep.mubr.msk.bf16.mxu1 %vm349_vm0, %v774_v42 }
  0x2b   :  { %465 = vmatpush1.bf16.msra.mxu0 %v769_v43  ;;  %700 = vmatpush1.bf16.msra.mxu1 %v769_v43 }
  0x2c   :  { %466 = vmatprep.subr.bf16.mxu0 %v780_v1  ;;  %692 = vmatprep.subr.bf16.mxu1 %v780_v1 }
  0x2e   :  { %399 = vmatmul.mubr.bf16.gmra.mrb[4].mxu0 %v776_v46  ;;  %452 = vmatmul.mubr.bf16.gmra.mrb[4].mxu1 %v776_v46 }
  0x2f   :  { %467 = vmatpush1.bf16.msra.mxu0 %v770_v47  ;;  %701 = vmatpush1.bf16.msra.mxu1 %v770_v47 }
  0x30   :  { %468 = vmatprep.subr.bf16.mxu0 %v780_v1  ;;  %693 = vmatprep.subr.bf16.mxu1 %v780_v1 }
  0x31   :  { %664 = vmatprep.mubr.msk.bf16.mxu0 %vm349_vm0, %v765_v30  ;;  %665 = vmatprep.mubr.msk.bf16.mxu1 %vm349_vm0, %v774_v42 }
  0x33   :  { %469 = vmatpush1.bf16.msra.mxu0 %v771_v48  ;;  %702 = vmatpush1.bf16.msra.mxu1 %v771_v48 }
  0x34   :  { %470 = vmatprep.subr.bf16.mxu0 %v780_v1  ;;  %694 = vmatprep.subr.bf16.mxu1 %v780_v1 }
  0x37   :  { %471 = vmatpush1.bf16.msra.mxu0 %v772_v49  ;;  %703 = vmatpush1.bf16.msra.mxu1 %v772_v49 }
  0x38   :  { %472 = vmatprep.subr.bf16.mxu0 %v780_v1  ;;  %695 = vmatprep.subr.bf16.mxu1 %v780_v1 }
  0x3b   :  { %473 = vmatpush1.bf16.msra.mxu0 %v773_v50  ;;  %704 = vmatpush1.bf16.msra.mxu1 %v773_v50 }
  0x3c   :  { %474 = vmatprep.subr.bf16.mxu0 %v780_v1  ;;  %696 = vmatprep.subr.bf16.mxu1 %v780_v1 }
  0x3f   :  { %475 = vmatpush1.bf16.msra.mxu0 %v777_v51  ;;  %705 = vmatpush1.bf16.msra.mxu1 %v777_v51 }
  0x40   :  { %476 = vmatprep.subr.bf16.mxu0 %v780_v1  ;;  %697 = vmatprep.subr.bf16.mxu1 %v780_v1 }
  0x43   :  { %477 = vmatpush1.bf16.msra.mxu0 %v778_v52  ;;  %706 = vmatpush1.bf16.msra.mxu1 %v778_v52 }
  0x44   :  { %478 = vmatprep.subr.bf16.mxu0 %v780_v1  ;;  %698 = vmatprep.subr.bf16.mxu1 %v780_v1 }
  0x47   :  { %479 = vmatpush1.bf16.msra.mxu0 %v779_v53  ;;  %707 = vmatpush1.bf16.msra.mxu1 %v779_v53 }
  0x4a   :  { %495 = vmatmul.mubr.bf16.vlgmr.msra.gmra.mrb[8].mxu0 %v919_v38  ;;  %503 = vmatmul.mubr.bf16.vlgmr.msra.gmra.mrb[8].mxu1 %v776_v46 }
  0x8d   :  { %v995_v56 = vpop.permute.xlu1 %89 }
  0x90   :  { %v991_v54 = vpop.permute.xlu0 %79 }
  0x91   :  { %v95_v19 = vpop.permute.xlu1 %94 }
  0x94   :  { %v993_v55 = vpop.permute.xlu0 %84 }
  0xf9   :  { %v390_v57 = vpop.f32.mrb[0].mxu0  ;;  %v443_v58 = vpop.f32.mrb[0].mxu1 }
  0xfa   :  { %v391_v59 = vadd.f32 %v390_v57, %v991_v54  ;;  %v444_v60 = vadd.f32 %v443_v58, %v991_v54  ;;  %v392_v61 = vpop.f32.mrb[1].mxu0  ;;  %v445_v62 = vpop.f32.mrb[1].mxu1 }
  0xfb   :  { %v393_v63 = vadd.f32 %v392_v61, %v991_v54  ;;  %v446_v0 = vadd.f32 %v445_v62, %v991_v54  ;;  %v394_v1 = vpop.f32.mrb[2].mxu0  ;;  %v447_v2 = vpop.f32.mrb[2].mxu1 }
  0xfc   :  { %v511_v3 = vmax.f32 %v391_v59, 0.0  ;;  %v513_v4 = vmax.f32 %v444_v60, 0.0  ;;  %v395_v5 = vadd.f32 %v394_v1, %v993_v55  ;;  %v448_v6 = vadd.f32 %v447_v2, %v993_v55  ;;  %v396_v7 = vpop.f32.mrb[3].mxu0  ;;  %v449_v8 = vpop.f32.mrb[3].mxu1 }
  0xfd   :  { %v512_v9 = vmax.f32 %v393_v63, 0.0  ;;  %v514_v10 = vmax.f32 %v446_v0, 0.0  ;;  %v397_v11 = vadd.f32 %v396_v7, %v993_v55  ;;  %v450_v12 = vadd.f32 %v449_v8, %v993_v55 }
  0xfe   :  { %v516_v13 = vmax.f32 %v395_v5, 0.0  ;;  %v518_v14 = vmax.f32 %v448_v6, 0.0 }
  0xff   :  { %v678_v15 = vpack.c.bf16 %v512_v9, %v511_v3  ;;  %v679_v16 = vpack.c.bf16 %v514_v10, %v513_v4  ;;  %v517_v17 = vmax.f32 %v397_v11, 0.0  ;;  %v519_v18 = vmax.f32 %v450_v12, 0.0 }
 0x101   :  { %595 = vst [vmem:[%s1051_s3] sm:$0xff] %v678_v15  ;;  %596 = vst [vmem:[%s1051_s3 + $0x8] sm:$0xff] %v679_v16  ;;  %v681_v20 = vpack.c.bf16 %v517_v17, %v516_v13  ;;  %v682_v21 = vpack.c.bf16 %v519_v18, %v518_v14  ;;  %v400_v22 = vpop.f32.mrb[4].mxu0  ;;  %v453_v23 = vpop.f32.mrb[4].mxu1 }
 0x102   :  { %v401_v24 = vadd.f32 %v400_v22, %v995_v56  ;;  %v454_v25 = vadd.f32 %v453_v23, %v995_v56  ;;  %v402_v26 = vpop.f32.mrb[5].mxu0  ;;  %v455_v27 = vpop.f32.mrb[5].mxu1 }
 0x103   :  { %598 = vst [vmem:[%s1051_s3 + $0x14] sm:$0xff] %v681_v20  ;;  %599 = vst [vmem:[%s1051_s3 + $0x1c] sm:$0xff] %v682_v21  ;;  %v403_v28 = vadd.f32 %v402_v26, %v995_v56  ;;  %v456_v29 = vadd.f32 %v455_v27, %v995_v56  ;;  %v404_v30 = vpop.f32.mrb[6].mxu0  ;;  %v457_v31 = vpop.f32.mrb[6].mxu1 }
 0x104   :  { %v521_v32 = vmax.f32 %v401_v24, 0.0  ;;  %v523_v33 = vmax.f32 %v454_v25, 0.0  ;;  %v405_v34 = vadd.f32 %v404_v30, %v95_v19  ;;  %v406_v35 = vpop.f32.mrb[7].mxu0  ;;  %v458_v36 = vadd.f32 %v457_v31, %v95_v19  ;;  %v459_v37 = vpop.f32.mrb[7].mxu1 }
 0x105   :  { %v522_v38 = vmax.f32 %v403_v28, 0.0  ;;  %v524_v39 = vmax.f32 %v456_v29, 0.0  ;;  %v407_v40 = vadd.f32 %v406_v35, %v95_v19  ;;  %v460_v41 = vadd.f32 %v459_v37, %v95_v19 }
 0x106   :  { %v526_v42 = vmax.f32 %v405_v34, 0.0  ;;  %v528_v43 = vmax.f32 %v458_v36, 0.0 }
 0x107   :  { %v684_v44 = vpack.c.bf16 %v522_v38, %v521_v32  ;;  %v685_v45 = vpack.c.bf16 %v524_v39, %v523_v33  ;;  %v527_v46 = vmax.f32 %v407_v40, 0.0  ;;  %v529_v47 = vmax.f32 %v460_v41, 0.0 }
 0x109   :  { %601 = vst [vmem:[%s1051_s3 + $0x28] sm:$0xff] %v684_v44  ;;  %602 = vst [vmem:[%s1051_s3 + $0x30] sm:$0xff] %v685_v45  ;;  %v687_v48 = vpack.c.bf16 %v527_v46, %v526_v42  ;;  %v688_v49 = vpack.c.bf16 %v529_v47, %v528_v43 }
 0x10b   :  { %604 = vst [vmem:[%s1051_s3 + $0x3c] sm:$0xff] %v687_v48  ;;  %605 = vst [vmem:[%s1051_s3 + $0x44] sm:$0xff] %v688_v49 }
 0x11d   :  { %v496_v50 = vpop.f32.mrb[8].mxu0  ;;  %v504_v51 = vpop.f32.mrb[8].mxu1 }
 0x11e   :  { %v497_v52 = vadd.f32 %v496_v50, %v991_v54  ;;  %v505_v53 = vadd.f32 %v504_v51, %v995_v56  ;;  %v498_v57 = vpop.f32.mrb[9].mxu0  ;;  %v506_v58 = vpop.f32.mrb[9].mxu1 }
 0x11f   :  { %v499_v59 = vpop.f32.mrb[10].mxu0  ;;  %v507_v60 = vpop.f32.mrb[10].mxu1 }
 0x120   :  { %v515_v61 = vmax.f32 %v497_v52, 0.0  ;;  %v525_v62 = vmax.f32 %v505_v53, 0.0  ;;  %v500_v63 = vadd.f32 %v499_v59, %v993_v55  ;;  %v508_v0 = vadd.f32 %v507_v60, %v95_v19  ;;  %v501_v1 = vpop.f32.mrb[11].mxu0  ;;  %v509_v2 = vpop.f32.mrb[11].mxu1 }
 0x122   :  { %v680_v3 = vpack.c.bf16 %v515_v61, %v515_v61  ;;  %v686_v4 = vpack.c.bf16 %v525_v62, %v525_v62  ;;  %v520_v5 = vmax.f32 %v500_v63, 0.0  ;;  %v530_v6 = vmax.f32 %v508_v0, 0.0 }
 0x124   :  { %597 = vst [vmem:[%s1051_s3 + $0x10] sm:$0xf] %v680_v3  ;;  %603 = vst [vmem:[%s1051_s3 + $0x38] sm:$0xf] %v686_v4  ;;  %v683_v54 = vpack.c.bf16 %v520_v5, %v520_v5  ;;  %v689_v56 = vpack.c.bf16 %v530_v6, %v530_v6 }
 0x126   :  { %600 = vst [vmem:[%s1051_s3 + $0x24] sm:$0xf] %v683_v54  ;;  %606 = vst [vmem:[%s1051_s3 + $0x4c] sm:$0xf] %v689_v56 }

// kernel: _normal_vs_infected.17
= control target key start
LH: loop header
LB: loop body
LE: loop exit
PB: predicated region body
PF: predicated region fallthrough
CT: control target
= control target key end

     0   :  { %v1405_v1 = vmov 0   ;;  %vm653_vm0 = vcmask 261120   ;;  %s1827_s1 = inlined_call_operand.vmem [shape: bf16[288,640], index: 1, kind: input, shape index: {}]   ;;  %s1828_s0 = inlined_call_operand.vmem [shape: bf16[32,288], index: 0, kind: input, shape index: {}]   ;;  %s1829_s2 = inlined_call_operand.vmem [shape: f32[32,1], index: 2, kind: input, shape index: {}]   ;;  %s1830_s3 = inlined_call_operand.vmem [shape: bf16[32,640], index: 3, kind: output, shape index: {}]  }
   0x1   :  { %v1271_v0 = vld [vmem:[%s1827_s1 + $0x4] ss:$20 sps:$4 sm:$0xff]   ;;  %745 = vmatprep.mubr.bf16.mxu1 %v1405_v1  ;;  %1269 = vset.pattern.permute.xlu0 %v1405_v1  ;;  %v1275_v3 = vld [vmem:[%s1827_s1] ss:$20 sps:$4 sm:$0xff]   ;;  %v1281_v7 = vld [vmem:[%s1827_s1 + $0x28] ss:$20 sps:$4 sm:$0xff]  }
   0x2   :  { %v1273_v2 = vld [vmem:[%s1827_s1 + $0x284] ss:$20 sps:$4 sm:$0xff]   ;;  %1270 = vset.pattern.permute.xlu1 %v1405_v1  ;;  %660 = vmatprep.subr.bf16.mxu0 %v1271_v0  ;;  %v1276_v4 = vld [vmem:[%s1827_s1 + $0x280] ss:$20 sps:$4 sm:$0xff]   ;;  %v1282_v8 = vld [vmem:[%s1827_s1 + $0x2a8] ss:$20 sps:$4 sm:$0xff]  }
   0x3   :  { %713 = vmatprep.subr.bf16.mxu1 %v1273_v2  ;;  %v1277_v5 = vld [vmem:[%s1827_s1 + $0x2c] ss:$20 sps:$4 sm:$0xff]   ;;  %661 = vmatpush1.bf16.msra.mxu0 %v1275_v3  ;;  %v1283_v9 = vld [vmem:[%s1827_s1 + $0x54] ss:$20 sps:$4 sm:$0xff]   ;;  %v1288_v12 = vld [vmem:[%s1827_s1 + $0x50] ss:$20 sps:$4 sm:$0xff]  }
   0x4   :  { %714 = vmatpush1.bf16.msra.mxu1 %v1276_v4  ;;  %v1279_v6 = vld [vmem:[%s1827_s1 + $0x2ac] ss:$20 sps:$4 sm:$0xff]   ;;  %662 = vmatprep.subr.bf16.mxu0 %v1277_v5  ;;  %v1285_v10 = vld [vmem:[%s1827_s1 + $0x8] ss:$20 sps:$4 sm:$0xff]   ;;  %v1292_v15 = vld [vmem:[%s1827_s1 + $0x30] ss:$20 sps:$4 sm:$0xff]  }
   0x5   :  { %715 = vmatprep.subr.bf16.mxu1 %v1279_v6  ;;  %v1287_v11 = vld [vmem:[%s1827_s1 + $0xc] ss:$20 sps:$4 sm:$0xff]   ;;  %v1468_v13 = vld [vmem:[%s1828_s0 + $0x8] ss:$12 sps:$4 sm:$0xff]   ;;  %v1290_v14 = vld [vmem:[%s1827_s1 + $0x7c] ss:$20 sps:$4 sm:$0xff]  }
   0x6   :  { %v1294_v16 = vld [vmem:[%s1827_s1 + $0x34] ss:$20 sps:$4 sm:$0xff]   ;;  %v1295_v17 = vld [vmem:[%s1827_s1 + $0x78] ss:$20 sps:$4 sm:$0xff]   ;;  %v1300_v19 = vld [vmem:[%s1827_s1 + $0x5c] ss:$20 sps:$4 sm:$0xff]  }
   0x7   :  { %663 = vmatpush1.bf16.msra.mxu0 %v1281_v7  ;;  %v1296_v18 = vld [vmem:[%s1827_s1 + $0xa4] ss:$20 sps:$4 sm:$0xff]   ;;  %v1301_v21 = vld [vmem:[%s1827_s1 + $0xa0] ss:$20 sps:$4 sm:$0xff]   ;;  %v1307_v25 = vld [vmem:[%s1827_s1 + $0xc8] ss:$20 sps:$4 sm:$0xff]  }
   0x8   :  { %716 = vmatpush1.bf16.msra.mxu1 %v1282_v8  ;;  %664 = vmatprep.subr.bf16.mxu0 %v1283_v9  ;;  %v1298_v20 = vld [vmem:[%s1827_s1 + $0x58] ss:$20 sps:$4 sm:$0xff]   ;;  %v1304_v24 = vld [vmem:[%s1827_s1 + $0x80] ss:$20 sps:$4 sm:$0xff]   ;;  %v1310_v28 = vld [vmem:[%s1827_s1 + $0xa8] ss:$20 sps:$4 sm:$0xff]  }
   0x9   :  { %766 = vmatprep.subr.bf16.mxu1 %v1287_v11  ;;  %v1302_v22 = vld [vmem:[%s1827_s1 + $0xcc] ss:$20 sps:$4 sm:$0xff]   ;;  %v1306_v23 = vld [vmem:[%s1827_s1 + $0x84] ss:$20 sps:$4 sm:$0xff]   ;;  %v1308_v26 = vld [vmem:[%s1827_s1 + $0xf4] ss:$20 sps:$4 sm:$0xff]  }
   0xa   :  { %v1312_v27 = vld [vmem:[%s1827_s1 + $0xac] ss:$20 sps:$4 sm:$0xff]   ;;  %v1313_v29 = vld [vmem:[%s1827_s1 + $0xf0] ss:$20 sps:$4 sm:$0xff]   ;;  %v1318_v31 = vld [vmem:[%s1827_s1 + $0xd4] ss:$20 sps:$4 sm:$0xff]  }
   0xb   :  { %1166 = vmatmul.mubr.msk.bf16.vlgmr.msra.gmra.mrb[0].mxu1 %vm653_vm0, %v1468_v13  ;;  %665 = vmatpush1.bf16.msra.mxu0 %v1288_v12  ;;  %v1314_v30 = vld [vmem:[%s1827_s1 + $0x11c] ss:$20 sps:$4 sm:$0xff]   ;;  %v1319_v33 = vld [vmem:[%s1827_s1 + $0x118] ss:$20 sps:$4 sm:$0xff]   ;;  %v1325_v37 = vld [vmem:[%s1827_s1 + $0x140] ss:$20 sps:$4 sm:$0xff]  }
   0xc   :  { %767 = vmatpush1.bf16.msra.mxu1 %v1285_v10  ;;  %666 = vmatprep.subr.bf16.mxu0 %v1290_v14  ;;  %v1316_v32 = vld [vmem:[%s1827_s1 + $0xd0] ss:$20 sps:$4 sm:$0xff]   ;;  %v1322_v36 = vld [vmem:[%s1827_s1 + $0xf8] ss:$20 sps:$4 sm:$0xff]   ;;  %v1328_v40 = vld [vmem:[%s1827_s1 + $0x120] ss:$20 sps:$4 sm:$0xff]  }
   0xd   :  { %768 = vmatprep.subr.bf16.mxu1 %v1294_v16  ;;  %755 = vmatprep.mubr.bf16.mxu1 %v1405_v1  ;;  %v1320_v34 = vld [vmem:[%s1827_s1 + $0x144] ss:$20 sps:$4 sm:$0xff]   ;;  %v1324_v35 = vld [vmem:[%s1827_s1 + $0xfc] ss:$20 sps:$4 sm:$0xff]   ;;  %v1326_v38 = vld [vmem:[%s1827_s1 + $0x16c] ss:$20 sps:$4 sm:$0xff]  }
   0xe   :  { %v1330_v39 = vld [vmem:[%s1827_s1 + $0x124] ss:$20 sps:$4 sm:$0xff]   ;;  %v1331_v41 = vld [vmem:[%s1827_s1 + $0x168] ss:$20 sps:$4 sm:$0xff]   ;;  %v1336_v43 = vld [vmem:[%s1827_s1 + $0x14c] ss:$20 sps:$4 sm:$0xff]  }
   0xf   :  { %667 = vmatpush1.bf16.msra.mxu0 %v1295_v17  ;;  %v1332_v42 = vld [vmem:[%s1827_s1 + $0x194] ss:$20 sps:$4 sm:$0xff]   ;;  %v1337_v45 = vld [vmem:[%s1827_s1 + $0x190] ss:$20 sps:$4 sm:$0xff]   ;;  %v1343_v49 = vld [vmem:[%s1827_s1 + $0x1b8] ss:$20 sps:$4 sm:$0xff]  }
  0x10   :  { %769 = vmatpush1.bf16.msra.mxu1 %v1292_v15  ;;  %668 = vmatprep.subr.bf16.mxu0 %v1296_v18  ;;  %v1334_v44 = vld [vmem:[%s1827_s1 + $0x148] ss:$20 sps:$4 sm:$0xff]   ;;  %v1340_v48 = vld [vmem:[%s1827_s1 + $0x170] ss:$20 sps:$4 sm:$0xff]   ;;  %v1595_v53 = vld [vmem:[%s1828_s0 + $0x20] ss:$12 sps:$4 sm:$0xff]  }
  0x11   :  { %770 = vmatprep.subr.bf16.mxu1 %v1300_v19  ;;  %v1338_v46 = vld [vmem:[%s1827_s1 + $0x1bc] ss:$20 sps:$4 sm:$0xff]   ;;  %v1342_v47 = vld [vmem:[%s1827_s1 + $0x174] ss:$20 sps:$4 sm:$0xff]   ;;  %v1344_v50 = vld [vmem:[%s1827_s1 + $0x1e4] ss:$20 sps:$4 sm:$0xff]  }
  0x12   :  { %v1348_v51 = vld [vmem:[%s1827_s1 + $0x19c] ss:$20 sps:$4 sm:$0xff]   ;;  %v1346_v54 = vld [vmem:[%s1827_s1 + $0x198] ss:$20 sps:$4 sm:$0xff]   ;;  %v1349_v55 = vld [vmem:[%s1827_s1 + $0x1e0] ss:$20 sps:$4 sm:$0xff]  }
  0x13   :  { %669 = vmatpush1.bf16.msra.mxu0 %v1301_v21  ;;  %v1590_v52 = vld [vmem:[%s1828_s0 + $0x4] ss:$12 sps:$4 sm:$0xff]   ;;  %1167 = vmatmul.mubr.msk.bf16.gmra.mrb[4].mxu1 %vm653_vm0, %v1595_v53  ;;  %v1350_v56 = vld [vmem:[%s1827_s1 + $0x20c] ss:$20 sps:$4 sm:$0xff]   ;;  %v1355_v59 = vld [vmem:[%s1827_s1 + $0x208] ss:$20 sps:$4 sm:$0xff]  }
  0x14   :  { %771 = vmatpush1.bf16.msra.mxu1 %v1298_v20  ;;  %670 = vmatprep.subr.bf16.mxu0 %v1302_v22  ;;  %v1354_v57 = vld [vmem:[%s1827_s1 + $0x1c4] ss:$20 sps:$4 sm:$0xff]   ;;  %v1352_v58 = vld [vmem:[%s1827_s1 + $0x1c0] ss:$20 sps:$4 sm:$0xff]   ;;  %v1358_v62 = vld [vmem:[%s1827_s1 + $0x1e8] ss:$20 sps:$4 sm:$0xff]  }
  0x15   :  { %772 = vmatprep.subr.bf16.mxu1 %v1306_v23  ;;  %692 = vmatprep.mubr.bf16.mxu0 %v1590_v52  ;;  %v1356_v60 = vld [vmem:[%s1827_s1 + $0x234] ss:$20 sps:$4 sm:$0xff]   ;;  %v1360_v61 = vld [vmem:[%s1827_s1 + $0x1ec] ss:$20 sps:$4 sm:$0xff]   ;;  %v1361_v63 = vld [vmem:[%s1827_s1 + $0x230] ss:$20 sps:$4 sm:$0xff]  }
  0x16   :  { %798 = vmatprep.mubr.bf16.mxu1 %v1590_v52  ;;  %v1362_v0 = vld [vmem:[%s1827_s1 + $0x25c] ss:$20 sps:$4 sm:$0xff]   ;;  %v1366_v2 = vld [vmem:[%s1827_s1 + $0x214] ss:$20 sps:$4 sm:$0xff]   ;;  %v1367_v4 = vld [vmem:[%s1827_s1 + $0x258] ss:$20 sps:$4 sm:$0xff]  }
  0x17   :  { %671 = vmatpush1.bf16.msra.mxu0 %v1307_v25  ;;  %v1364_v3 = vld [vmem:[%s1827_s1 + $0x210] ss:$20 sps:$4 sm:$0xff]   ;;  %v1652_v7 = vld [vmem:[%s1828_s0] ss:$12 sps:$4 sm:$0xff]   ;;  %v1672_v14 = vld [vmem:[%s1828_s0 + $0x1c] ss:$12 sps:$4 sm:$0xff]  }
  0x18   :  { %773 = vmatpush1.bf16.msra.mxu1 %v1304_v24  ;;  %672 = vmatprep.subr.bf16.mxu0 %v1308_v26  ;;  %v1374_v5 = vld [vmem:[%s1827_s1 + $0x23c] ss:$20 sps:$4 sm:$0xff]   ;;  %v1372_v8 = vld [vmem:[%s1827_s1 + $0x238] ss:$20 sps:$4 sm:$0xff]   ;;  %v1377_v12 = vld [vmem:[%s1827_s1 + $0x260] ss:$20 sps:$4 sm:$0xff]  }
  0x19   :  { %774 = vmatprep.subr.bf16.mxu1 %v1312_v27  ;;  %v1375_v6 = vld [vmem:[%s1827_s1 + $0x150] ss:$20 sps:$4 sm:$0xff]   ;;  %v1380_v11 = vld [vmem:[%s1827_s1 + $0x178] ss:$20 sps:$4 sm:$0xff]   ;;  %v1385_v16 = vld [vmem:[%s1827_s1 + $0x1a0] ss:$20 sps:$4 sm:$0xff]  }
  0x1a   :  { %v1376_v9 = vld [vmem:[%s1827_s1 + $0x10] ss:$20 sps:$4 sm:$0xff]   ;;  %v1381_v15 = vld [vmem:[%s1827_s1 + $0x38] ss:$20 sps:$4 sm:$0xff]   ;;  %v1386_v21 = vld [vmem:[%s1827_s1 + $0x60] ss:$20 sps:$4 sm:$0xff]  }
  0x1b   :  { %673 = vmatpush1.bf16.msra.mxu0 %v1313_v29  ;;  %v1379_v10 = vld [vmem:[%s1827_s1 + $0x264] ss:$20 sps:$4 sm:$0xff]   ;;  %v1389_v17 = vld [vmem:[%s1827_s1 + $0x28c] ss:$20 sps:$4 sm:$0xff]   ;;  %v133_v20 = vld [vmem:[%s1829_s2 + $0x10] sm:$0xff] }
  0x1c   :  { %775 = vmatpush1.bf16.msra.mxu1 %v1310_v28  ;;  %674 = vmatprep.subr.bf16.mxu0 %v1314_v30  ;;  %v131_v18 = vld [vmem:[%s1829_s2] sm:$0xff]  ;;  %v1387_v22 = vld [vmem:[%s1827_s1 + $0x288] ss:$20 sps:$4 sm:$0xff]  }
  0x1d   :  { %776 = vmatprep.subr.bf16.mxu1 %v1318_v31  ;;  %v1384_v19 = vld [vmem:[%s1828_s0 + $0x18] ss:$12 sps:$4 sm:$0xff]   ;;  %137 = vperm.xlu0 %1269, %v131_v18   ;;  %v1390_v23 = vld [vmem:[%s1827_s1 + $0x1c8] ss:$20 sps:$4 sm:$0xff]  }
  0x1e   :  { %v1396_v24 = vld [vmem:[%s1827_s1 + $0x2b4] ss:$20 sps:$4 sm:$0xff]   ;;  %147 = vperm.xlu1 %1270, %v133_v20   ;;  %v1394_v26 = vld [vmem:[%s1827_s1 + $0x2b0] ss:$20 sps:$4 sm:$0xff]   ;;  %v134_v28 = vld [vmem:[%s1829_s2 + $0x18] sm:$0xff] }
  0x1f   :  { %675 = vmatpush1.bf16.msra.mxu0 %v1319_v33  ;;  %v1391_v25 = vld [vmem:[%s1827_s1 + $0x88] ss:$20 sps:$4 sm:$0xff]   ;;  %v1392_v29 = vld [vmem:[%s1827_s1 + $0x1f0] ss:$20 sps:$4 sm:$0xff]   ;;  %v1398_v33 = vld [vmem:[%s1827_s1 + $0xd8] ss:$20 sps:$4 sm:$0xff]  }
  0x20   :  { %777 = vmatpush1.bf16.msra.mxu1 %v1316_v32  ;;  %676 = vmatprep.subr.bf16.mxu0 %v1320_v34  ;;  %v132_v27 = vld [vmem:[%s1829_s2 + $0x8] sm:$0xff]  ;;  %v1401_v30 = vld [vmem:[%s1827_s1 + $0x290] ss:$20 sps:$4 sm:$0xff]   ;;  %v1399_v34 = vld [vmem:[%s1827_s1 + $0x240] ss:$20 sps:$4 sm:$0xff]  }
  0x21   :  { %778 = vmatprep.subr.bf16.mxu1 %v1324_v35  ;;  %142 = vperm.xlu0 %1269, %v132_v27   ;;  %v1393_v31 = vld [vmem:[%s1827_s1 + $0xb0] ss:$20 sps:$4 sm:$0xff]   ;;  %v1397_v32 = vld [vmem:[%s1827_s1 + $0x218] ss:$20 sps:$4 sm:$0xff]   ;;  %v1400_v35 = vld [vmem:[%s1827_s1 + $0x100] ss:$20 sps:$4 sm:$0xff]  }
  0x22   :  { %152 = vperm.xlu1 %1270, %v134_v28  }
  0x23   :  { %677 = vmatpush1.bf16.msra.mxu0 %v1325_v37  ;;  %v1404_v37 = vld [vmem:[%s1827_s1 + $0x2b8] ss:$20 sps:$4 sm:$0xff]  }
  0x24   :  { %779 = vmatpush1.bf16.msra.mxu1 %v1322_v36  ;;  %678 = vmatprep.subr.bf16.mxu0 %v1326_v38  ;;  %v1402_v36 = vld [vmem:[%s1827_s1 + $0x268] ss:$20 sps:$4 sm:$0xff]  }
  0x25   :  { %780 = vmatprep.subr.bf16.mxu1 %v1330_v39  ;;  %v1403_v38 = vld [vmem:[%s1827_s1 + $0x128] ss:$20 sps:$4 sm:$0xff]  }
  0x27   :  { %679 = vmatpush1.bf16.msra.mxu0 %v1331_v41 }
  0x28   :  { %781 = vmatpush1.bf16.msra.mxu1 %v1328_v40  ;;  %680 = vmatprep.subr.bf16.mxu0 %v1332_v42 }
  0x29   :  { %782 = vmatprep.subr.bf16.mxu1 %v1336_v43 }
  0x2b   :  { %681 = vmatpush1.bf16.msra.mxu0 %v1337_v45 }
  0x2c   :  { %783 = vmatpush1.bf16.msra.mxu1 %v1334_v44  ;;  %682 = vmatprep.subr.bf16.mxu0 %v1338_v46 }
  0x2d   :  { %784 = vmatprep.subr.bf16.mxu1 %v1342_v47 }
  0x2f   :  { %683 = vmatpush1.bf16.msra.mxu0 %v1343_v49 }
  0x30   :  { %785 = vmatpush1.bf16.msra.mxu1 %v1340_v48  ;;  %684 = vmatprep.subr.bf16.mxu0 %v1344_v50 }
  0x31   :  { %786 = vmatprep.subr.bf16.mxu1 %v1348_v51 }
  0x33   :  { %685 = vmatpush1.bf16.msra.mxu0 %v1349_v55 }
  0x34   :  { %787 = vmatpush1.bf16.msra.mxu1 %v1346_v54  ;;  %686 = vmatprep.subr.bf16.mxu0 %v1350_v56 }
  0x35   :  { %788 = vmatprep.subr.bf16.mxu1 %v1354_v57 }
  0x37   :  { %687 = vmatpush1.bf16.msra.mxu0 %v1355_v59 }
  0x38   :  { %789 = vmatpush1.bf16.msra.mxu1 %v1352_v58  ;;  %688 = vmatprep.subr.bf16.mxu0 %v1356_v60 }
  0x39   :  { %790 = vmatprep.subr.bf16.mxu1 %v1360_v61 }
  0x3b   :  { %689 = vmatpush1.bf16.msra.mxu0 %v1361_v63 }
  0x3c   :  { %791 = vmatpush1.bf16.msra.mxu1 %v1358_v62  ;;  %690 = vmatprep.subr.bf16.mxu0 %v1362_v0 }
  0x3d   :  { %792 = vmatprep.subr.bf16.mxu1 %v1366_v2 }
  0x3f   :  { %691 = vmatpush1.bf16.msra.mxu0 %v1367_v4 }
  0x40   :  { %793 = vmatpush1.bf16.msra.mxu1 %v1364_v3  ;;  %1196 = vmatprep.subr.bf16.mxu0 %v1375_v6 }
  0x41   :  { %794 = vmatprep.subr.bf16.mxu1 %v1374_v5 }
  0x42   :  { %693 = vmatmul.mubr.bf16.vlgmr.msra.gmra.mrb[0].mxu0 %v1652_v7 }
  0x43   :  { %1197 = vmatpush3.bf16.msra.mxu0 %v1376_v9  ;;  %702 = vmatprep.mubr.bf16.mxu0 %v1672_v14 }
  0x44   :  { %795 = vmatpush1.bf16.msra.mxu1 %v1372_v8  ;;  %1198 = vmatprep.subr.bf16.mxu0 %v1380_v11 }
  0x45   :  { %796 = vmatprep.subr.bf16.mxu1 %v1379_v10 }
  0x47   :  { %1199 = vmatpush3.bf16.msra.mxu0 %v1381_v15 }
  0x48   :  { %797 = vmatpush1.bf16.msra.mxu1 %v1377_v12  ;;  %1200 = vmatprep.subr.bf16.mxu0 %v1385_v16 }
  0x49   :  { %819 = vmatprep.subr.bf16.mxu1 %v1389_v17 }
  0x4a   :  { %703 = vmatmul.mubr.bf16.gmra.mrb[4].mxu0 %v1384_v19 }
  0x4b   :  { %799 = vmatmul.mubr.bf16.vlgmr.msra.gmra.mrb[8].mxu1 %v1652_v7  ;;  %1201 = vmatpush3.bf16.msra.mxu0 %v1386_v21 }
  0x4c   :  { %820 = vmatpush1.bf16.msra.mxu1 %v1387_v22  ;;  %1202 = vmatprep.subr.bf16.mxu0 %v1390_v23 }
  0x4d   :  { %808 = vmatprep.mubr.bf16.mxu1 %v1672_v14  ;;  %821 = vmatprep.subr.bf16.mxu1 %v1396_v24 }
  0x4e   :  { %904 = vmatprep.mubr.bf16.mxu0 %v1590_v52 }
  0x4f   :  { %1203 = vmatpush3.bf16.msra.mxu0 %v1391_v25 }
  0x50   :  { %822 = vmatpush1.bf16.msra.mxu1 %v1394_v26  ;;  %1204 = vmatprep.subr.bf16.mxu0 %v1392_v29 }
  0x51   :  { %1228 = vmatprep.subr.bf16.mxu1 %v1401_v30 }
  0x53   :  { %809 = vmatmul.mubr.bf16.gmra.mrb[12].mxu1 %v1384_v19  ;;  %1205 = vmatpush3.bf16.msra.mxu0 %v1393_v31 }
  0x54   :  { %851 = vmatprep.mubr.bf16.mxu1 %v1405_v1  ;;  %1206 = vmatprep.subr.bf16.mxu0 %v1397_v32 }
  0x57   :  { %1207 = vmatpush3.bf16.msra.mxu0 %v1398_v33 }
  0x58   :  { %1208 = vmatprep.subr.bf16.mxu0 %v1399_v34 }
  0x5b   :  { %1168 = vmatmul.mubr.msk.bf16.vlgmr.msra.gmra.mrb[8].mxu1 %vm653_vm0, %v1468_v13  ;;  %1209 = vmatpush3.bf16.msra.mxu0 %v1400_v35 }
  0x5c   :  { %1229 = vmatpush3.bf16.msra.mxu1 %v1401_v30  ;;  %1210 = vmatprep.subr.bf16.mxu0 %v1402_v36 }
  0x5d   :  { %861 = vmatprep.mubr.bf16.mxu1 %v1405_v1  ;;  %1230 = vmatprep.subr.bf16.mxu1 %v1404_v37 }
  0x5f   :  { %1211 = vmatpush3.bf16.msra.mxu0 %v1403_v38 }
  0x60   :  { %1231 = vmatpush3.bf16.msra.mxu1 %v1404_v37 }
  0x62   :  { %905 = vmatmul.mubr.bf16.vlgmr.msra.gmra.mrb[8].mxu0 %v1652_v7 }
  0x63   :  { %1169 = vmatmul.mubr.msk.bf16.gmra.mrb[12].mxu1 %vm653_vm0, %v1595_v53  ;;  %912 = vmatprep.mubr.bf16.mxu0 %v1672_v14 }
  0x64   :  { %1232 = vmatprep.mubr.msk.bf16.mxu1 %vm653_vm0, %v1468_v13 }
  0x6a   :  { %913 = vmatmul.mubr.bf16.gmra.mrb[12].mxu0 %v1384_v19 }
  0x6b   :  { %1233 = vmatmul.mubr.msk.bf16.vlgmr.msra.gmra.mrb[16].mxu1 %vm653_vm0, %v1595_v53 }
  0x9c   :  { %v1763_v46 = vpop.permute.xlu0 %137 }
  0x9d   :  { %v1769_v52 = vpop.permute.xlu1 %147 }
  0xa0   :  { %v1765_v48 = vpop.permute.xlu0 %142 }
  0xa1   :  { %v1773_v3 = vpop.permute.xlu1 %152 }
  0xde   :  { %v747_v39 = vpop.f32.mrb[0].mxu1 }
  0xdf   :  { %v749_v40 = vpop.f32.mrb[1].mxu1 }
  0xe0   :  { %v751_v1 = vpop.f32.mrb[2].mxu1 }
  0xe1   :  { %v753_v41 = vpop.f32.mrb[3].mxu1 }
  0xe6   :  { %v757_v42 = vpop.f32.mrb[4].mxu1 }
  0xe7   :  { %v759_v43 = vpop.f32.mrb[5].mxu1 }
  0xe8   :  { %v761_v44 = vpop.f32.mrb[6].mxu1 }
  0xe9   :  { %v763_v45 = vpop.f32.mrb[7].mxu1 }
 0x115   :  { %v694_v47 = vpop.f32.mrb[0].mxu0 }
 0x116   :  { %v695_v49 = vadd.f32 %v694_v47, %v1763_v46  ;;  %v696_v13 = vpop.f32.mrb[1].mxu0 }
 0x117   :  { %v697_v50 = vadd.f32 %v696_v13, %v1763_v46  ;;  %v698_v51 = vpop.f32.mrb[2].mxu0 }
 0x118   :  { %v748_v53 = vadd.f32 %v747_v39, %v695_v49  ;;  %v699_v54 = vadd.f32 %v698_v51, %v1765_v48  ;;  %v700_v55 = vpop.f32.mrb[3].mxu0 }
 0x119   :  { %v750_v56 = vadd.f32 %v749_v40, %v697_v50  ;;  %v701_v57 = vadd.f32 %v700_v55, %v1765_v48 }
 0x11a   :  { %v970_v58 = vmax.f32 %v748_v53, 0.0  ;;  %v752_v59 = vadd.f32 %v751_v1, %v699_v54 }
 0x11b   :  { %v971_v60 = vmax.f32 %v750_v56, 0.0  ;;  %v754_v61 = vadd.f32 %v753_v41, %v701_v57 }
 0x11c   :  { %v975_v62 = vmax.f32 %v752_v59, 0.0 }
 0x11d   :  { %v1184_v63 = vpack.c.bf16 %v971_v60, %v970_v58  ;;  %v976_v0 = vmax.f32 %v754_v61, 0.0  ;;  %v704_v2 = vpop.f32.mrb[4].mxu0 }
 0x11e   :  { %v705_v4 = vadd.f32 %v704_v2, %v1769_v52  ;;  %v706_v5 = vpop.f32.mrb[5].mxu0 }
 0x11f   :  { %1054 = vst [vmem:[%s1830_s3] sm:$0xff] %v1184_v63  ;;  %v1187_v6 = vpack.c.bf16 %v976_v0, %v975_v62  ;;  %v707_v7 = vadd.f32 %v706_v5, %v1769_v52  ;;  %v708_v8 = vpop.f32.mrb[6].mxu0 }
 0x120   :  { %v758_v9 = vadd.f32 %v757_v42, %v705_v4  ;;  %v709_v10 = vadd.f32 %v708_v8, %v1773_v3  ;;  %v710_v11 = vpop.f32.mrb[7].mxu0 }
 0x121   :  { %1057 = vst [vmem:[%s1830_s3 + $0x14] sm:$0xff] %v1187_v6  ;;  %v760_v12 = vadd.f32 %v759_v43, %v707_v7  ;;  %v711_v14 = vadd.f32 %v710_v11, %v1773_v3 }
 0x122   :  { %v980_v15 = vmax.f32 %v758_v9, 0.0  ;;  %v762_v16 = vadd.f32 %v761_v44, %v709_v10 }
 0x123   :  { %v981_v17 = vmax.f32 %v760_v12, 0.0  ;;  %v764_v18 = vadd.f32 %v763_v45, %v711_v14 }
 0x124   :  { %v985_v19 = vmax.f32 %v762_v16, 0.0 }
 0x125   :  { %v1190_v20 = vpack.c.bf16 %v981_v17, %v980_v15  ;;  %v986_v21 = vmax.f32 %v764_v18, 0.0 }
 0x127   :  { %1060 = vst [vmem:[%s1830_s3 + $0x28] sm:$0xff] %v1190_v20  ;;  %v1193_v22 = vpack.c.bf16 %v986_v21, %v985_v19 }
 0x129   :  { %1063 = vst [vmem:[%s1830_s3 + $0x3c] sm:$0xff] %v1193_v22 }
 0x12e   :  { %v853_v23 = vpop.f32.mrb[8].mxu1 }
 0x12f   :  { %v1252_v24 = vadd.f32 %v853_v23, %v1763_v46  ;;  %v855_v25 = vpop.f32.mrb[9].mxu1 }
 0x130   :  { %v1253_v26 = vadd.f32 %v855_v25, %v1763_v46  ;;  %v857_v27 = vpop.f32.mrb[10].mxu1 }
 0x131   :  { %v972_v28 = vmax.f32 %v1252_v24, 0.0  ;;  %v1254_v29 = vadd.f32 %v857_v27, %v1765_v48  ;;  %v859_v30 = vpop.f32.mrb[11].mxu1 }
 0x132   :  { %v973_v31 = vmax.f32 %v1253_v26, 0.0  ;;  %v1255_v32 = vadd.f32 %v859_v30, %v1765_v48 }
 0x133   :  { %v977_v33 = vmax.f32 %v1254_v29, 0.0 }
 0x134   :  { %v1185_v34 = vpack.c.bf16 %v973_v31, %v972_v28  ;;  %v978_v35 = vmax.f32 %v1255_v32, 0.0 }
 0x135   :  { %v1212_v38 = vpop.f32.mrb[8].mxu0 }
 0x136   :  { %1055 = vst [vmem:[%s1830_s3 + $0x8] sm:$0xff] %v1185_v34  ;;  %v1188_v36 = vpack.c.bf16 %v978_v35, %v977_v33  ;;  %v863_v37 = vpop.f32.mrb[12].mxu1  ;;  %v1213_v1 = vpop.f32.mrb[9].mxu0 }
 0x137   :  { %v1256_v39 = vadd.f32 %v863_v37, %v1769_v52  ;;  %v865_v40 = vpop.f32.mrb[13].mxu1  ;;  %v1214_v42 = vadd.f32 %v1213_v1, %v1212_v38  ;;  %v1215_v44 = vpop.f32.mrb[10].mxu0 }
 0x138   :  { %1058 = vst [vmem:[%s1830_s3 + $0x1c] sm:$0xff] %v1188_v36  ;;  %v1257_v41 = vadd.f32 %v865_v40, %v1769_v52  ;;  %v867_v43 = vpop.f32.mrb[14].mxu1  ;;  %v1216_v13 = vpop.f32.mrb[11].mxu0 }
 0x139   :  { %v982_v45 = vmax.f32 %v1256_v39, 0.0  ;;  %v1258_v47 = vadd.f32 %v867_v43, %v1773_v3  ;;  %v869_v49 = vpop.f32.mrb[15].mxu1  ;;  %v1217_v53 = vadd.f32 %v1216_v13, %v1215_v44  ;;  %v907_v60 = vadd.f32 %v1214_v42, %v1763_v46 }
 0x13a   :  { %v983_v50 = vmax.f32 %v1257_v41, 0.0  ;;  %v1259_v51 = vadd.f32 %v869_v49, %v1773_v3 }
 0x13b   :  { %v987_v54 = vmax.f32 %v1258_v47, 0.0  ;;  %v910_v5 = vadd.f32 %v1217_v53, %v1765_v48 }
 0x13c   :  { %v1191_v55 = vpack.c.bf16 %v983_v50, %v982_v45  ;;  %v988_v56 = vmax.f32 %v1259_v51, 0.0 }
 0x13d   :  { %v1218_v58 = vpop.f32.mrb[12].mxu0 }
 0x13e   :  { %1061 = vst [vmem:[%s1830_s3 + $0x30] sm:$0xff] %v1191_v55  ;;  %v1194_v57 = vpack.c.bf16 %v988_v56, %v987_v54  ;;  %v1234_v59 = vpop.f32.mrb[16].mxu1  ;;  %v1219_v61 = vpop.f32.mrb[13].mxu0 }
 0x13f   :  { %v955_v62 = vpop.f32.mrb[17].mxu1  ;;  %v1220_v63 = vadd.f32 %v1219_v61, %v1218_v58  ;;  %v1221_v2 = vpop.f32.mrb[14].mxu0 }
 0x140   :  { %1064 = vst [vmem:[%s1830_s3 + $0x44] sm:$0xff] %v1194_v57  ;;  %v956_v0 = vadd.f32 %v955_v62, %v907_v60  ;;  %v1235_v4 = vpop.f32.mrb[18].mxu1  ;;  %v1222_v6 = vpop.f32.mrb[15].mxu0 }
 0x141   :  { %v958_v7 = vpop.f32.mrb[19].mxu1  ;;  %v915_v8 = vadd.f32 %v1220_v63, %v1769_v52  ;;  %v1223_v10 = vadd.f32 %v1222_v6, %v1221_v2 }
 0x142   :  { %v974_v9 = vmax.f32 %v956_v0, 0.0  ;;  %v959_v11 = vadd.f32 %v958_v7, %v910_v5 }
 0x143   :  { %v964_v46 = vadd.f32 %v1234_v59, %v915_v8  ;;  %v918_v14 = vadd.f32 %v1223_v10, %v1773_v3 }
 0x144   :  { %v1186_v12 = vpack.c.bf16 %v974_v9, %v974_v9  ;;  %v979_v15 = vmax.f32 %v959_v11, 0.0 }
 0x145   :  { %v984_v16 = vmax.f32 %v964_v46, 0.0  ;;  %v967_v17 = vadd.f32 %v1235_v4, %v918_v14 }
 0x146   :  { %1056 = vst [vmem:[%s1830_s3 + $0x10] sm:$0xf] %v1186_v12  ;;  %v1189_v18 = vpack.c.bf16 %v979_v15, %v979_v15 }
 0x147   :  { %v1192_v48 = vpack.c.bf16 %v984_v16, %v984_v16  ;;  %v989_v19 = vmax.f32 %v967_v17, 0.0 }
 0x148   :  { %1059 = vst [vmem:[%s1830_s3 + $0x24] sm:$0xf] %v1189_v18 }
 0x149   :  { %1062 = vst [vmem:[%s1830_s3 + $0x38] sm:$0xf] %v1192_v48  ;;  %v1195_v52 = vpack.c.bf16 %v989_v19, %v989_v19 }
 0x14b   :  { %1065 = vst [vmem:[%s1830_s3 + $0x4c] sm:$0xf] %v1195_v52 }

// kernel: _normal_vs_infected.18
= control target key start
LH: loop header
LB: loop body
LE: loop exit
PB: predicated region body
PF: predicated region fallthrough
CT: control target
= control target key end

     0   :  { %vm228_vm0 = vcmask 199680   ;;  %s659_s0 = inlined_call_operand.vmem [shape: bf16[25,32,25], index: 0, kind: input, shape index: {}]   ;;  %s660_s1 = inlined_call_operand.vmem [shape: bf16[32,25], index: 1, kind: output, shape index: {}]  }
   0x1   :  { %v8_v0 = vld [vmem:[%s659_s0] sm:$0xf]  ;;  %v237_v1 = vld [vmem:[%s659_s0 + $0x10] sm:$0xf]  ;;  %v9_v11 = vld [vmem:[%s659_s0 + $0x4] sm:$0xf] }
   0x2   :  { %v241_v2 = vld [vmem:[%s659_s0 + $0x20] sm:$0xf]  ;;  %v17_v3 = vmax.bf16 %v237_v1, %v8_v0  ;;  %v245_v4 = vld [vmem:[%s659_s0 + $0x30] sm:$0xf]  ;;  %v238_v12 = vld [vmem:[%s659_s0 + $0x14] sm:$0xf] }
   0x3   :  { %v249_v6 = vld [vmem:[%s659_s0 + $0x40] sm:$0xf]  ;;  %v253_v8 = vld [vmem:[%s659_s0 + $0x50] sm:$0xf]  ;;  %v18_v14 = vmax.bf16 %v238_v12, %v9_v11  ;;  %v242_v15 = vld [vmem:[%s659_s0 + $0x24] sm:$0xf] }
   0x4   :  { %v26_v5 = vmax.bf16 %v241_v2, %v17_v3  ;;  %v257_v10 = vld [vmem:[%s659_s0 + $0x60] sm:$0xf]  ;;  %v261_v16 = vld [vmem:[%s659_s0 + $0x70] sm:$0xf]  ;;  %v246_v17 = vld [vmem:[%s659_s0 + $0x34] sm:$0xf] }
   0x5   :  { %v27_v19 = vmax.bf16 %v242_v15, %v18_v14  ;;  %v265_v20 = vld [vmem:[%s659_s0 + $0x80] sm:$0xf]  ;;  %v250_v21 = vld [vmem:[%s659_s0 + $0x44] sm:$0xf]  ;;  %v269_v24 = vld [vmem:[%s659_s0 + $0x90] sm:$0xf] }
   0x6   :  { %v35_v7 = vmax.bf16 %v245_v4, %v26_v5  ;;  %v254_v25 = vld [vmem:[%s659_s0 + $0x54] sm:$0xf]  ;;  %v273_v28 = vld [vmem:[%s659_s0 + $0xa0] sm:$0xf]  ;;  %v258_v29 = vld [vmem:[%s659_s0 + $0x64] sm:$0xf] }
   0x7   :  { %v36_v23 = vmax.bf16 %v246_v17, %v27_v19  ;;  %v10_v30 = vld [vmem:[%s659_s0 + $0x8] sm:$0xf]  ;;  %v239_v33 = vld [vmem:[%s659_s0 + $0x18] sm:$0xf]  ;;  %v277_v35 = vld [vmem:[%s659_s0 + $0xb0] sm:$0xf] }
   0x8   :  { %v44_v9 = vmax.bf16 %v249_v6, %v35_v7  ;;  %v243_v34 = vld [vmem:[%s659_s0 + $0x28] sm:$0xf]  ;;  %v262_v36 = vld [vmem:[%s659_s0 + $0x74] sm:$0xf]  ;;  %v19_v37 = vmax.bf16 %v239_v33, %v10_v30  ;;  %v247_v40 = vld [vmem:[%s659_s0 + $0x38] sm:$0xf] }
   0x9   :  { %v45_v27 = vmax.bf16 %v250_v21, %v36_v23  ;;  %v281_v41 = vld [vmem:[%s659_s0 + $0xc0] sm:$0xf]  ;;  %v266_v42 = vld [vmem:[%s659_s0 + $0x84] sm:$0xf]  ;;  %v251_v46 = vld [vmem:[%s659_s0 + $0x48] sm:$0xf] }
   0xa   :  { %v53_v13 = vmax.bf16 %v253_v8, %v44_v9  ;;  %v28_v43 = vmax.bf16 %v243_v34, %v19_v37  ;;  %v285_v47 = vld [vmem:[%s659_s0 + $0xd0] sm:$0xf]  ;;  %v270_v48 = vld [vmem:[%s659_s0 + $0x94] sm:$0xf]  ;;  %v255_v52 = vld [vmem:[%s659_s0 + $0x58] sm:$0xf] }
   0xb   :  { %v54_v32 = vmax.bf16 %v254_v25, %v45_v27  ;;  %v289_v53 = vld [vmem:[%s659_s0 + $0xe0] sm:$0xf]  ;;  %v274_v54 = vld [vmem:[%s659_s0 + $0xa4] sm:$0xf]  ;;  %v259_v56 = vld [vmem:[%s659_s0 + $0x68] sm:$0xf] }
   0xc   :  { %v62_v18 = vmax.bf16 %v257_v10, %v53_v13  ;;  %v37_v49 = vmax.bf16 %v247_v40, %v28_v43  ;;  %v11_v59 = vld [vmem:[%s659_s0 + $0xc] sm:$0xf]  ;;  %v240_v60 = vld [vmem:[%s659_s0 + $0x1c] sm:$0xf]  ;;  %v293_v62 = vld [vmem:[%s659_s0 + $0xf0] sm:$0xf] }
   0xd   :  { %v63_v39 = vmax.bf16 %v258_v29, %v54_v32  ;;  %v244_v61 = vld [vmem:[%s659_s0 + $0x2c] sm:$0xf]  ;;  %v278_v63 = vld [vmem:[%s659_s0 + $0xb4] sm:$0xf]  ;;  %v20_v1 = vmax.bf16 %v240_v60, %v11_v59  ;;  %v263_v4 = vld [vmem:[%s659_s0 + $0x78] sm:$0xf] }
   0xe   :  { %v71_v22 = vmax.bf16 %v261_v16, %v62_v18  ;;  %v46_v55 = vmax.bf16 %v251_v46, %v37_v49  ;;  %v248_v5 = vld [vmem:[%s659_s0 + $0x3c] sm:$0xf]  ;;  %v297_v6 = vld [vmem:[%s659_s0 + $0x100] sm:$0xf]  ;;  %v282_v7 = vld [vmem:[%s659_s0 + $0xc4] sm:$0xf] }
   0xf   :  { %v72_v45 = vmax.bf16 %v262_v36, %v63_v39  ;;  %v29_v9 = vmax.bf16 %v244_v61, %v20_v1  ;;  %v267_v12 = vld [vmem:[%s659_s0 + $0x88] sm:$0xf]  ;;  %v252_v13 = vld [vmem:[%s659_s0 + $0x4c] sm:$0xf]  ;;  %v301_v14 = vld [vmem:[%s659_s0 + $0x110] sm:$0xf] }
  0x10   :  { %v80_v26 = vmax.bf16 %v265_v20, %v71_v22  ;;  %v55_v0 = vmax.bf16 %v255_v52, %v46_v55  ;;  %v286_v15 = vld [vmem:[%s659_s0 + $0xd4] sm:$0xf]  ;;  %v271_v20 = vld [vmem:[%s659_s0 + $0x98] sm:$0xf]  ;;  %v256_v21 = vld [vmem:[%s659_s0 + $0x5c] sm:$0xf] }
  0x11   :  { %v81_v51 = vmax.bf16 %v266_v42, %v72_v45  ;;  %v38_v17 = vmax.bf16 %v248_v5, %v29_v9  ;;  %v305_v22 = vld [vmem:[%s659_s0 + $0x120] sm:$0xf]  ;;  %v290_v23 = vld [vmem:[%s659_s0 + $0xe4] sm:$0xf]  ;;  %v260_v29 = vld [vmem:[%s659_s0 + $0x6c] sm:$0xf] }
  0x12   :  { %v89_v31 = vmax.bf16 %v269_v24, %v80_v26  ;;  %v64_v8 = vmax.bf16 %v259_v56, %v55_v0  ;;  %v309_v30 = vld [vmem:[%s659_s0 + $0x130] sm:$0xf]  ;;  %v279_v36 = vld [vmem:[%s659_s0 + $0xb8] sm:$0xf]  ;;  %v264_v37 = vld [vmem:[%s659_s0 + $0x7c] sm:$0xf] }
  0x13   :  { %v90_v58 = vmax.bf16 %v270_v48, %v81_v51  ;;  %v47_v25 = vmax.bf16 %v252_v13, %v38_v17  ;;  %v298_v39 = vld [vmem:[%s659_s0 + $0x104] sm:$0xf]  ;;  %v268_v45 = vld [vmem:[%s659_s0 + $0x8c] sm:$0xf]  ;;  %v317_v46 = vld [vmem:[%s659_s0 + $0x150] sm:$0xf] }
  0x14   :  { %v98_v38 = vmax.bf16 %v273_v28, %v89_v31  ;;  %v73_v16 = vmax.bf16 %v263_v4, %v64_v8  ;;  %v275_v28 = vld [vmem:[%s659_s0 + $0xa8] sm:$0xf]  ;;  %v294_v31 = vld [vmem:[%s659_s0 + $0xf4] sm:$0xf]  ;;  %v287_v52 = vld [vmem:[%s659_s0 + $0xd8] sm:$0xf] }
  0x15   :  { %v99_v3 = vmax.bf16 %v274_v54, %v90_v58  ;;  %v56_v33 = vmax.bf16 %v256_v21, %v47_v25  ;;  %v321_v54 = vld [vmem:[%s659_s0 + $0x160] sm:$0xf]  ;;  %v306_v55 = vld [vmem:[%s659_s0 + $0x124] sm:$0xf]  ;;  %v291_v60 = vld [vmem:[%s659_s0 + $0xe8] sm:$0xf] }
  0x16   :  { %v107_v44 = vmax.bf16 %v277_v35, %v98_v38  ;;  %v82_v24 = vmax.bf16 %v267_v12, %v73_v16  ;;  %v313_v38 = vld [vmem:[%s659_s0 + $0x140] sm:$0xf]  ;;  %v276_v61 = vld [vmem:[%s659_s0 + $0xac] sm:$0xf]  ;;  %v295_v4 = vld [vmem:[%s659_s0 + $0xf8] sm:$0xf] }
  0x17   :  { %v108_v11 = vmax.bf16 %v278_v63, %v99_v3  ;;  %v310_v63 = vld [vmem:[%s659_s0 + $0x134] sm:$0xf]  ;;  %v280_v5 = vld [vmem:[%s659_s0 + $0xbc] sm:$0xf]  ;;  %v299_v12 = vld [vmem:[%s659_s0 + $0x108] sm:$0xf] }
  0x18   :  { %v116_v50 = vmax.bf16 %v281_v41, %v107_v44  ;;  %v91_v32 = vmax.bf16 %v271_v20, %v82_v24  ;;  %v65_v41 = vmax.bf16 %v260_v29, %v56_v33  ;;  %v283_v44 = vld [vmem:[%s659_s0 + $0xc8] sm:$0xf]  ;;  %v284_v13 = vld [vmem:[%s659_s0 + $0xcc] sm:$0xf]  ;;  %v288_v20 = vld [vmem:[%s659_s0 + $0xdc] sm:$0xf] }
  0x19   :  { %v117_v19 = vmax.bf16 %v282_v7, %v108_v11  ;;  %v314_v7 = vld [vmem:[%s659_s0 + $0x144] sm:$0xf]  ;;  %v307_v25 = vld [vmem:[%s659_s0 + $0x128] sm:$0xf] }
  0x1a   :  { %v125_v57 = vmax.bf16 %v285_v47, %v116_v50  ;;  %v100_v40 = vmax.bf16 %v275_v28, %v91_v32  ;;  %v302_v47 = vld [vmem:[%s659_s0 + $0x114] sm:$0xf]  ;;  %v74_v49 = vmax.bf16 %v264_v37, %v65_v41  ;;  %v322_v21 = vld [vmem:[%s659_s0 + $0x164] sm:$0xf]  ;;  %v296_v32 = vld [vmem:[%s659_s0 + $0xfc] sm:$0xf] }
  0x1b   :  { %v126_v27 = vmax.bf16 %v286_v15, %v117_v19  ;;  %v303_v19 = vld [vmem:[%s659_s0 + $0x118] sm:$0xf]  ;;  %v330_v33 = vld [vmem:[%s659_s0 + $0x184] sm:$0xf]  ;;  %v315_v37 = vld [vmem:[%s659_s0 + $0x148] sm:$0xf] }
  0x1c   :  { %v134_v2 = vmax.bf16 %v289_v53, %v125_v57  ;;  %v109_v48 = vmax.bf16 %v279_v36, %v100_v40  ;;  %v272_v53 = vld [vmem:[%s659_s0 + $0x9c] sm:$0xf]  ;;  %v83_v57 = vmax.bf16 %v268_v45, %v74_v49 }
  0x1d   :  { %v135_v35 = vmax.bf16 %v290_v23, %v126_v27  ;;  %v326_v27 = vld [vmem:[%s659_s0 + $0x174] sm:$0xf] }
  0x1e   :  { %v143_v10 = vmax.bf16 %v293_v62, %v134_v2  ;;  %v118_v56 = vmax.bf16 %v283_v44, %v109_v48  ;;  %v325_v62 = vld [vmem:[%s659_s0 + $0x170] sm:$0xf]  ;;  %v92_v1 = vmax.bf16 %v272_v53, %v83_v57 }
  0x1f   :  { %v144_v43 = vmax.bf16 %v294_v31, %v135_v35  ;;  %v311_v31 = vld [vmem:[%s659_s0 + $0x138] sm:$0xf] }
  0x20   :  { %v152_v18 = vmax.bf16 %v297_v6, %v143_v10  ;;  %v127_v0 = vmax.bf16 %v287_v52, %v118_v56  ;;  %v329_v6 = vld [vmem:[%s659_s0 + $0x180] sm:$0xf]  ;;  %v101_v9 = vmax.bf16 %v276_v61, %v92_v1  ;;  %v324_v61 = vld [vmem:[%s659_s0 + $0x16c] sm:$0xf] }
  0x21   :  { %v153_v51 = vmax.bf16 %v298_v39, %v144_v43  ;;  %v304_v43 = vld [vmem:[%s659_s0 + $0x11c] sm:$0xf]  ;;  %v332_v1 = vld [vmem:[%s659_s0 + $0x18c] sm:$0xf] }
  0x22   :  { %v161_v26 = vmax.bf16 %v301_v14, %v152_v18  ;;  %v136_v8 = vmax.bf16 %v291_v60, %v127_v0  ;;  %v318_v14 = vld [vmem:[%s659_s0 + $0x154] sm:$0xf]  ;;  %v110_v16 = vmax.bf16 %v280_v5, %v101_v9 }
  0x23   :  { %v162_v59 = vmax.bf16 %v302_v47, %v153_v51  ;;  %v308_v47 = vld [vmem:[%s659_s0 + $0x12c] sm:$0xf]  ;;  %v312_v51 = vld [vmem:[%s659_s0 + $0x13c] sm:$0xf] }
  0x24   :  { %v170_v34 = vmax.bf16 %v305_v22, %v161_v26  ;;  %v145_v15 = vmax.bf16 %v295_v4, %v136_v8  ;;  %v119_v23 = vmax.bf16 %v284_v13, %v110_v16  ;;  %v292_v26 = vld [vmem:[%s659_s0 + $0xec] sm:$0xf] }
  0x25   :  { %v171_v3 = vmax.bf16 %v306_v55, %v162_v59  ;;  %v316_v55 = vld [vmem:[%s659_s0 + $0x14c] sm:$0xf] }
  0x26   :  { %v179_v42 = vmax.bf16 %v309_v30, %v170_v34  ;;  %v154_v22 = vmax.bf16 %v299_v12, %v145_v15  ;;  %v128_v29 = vmax.bf16 %v288_v20, %v119_v23 }
  0x27   :  { %v180_v11 = vmax.bf16 %v310_v63, %v171_v3  ;;  %v328_v63 = vld [vmem:[%s659_s0 + $0x17c] sm:$0xf] }
  0x28   :  { %v188_v50 = vmax.bf16 %v313_v38, %v179_v42  ;;  %v163_v28 = vmax.bf16 %v303_v19, %v154_v22  ;;  %v137_v35 = vmax.bf16 %v292_v26, %v128_v29  ;;  %v300_v38 = vld [vmem:[%s659_s0 + $0x10c] sm:$0xf]  ;;  %v319_v42 = vld [vmem:[%s659_s0 + $0x158] sm:$0xf] }
  0x29   :  { %v189_v18 = vmax.bf16 %v314_v7, %v180_v11 }
  0x2a   :  { %v197_v58 = vmax.bf16 %v317_v46, %v188_v50  ;;  %v172_v34 = vmax.bf16 %v307_v25, %v163_v28  ;;  %v146_v40 = vmax.bf16 %v296_v32, %v137_v35  ;;  %v323_v46 = vld [vmem:[%s659_s0 + $0x168] sm:$0xf]  ;;  %v327_v50 = vld [vmem:[%s659_s0 + $0x178] sm:$0xf] }
  0x2b   :  { %v198_v24 = vmax.bf16 %v318_v14, %v189_v18 }
  0x2c   :  { %v206_v2 = vmax.bf16 %v321_v54, %v197_v58  ;;  %v181_v39 = vmax.bf16 %v311_v31, %v172_v34  ;;  %v155_v45 = vmax.bf16 %v300_v38, %v146_v40  ;;  %v331_v54 = vld [vmem:[%s659_s0 + $0x188] sm:$0xf]  ;;  %v320_v58 = vld [vmem:[%s659_s0 + $0x15c] sm:$0xf] }
  0x2d   :  { %v207_v30 = vmax.bf16 %v322_v21, %v198_v24 }
  0x2e   :  { %v215_v10 = vmax.bf16 %v325_v62, %v206_v2  ;;  %v190_v44 = vmax.bf16 %v315_v37, %v181_v39  ;;  %v164_v49 = vmax.bf16 %v304_v43, %v155_v45 }
  0x2f   :  { %v216_v36 = vmax.bf16 %v326_v27, %v207_v30 }
  0x30   :  { %v224_v17 = vmax.bf16 %v329_v6, %v215_v10  ;;  %v199_v48 = vmax.bf16 %v319_v42, %v190_v44  ;;  %v173_v53 = vmax.bf16 %v308_v47, %v164_v49 }
  0x31   :  { %v225_v41 = vmax.bf16 %v330_v33, %v216_v36 }
  0x32   :  { %229 = vst.msk [vmem:[%s660_s1] sm:$0xf] %vm228_vm0, %v224_v17  ;;  %v208_v52 = vmax.bf16 %v323_v46, %v199_v48  ;;  %v182_v57 = vmax.bf16 %v312_v51, %v173_v53 }
  0x33   :  { %230 = vst.msk [vmem:[%s660_s1 + $0x4] sm:$0xf] %vm228_vm0, %v225_v41 }
  0x34   :  { %v217_v56 = vmax.bf16 %v327_v50, %v208_v52  ;;  %v191_v60 = vmax.bf16 %v316_v55, %v182_v57 }
  0x36   :  { %v226_v59 = vmax.bf16 %v331_v54, %v217_v56  ;;  %v200_v62 = vmax.bf16 %v320_v58, %v191_v60 }
  0x38   :  { %231 = vst.msk [vmem:[%s660_s1 + $0x8] sm:$0xf] %vm228_vm0, %v226_v59  ;;  %v209_v0 = vmax.bf16 %v324_v61, %v200_v62 }
  0x3a   :  { %v218_v2 = vmax.bf16 %v328_v63, %v209_v0 }
  0x3c   :  { %v227_v3 = vmax.bf16 %v332_v1, %v218_v2 }
  0x3e   :  { %232 = vst.msk [vmem:[%s660_s1 + $0xc] sm:$0xf] %vm228_vm0, %v227_v3 }

// kernel: _normal_vs_infected.19
= control target key start
LH: loop header
LB: loop body
LE: loop exit
PB: predicated region body
PF: predicated region fallthrough
CT: control target
= control target key end

     0   :  { %v1060_v2 = vmov 0.0   ;;  %v134_v31 = vlaneseq  ;;  %v1061_v34 = vmov 1966171168   ;;  %vm1062_vm0 = vmmov 0   ;;  %s1322_s0 = inlined_call_operand.vmem [shape: bf16[1,800], index: 0, kind: input, shape index: {}]   ;;  %s1323_s1 = inlined_call_operand.vmem [shape: bf16[800,128], index: 1, kind: input, shape index: {}]   ;;  %s1324_s2 = inlined_call_operand.vmem [shape: f32[1,128], index: 2, kind: input, shape index: {}]   ;;  %s1325_s3 = inlined_call_operand.vmem [shape: f32[128,2], index: 3, kind: input, shape index: {}]   ;;  %s1326_s4 = inlined_call_operand.vmem [shape: f32[1,2], index: 4, kind: input, shape index: {}]   ;;  %s1327_s5 = inlined_call_operand.hbm [shape: f32[1,2], index: 5, kind: output, shape index: {}]  }
   0x1   :  { %v981_v0 = vld [vmem:[%s1323_s1 + $0x40] sm:$0xff]   ;;  %26 = vst [vmem:[#allocation2] sm:$0x1] %v1060_v2  ;;  %v985_v5 = vld [vmem:[%s1323_s1 + $0x48] sm:$0xff]   ;;  %v989_v9 = vld [vmem:[%s1323_s1 + $0x50] sm:$0xff]   ;;  %v132_v35 = vunpack.c.l.s4 %v1061_v34 }
   0x2   :  { %v982_v1 = vld [vmem:[%s1323_s1 + $0xc0] sm:$0xff]   ;;  %823 = vmatprep.subr.bf16.mxu0 %v981_v0  ;;  %v986_v6 = vld [vmem:[%s1323_s1 + $0xc8] sm:$0xff]   ;;  %v990_v10 = vld [vmem:[%s1323_s1 + $0xd0] sm:$0xff]   ;;  %v135_v36 = vshrl.u32 %v134_v31, 7 }
   0x3   :  { %v983_v3 = vld [vmem:[%s1323_s1] sm:$0xff]   ;;  %845 = vmatprep.subr.bf16.mxu1 %v982_v1  ;;  %v987_v7 = vld [vmem:[%s1323_s1 + $0x8] sm:$0xff]   ;;  %v991_v11 = vld [vmem:[%s1323_s1 + $0x10] sm:$0xff]   ;;  %v133_v40 = vunpack.c.0.s8 %v132_v35 }
   0x4   :  { %v984_v4 = vld [vmem:[%s1323_s1 + $0x80] sm:$0xff]   ;;  %824 = vmatpush3.bf16.msra.mxu0 %v983_v3  ;;  %v988_v8 = vld [vmem:[%s1323_s1 + $0x88] sm:$0xff]   ;;  %v992_v12 = vld [vmem:[%s1323_s1 + $0x90] sm:$0xff]  }
   0x5   :  { %846 = vmatpush3.bf16.msra.mxu1 %v984_v4  ;;  %825 = vmatprep.subr.bf16.mxu0 %v985_v5  ;;  %v993_v13 = vld [vmem:[%s1323_s1 + $0x58] sm:$0xff]   ;;  %v997_v17 = vld [vmem:[%s1323_s1 + $0x60] sm:$0xff]   ;;  %v1001_v21 = vld [vmem:[%s1323_s1 + $0x68] sm:$0xff]   ;;  %v136_v41 = vsub.s32 %v133_v40, %v135_v36 }
   0x6   :  { %847 = vmatprep.subr.bf16.mxu1 %v986_v6  ;;  %v994_v14 = vld [vmem:[%s1323_s1 + $0xd8] sm:$0xff]   ;;  %v998_v18 = vld [vmem:[%s1323_s1 + $0xe0] sm:$0xff]   ;;  %v1002_v22 = vld [vmem:[%s1323_s1 + $0xe8] sm:$0xff]  }
   0x7   :  { %v995_v15 = vld [vmem:[%s1323_s1 + $0x18] sm:$0xff]   ;;  %v999_v19 = vld [vmem:[%s1323_s1 + $0x20] sm:$0xff]   ;;  %v1003_v23 = vld [vmem:[%s1323_s1 + $0x28] sm:$0xff]  }
   0x8   :  { %826 = vmatpush3.bf16.msra.mxu0 %v987_v7  ;;  %v996_v16 = vld [vmem:[%s1323_s1 + $0x98] sm:$0xff]   ;;  %v1000_v20 = vld [vmem:[%s1323_s1 + $0xa0] sm:$0xff]   ;;  %v1004_v24 = vld [vmem:[%s1323_s1 + $0xa8] sm:$0xff]  }
   0x9   :  { %848 = vmatpush3.bf16.msra.mxu1 %v988_v8  ;;  %827 = vmatprep.subr.bf16.mxu0 %v989_v9  ;;  %v1005_v25 = vld [vmem:[%s1323_s1 + $0x70] sm:$0xff]   ;;  %v1009_v29 = vld [vmem:[%s1323_s1 + $0x78] sm:$0xff]   ;;  %v1014_v37 = vld [vmem:[%s1323_s1 + $0x140] sm:$0xff]  }
   0xa   :  { %849 = vmatprep.subr.bf16.mxu1 %v990_v10  ;;  %v1006_v26 = vld [vmem:[%s1323_s1 + $0xf0] sm:$0xff]   ;;  %v1010_v30 = vld [vmem:[%s1323_s1 + $0xf8] sm:$0xff]   ;;  %v28_v38 = vld [vmem:[%s1322_s0] sm:$0x7f] }
   0xb   :  { %v1007_v27 = vld [vmem:[%s1323_s1 + $0x30] sm:$0xff]   ;;  %v1011_v32 = vld [vmem:[%s1323_s1 + $0x38] sm:$0xff]   ;;  %v130_v39 = vcombine.high %v28_v38, %v28_v38  ;;  %v137_v42 = vrot.slane %v28_v38, %v136_v41  ;;  %v1015_v48 = vld [vmem:[%s1323_s1 + $0x100] sm:$0xff]  }
   0xc   :  { %828 = vmatpush3.bf16.msra.mxu0 %v991_v11  ;;  %v1008_v28 = vld [vmem:[%s1323_s1 + $0xb0] sm:$0xff]   ;;  %v1012_v33 = vld [vmem:[%s1323_s1 + $0xb8] sm:$0xff]   ;;  %v1016_v50 = vld [vmem:[%s1323_s1 + $0x148] sm:$0xff]  }
   0xd   :  { %850 = vmatpush3.bf16.msra.mxu1 %v992_v12  ;;  %829 = vmatprep.subr.bf16.mxu0 %v993_v13  ;;  %v144_v43 = vrot.slane %v130_v39, %v136_v41  ;;  %v145_v44 = vcombine.high %v137_v42, %v137_v42  ;;  %v153_v45 = vrot.slane %v137_v42, %v136_v41  ;;  %v1017_v53 = vld [vmem:[%s1323_s1 + $0x108] sm:$0xff]   ;;  %v1028_v54 = vld [vmem:[%s1323_s1 + $0x180] sm:$0xff]   ;;  %v1018_v55 = vld [vmem:[%s1323_s1 + $0x150] sm:$0xff]  }
   0xe   :  { %851 = vmatprep.subr.bf16.mxu1 %v994_v14  ;;  %v1031_v57 = vld [vmem:[%s1323_s1 + $0x188] sm:$0xff]  }
   0xf   :  { %v146_v46 = vcombine.high %v144_v43, %v144_v43  ;;  %v167_v47 = vrot.slane %v145_v44, %v136_v41  ;;  %v175_v49 = vcombine.high %v153_v45, %v153_v45  ;;  %v160_v56 = vrot.slane %v144_v43, %v136_v41 }
  0x10   :  { %830 = vmatpush3.bf16.msra.mxu0 %v995_v15 }
  0x11   :  { %852 = vmatpush3.bf16.msra.mxu1 %v996_v16  ;;  %831 = vmatprep.subr.bf16.mxu0 %v997_v17  ;;  %v177_v51 = vcombine.high %v167_v47, %v167_v47  ;;  %v174_v52 = vrot.slane %v146_v46, %v136_v41 }
  0x12   :  { %853 = vmatprep.subr.bf16.mxu1 %v998_v18  ;;  %520 = vmatprep.mubr.bf16.mxu0 %v167_v47 }
  0x13   :  { %560 = vmatprep.mubr.bf16.mxu1 %v177_v51 }
  0x14   :  { %832 = vmatpush3.bf16.msra.mxu0 %v999_v19 }
  0x15   :  { %854 = vmatpush3.bf16.msra.mxu1 %v1000_v20  ;;  %833 = vmatprep.subr.bf16.mxu0 %v1001_v21 }
  0x16   :  { %855 = vmatprep.subr.bf16.mxu1 %v1002_v22 }
  0x18   :  { %834 = vmatpush3.bf16.msra.mxu0 %v1003_v23 }
  0x19   :  { %856 = vmatpush3.bf16.msra.mxu1 %v1004_v24  ;;  %835 = vmatprep.subr.bf16.mxu0 %v1005_v25 }
  0x1a   :  { %857 = vmatprep.subr.bf16.mxu1 %v1006_v26 }
  0x1c   :  { %836 = vmatpush3.bf16.msra.mxu0 %v1007_v27 }
  0x1d   :  { %858 = vmatpush3.bf16.msra.mxu1 %v1008_v28  ;;  %837 = vmatprep.subr.bf16.mxu0 %v1009_v29 }
  0x1e   :  { %859 = vmatprep.subr.bf16.mxu1 %v1010_v30 }
  0x20   :  { %838 = vmatpush3.bf16.msra.mxu0 %v1011_v32 }
  0x21   :  { %860 = vmatpush3.bf16.msra.mxu1 %v1012_v33  ;;  %867 = vmatprep.subr.bf16.mxu0 %v1014_v37 }
  0x22   :  { %909 = vmatprep.subr.bf16.mxu1 %v1060_v2 }
  0x23   :  { %521 = vmatmul.mubr.bf16.vlgmr.msra.gmra.mrb[0].mxu0 %v153_v45 }
  0x24   :  { %868 = vmatpush3.bf16.msra.mxu0 %v1015_v48  ;;  %561 = vmatmul.mubr.bf16.vlgmr.msra.gmra.mrb[0].mxu1 %v175_v49 }
  0x25   :  { %869 = vmatprep.subr.bf16.mxu0 %v1016_v50  ;;  %910 = vmatpush3.bf16.msra.mxu1 %v1028_v54 }
  0x26   :  { %600 = vmatprep.mubr.bf16.mxu0 %v174_v52  ;;  %911 = vmatprep.subr.bf16.mxu1 %v1060_v2 }
  0x27   :  { %913 = vmatprep.mubr.msk.bf16.mxu1 %vm1062_vm0, %v1060_v2 }
  0x28   :  { %10 = vsyncpa [#allocation4], 0  ;;  %870 = vmatpush3.bf16.msra.mxu0 %v1017_v53  ;;  %v1019_v58 = vld [vmem:[%s1323_s1 + $0x110] sm:$0xff]   ;;  %v1020_v59 = vld [vmem:[%s1323_s1 + $0x158] sm:$0xff]   ;;  %v176_v60 = vcombine.high %v160_v56, %v160_v56  ;;  %vm484_vm1 = vcmask 261120   ;;  %v1063_v9 = vmov 0.0|0.0  }
  0x29   :  { %871 = vmatprep.subr.bf16.mxu0 %v1018_v55  ;;  %912 = vmatpush3.bf16.msra.mxu1 %v1031_v57  ;;  %v1021_v61 = vld [vmem:[%s1323_s1 + $0x118] sm:$0xff]   ;;  %v1022_v62 = vld [vmem:[%s1323_s1 + $0x160] sm:$0xff]   ;;  %v1024_v0 = vld [vmem:[%s1323_s1 + $0x168] sm:$0xff]   ;;  %vm743_vm2 = vcmask 8192  }
  0x2a   :  { %v1023_v63 = vld [vmem:[%s1323_s1 + $0x120] sm:$0xff]   ;;  %v1025_v1 = vld [vmem:[%s1323_s1 + $0x128] sm:$0xff]   ;;  %v1027_v3 = vld [vmem:[%s1323_s1 + $0x130] sm:$0xff]   ;;  %952 = vmatprep.subr.bf16.mxu1 %v1063_v9 }
  0x2b   :  { %v1029_v4 = vld [vmem:[%s1323_s1 + $0x178] sm:$0xff]   ;;  %v656_v6 = vld [vmem:[%s1325_s3] sm:$0xff]  ;;  %v657_v7 = vld [vmem:[%s1325_s3 + $0x8] sm:$0xff] }
  0x2c   :  { %872 = vmatpush3.bf16.msra.mxu0 %v1019_v58  ;;  %914 = vmatmul.mubr.msk.bf16.vlgmr.msra.gmra.mrb[4].mxu1 %vm484_vm1, %v176_v60  ;;  %v1030_v5 = vld [vmem:[%s1323_s1 + $0x138] sm:$0xff]   ;;  %v658_v8 = vld [vmem:[%s1325_s3 + $0x10] sm:$0xff]  ;;  %v953_v10 = vpack.c.bf16 %v657_v7, %v656_v6  ;;  %v660_v13 = vld [vmem:[%s1325_s3 + $0x20] sm:$0xff] }
  0x2d   :  { %873 = vmatprep.subr.bf16.mxu0 %v1020_v59  ;;  %949 = vmatprep.mubr.msk.f32.mxu1 %vm1062_vm0, %v1060_v2  ;;  %v1026_v2 = vld [vmem:[%s1323_s1 + $0x170] sm:$0xff]   ;;  %v659_v11 = vld [vmem:[%s1325_s3 + $0x18] sm:$0xff]  ;;  %v661_v14 = vld [vmem:[%s1325_s3 + $0x28] sm:$0xff] }
  0x2e   :  { %954 = vmatpush3.bf16.msra.mxu1 %v953_v10  ;;  %v956_v12 = vpack.c.bf16 %v659_v11, %v658_v8  ;;  %v959_v15 = vpack.c.bf16 %v661_v14, %v660_v13  ;;  %v662_v16 = vld [vmem:[%s1325_s3 + $0x30] sm:$0xff]  ;;  %v663_v17 = vld [vmem:[%s1325_s3 + $0x38] sm:$0xff]  ;;  %v664_v19 = vld [vmem:[%s1325_s3 + $0x40] sm:$0xff] }
  0x2f   :  { %955 = vmatprep.subr.bf16.mxu1 %v1063_v9  ;;  %v962_v18 = vpack.c.bf16 %v663_v17, %v662_v16  ;;  %v665_v20 = vld [vmem:[%s1325_s3 + $0x48] sm:$0xff]  ;;  %v666_v22 = vld [vmem:[%s1325_s3 + $0x50] sm:$0xff]  ;;  %v667_v23 = vld [vmem:[%s1325_s3 + $0x58] sm:$0xff] }
  0x30   :  { %874 = vmatpush3.bf16.msra.mxu0 %v1021_v61  ;;  %v965_v21 = vpack.c.bf16 %v665_v20, %v664_v19  ;;  %v968_v24 = vpack.c.bf16 %v667_v23, %v666_v22  ;;  %v668_v25 = vld [vmem:[%s1325_s3 + $0x60] sm:$0xff]  ;;  %v669_v26 = vld [vmem:[%s1325_s3 + $0x68] sm:$0xff]  ;;  %v670_v28 = vld [vmem:[%s1325_s3 + $0x70] sm:$0xff] }
  0x31   :  { %875 = vmatprep.subr.bf16.mxu0 %v1022_v62  ;;  %v971_v27 = vpack.c.bf16 %v669_v26, %v668_v25  ;;  %v671_v29 = vld [vmem:[%s1325_s3 + $0x78] sm:$0xff]  ;;  %v27_v52 = vld [vmem:[#allocation2] sm:$0x1] }
  0x32   :  { %957 = vmatpush3.bf16.msra.mxu1 %v956_v12  ;;  %v974_v30 = vpack.c.bf16 %v671_v29, %v670_v28  ;;  %v654_v55 = vld [vmem:[%s1324_s2] sm:$0x1]  ;;  %s1064_s2 = smov [#allocation3]  }
  0x33   :  { %958 = vmatprep.subr.bf16.mxu1 %v1063_v9  ;;  %v672_v58 = vld [vmem:[%s1326_s4] sm:$0x1]  ;;  %s764_s4 = sshll.u32 %s1064_s2, 4  ;;  %s765_s4 = int_to_ptr.vmem [resolvable:$true] %s764_s4 }
  0x34   :  { %876 = vmatpush3.bf16.msra.mxu0 %v1023_v63  ;;  %s1036_s25 = scalar_lea.vmem %s765_s4, 16  ;;  %s1040_s26 = scalar_lea.vmem %s765_s4, 32 }
  0x35   :  { %877 = vmatprep.subr.bf16.mxu0 %v1024_v0  ;;  %p1037_p0 = scmp.ne.s32.totalorder %s765_s4, %s1036_s25  ;;  %p1041_p1 = scmp.lt.s32.totalorder %s765_s4, %s765_s4 }
  0x36   :  { %960 = vmatpush3.bf16.msra.mxu1 %v959_v15  ;;  %p1042_p2 = scmp.lt.s32.totalorder %s1040_s26, %s1036_s25 }
  0x37   :  { %961 = vmatprep.subr.bf16.mxu1 %v1063_v9 }
  0x38   :  { %878 = vmatpush3.bf16.msra.mxu0 %v1025_v1  ;;  %p1043_p3 = por %p1042_p2, %p1041_p1 }
  0x39   :  { %879 = vmatprep.subr.bf16.mxu0 %v1026_v2 }
  0x3a   :  { %963 = vmatpush3.bf16.msra.mxu1 %v962_v18  ;;  %p1044_p4 = pnand %p1043_p3, %p1037_p0 }
  0x3b   :  { %964 = vmatprep.subr.bf16.mxu1 %v1063_v9 }
  0x3c   :  { %880 = vmatpush3.bf16.msra.mxu0 %v1027_v3 }
  0x3d   :  { %881 = vmatprep.subr.bf16.mxu0 %v1029_v4 }
  0x3e   :  { %966 = vmatpush3.bf16.msra.mxu1 %v965_v21 }
  0x3f   :  { %967 = vmatprep.subr.bf16.mxu1 %v1063_v9 }
  0x40   :  { %882 = vmatpush3.bf16.msra.mxu0 %v1030_v5 }
  0x42   :  { %969 = vmatpush3.bf16.msra.mxu1 %v968_v24 }
  0x43   :  { %601 = vmatmul.mubr.bf16.vlgmr.msra.gmra.mrb[4].mxu0 %v160_v56  ;;  %970 = vmatprep.subr.bf16.mxu1 %v1063_v9 }
  0x46   :  { %972 = vmatpush3.bf16.msra.mxu1 %v971_v27 }
  0x47   :  { %973 = vmatprep.subr.bf16.mxu1 %v1063_v9 }
  0x4a   :  { %975 = vmatpush3.bf16.msra.mxu1 %v974_v30 }
  0xf6   :  { %v839_v31 = vpop.f32.mrb[0].mxu0 }
  0xf7   :  { %v840_v32 = vpop.f32.mrb[1].mxu0  ;;  %v861_v33 = vpop.f32.mrb[0].mxu1 }
  0xf8   :  { %v841_v34 = vadd.f32 %v840_v32, %v839_v31  ;;  %v842_v35 = vpop.f32.mrb[2].mxu0  ;;  %v862_v36 = vpop.f32.mrb[1].mxu1 }
  0xf9   :  { %v843_v37 = vpop.f32.mrb[3].mxu0  ;;  %v863_v38 = vadd.f32 %v862_v36, %v861_v33  ;;  %v864_v39 = vpop.f32.mrb[2].mxu1 }
  0xfa   :  { %v865_v40 = vpop.f32.mrb[3].mxu1 }
  0xfb   :  { %v563_v41 = vadd.f32 %v863_v38, %v841_v34 }
  0xff   :  { %v642_v42 = vpop.f32.mrb[4].mxu1 }
 0x100   :  { %v915_v43 = vpop.f32.mrb[5].mxu1 }
 0x101   :  { %v645_v44 = vpop.f32.mrb[6].mxu1 }
 0x102   :  { %v916_v45 = vpop.f32.mrb[7].mxu1 }
 0x116   :  { %v883_v46 = vpop.f32.mrb[4].mxu0 }
 0x117   :  { %v884_v47 = vpop.f32.mrb[5].mxu0 }
 0x118   :  { %v885_v48 = vadd.f32 %v884_v47, %v883_v46  ;;  %v886_v49 = vpop.f32.mrb[6].mxu0 }
 0x119   :  { %v887_v50 = vpop.f32.mrb[7].mxu0 }
 0x11a   :  { %v603_v51 = vadd.f32 %v885_v48, %v563_v41 }
 0x11c   :  { %v643_v53 = vadd.f32 %v642_v42, %v603_v51 }
 0x11e   :  { %v648_v54 = vadd.f32 %v643_v53, %v27_v52 }
 0x120   :  { %649 = vst [vmem:[#allocation2] sm:$0x1] %v648_v54 }
 0x127   :  { %v653_v56 = vld [vmem:[#allocation2] sm:$0x1] }
 0x128   :  { %v655_v57 = vadd.f32 %v654_v55, %v653_v56 }
 0x12a   :  { %950 = vmatmul.mubr.f32.vlgmr.msra.gmra.mrb[8].mxu1 %v655_v57 }
 0x1fd   :  { %v739_v59 = vpop.f32.mrb[8].mxu1 }
 0x1fe   :  { %v740_v60 = vadd.f32 %v739_v59, %v672_v58  ;;  %v951_v61 = vpop.f32.mrb[9].mxu1 }
 0x200   :  { %v744_v62 = vsel %vm743_vm2, %v740_v60, -inf }
 0x201   :  { %745 = vmax.xlane.f32.xlu0 %v744_v62 }
 0x28e   :  { %v746_v63 = vpop.xlane.xlu0 %745 }
 0x28f   :  { %v747_v0 = vsub.f32 %v740_v60, %v746_v63 }
 0x291   :  { %v748_v1 = vmul.f32 1.442695, %v747_v0 }
 0x293   :  { %1032 = vpow2.f32 %v748_v1 }
 0x29d   :  { %v1033_v2 = vpop.eup %1032 }
 0x29e   :  { %v750_v3 = vsel %vm743_vm2, %v1033_v2, 0.0 }
 0x29f   :  { %751 = vadd.xlane.f32.xlu0 %v750_v3 }
 0x32c   :  { %v752_v4 = vpop.xlane.xlu0 %751 }
 0x32d   :  { %1034 = vlog2.f32 %v752_v4 }
 0x337   :  { %v1035_v5 = vpop.eup %1034 }
 0x338   :  { %v754_v6 = vmul.f32 0.6931472, %v1035_v5 }
 0x33a   :  { %v755_v7 = vadd.f32 %v754_v6, %v746_v63 }
 0x33c   :  { %v756_v8 = vsub.f32 %v740_v60, %v755_v7 }
 0x33e   :  { %757 = vst.msk [vmem:[#allocation3] sm:$0x1] %vm743_vm2, %v756_v8 }
 0x33f   :  { %1047 = shalt.err (!%p1044_p4)
}
 0x340   :  { %s1048_s29 = scalar_lea.hbm %s1327_s5, 16 }
 0x341   :  { %p1049_p5 = scmp.ne.s32.totalorder %s1327_s5, %s1048_s29  ;;  %p1052_p6 = scmp.lt.u32.totalorder %s1048_s29, %s1327_s5 }
 0x343   :  { %p1054_p7 = pnand %p1052_p6, %p1049_p5 }
 0x345   :  { %1057 = shalt.err (!%p1054_p7)
}
 0x346   :  { %767 = dma.vmem_to_hbm [thread:$0]  %s765_s4, 16, %s1327_s5, [#allocation4]  }
 0x347   :  { %1058 = dma.done.wait [#allocation4], 16  }
 0x348   :  { %1059 = vsyncadd [#allocation4], 4294967280 }
 0x349   :  { %771 = vsyncpa [#allocation4], 1 }

</bundles_post_ra>
